<compile_context>
chip_gen: v7x
topology: tpu7x:2x2x1
jax: 0.10.0
libtpu: 0.0.40
codegen_flags: <defaults>
</compile_context>

<pallas_src>
import functools
import math

import jax
import jax.numpy as jnp
from jax.experimental import pallas as pl
from jax.experimental.pallas import tpu as pltpu


# ---------------------------------------------------------------------------
# Pallas kernels
# ---------------------------------------------------------------------------
def _mm_bn_kernel(a_ref, b_ref, s_ref, t_ref, o_ref, *, relu):
    """out = act((a @ b) * scale + shift); bf16 operands, f32 accumulate."""
    acc = jnp.dot(a_ref[...], b_ref[...], preferred_element_type=jnp.float32)
    y = acc * s_ref[...] + t_ref[...]
    if relu:
        y = jnp.maximum(y, 0.0)
    o_ref[...] = y.astype(o_ref.dtype)


def _mm_bn_res_kernel(a_ref, b_ref, s_ref, t_ref, r_ref, o_ref, *, relu):
    """out = act((a @ b) * scale + shift + residual)."""
    acc = jnp.dot(a_ref[...], b_ref[...], preferred_element_type=jnp.float32)
    y = acc * s_ref[...] + t_ref[...] + r_ref[...].astype(jnp.float32)
    if relu:
        y = jnp.maximum(y, 0.0)
    o_ref[...] = y.astype(o_ref.dtype)


def _mm_bn_ds_kernel(a_ref, b_ref, s_ref, t_ref,
                     ra_ref, rb_ref, rs_ref, rt_ref, o_ref, *, relu):
    """out = act((a@b)*s + t + ((ra@rb)*rs + rt)); downsample conv+BN fused."""
    acc = jnp.dot(a_ref[...], b_ref[...], preferred_element_type=jnp.float32)
    res = jnp.dot(ra_ref[...], rb_ref[...], preferred_element_type=jnp.float32)
    y = acc * s_ref[...] + t_ref[...] + (res * rs_ref[...] + rt_ref[...])
    if relu:
        y = jnp.maximum(y, 0.0)
    o_ref[...] = y.astype(o_ref.dtype)


def _conv3x3_bn_relu_kernel(x_ref, w_ref, s_ref, t_ref, o_ref, *, Ho, Wo):
    """3x3 conv (stride 1 over a pre-padded NHWC tile) + BN + ReLU.

    x_ref: (B, Ho+2, Wo+2, Cin) bf16     w_ref: (3, 3, Cin, Cout) bf16
    o_ref: (B*Ho*Wo, Cout)               scale/shift: (1, Cout) f32
    Nine tap-matmuls accumulate into an f32 value -- no im2col in HBM.
    """
    B = x_ref.shape[0]
    Cin = x_ref.shape[-1]
    Cout = w_ref.shape[-1]
    acc = jnp.zeros((B * Ho * Wo, Cout), jnp.float32)
    for kh in range(3):
        for kw in range(3):
            tap = x_ref[:, kh:kh + Ho, kw:kw + Wo, :]
            tap = tap.reshape(B * Ho * Wo, Cin)
            acc = acc + jnp.dot(tap, w_ref[kh, kw],
                                preferred_element_type=jnp.float32)
    y = acc * s_ref[...] + t_ref[...]
    o_ref[...] = jnp.maximum(y, 0.0).astype(o_ref.dtype)


# ---------------------------------------------------------------------------
# Pallas wrappers
# ---------------------------------------------------------------------------
def _pick_tm(m):
    for t in (256, 128, 64, 32, 16, 8):
        if m % t == 0:
            return t
    return m  # fall back to full extent (always legal as a block dim)


def fused_matmul_bn(a, b, scale, shift, *, relu, out_dtype,
                    residual=None, ds=None):
    """a:(M,K) @ b:(K,N) + folded-BN (+residual | +fused downsample) (+ReLU).

    Operands are cast to bf16 (MXU-native); accumulation and the epilogue are
    f32.  `ds` = (ra, rb, r_scale, r_shift) fuses the 1x1 downsample conv+BN
    that produces the residual.
    """
    M, K = a.shape
    K2, N = b.shape
    assert K == K2
    tm = _pick_tm(M)
    tn = N                       # N <= 256 here: full-N lane-dense tiles
    grid = (M // tm, 1)

    a = a.astype(jnp.bfloat16)
    b = b.astype(jnp.bfloat16)
    s2 = scale.reshape(1, N).astype(jnp.float32)
    t2 = shift.reshape(1, N).astype(jnp.float32)

    in_specs = [
        pl.BlockSpec((tm, K), lambda i, j: (i, 0)),
        pl.BlockSpec((K, tn), lambda i, j: (0, j)),
        pl.BlockSpec((1, tn), lambda i, j: (0, j)),
        pl.BlockSpec((1, tn), lambda i, j: (0, j)),
    ]
    args = [a, b, s2, t2]
    flops = 2 * M * N * K
    bytes_acc = (a.size + b.size) * 2 + (s2.size + t2.size) * 4 \
        + M * N * jnp.dtype(out_dtype).itemsize

    if ds is not None:
        ra, rb, rs, rt = ds
        Kd = ra.shape[1]
        ra = ra.astype(jnp.bfloat16)
        rb = rb.astype(jnp.bfloat16)
        rs2 = rs.reshape(1, N).astype(jnp.float32)
        rt2 = rt.reshape(1, N).astype(jnp.float32)
        in_specs += [
            pl.BlockSpec((tm, Kd), lambda i, j: (i, 0)),
            pl.BlockSpec((Kd, tn), lambda i, j: (0, j)),
            pl.BlockSpec((1, tn), lambda i, j: (0, j)),
            pl.BlockSpec((1, tn), lambda i, j: (0, j)),
        ]
        args += [ra, rb, rs2, rt2]
        kernel = functools.partial(_mm_bn_ds_kernel, relu=relu)
        flops += 2 * M * N * Kd
        bytes_acc += (ra.size + rb.size) * 2 + 2 * N * 4
    elif residual is not None:
        in_specs.append(pl.BlockSpec((tm, tn), lambda i, j: (i, j)))
        args.append(residual)
        kernel = functools.partial(_mm_bn_res_kernel, relu=relu)
        bytes_acc += residual.size * residual.dtype.itemsize
    else:
        kernel = functools.partial(_mm_bn_kernel, relu=relu)

    return pl.pallas_call(
        kernel,
        out_shape=jax.ShapeDtypeStruct((M, N), out_dtype),
        grid=grid,
        in_specs=in_specs,
        out_specs=pl.BlockSpec((tm, tn), lambda i, j: (i, j)),
        compiler_params=pltpu.CompilerParams(
            dimension_semantics=("parallel", "parallel")),
        cost_estimate=pl.CostEstimate(
            flops=int(flops), transcendentals=0,
            bytes_accessed=int(bytes_acc)),
    )(*args)


def conv3x3_bn_relu(x_nhwc, w, scale, shift, *, stride):
    """3x3 conv (pad=1) + BN + ReLU.  x_nhwc: (B,H,W,Cin), w: (3,3,Cin,Cout).

    stride > 1 is handled by computing the stride-1 output and subsampling in
    glue, which is exact for a padded 3x3 conv and avoids strided in-kernel
    reads; the redundant compute is negligible at these sizes.
    """
    B, H, W, Cin = x_nhwc.shape
    Cout = w.shape[-1]
    xp = jnp.pad(x_nhwc, ((0, 0), (1, 1), (1, 1), (0, 0))).astype(jnp.bfloat16)
    M = B * H * W
    out = pl.pallas_call(
        functools.partial(_conv3x3_bn_relu_kernel, Ho=H, Wo=W),
        out_shape=jax.ShapeDtypeStruct((M, Cout), jnp.bfloat16),
        cost_estimate=pl.CostEstimate(
            flops=int(2 * M * Cout * Cin * 9), transcendentals=0,
            bytes_accessed=int(xp.size * 2 + w.size * 2 + 2 * Cout * 4
                               + M * Cout * 2)),
    )(xp, w.astype(jnp.bfloat16),
      scale.reshape(1, Cout).astype(jnp.float32),
      shift.reshape(1, Cout).astype(jnp.float32))
    out = out.reshape(B, H, W, Cout)
    if stride != 1:
        out = out[:, ::stride, ::stride, :]
    return out


# ---------------------------------------------------------------------------
# Bottleneck forward (matches the PyTorch module's forward())
# ---------------------------------------------------------------------------
def bottleneck_forward(x_nchw, params, *, stride=1):
    x = jnp.transpose(x_nchw, (0, 2, 3, 1)).astype(jnp.float32)   # NHWC
    B, H, W, Cin = x.shape
    planes = params["w1"].shape[1]

    # conv1 (1x1) + bn1 + relu  -> bf16 activation
    out1 = fused_matmul_bn(
        x.reshape(B * H * W, Cin), params["w1"], params["s1"], params["b1"],
        relu=True, out_dtype=jnp.bfloat16)
    out1 = out1.reshape(B, H, W, planes)

    # conv2 (3x3, stride, pad=1) + bn2 + relu -> bf16 activation
    out2 = conv3x3_bn_relu(out1, params["w2"], params["s2"], params["b2"],
                           stride=stride)
    Bo, Ho, Wo, _ = out2.shape
    M = Bo * Ho * Wo

    # conv3 (1x1) + bn3 + residual + final relu, all fused in one kernel.
    if "wd" in params:
        # downsample = 1x1 conv (stride) + BN, fused as a second dot.
        x_ds = x[:, ::stride, ::stride, :]
        ds = (x_ds.reshape(M, Cin), params["wd"], params["sd"], params["bd"])
        out3 = fused_matmul_bn(
            out2.reshape(M, planes), params["w3"], params["s3"], params["b3"],
            relu=True, out_dtype=jnp.float32, ds=ds)
    else:
        out3 = fused_matmul_bn(
            out2.reshape(M, planes), params["w3"], params["s3"], params["b3"],
            relu=True, out_dtype=jnp.float32, residual=x.reshape(M, Cin))

    Cout = params["w3"].shape[1]
    out3 = out3.reshape(Bo, Ho, Wo, Cout)
    return jnp.transpose(out3, (0, 3, 1, 2))                      # back to NCHW


# ---------------------------------------------------------------------------
# Deterministic parameter construction (shapes from the PyTorch __init__)
# ---------------------------------------------------------------------------
def init_params(key, inplanes, planes, *, downsample=False):
    expansion = 4
    keys = jax.random.split(key, 4)

    def conv_w(k_, shape, fan):
        return jax.random.normal(k_, shape, jnp.float32) * math.sqrt(2.0 / fan)

    def bn(c):
        gamma = jnp.ones((c,), jnp.float32)
        beta = jnp.zeros((c,), jnp.float32)
        mean = jnp.zeros((c,), jnp.float32)
        var = jnp.ones((c,), jnp.float32)
        scale = gamma / jnp.sqrt(var + 1e-5)
        shift = beta - mean * scale
        return scale, shift

    p = {}
    p["w1"] = conv_w(keys[0], (inplanes, planes), planes)             # 1x1
    p["s1"], p["b1"] = bn(planes)
    p["w2"] = conv_w(keys[1], (3, 3, planes, planes), 9 * planes)     # 3x3 HWIO
    p["s2"], p["b2"] = bn(planes)
    p["w3"] = conv_w(keys[2], (planes, planes * expansion),           # 1x1
                     planes * expansion)
    p["s3"], p["b3"] = bn(planes * expansion)
    if downsample:
        p["wd"] = conv_w(keys[3], (inplanes, planes * expansion),
                         planes * expansion)
        p["sd"], p["bd"] = bn(planes * expansion)
    return p


# ---------------------------------------------------------------------------
if __name__ == "__main__":
    key = jax.random.PRNGKey(0)
    k_p1, k_p2, k_x1, k_x2 = jax.random.split(key, 4)

    fwd = jax.jit(bottleneck_forward, static_argnames="stride")

    # Case 1: default module args (stride=1, downsample=None) -> identity add.
    p1 = init_params(k_p1, inplanes=128, planes=32, downsample=False)
    x1 = jax.random.normal(k_x1, (2, 128, 16, 16), jnp.float32)   # NCHW
    y1 = jax.block_until_ready(fwd(x1, p1, stride=1))
    assert y1.shape == (2, 128, 16, 16), y1.shape
    assert bool(jnp.all(jnp.isfinite(y1)))
    assert bool(jnp.all(y1 >= 0.0))           # final ReLU

    # Case 2: stride-2 block with a 1x1-conv+BN downsample (fused in conv3).
    p2 = init_params(k_p2, inplanes=64, planes=32, downsample=True)
    x2 = jax.random.normal(k_x2, (2, 64, 16, 16), jnp.float32)    # NCHW
    y2 = jax.block_until_ready(fwd(x2, p2, stride=2))
    assert y2.shape == (2, 128, 8, 8), y2.shape
    assert bool(jnp.all(jnp.isfinite(y2)))
    assert bool(jnp.all(y2 >= 0.0))

    print("KERNEL_OK")
</pallas_src>

<mosaic_0001>
module attributes {stable_mosaic.version = 11 : i64} {
  func.func @_mm_bn_kernel(%arg0: i32, %arg1: i32, %arg2: memref<256x128xbf16, #tpu.memory_space<vmem>>, %arg3: memref<128x32xbf16, #tpu.memory_space<vmem>>, %arg4: memref<1x32xf32, #tpu.memory_space<vmem>>, %arg5: memref<1x32xf32, #tpu.memory_space<vmem>>, %arg6: memref<256x32xbf16, #tpu.memory_space<vmem>>) attributes {dimension_semantics = [#tpu.dimension_semantics<parallel>, #tpu.dimension_semantics<parallel>], iteration_bounds = array<i64: 2, 1>, scalar_prefetch = 0 : i64, scratch_operands = 0 : i64, tpu.core_type = #tpu.core_type<tc>, window_params = [{transform_indices = @transform_0, window_bounds = array<i64: 256, 128>}, {transform_indices = @transform_1, window_bounds = array<i64: 128, 32>}, {transform_indices = @transform_2, window_bounds = array<i64: 1, 32>}, {transform_indices = @transform_3, window_bounds = array<i64: 1, 32>}, {transform_indices = @transform_4, window_bounds = array<i64: 256, 32>}]} {
    %c0 = arith.constant 0 : index
    %c0_0 = arith.constant 0 : index
    %0 = vector.load %arg2[%c0, %c0_0] : memref<256x128xbf16, #tpu.memory_space<vmem>>, vector<256x128xbf16>
    %c0_1 = arith.constant 0 : index
    %c0_2 = arith.constant 0 : index
    %1 = vector.load %arg3[%c0_1, %c0_2] : memref<128x32xbf16, #tpu.memory_space<vmem>>, vector<128x32xbf16>
    %cst = arith.constant dense<0.000000e+00> : vector<256x32xf32>
    %2 = tpu.matmul %0, %1, %cst {dimension_numbers = #tpu.dot_dimension_numbers<[1], [0], [0], [1], [0, 0, 1, 1], [], []>} : vector<256x128xbf16>, vector<128x32xbf16>, vector<256x32xf32> -> vector<256x32xf32>
    %c0_3 = arith.constant 0 : index
    %c0_4 = arith.constant 0 : index
    %3 = vector.load %arg4[%c0_3, %c0_4] : memref<1x32xf32, #tpu.memory_space<vmem>>, vector<1x32xf32>
    %4 = vector.broadcast %3 : vector<1x32xf32> to vector<256x32xf32>
    %5 = arith.mulf %2, %4 : vector<256x32xf32>
    %c0_5 = arith.constant 0 : index
    %c0_6 = arith.constant 0 : index
    %6 = vector.load %arg5[%c0_5, %c0_6] : memref<1x32xf32, #tpu.memory_space<vmem>>, vector<1x32xf32>
    %7 = vector.broadcast %6 : vector<1x32xf32> to vector<256x32xf32>
    %8 = arith.addf %5, %7 : vector<256x32xf32>
    %cst_7 = arith.constant 0.000000e+00 : f32
    %9 = vector.broadcast %cst_7 : f32 to vector<256x32xf32>
    %10 = arith.maximumf %8, %9 : vector<256x32xf32>
    %11 = arith.truncf %10 : vector<256x32xf32> to vector<256x32xbf16>
    %c0_8 = arith.constant 0 : index
    %c0_9 = arith.constant 0 : index
    %12 = vector.load %arg6[%c0_8, %c0_9] : memref<256x32xbf16, #tpu.memory_space<vmem>>, vector<256x32xbf16>
    tpu.vector_store %arg6[%c0_8, %c0_9], %11 {strides = array<i32>} : memref<256x32xbf16, #tpu.memory_space<vmem>>, vector<256x32xbf16>,
    return
  }
  func.func @transform_0(%arg0: i32, %arg1: i32) -> (i32, i32) {
    %c0_i32 = arith.constant 0 : i32
    %c0_i32_0 = arith.constant 0 : i32
    return %arg0, %c0_i32 : i32, i32
  }
  func.func @transform_1(%arg0: i32, %arg1: i32) -> (i32, i32) {
    %c0_i32 = arith.constant 0 : i32
    %c0_i32_0 = arith.constant 0 : i32
    return %c0_i32, %arg1 : i32, i32
  }
  func.func @transform_2(%arg0: i32, %arg1: i32) -> (i32, i32) {
    %c0_i32 = arith.constant 0 : i32
    %c0_i32_0 = arith.constant 0 : i32
    return %c0_i32, %arg1 : i32, i32
  }
  func.func @transform_3(%arg0: i32, %arg1: i32) -> (i32, i32) {
    %c0_i32 = arith.constant 0 : i32
    %c0_i32_0 = arith.constant 0 : i32
    return %c0_i32, %arg1 : i32, i32
  }
  func.func @transform_4(%arg0: i32, %arg1: i32) -> (i32, i32) {
    %c0_i32 = arith.constant 0 : i32
    return %arg0, %arg1 : i32, i32
  }
}

module attributes {stable_mosaic.version = 11 : i64} {
  func.func @_conv3x3_bn_relu_kernel(%arg0: memref<2x18x18x32xbf16, #tpu.memory_space<vmem>>, %arg1: memref<3x3x32x32xbf16, #tpu.memory_space<vmem>>, %arg2: memref<1x32xf32, #tpu.memory_space<vmem>>, %arg3: memref<1x32xf32, #tpu.memory_space<vmem>>, %arg4: memref<512x32xbf16, #tpu.memory_space<vmem>>) attributes {dimension_semantics = [], scalar_prefetch = 0 : i64, scratch_operands = 0 : i64, tpu.core_type = #tpu.core_type<tc>} {
    %cst = arith.constant 0.000000e+00 : f32
    %0 = vector.broadcast %cst : f32 to vector<512x32xf32>
    %c0 = arith.constant 0 : index
    %c0_0 = arith.constant 0 : index
    %c0_1 = arith.constant 0 : index
    %c0_2 = arith.constant 0 : index
    %1 = vector.load %arg0[%c0, %c0_0, %c0_1, %c0_2] : memref<2x18x18x32xbf16, #tpu.memory_space<vmem>>, vector<2x16x16x32xbf16>
    %2 = vector.shape_cast %1 : vector<2x16x16x32xbf16> to vector<512x32xbf16>
    %c0_3 = arith.constant 0 : index
    %c0_4 = arith.constant 0 : index
    %c0_5 = arith.constant 0 : index
    %c0_6 = arith.constant 0 : index
    %3 = vector.load %arg1[%c0_3, %c0_4, %c0_5, %c0_6] : memref<3x3x32x32xbf16, #tpu.memory_space<vmem>>, vector<1x1x32x32xbf16>
    %4 = vector.shape_cast %3 : vector<1x1x32x32xbf16> to vector<32x32xbf16>
    %cst_7 = arith.constant dense<0.000000e+00> : vector<512x32xf32>
    %5 = tpu.matmul %2, %4, %cst_7 {dimension_numbers = #tpu.dot_dimension_numbers<[1], [0], [0], [1], [0, 0, 1, 1], [], []>} : vector<512x32xbf16>, vector<32x32xbf16>, vector<512x32xf32> -> vector<512x32xf32>
    %6 = arith.addf %0, %5 : vector<512x32xf32>
    %c0_8 = arith.constant 0 : index
    %c0_9 = arith.constant 0 : index
    %c1 = arith.constant 1 : index
    %c0_10 = arith.constant 0 : index
    %7 = vector.load %arg0[%c0_8, %c0_9, %c1, %c0_10] : memref<2x18x18x32xbf16, #tpu.memory_space<vmem>>, vector<2x16x16x32xbf16>
    %8 = vector.shape_cast %7 : vector<2x16x16x32xbf16> to vector<512x32xbf16>
    %c0_11 = arith.constant 0 : index
    %c1_12 = arith.constant 1 : index
    %c0_13 = arith.constant 0 : index
    %c0_14 = arith.constant 0 : index
    %9 = vector.load %arg1[%c0_11, %c1_12, %c0_13, %c0_14] : memref<3x3x32x32xbf16, #tpu.memory_space<vmem>>, vector<1x1x32x32xbf16>
    %10 = vector.shape_cast %9 : vector<1x1x32x32xbf16> to vector<32x32xbf16>
    %cst_15 = arith.constant dense<0.000000e+00> : vector<512x32xf32>
    %11 = tpu.matmul %8, %10, %cst_15 {dimension_numbers = #tpu.dot_dimension_numbers<[1], [0], [0], [1], [0, 0, 1, 1], [], []>} : vector<512x32xbf16>, vector<32x32xbf16>, vector<512x32xf32> -> vector<512x32xf32>
    %12 = arith.addf %6, %11 : vector<512x32xf32>
    %c0_16 = arith.constant 0 : index
    %c0_17 = arith.constant 0 : index
    %c2 = arith.constant 2 : index
    %c0_18 = arith.constant 0 : index
    %13 = vector.load %arg0[%c0_16, %c0_17, %c2, %c0_18] : memref<2x18x18x32xbf16, #tpu.memory_space<vmem>>, vector<2x16x16x32xbf16>
    %14 = vector.shape_cast %13 : vector<2x16x16x32xbf16> to vector<512x32xbf16>
    %c0_19 = arith.constant 0 : index
    %c2_20 = arith.constant 2 : index
    %c0_21 = arith.constant 0 : index
    %c0_22 = arith.constant 0 : index
    %15 = vector.load %arg1[%c0_19, %c2_20, %c0_21, %c0_22] : memref<3x3x32x32xbf16, #tpu.memory_space<vmem>>, vector<1x1x32x32xbf16>
    %16 = vector.shape_cast %15 : vector<1x1x32x32xbf16> to vector<32x32xbf16>
    %cst_23 = arith.constant dense<0.000000e+00> : vector<512x32xf32>
    %17 = tpu.matmul %14, %16, %cst_23 {dimension_numbers = #tpu.dot_dimension_numbers<[1], [0], [0], [1], [0, 0, 1, 1], [], []>} : vector<512x32xbf16>, vector<32x32xbf16>, vector<512x32xf32> -> vector<512x32xf32>
    %18 = arith.addf %12, %17 : vector<512x32xf32>
    %c0_24 = arith.constant 0 : index
    %c1_25 = arith.constant 1 : index
    %c0_26 = arith.constant 0 : index
    %c0_27 = arith.constant 0 : index
    %19 = vector.load %arg0[%c0_24, %c1_25, %c0_26, %c0_27] : memref<2x18x18x32xbf16, #tpu.memory_space<vmem>>, vector<2x16x16x32xbf16>
    %20 = vector.shape_cast %19 : vector<2x16x16x32xbf16> to vector<512x32xbf16>
    %c1_28 = arith.constant 1 : index
    %c0_29 = arith.constant 0 : index
    %c0_30 = arith.constant 0 : index
    %c0_31 = arith.constant 0 : index
    %21 = vector.load %arg1[%c1_28, %c0_29, %c0_30, %c0_31] : memref<3x3x32x32xbf16, #tpu.memory_space<vmem>>, vector<1x1x32x32xbf16>
    %22 = vector.shape_cast %21 : vector<1x1x32x32xbf16> to vector<32x32xbf16>
    %cst_32 = arith.constant dense<0.000000e+00> : vector<512x32xf32>
    %23 = tpu.matmul %20, %22, %cst_32 {dimension_numbers = #tpu.dot_dimension_numbers<[1], [0], [0], [1], [0, 0, 1, 1], [], []>} : vector<512x32xbf16>, vector<32x32xbf16>, vector<512x32xf32> -> vector<512x32xf32>
    %24 = arith.addf %18, %23 : vector<512x32xf32>
    %c0_33 = arith.constant 0 : index
    %c1_34 = arith.constant 1 : index
    %c1_35 = arith.constant 1 : index
    %c0_36 = arith.constant 0 : index
    %25 = vector.load %arg0[%c0_33, %c1_34, %c1_35, %c0_36] : memref<2x18x18x32xbf16, #tpu.memory_space<vmem>>, vector<2x16x16x32xbf16>
    %26 = vector.shape_cast %25 : vector<2x16x16x32xbf16> to vector<512x32xbf16>
    %c1_37 = arith.constant 1 : index
    %c1_38 = arith.constant 1 : index
    %c0_39 = arith.constant 0 : index
    %c0_40 = arith.constant 0 : index
    %27 = vector.load %arg1[%c1_37, %c1_38, %c0_39, %c0_40] : memref<3x3x32x32xbf16, #tpu.memory_space<vmem>>, vector<1x1x32x32xbf16>
    %28 = vector.shape_cast %27 : vector<1x1x32x32xbf16> to vector<32x32xbf16>
    %cst_41 = arith.constant dense<0.000000e+00> : vector<512x32xf32>
    %29 = tpu.matmul %26, %28, %cst_41 {dimension_numbers = #tpu.dot_dimension_numbers<[1], [0], [0], [1], [0, 0, 1, 1], [], []>} : vector<512x32xbf16>, vector<32x32xbf16>, vector<512x32xf32> -> vector<512x32xf32>
    %30 = arith.addf %24, %29 : vector<512x32xf32>
    %c0_42 = arith.constant 0 : index
    %c1_43 = arith.constant 1 : index
    %c2_44 = arith.constant 2 : index
    %c0_45 = arith.constant 0 : index
    %31 = vector.load %arg0[%c0_42, %c1_43, %c2_44, %c0_45] : memref<2x18x18x32xbf16, #tpu.memory_space<vmem>>, vector<2x16x16x32xbf16>
    %32 = vector.shape_cast %31 : vector<2x16x16x32xbf16> to vector<512x32xbf16>
    %c1_46 = arith.constant 1 : index
    %c2_47 = arith.constant 2 : index
    %c0_48 = arith.constant 0 : index
    %c0_49 = arith.constant 0 : index
    %33 = vector.load %arg1[%c1_46, %c2_47, %c0_48, %c0_49] : memref<3x3x32x32xbf16, #tpu.memory_space<vmem>>, vector<1x1x32x32xbf16>
    %34 = vector.shape_cast %33 : vector<1x1x32x32xbf16> to vector<32x32xbf16>
    %cst_50 = arith.constant dense<0.000000e+00> : vector<512x32xf32>
    %35 = tpu.matmul %32, %34, %cst_50 {dimension_numbers = #tpu.dot_dimension_numbers<[1], [0], [0], [1], [0, 0, 1, 1], [], []>} : vector<512x32xbf16>, vector<32x32xbf16>, vector<512x32xf32> -> vector<512x32xf32>
    %36 = arith.addf %30, %35 : vector<512x32xf32>
    %c0_51 = arith.constant 0 : index
    %c2_52 = arith.constant 2 : index
    %c0_53 = arith.constant 0 : index
    %c0_54 = arith.constant 0 : index
    %37 = vector.load %arg0[%c0_51, %c2_52, %c0_53, %c0_54] : memref<2x18x18x32xbf16, #tpu.memory_space<vmem>>, vector<2x16x16x32xbf16>
    %38 = vector.shape_cast %37 : vector<2x16x16x32xbf16> to vector<512x32xbf16>
    %c2_55 = arith.constant 2 : index
    %c0_56 = arith.constant 0 : index
    %c0_57 = arith.constant 0 : index
    %c0_58 = arith.constant 0 : index
    %39 = vector.load %arg1[%c2_55, %c0_56, %c0_57, %c0_58] : memref<3x3x32x32xbf16, #tpu.memory_space<vmem>>, vector<1x1x32x32xbf16>
    %40 = vector.shape_cast %39 : vector<1x1x32x32xbf16> to vector<32x32xbf16>
    %cst_59 = arith.constant dense<0.000000e+00> : vector<512x32xf32>
    %41 = tpu.matmul %38, %40, %cst_59 {dimension_numbers = #tpu.dot_dimension_numbers<[1], [0], [0], [1], [0, 0, 1, 1], [], []>} : vector<512x32xbf16>, vector<32x32xbf16>, vector<512x32xf32> -> vector<512x32xf32>
    %42 = arith.addf %36, %41 : vector<512x32xf32>
    %c0_60 = arith.constant 0 : index
    %c2_61 = arith.constant 2 : index
    %c1_62 = arith.constant 1 : index
    %c0_63 = arith.constant 0 : index
    %43 = vector.load %arg0[%c0_60, %c2_61, %c1_62, %c0_63] : memref<2x18x18x32xbf16, #tpu.memory_space<vmem>>, vector<2x16x16x32xbf16>
    %44 = vector.shape_cast %43 : vector<2x16x16x32xbf16> to vector<512x32xbf16>
    %c2_64 = arith.constant 2 : index
    %c1_65 = arith.constant 1 : index
    %c0_66 = arith.constant 0 : index
    %c0_67 = arith.constant 0 : index
    %45 = vector.load %arg1[%c2_64, %c1_65, %c0_66, %c0_67] : memref<3x3x32x32xbf16, #tpu.memory_space<vmem>>, vector<1x1x32x32xbf16>
    %46 = vector.shape_cast %45 : vector<1x1x32x32xbf16> to vector<32x32xbf16>
    %cst_68 = arith.constant dense<0.000000e+00> : vector<512x32xf32>
    %47 = tpu.matmul %44, %46, %cst_68 {dimension_numbers = #tpu.dot_dimension_numbers<[1], [0], [0], [1], [0, 0, 1, 1], [], []>} : vector<512x32xbf16>, vector<32x32xbf16>, vector<512x32xf32> -> vector<512x32xf32>
    %48 = arith.addf %42, %47 : vector<512x32xf32>
    %c0_69 = arith.constant 0 : index
    %c2_70 = arith.constant 2 : index
    %c2_71 = arith.constant 2 : index
    %c0_72 = arith.constant 0 : index
    %49 = vector.load %arg0[%c0_69, %c2_70, %c2_71, %c0_72] : memref<2x18x18x32xbf16, #tpu.memory_space<vmem>>, vector<2x16x16x32xbf16>
    %50 = vector.shape_cast %49 : vector<2x16x16x32xbf16> to vector<512x32xbf16>
    %c2_73 = arith.constant 2 : index
    %c2_74 = arith.constant 2 : index
    %c0_75 = arith.constant 0 : index
    %c0_76 = arith.constant 0 : index
    %51 = vector.load %arg1[%c2_73, %c2_74, %c0_75, %c0_76] : memref<3x3x32x32xbf16, #tpu.memory_space<vmem>>, vector<1x1x32x32xbf16>
    %52 = vector.shape_cast %51 : vector<1x1x32x32xbf16> to vector<32x32xbf16>
    %cst_77 = arith.constant dense<0.000000e+00> : vector<512x32xf32>
    %53 = tpu.matmul %50, %52, %cst_77 {dimension_numbers = #tpu.dot_dimension_numbers<[1], [0], [0], [1], [0, 0, 1, 1], [], []>} : vector<512x32xbf16>, vector<32x32xbf16>, vector<512x32xf32> -> vector<512x32xf32>
    %54 = arith.addf %48, %53 : vector<512x32xf32>
    %c0_78 = arith.constant 0 : index
    %c0_79 = arith.constant 0 : index
    %55 = vector.load %arg2[%c0_78, %c0_79] : memref<1x32xf32, #tpu.memory_space<vmem>>, vector<1x32xf32>
    %56 = vector.broadcast %55 : vector<1x32xf32> to vector<512x32xf32>
    %57 = arith.mulf %54, %56 : vector<512x32xf32>
    %c0_80 = arith.constant 0 : index
    %c0_81 = arith.constant 0 : index
    %58 = vector.load %arg3[%c0_80, %c0_81] : memref<1x32xf32, #tpu.memory_space<vmem>>, vector<1x32xf32>
    %59 = vector.broadcast %58 : vector<1x32xf32> to vector<512x32xf32>
    %60 = arith.addf %57, %59 : vector<512x32xf32>
    %cst_82 = arith.constant 0.000000e+00 : f32
    %61 = vector.broadcast %cst_82 : f32 to vector<512x32xf32>
    %62 = arith.maximumf %60, %61 : vector<512x32xf32>
    %63 = arith.truncf %62 : vector<512x32xf32> to vector<512x32xbf16>
    %c0_83 = arith.constant 0 : index
    %c0_84 = arith.constant 0 : index
    %64 = vector.load %arg4[%c0_83, %c0_84] : memref<512x32xbf16, #tpu.memory_space<vmem>>, vector<512x32xbf16>
    tpu.vector_store %arg4[%c0_83, %c0_84], %63 {strides = array<i32>} : memref<512x32xbf16, #tpu.memory_space<vmem>>, vector<512x32xbf16>,
    return
  }
}

module attributes {stable_mosaic.version = 11 : i64} {
  func.func @_mm_bn_res_kernel(%arg0: i32, %arg1: i32, %arg2: memref<256x32xbf16, #tpu.memory_space<vmem>>, %arg3: memref<32x128xbf16, #tpu.memory_space<vmem>>, %arg4: memref<1x128xf32, #tpu.memory_space<vmem>>, %arg5: memref<1x128xf32, #tpu.memory_space<vmem>>, %arg6: memref<256x128xf32, #tpu.memory_space<vmem>>, %arg7: memref<256x128xf32, #tpu.memory_space<vmem>>) attributes {dimension_semantics = [#tpu.dimension_semantics<parallel>, #tpu.dimension_semantics<parallel>], iteration_bounds = array<i64: 2, 1>, scalar_prefetch = 0 : i64, scratch_operands = 0 : i64, tpu.core_type = #tpu.core_type<tc>, window_params = [{transform_indices = @transform_0, window_bounds = array<i64: 256, 32>}, {transform_indices = @transform_1, window_bounds = array<i64: 32, 128>}, {transform_indices = @transform_2, window_bounds = array<i64: 1, 128>}, {transform_indices = @transform_3, window_bounds = array<i64: 1, 128>}, {transform_indices = @transform_4, window_bounds = array<i64: 256, 128>}, {transform_indices = @transform_5, window_bounds = array<i64: 256, 128>}]} {
    %c0 = arith.constant 0 : index
    %c0_0 = arith.constant 0 : index
    %0 = vector.load %arg2[%c0, %c0_0] : memref<256x32xbf16, #tpu.memory_space<vmem>>, vector<256x32xbf16>
    %c0_1 = arith.constant 0 : index
    %c0_2 = arith.constant 0 : index
    %1 = vector.load %arg3[%c0_1, %c0_2] : memref<32x128xbf16, #tpu.memory_space<vmem>>, vector<32x128xbf16>
    %cst = arith.constant dense<0.000000e+00> : vector<256x128xf32>
    %2 = tpu.matmul %0, %1, %cst {dimension_numbers = #tpu.dot_dimension_numbers<[1], [0], [0], [1], [0, 0, 1, 1], [], []>} : vector<256x32xbf16>, vector<32x128xbf16>, vector<256x128xf32> -> vector<256x128xf32>
    %c0_3 = arith.constant 0 : index
    %c0_4 = arith.constant 0 : index
    %3 = vector.load %arg4[%c0_3, %c0_4] : memref<1x128xf32, #tpu.memory_space<vmem>>, vector<1x128xf32>
    %4 = vector.broadcast %3 : vector<1x128xf32> to vector<256x128xf32>
    %5 = arith.mulf %2, %4 : vector<256x128xf32>
    %c0_5 = arith.constant 0 : index
    %c0_6 = arith.constant 0 : index
    %6 = vector.load %arg5[%c0_5, %c0_6] : memref<1x128xf32, #tpu.memory_space<vmem>>, vector<1x128xf32>
    %7 = vector.broadcast %6 : vector<1x128xf32> to vector<256x128xf32>
    %8 = arith.addf %5, %7 : vector<256x128xf32>
    %c0_7 = arith.constant 0 : index
    %c0_8 = arith.constant 0 : index
    %9 = vector.load %arg6[%c0_7, %c0_8] : memref<256x128xf32, #tpu.memory_space<vmem>>, vector<256x128xf32>
    %10 = arith.addf %8, %9 : vector<256x128xf32>
    %cst_9 = arith.constant 0.000000e+00 : f32
    %11 = vector.broadcast %cst_9 : f32 to vector<256x128xf32>
    %12 = arith.maximumf %10, %11 : vector<256x128xf32>
    %c0_10 = arith.constant 0 : index
    %c0_11 = arith.constant 0 : index
    %13 = vector.load %arg7[%c0_10, %c0_11] : memref<256x128xf32, #tpu.memory_space<vmem>>, vector<256x128xf32>
    tpu.vector_store %arg7[%c0_10, %c0_11], %12 {strides = array<i32>} : memref<256x128xf32, #tpu.memory_space<vmem>>, vector<256x128xf32>,
    return
  }
  func.func @transform_0(%arg0: i32, %arg1: i32) -> (i32, i32) {
    %c0_i32 = arith.constant 0 : i32
    %c0_i32_0 = arith.constant 0 : i32
    return %arg0, %c0_i32 : i32, i32
  }
  func.func @transform_1(%arg0: i32, %arg1: i32) -> (i32, i32) {
    %c0_i32 = arith.constant 0 : i32
    %c0_i32_0 = arith.constant 0 : i32
    return %c0_i32, %arg1 : i32, i32
  }
  func.func @transform_2(%arg0: i32, %arg1: i32) -> (i32, i32) {
    %c0_i32 = arith.constant 0 : i32
    %c0_i32_0 = arith.constant 0 : i32
    return %c0_i32, %arg1 : i32, i32
  }
  func.func @transform_3(%arg0: i32, %arg1: i32) -> (i32, i32) {
    %c0_i32 = arith.constant 0 : i32
    %c0_i32_0 = arith.constant 0 : i32
    return %c0_i32, %arg1 : i32, i32
  }
  func.func @transform_4(%arg0: i32, %arg1: i32) -> (i32, i32) {
    %c0_i32 = arith.constant 0 : i32
    return %arg0, %arg1 : i32, i32
  }
  func.func @transform_5(%arg0: i32, %arg1: i32) -> (i32, i32) {
    %c0_i32 = arith.constant 0 : i32
    return %arg0, %arg1 : i32, i32
  }
}

</mosaic_0001>

<bundles_post_ra>
// kernel: bottleneck_forward.3
= control target key start
LH: loop header
LB: loop body
LE: loop exit
PB: predicated region body
PF: predicated region fallthrough
CT: control target
= control target key end

     0   :  { %s1294_s15 = smov 0   ;;  %s1296_s16 = smov 0   ;;  %s1516_s0 = inlined_call_operand.vmem [shape: bf16[512,128], index: 0, kind: input, shape index: {}]   ;;  %s1517_s1 = inlined_call_operand.vmem [shape: bf16[128,32], index: 1, kind: input, shape index: {}]   ;;  %s1518_s2 = inlined_call_operand.vmem [shape: f32[1,32], index: 2, kind: input, shape index: {}]   ;;  %s1519_s3 = inlined_call_operand.vmem [shape: f32[1,32], index: 3, kind: input, shape index: {}]   ;;  %s1520_s4 = inlined_call_operand.vmem [shape: bf16[512,32], index: 4, kind: output, shape index: {}]  }
   0x1   :  { %s1298_s17 = smov 0  }
   0x2 LB: > { %s26_s18 = sadd.s32 1, %s1263_s16  ;;  %p1012_p0 = scmp.ge.s32.totalorder %s1267_s17, 1  ;;  %s1267_s17 = sphi %s1298_s17, %s14_s17   ;;  %s1263_s16 = sphi %s1296_s16, %s1522_s16   ;;  %s1259_s15 = sphi %s1294_s15, %s1521_s15  }
   0x3   : > { %p28_p1 = scmp.ge.s32.totalorder %s26_s18, 2  ;;  %p202_p2 = scmp.lt.s32.totalorder %s1267_s17, 3 }
   0x5   : > { %s1524_s18 = smov (%p28_p1, %s26_s18), 0  ;;  %p203_p3 = pnand %p1012_p0, %p202_p2 }
   0x6   : > { %v1221_v0 = vld [vmem:[%s1517_s1] sm:$0xff] (!%p203_p3)   ;;  %s1013_s21 = sshll.u32 (!%p203_p3), %s1259_s15, 5  ;;  %v1222_v1 = vld [vmem:[%s1517_s1 + $0x8] sm:$0xff] (!%p203_p3)   ;;  %v1223_v2 = vld [vmem:[%s1517_s1 + $0x10] sm:$0xff] (!%p203_p3)   ;;  %vm858_vm0 = vcmask (!%p203_p3), 257024  }
   0x7   : > { %206 = sbr.rel (%p203_p3) target bundleno = 290 (0x122), region = 36  ;;  %p242_p4 = scmp.lt.s32.totalorder (!%p203_p3), %s1013_s21, 63  ;;  %1133 = vmatprep.subr.bf16.mxu0 (!%p203_p3), %v1221_v0  ;;  %1181 = vmatprep.subr.bf16.mxu1 (!%p203_p3), %v1221_v0  ;;  %v1224_v3 = vld [vmem:[%s1517_s1 + $0x18] sm:$0xff] (!%p203_p3)   ;;  %v1225_v6 = vld [vmem:[%s1517_s1 + $0x20] sm:$0xff] (!%p203_p3)   ;;  %v1226_v7 = vld [vmem:[%s1517_s1 + $0x28] sm:$0xff] (!%p203_p3)  }
   0x8   : > { %1134 = vmatpush3.bf16.msra.mxu0 (!%p203_p3), %v1221_v0  ;;  %1189 = vmatpush3.bf16.msra.mxu1 (!%p203_p3), %v1221_v0  ;;  %v1227_v8 = vld [vmem:[%s1517_s1 + $0x30] sm:$0xff] (!%p203_p3)   ;;  %v1228_v9 = vld [vmem:[%s1517_s1 + $0x38] sm:$0xff] (!%p203_p3)   ;;  %v1365_v24 = vld [vmem:[%s1518_s2] ss:$0 sm:$0xff] (!%p203_p3) }
   0x9   : > { %1135 = vmatprep.subr.bf16.mxu0 (!%p203_p3), %v1222_v1  ;;  %1182 = vmatprep.subr.bf16.mxu1 (!%p203_p3), %v1222_v1  ;;  %v1370_v26 = vld [vmem:[%s1519_s3] ss:$0 sm:$0xff] (!%p203_p3) }
   0xc   : > { %1136 = vmatpush3.bf16.msra.mxu0 (!%p203_p3), %v1222_v1  ;;  %1190 = vmatpush3.bf16.msra.mxu1 (!%p203_p3), %v1222_v1 }
   0xd   : > { %1137 = vmatprep.subr.bf16.mxu0 (!%p203_p3), %v1223_v2  ;;  %1183 = vmatprep.subr.bf16.mxu1 (!%p203_p3), %v1223_v2 }
   0xe   : > { %s1526_s21 = smov (!%p242_p4, %s1013_s21), 63 }
   0xf   : > { %s1014_s26 = sshll.u32 %s1526_s21, 2 }
  0x10   : > { %s1329_s29 = scalar_lea.vmem %s1516_s0, %s1014_s26  ;;  %1138 = vmatpush3.bf16.msra.mxu0 %v1223_v2  ;;  %1191 = vmatpush3.bf16.msra.mxu1 %v1223_v2  ;;  %s1391_s24 = scalar_lea.vmem %s1520_s4, %s1014_s26 }
  0x11   : > { %v1229_v4 = vld [vmem:[%s1329_s29] sm:$0xff]   ;;  %1139 = vmatprep.subr.bf16.mxu0 %v1224_v3  ;;  %1184 = vmatprep.subr.bf16.mxu1 %v1224_v3  ;;  %v1231_v10 = vld [vmem:[%s1329_s29 + $0x8] sm:$0xff]   ;;  %v1233_v12 = vld [vmem:[%s1329_s29 + $0x10] sm:$0xff]  }
  0x12   : > { %v1230_v5 = vld [vmem:[%s1329_s29 + $0x40] sm:$0xff]   ;;  %1149 = vmatprep.mubr.bf16.mxu0 %v1229_v4  ;;  %v1232_v11 = vld [vmem:[%s1329_s29 + $0x48] sm:$0xff]   ;;  %v1234_v13 = vld [vmem:[%s1329_s29 + $0x50] sm:$0xff]  }
  0x13   : > { %1165 = vmatprep.mubr.bf16.mxu1 %v1230_v5  ;;  %v1235_v14 = vld [vmem:[%s1329_s29 + $0x18] sm:$0xff]   ;;  %v1237_v16 = vld [vmem:[%s1329_s29 + $0x20] sm:$0xff]   ;;  %v1239_v18 = vld [vmem:[%s1329_s29 + $0x28] sm:$0xff]  }
  0x14   : > { %1140 = vmatpush3.bf16.msra.mxu0 %v1224_v3  ;;  %1192 = vmatpush3.bf16.msra.mxu1 %v1224_v3  ;;  %v1236_v15 = vld [vmem:[%s1329_s29 + $0x58] sm:$0xff]   ;;  %v1238_v17 = vld [vmem:[%s1329_s29 + $0x60] sm:$0xff]   ;;  %v1240_v19 = vld [vmem:[%s1329_s29 + $0x68] sm:$0xff]  }
  0x15   : > { %1141 = vmatprep.subr.bf16.mxu0 %v1225_v6  ;;  %1185 = vmatprep.subr.bf16.mxu1 %v1225_v6  ;;  %v1241_v20 = vld [vmem:[%s1329_s29 + $0x30] sm:$0xff]   ;;  %v1243_v22 = vld [vmem:[%s1329_s29 + $0x38] sm:$0xff]  }
  0x16   : > { %v1242_v21 = vld [vmem:[%s1329_s29 + $0x70] sm:$0xff]   ;;  %v1244_v23 = vld [vmem:[%s1329_s29 + $0x78] sm:$0xff]  }
  0x18   : > { %1142 = vmatpush3.bf16.msra.mxu0 %v1225_v6  ;;  %1193 = vmatpush3.bf16.msra.mxu1 %v1225_v6 }
  0x19   : > { %1143 = vmatprep.subr.bf16.mxu0 %v1226_v7  ;;  %1186 = vmatprep.subr.bf16.mxu1 %v1226_v7 }
  0x1c   : > { %1144 = vmatpush3.bf16.msra.mxu0 %v1226_v7  ;;  %1194 = vmatpush3.bf16.msra.mxu1 %v1226_v7 }
  0x1d   : > { %1145 = vmatprep.subr.bf16.mxu0 %v1227_v8  ;;  %1187 = vmatprep.subr.bf16.mxu1 %v1227_v8 }
  0x20   : > { %1146 = vmatpush3.bf16.msra.mxu0 %v1227_v8  ;;  %1195 = vmatpush3.bf16.msra.mxu1 %v1227_v8 }
  0x21   : > { %1147 = vmatprep.subr.bf16.mxu0 %v1228_v9  ;;  %1188 = vmatprep.subr.bf16.mxu1 %v1228_v9 }
  0x24   : > { %1148 = vmatpush3.bf16.msra.mxu0 %v1228_v9  ;;  %1196 = vmatpush3.bf16.msra.mxu1 %v1228_v9 }
  0x27   : > { %1150 = vmatmul.mubr.bf16.vlgmr.msra.gmra.mrb[0].mxu0 %v1231_v10  ;;  %1166 = vmatmul.mubr.bf16.vlgmr.msra.gmra.mrb[0].mxu1 %v1232_v11 }
  0x28   : > { %1153 = vmatprep.mubr.bf16.mxu0 %v1233_v12  ;;  %1169 = vmatprep.mubr.bf16.mxu1 %v1234_v13 }
  0x2f   : > { %1154 = vmatmul.mubr.bf16.gmra.mrb[4].mxu0 %v1235_v14  ;;  %1170 = vmatmul.mubr.bf16.gmra.mrb[4].mxu1 %v1236_v15 }
  0x30   : > { %1157 = vmatprep.mubr.bf16.mxu0 %v1237_v16  ;;  %1173 = vmatprep.mubr.bf16.mxu1 %v1238_v17 }
  0x37   : > { %1158 = vmatmul.mubr.bf16.gmra.mrb[8].mxu0 %v1239_v18  ;;  %1174 = vmatmul.mubr.bf16.gmra.mrb[8].mxu1 %v1240_v19 }
  0x38   : > { %1161 = vmatprep.mubr.bf16.mxu0 %v1241_v20  ;;  %1177 = vmatprep.mubr.bf16.mxu1 %v1242_v21 }
  0x3f   : > { %1162 = vmatmul.mubr.bf16.gmra.mrb[12].mxu0 %v1243_v22  ;;  %1178 = vmatmul.mubr.bf16.gmra.mrb[12].mxu1 %v1244_v23 }
  0xfa   : > { %v1151_v25 = vpop.f32.mrb[0].mxu0  ;;  %v1167_v27 = vpop.f32.mrb[0].mxu1 }
  0xfb   : > { %v629_v28 = vmul.f32 %v1151_v25, %v1365_v24  ;;  %v645_v29 = vmul.f32 %v1167_v27, %v1365_v24  ;;  %v493_v30 = vpop.f32.mrb[1].mxu0  ;;  %v557_v31 = vpop.f32.mrb[1].mxu1 }
  0xfc   : > { %v627_v32 = vmul.f32 %v1365_v24, %v493_v30  ;;  %v643_v33 = vmul.f32 %v1365_v24, %v557_v31  ;;  %v1152_v34 = vpop.f32.mrb[2].mxu0  ;;  %v1168_v35 = vpop.f32.mrb[2].mxu1 }
  0xfd   : > { %v668_v36 = vadd.f32 %v1370_v26, %v629_v28  ;;  %v684_v37 = vadd.f32 %v1370_v26, %v645_v29  ;;  %v630_v38 = vmul.f32 %v1152_v34, %v1365_v24  ;;  %v646_v39 = vmul.f32 %v1168_v35, %v1365_v24  ;;  %v496_v40 = vpop.f32.mrb[3].mxu0  ;;  %v560_v41 = vpop.f32.mrb[3].mxu1 }
  0xfe   : > { %v666_v42 = vadd.f32 %v1370_v26, %v627_v32  ;;  %v682_v43 = vadd.f32 %v1370_v26, %v643_v33  ;;  %v628_v44 = vmul.f32 %v1365_v24, %v496_v40  ;;  %v644_v45 = vmul.f32 %v1365_v24, %v560_v41 }
  0xff   : > { %v700_v46 = vmax.f32 %v668_v36, 0.0  ;;  %v716_v47 = vmax.f32 %v684_v37, 0.0  ;;  %v669_v48 = vadd.f32 %v1370_v26, %v630_v38  ;;  %v685_v49 = vadd.f32 %v1370_v26, %v646_v39 }
 0x100   : > { %v698_v50 = vmax.f32 %v666_v42, 0.0  ;;  %v714_v51 = vmax.f32 %v682_v43, 0.0  ;;  %v667_v52 = vadd.f32 %v1370_v26, %v628_v44  ;;  %v683_v53 = vadd.f32 %v1370_v26, %v644_v45 }
 0x101   : > { %v1079_v54 = vpack.c.bf16 %v700_v46, %v700_v46  ;;  %v1095_v55 = vpack.c.bf16 %v716_v47, %v716_v47  ;;  %v701_v56 = vmax.f32 %v669_v48, 0.0  ;;  %v717_v57 = vmax.f32 %v685_v49, 0.0 }
 0x102   : > { %v1077_v58 = vpack.c.bf16 %v698_v50, %v698_v50  ;;  %v1093_v59 = vpack.c.bf16 %v714_v51, %v714_v51  ;;  %v699_v60 = vmax.f32 %v667_v52, 0.0  ;;  %v715_v61 = vmax.f32 %v683_v53, 0.0  ;;  %v1155_v62 = vpop.f32.mrb[4].mxu0  ;;  %v1171_v63 = vpop.f32.mrb[4].mxu1 }
 0x103   : > { %861 = vst.msk [vmem:[%s1391_s24 + $0x8] sm:$0xf] %vm858_vm0, %v1079_v54  ;;  %877 = vst.msk [vmem:[%s1391_s24 + $0x48] sm:$0xf] %vm858_vm0, %v1095_v55  ;;  %v1080_v0 = vpack.c.bf16 %v701_v56, %v701_v56  ;;  %v1096_v1 = vpack.c.bf16 %v717_v57, %v717_v57  ;;  %v633_v2 = vmul.f32 %v1155_v62, %v1365_v24  ;;  %v509_v4 = vpop.f32.mrb[5].mxu0  ;;  %v573_v5 = vpop.f32.mrb[5].mxu1 }
 0x104   : > { %v649_v3 = vmul.f32 %v1171_v63, %v1365_v24  ;;  %859 = vst.msk [vmem:[%s1391_s24] sm:$0xf] %vm858_vm0, %v1077_v58  ;;  %875 = vst.msk [vmem:[%s1391_s24 + $0x40] sm:$0xf] %vm858_vm0, %v1093_v59  ;;  %v1078_v6 = vpack.c.bf16 %v699_v60, %v699_v60  ;;  %v1094_v7 = vpack.c.bf16 %v715_v61, %v715_v61  ;;  %v1156_v10 = vpop.f32.mrb[6].mxu0  ;;  %v1172_v11 = vpop.f32.mrb[6].mxu1 }
 0x105   : > { %v631_v8 = vmul.f32 %v1365_v24, %v509_v4  ;;  %v647_v9 = vmul.f32 %v1365_v24, %v573_v5  ;;  %862 = vst.msk [vmem:[%s1391_s24 + $0xc] sm:$0xf] %vm858_vm0, %v1080_v0  ;;  %878 = vst.msk [vmem:[%s1391_s24 + $0x4c] sm:$0xf] %vm858_vm0, %v1096_v1  ;;  %v672_v12 = vadd.f32 %v1370_v26, %v633_v2  ;;  %v512_v16 = vpop.f32.mrb[7].mxu0  ;;  %v576_v17 = vpop.f32.mrb[7].mxu1 }
 0x106   : > { %v688_v13 = vadd.f32 %v1370_v26, %v649_v3  ;;  %v634_v14 = vmul.f32 %v1156_v10, %v1365_v24  ;;  %v650_v15 = vmul.f32 %v1172_v11, %v1365_v24  ;;  %860 = vst.msk [vmem:[%s1391_s24 + $0x4] sm:$0xf] %vm858_vm0, %v1078_v6  ;;  %876 = vst.msk [vmem:[%s1391_s24 + $0x44] sm:$0xf] %vm858_vm0, %v1094_v7 }
 0x107   : > { %v670_v18 = vadd.f32 %v1370_v26, %v631_v8  ;;  %v686_v19 = vadd.f32 %v1370_v26, %v647_v9  ;;  %v632_v20 = vmul.f32 %v1365_v24, %v512_v16  ;;  %v648_v21 = vmul.f32 %v1365_v24, %v576_v17 }
 0x108   : > { %v704_v22 = vmax.f32 %v672_v12, 0.0  ;;  %v720_v23 = vmax.f32 %v688_v13, 0.0  ;;  %v673_v25 = vadd.f32 %v1370_v26, %v634_v14  ;;  %v689_v27 = vadd.f32 %v1370_v26, %v650_v15 }
 0x109   : > { %v702_v28 = vmax.f32 %v670_v18, 0.0  ;;  %v718_v29 = vmax.f32 %v686_v19, 0.0  ;;  %v671_v30 = vadd.f32 %v1370_v26, %v632_v20  ;;  %v687_v31 = vadd.f32 %v1370_v26, %v648_v21 }
 0x10a   : > { %v1083_v32 = vpack.c.bf16 %v704_v22, %v704_v22  ;;  %v1099_v33 = vpack.c.bf16 %v720_v23, %v720_v23  ;;  %v705_v34 = vmax.f32 %v673_v25, 0.0  ;;  %v721_v35 = vmax.f32 %v689_v27, 0.0  ;;  %v1159_v40 = vpop.f32.mrb[8].mxu0  ;;  %v1175_v41 = vpop.f32.mrb[8].mxu1 }
 0x10b   : > { %v1081_v36 = vpack.c.bf16 %v702_v28, %v702_v28  ;;  %v1097_v37 = vpack.c.bf16 %v718_v29, %v718_v29  ;;  %v703_v38 = vmax.f32 %v671_v30, 0.0  ;;  %v719_v39 = vmax.f32 %v687_v31, 0.0  ;;  %v525_v46 = vpop.f32.mrb[9].mxu0  ;;  %v589_v47 = vpop.f32.mrb[9].mxu1 }
 0x10c   : > { %865 = vst.msk [vmem:[%s1391_s24 + $0x18] sm:$0xf] %vm858_vm0, %v1083_v32  ;;  %881 = vst.msk [vmem:[%s1391_s24 + $0x58] sm:$0xf] %vm858_vm0, %v1099_v33  ;;  %v1084_v42 = vpack.c.bf16 %v705_v34, %v705_v34  ;;  %v1100_v43 = vpack.c.bf16 %v721_v35, %v721_v35  ;;  %v637_v44 = vmul.f32 %v1159_v40, %v1365_v24  ;;  %v1160_v52 = vpop.f32.mrb[10].mxu0  ;;  %v1176_v53 = vpop.f32.mrb[10].mxu1 }
 0x10d   : > { %v653_v45 = vmul.f32 %v1175_v41, %v1365_v24  ;;  %863 = vst.msk [vmem:[%s1391_s24 + $0x10] sm:$0xf] %vm858_vm0, %v1081_v36  ;;  %879 = vst.msk [vmem:[%s1391_s24 + $0x50] sm:$0xf] %vm858_vm0, %v1097_v37  ;;  %v1082_v48 = vpack.c.bf16 %v703_v38, %v703_v38  ;;  %v1098_v49 = vpack.c.bf16 %v719_v39, %v719_v39  ;;  %v528_v58 = vpop.f32.mrb[11].mxu0  ;;  %v592_v59 = vpop.f32.mrb[11].mxu1 }
 0x10e   : > { %v635_v50 = vmul.f32 %v1365_v24, %v525_v46  ;;  %v651_v51 = vmul.f32 %v1365_v24, %v589_v47  ;;  %866 = vst.msk [vmem:[%s1391_s24 + $0x1c] sm:$0xf] %vm858_vm0, %v1084_v42  ;;  %882 = vst.msk [vmem:[%s1391_s24 + $0x5c] sm:$0xf] %vm858_vm0, %v1100_v43  ;;  %v676_v54 = vadd.f32 %v1370_v26, %v637_v44 }
 0x10f   : > { %v692_v55 = vadd.f32 %v1370_v26, %v653_v45  ;;  %v638_v56 = vmul.f32 %v1160_v52, %v1365_v24  ;;  %v654_v57 = vmul.f32 %v1176_v53, %v1365_v24  ;;  %864 = vst.msk [vmem:[%s1391_s24 + $0x14] sm:$0xf] %vm858_vm0, %v1082_v48  ;;  %880 = vst.msk [vmem:[%s1391_s24 + $0x54] sm:$0xf] %vm858_vm0, %v1098_v49 }
 0x110   : > { %v674_v60 = vadd.f32 %v1370_v26, %v635_v50  ;;  %v690_v61 = vadd.f32 %v1370_v26, %v651_v51  ;;  %v636_v62 = vmul.f32 %v1365_v24, %v528_v58  ;;  %v652_v63 = vmul.f32 %v1365_v24, %v592_v59 }
 0x111   : > { %v708_v0 = vmax.f32 %v676_v54, 0.0  ;;  %v724_v1 = vmax.f32 %v692_v55, 0.0  ;;  %v677_v2 = vadd.f32 %v1370_v26, %v638_v56  ;;  %v693_v3 = vadd.f32 %v1370_v26, %v654_v57 }
 0x112   : > { %v706_v4 = vmax.f32 %v674_v60, 0.0  ;;  %v722_v5 = vmax.f32 %v690_v61, 0.0  ;;  %v675_v6 = vadd.f32 %v1370_v26, %v636_v62  ;;  %v691_v7 = vadd.f32 %v1370_v26, %v652_v63  ;;  %v1163_v16 = vpop.f32.mrb[12].mxu0  ;;  %v1179_v17 = vpop.f32.mrb[12].mxu1 }
 0x113   : > { %v1087_v8 = vpack.c.bf16 %v708_v0, %v708_v0  ;;  %v1103_v9 = vpack.c.bf16 %v724_v1, %v724_v1  ;;  %v709_v10 = vmax.f32 %v677_v2, 0.0  ;;  %v725_v11 = vmax.f32 %v693_v3, 0.0  ;;  %v541_v22 = vpop.f32.mrb[13].mxu0  ;;  %v605_v23 = vpop.f32.mrb[13].mxu1 }
 0x114   : > { %v1085_v12 = vpack.c.bf16 %v706_v4, %v706_v4  ;;  %v1101_v13 = vpack.c.bf16 %v722_v5, %v722_v5  ;;  %v707_v14 = vmax.f32 %v675_v6, 0.0  ;;  %v723_v15 = vmax.f32 %v691_v7, 0.0  ;;  %v1164_v30 = vpop.f32.mrb[14].mxu0  ;;  %v1180_v31 = vpop.f32.mrb[14].mxu1 }
 0x115   : > { %869 = vst.msk [vmem:[%s1391_s24 + $0x28] sm:$0xf] %vm858_vm0, %v1087_v8  ;;  %885 = vst.msk [vmem:[%s1391_s24 + $0x68] sm:$0xf] %vm858_vm0, %v1103_v9  ;;  %v1088_v18 = vpack.c.bf16 %v709_v10, %v709_v10  ;;  %v1104_v19 = vpack.c.bf16 %v725_v11, %v725_v11  ;;  %v641_v20 = vmul.f32 %v1163_v16, %v1365_v24  ;;  %v544_v36 = vpop.f32.mrb[15].mxu0  ;;  %v608_v37 = vpop.f32.mrb[15].mxu1 }
 0x116   : > { %v657_v21 = vmul.f32 %v1179_v17, %v1365_v24  ;;  %867 = vst.msk [vmem:[%s1391_s24 + $0x20] sm:$0xf] %vm858_vm0, %v1085_v12  ;;  %883 = vst.msk [vmem:[%s1391_s24 + $0x60] sm:$0xf] %vm858_vm0, %v1101_v13  ;;  %v1086_v25 = vpack.c.bf16 %v707_v14, %v707_v14  ;;  %v1102_v27 = vpack.c.bf16 %v723_v15, %v723_v15 }
 0x117   : > { %v639_v28 = vmul.f32 %v1365_v24, %v541_v22  ;;  %v655_v29 = vmul.f32 %v1365_v24, %v605_v23  ;;  %870 = vst.msk [vmem:[%s1391_s24 + $0x2c] sm:$0xf] %vm858_vm0, %v1088_v18  ;;  %886 = vst.msk [vmem:[%s1391_s24 + $0x6c] sm:$0xf] %vm858_vm0, %v1104_v19  ;;  %v680_v32 = vadd.f32 %v1370_v26, %v641_v20 }
 0x118   : > { %v696_v33 = vadd.f32 %v1370_v26, %v657_v21  ;;  %v642_v34 = vmul.f32 %v1164_v30, %v1365_v24  ;;  %v658_v35 = vmul.f32 %v1180_v31, %v1365_v24  ;;  %868 = vst.msk [vmem:[%s1391_s24 + $0x24] sm:$0xf] %vm858_vm0, %v1086_v25  ;;  %884 = vst.msk [vmem:[%s1391_s24 + $0x64] sm:$0xf] %vm858_vm0, %v1102_v27 }
 0x119   : > { %v678_v38 = vadd.f32 %v1370_v26, %v639_v28  ;;  %v694_v39 = vadd.f32 %v1370_v26, %v655_v29  ;;  %v640_v40 = vmul.f32 %v1365_v24, %v544_v36  ;;  %v656_v41 = vmul.f32 %v1365_v24, %v608_v37 }
 0x11a   : > { %v712_v42 = vmax.f32 %v680_v32, 0.0  ;;  %v728_v43 = vmax.f32 %v696_v33, 0.0  ;;  %v681_v44 = vadd.f32 %v1370_v26, %v642_v34  ;;  %v697_v45 = vadd.f32 %v1370_v26, %v658_v35 }
 0x11b   : > { %v710_v46 = vmax.f32 %v678_v38, 0.0  ;;  %v726_v47 = vmax.f32 %v694_v39, 0.0  ;;  %v679_v48 = vadd.f32 %v1370_v26, %v640_v40  ;;  %v695_v49 = vadd.f32 %v1370_v26, %v656_v41 }
 0x11c   : > { %v1091_v50 = vpack.c.bf16 %v712_v42, %v712_v42  ;;  %v1107_v51 = vpack.c.bf16 %v728_v43, %v728_v43  ;;  %v713_v24 = vmax.f32 %v681_v44, 0.0  ;;  %v729_v52 = vmax.f32 %v697_v45, 0.0 }
 0x11d   : > { %v1089_v53 = vpack.c.bf16 %v710_v46, %v710_v46  ;;  %v1105_v54 = vpack.c.bf16 %v726_v47, %v726_v47  ;;  %v711_v55 = vmax.f32 %v679_v48, 0.0  ;;  %v727_v56 = vmax.f32 %v695_v49, 0.0 }
 0x11e   : > { %873 = vst.msk [vmem:[%s1391_s24 + $0x38] sm:$0xf] %vm858_vm0, %v1091_v50  ;;  %889 = vst.msk [vmem:[%s1391_s24 + $0x78] sm:$0xf] %vm858_vm0, %v1107_v51  ;;  %v1092_v57 = vpack.c.bf16 %v713_v24, %v713_v24  ;;  %v1108_v58 = vpack.c.bf16 %v729_v52, %v729_v52 }
 0x11f   : > { %871 = vst.msk [vmem:[%s1391_s24 + $0x30] sm:$0xf] %vm858_vm0, %v1089_v53  ;;  %887 = vst.msk [vmem:[%s1391_s24 + $0x70] sm:$0xf] %vm858_vm0, %v1105_v54  ;;  %v1090_v26 = vpack.c.bf16 %v711_v55, %v711_v55  ;;  %v1106_v59 = vpack.c.bf16 %v727_v56, %v727_v56 }
 0x120   : > { %874 = vst.msk [vmem:[%s1391_s24 + $0x3c] sm:$0xf] %vm858_vm0, %v1092_v57  ;;  %890 = vst.msk [vmem:[%s1391_s24 + $0x7c] sm:$0xf] %vm858_vm0, %v1108_v58 }
 0x121   : > { %872 = vst.msk [vmem:[%s1391_s24 + $0x34] sm:$0xf] %vm858_vm0, %v1090_v26  ;;  %888 = vst.msk [vmem:[%s1391_s24 + $0x74] sm:$0xf] %vm858_vm0, %v1106_v59 }
 0x122 PF: > { %s14_s17 = sadd.s32 1, %s1267_s17   ;;  %s1521_s15 = smov %s1263_s16 }
 0x123   : > { %p11_p5 = scmp.ge.s32.totalorder %s14_s17, 4   ;;  %s1522_s16 = smov %s1524_s18 }
 0x125   :  { %13 = sbr.rel (!%p11_p5) target bundleno = 2 (0x2), region = 75 }

// kernel: bottleneck_forward.5
= control target key start
LH: loop header
LB: loop body
LE: loop exit
PB: predicated region body
PF: predicated region fallthrough
CT: control target
= control target key end

     0   :  { %10 = vsyncpa [#allocation3], 0  ;;  %s1616_s0 = inlined_call_operand.vmem [shape: bf16[512,32], index: 0, kind: input, shape index: {}]   ;;  %s1617_s1 = inlined_call_operand.vmem [shape: bf16[32,128], index: 1, kind: input, shape index: {}]   ;;  %s1618_s2 = inlined_call_operand.vmem [shape: f32[1,128], index: 2, kind: input, shape index: {}]   ;;  %s1619_s3 = inlined_call_operand.vmem [shape: f32[1,128], index: 3, kind: input, shape index: {}]   ;;  %s1620_s4 = inlined_call_operand.vmem [shape: f32[512,128], index: 4, kind: input, shape index: {}]   ;;  %s1621_s5 = inlined_call_operand.hbm [shape: f32[512,128], index: 5, kind: output, shape index: {}]  }
   0x1   :  { %12 = vsyncpa [#allocation3 + $0x1], 0  ;;  %s1305_s18 = smov 0   ;;  %s1307_s19 = smov 0  }
   0x2   :  { %s1309_s20 = smov 0   ;;  %s1311_s21 = smov 0  }
   0x3   :  { %s1313_s22 = smov 0   ;;  %s1315_s23 = smov 0  }
   0x4 LB: > { %s1004_s24 = sadd.s32 4294967295, %s1270_s23   ;;  %s1005_s25 = sadd.s32 4294967294, %s1270_s23   ;;  %s1270_s23 = sphi %s1315_s23, %s18_s23   ;;  %s1266_s22 = sphi %s1313_s22, %s1628_s22   ;;  %s1262_s21 = sphi %s1311_s21, %s1627_s21   ;;  %s1258_s20 = sphi %s1309_s20, %s1626_s20   ;;  %s1254_s19 = sphi %s1307_s19, %s1625_s19   ;;  %s1250_s18 = sphi %s1305_s18, %s1624_s18  }
   0x5   : > { %s30_s26 = sadd.s32 1, %s1266_s22  ;;  %s171_s27 = sadd.s32 1, %s1258_s20 }
   0x6   : > { %p32_p0 = scmp.ge.s32.totalorder %s30_s26, 2  ;;  %p181_p1 = scmp.ne.s32.totalorder %s1258_s20, %s1254_s19 }
   0x7   : > { %p182_p2 = scmp.eq.s32.totalorder %s1004_s24, 1  ;;  %p187_p3 = scmp.ne.s32.totalorder %s1254_s19, %s1250_s18 }
   0x8   : > { %s1630_s26 = smov (%p32_p0, %s30_s26), 0  ;;  %p188_p5 = scmp.eq.s32.totalorder %s1005_s25, 1 }
   0x9   : > { %p1345_p4 = por %p182_p2, %p181_p1  ;;  %s166_s29 = ssub.s32 %s1266_s22, %s1630_s26 }
   0xa   : > { %p1011_p6 = scmp.ge.s32.totalorder %s1270_s23, 1  ;;  %p169_p7 = scmp.eq.s32.totalorder %s166_s29, 0 }
   0xb   : > { %p1352_p8 = por %p188_p5, %p187_p3  ;;  %p246_p9 = scmp.lt.s32.totalorder %s1270_s23, 3 }
   0xc   : > { %s1358_s6 = scalar_select %p169_p7, %s1258_s20, %s171_s27  }
   0xd   : > { %p247_p10 = pnand %p1011_p6, %p246_p9 }
   0xe   : > { %v1174_v0 = vld [vmem:[%s1617_s1] sm:$0xff] (!%p247_p10)   ;;  %s1013_s9 = sshll.u32 (!%p247_p10), %s1262_s21, 5  ;;  %v1175_v1 = vld [vmem:[%s1617_s1 + $0x8] sm:$0xff] (!%p247_p10)   ;;  %vm447_vm0 = vcmask (!%p247_p10), 261120   ;;  %s289_s7 = sand.u32 (!%p247_p10), 1, %s1254_s19  }
   0xf   : > { %250 = sbr.rel (%p247_p10) target bundleno = 291 (0x123), region = 40  ;;  %p293_p11 = scmp.lt.s32.totalorder (!%p247_p10), %s1013_s9, 63  ;;  %1077 = vmatprep.subr.bf16.mxu0 (!%p247_p10), %v1174_v0  ;;  %1113 = vmatprep.subr.bf16.mxu1 (!%p247_p10), %v1174_v0  ;;  %v1411_v18 = vld [vmem:[%s1618_s2] ss:$0 sm:$0xff] (!%p247_p10) }
  0x10   : > { %1078 = vmatpush3.bf16.msra.mxu0 (!%p247_p10), %v1174_v0  ;;  %1115 = vmatpush3.bf16.msra.mxu1 (!%p247_p10), %v1174_v0  ;;  %v1422_v20 = vld [vmem:[%s1619_s3] ss:$0 sm:$0xff] (!%p247_p10)  ;;  %s1272_s24 = smov (!%p247_p10), [#allocation2]  }
  0x11   : > { %1079 = vmatprep.subr.bf16.mxu0 (!%p247_p10), %v1175_v1  ;;  %1114 = vmatprep.subr.bf16.mxu1 (!%p247_p10), %v1175_v1  ;;  %s1196_s25 = sshll.u32 (!%p247_p10), %s1272_s24, 4  ;;  %s1197_s25 = int_to_ptr.vmem [resolvable:$false] %s1196_s25 }
  0x12   : > { %s1198_s27 = scalar_lea.vmem (!%p247_p10), %s1197_s25, 8192 }
  0x14   : > { %1080 = vmatpush3.bf16.msra.mxu0 (!%p247_p10), %v1175_v1  ;;  %1116 = vmatpush3.bf16.msra.mxu1 (!%p247_p10), %v1175_v1 }
  0x16   : > { %s1632_s9 = smov (!%p293_p11, %s1013_s9), 63 }
  0x17   : > { %s1014_s12 = sshll.u32 %s1632_s9, 2  ;;  %s1016_s16 = sshll.u32 %s1632_s9, 3 }
  0x18   : > { %s1373_s15 = scalar_lea.vmem %s1616_s0, %s1014_s12  ;;  %s1416_s29 = scalar_lea.vmem %s1620_s4, %s1016_s16 }
  0x19   : > { %v1176_v2 = vld [vmem:[%s1373_s15] sm:$0xff]   ;;  %v1178_v4 = vld [vmem:[%s1373_s15 + $0x8] sm:$0xff]   ;;  %v1180_v6 = vld [vmem:[%s1373_s15 + $0x10] sm:$0xff]   ;;  %s1430_s9 = sshll.u32 %s289_s7, 8  ;;  %s1058_s12 = sshll.u32 %s1262_s21, 12 }
  0x1a   : > { %v1177_v3 = vld [vmem:[%s1373_s15 + $0x40] sm:$0xff]   ;;  %1081 = vmatprep.mubr.msk.bf16.mxu0 %vm447_vm0, %v1176_v2  ;;  %v1179_v5 = vld [vmem:[%s1373_s15 + $0x48] sm:$0xff]   ;;  %v1181_v7 = vld [vmem:[%s1373_s15 + $0x50] sm:$0xff]   ;;  %s1453_s11 = scalar_lea.vmem [#allocation2], %s1430_s9  ;;  %s1570_s16 = scalar_lea.sflag [#allocation3], %s289_s7 }
  0x1b   : > { %1097 = vmatprep.mubr.msk.bf16.mxu1 %vm447_vm0, %v1177_v3  ;;  %1082 = vmatmul.mubr.msk.bf16.vlgmr.msra.gmra.mrb[0].mxu0 %vm447_vm0, %v1178_v4  ;;  %v1182_v8 = vld [vmem:[%s1373_s15 + $0x18] sm:$0xff]   ;;  %v1184_v10 = vld [vmem:[%s1373_s15 + $0x20] sm:$0xff]   ;;  %v1186_v12 = vld [vmem:[%s1373_s15 + $0x28] sm:$0xff]   ;;  %s878_s13 = sshll.u32 %s1453_s11, 4  ;;  %s1561_s13 = int_to_ptr.vmem [resolvable:$true] %s878_s13 }
  0x1c   : > { %1098 = vmatmul.mubr.msk.bf16.vlgmr.msra.gmra.mrb[0].mxu1 %vm447_vm0, %v1179_v5  ;;  %1085 = vmatprep.mubr.msk.bf16.mxu0 %vm447_vm0, %v1180_v6  ;;  %v1183_v9 = vld [vmem:[%s1373_s15 + $0x58] sm:$0xff]   ;;  %v1185_v11 = vld [vmem:[%s1373_s15 + $0x60] sm:$0xff]   ;;  %v1187_v13 = vld [vmem:[%s1373_s15 + $0x68] sm:$0xff]   ;;  %s1192_s17 = scalar_lea.vmem %s1561_s13, 4096  ;;  %p1199_p1 = scmp.lt.s32.totalorder %s1561_s13, %s1197_s25 }
  0x1d   : > { %1101 = vmatprep.mubr.msk.bf16.mxu1 %vm447_vm0, %v1181_v7  ;;  %v1188_v14 = vld [vmem:[%s1373_s15 + $0x30] sm:$0xff]   ;;  %v1190_v16 = vld [vmem:[%s1373_s15 + $0x38] sm:$0xff]   ;;  %v735_v31 = vld [vmem:[%s1416_s29] sm:$0xff]  ;;  %p1193_p12 = scmp.ne.s32.totalorder %s1561_s13, %s1192_s17  ;;  %p1200_p2 = scmp.lt.s32.totalorder %s1198_s27, %s1192_s17 }
  0x1e   : > { %v1189_v15 = vld [vmem:[%s1373_s15 + $0x70] sm:$0xff]   ;;  %v1191_v17 = vld [vmem:[%s1373_s15 + $0x78] sm:$0xff]   ;;  %v751_v38 = vld [vmem:[%s1416_s29 + $0x80] sm:$0xff]  ;;  %s1559_s15 = scalar_lea.hbm %s1621_s5, %s1058_s12 }
  0x1f   : > { %v737_v24 = vld [vmem:[%s1416_s29 + $0x10] sm:$0xff]  ;;  %v738_v39 = vld [vmem:[%s1416_s29 + $0x18] sm:$0xff]  ;;  %v736_v47 = vld [vmem:[%s1416_s29 + $0x8] sm:$0xff]  ;;  %p1194_p13 = pnand %p1193_p12, %p1345_p4  ;;  %p1201_p3 = por %p1200_p2, %p1199_p1 }
  0x20   : > { %v753_v30 = vld [vmem:[%s1416_s29 + $0x90] sm:$0xff]  ;;  %v754_v46 = vld [vmem:[%s1416_s29 + $0x98] sm:$0xff]  ;;  %v752_v53 = vld [vmem:[%s1416_s29 + $0x88] sm:$0xff] }
  0x21   : > { %v741_v7 = vld [vmem:[%s1416_s29 + $0x30] sm:$0xff]  ;;  %p1195_p0 = pneg %p1194_p13 }
  0x23   : > { %1086 = vmatmul.mubr.msk.bf16.gmra.mrb[4].mxu0 %vm447_vm0, %v1182_v8  ;;  %p1202_p5 = pnand %p1201_p3, %p1195_p0 }
  0x24   : > { %1102 = vmatmul.mubr.msk.bf16.gmra.mrb[4].mxu1 %vm447_vm0, %v1183_v9  ;;  %1089 = vmatprep.mubr.msk.bf16.mxu0 %vm447_vm0, %v1184_v10 }
  0x25   : > { %1105 = vmatprep.mubr.msk.bf16.mxu1 %vm447_vm0, %v1185_v11 }
  0x2b   : > { %1090 = vmatmul.mubr.msk.bf16.gmra.mrb[8].mxu0 %vm447_vm0, %v1186_v12 }
  0x2c   : > { %1106 = vmatmul.mubr.msk.bf16.gmra.mrb[8].mxu1 %vm447_vm0, %v1187_v13  ;;  %1093 = vmatprep.mubr.msk.bf16.mxu0 %vm447_vm0, %v1188_v14  ;;  %v757_v14 = vld [vmem:[%s1416_s29 + $0xb0] sm:$0xff] }
  0x2d   : > { %1109 = vmatprep.mubr.msk.bf16.mxu1 %vm447_vm0, %v1189_v15  ;;  %v739_v15 = vld [vmem:[%s1416_s29 + $0x20] sm:$0xff] }
  0x33   : > { %1094 = vmatmul.mubr.msk.bf16.gmra.mrb[12].mxu0 %vm447_vm0, %v1190_v16 }
  0x34   : > { %1110 = vmatmul.mubr.msk.bf16.gmra.mrb[12].mxu1 %vm447_vm0, %v1191_v17 }
  0xee   : > { %v1083_v19 = vpop.f32.mrb[0].mxu0 }
  0xef   : > { %v666_v21 = vmul.f32 %v1083_v19, %v1411_v18  ;;  %v1099_v22 = vpop.f32.mrb[0].mxu1  ;;  %v530_v23 = vpop.f32.mrb[1].mxu0 }
  0xf0   : > { %v682_v25 = vmul.f32 %v1099_v22, %v1411_v18  ;;  %v664_v26 = vmul.f32 %v1411_v18, %v530_v23  ;;  %v594_v27 = vpop.f32.mrb[1].mxu1  ;;  %v1084_v28 = vpop.f32.mrb[2].mxu0 }
  0xf1   : > { %v705_v29 = vadd.f32 %v1422_v20, %v666_v21  ;;  %v680_v32 = vmul.f32 %v1411_v18, %v594_v27  ;;  %v667_v33 = vmul.f32 %v1084_v28, %v1411_v18  ;;  %v1100_v34 = vpop.f32.mrb[2].mxu1  ;;  %v533_v35 = vpop.f32.mrb[3].mxu0 }
  0xf2   : > { %v721_v36 = vadd.f32 %v1422_v20, %v682_v25  ;;  %v703_v37 = vadd.f32 %v1422_v20, %v664_v26  ;;  %v683_v40 = vmul.f32 %v1100_v34, %v1411_v18  ;;  %v665_v41 = vmul.f32 %v1411_v18, %v533_v35  ;;  %v597_v42 = vpop.f32.mrb[3].mxu1  ;;  %v742_v25 = vld [vmem:[%s1416_s29 + $0x38] sm:$0xff] }
  0xf3   : > { %v769_v43 = vadd.f32 %v737_v24, %v705_v29  ;;  %v719_v44 = vadd.f32 %v1422_v20, %v680_v32  ;;  %v706_v45 = vadd.f32 %v1422_v20, %v667_v33  ;;  %v681_v48 = vmul.f32 %v1411_v18, %v597_v42  ;;  %v755_v24 = vld [vmem:[%s1416_s29 + $0xa0] sm:$0xff]  ;;  %v758_v32 = vld [vmem:[%s1416_s29 + $0xb8] sm:$0xff]  ;;  %v740_v33 = vld [vmem:[%s1416_s29 + $0x28] sm:$0xff] }
  0xf4   : > { %v785_v49 = vadd.f32 %v753_v30, %v721_v36  ;;  %v767_v50 = vadd.f32 %v735_v31, %v703_v37  ;;  %v722_v51 = vadd.f32 %v1422_v20, %v683_v40  ;;  %v704_v52 = vadd.f32 %v1422_v20, %v665_v41 }
  0xf5   : > { %v801_v54 = vmax.f32 %v769_v43, 0.0  ;;  %v783_v55 = vadd.f32 %v751_v38, %v719_v44  ;;  %v770_v56 = vadd.f32 %v738_v39, %v706_v45  ;;  %v720_v57 = vadd.f32 %v1422_v20, %v681_v48  ;;  %v756_v39 = vld [vmem:[%s1416_s29 + $0xa8] sm:$0xff] }
  0xf6   : > { %v817_v58 = vmax.f32 %v785_v49, 0.0  ;;  %v799_v59 = vmax.f32 %v767_v50, 0.0  ;;  %v786_v60 = vadd.f32 %v754_v46, %v722_v51  ;;  %v768_v61 = vadd.f32 %v736_v47, %v704_v52  ;;  %v1087_v62 = vpop.f32.mrb[4].mxu0 }
  0xf7   : > { %833 = vst [vmem:[%s1453_s11 + $0x10] sm:$0xff] %v801_v54  ;;  %v815_v63 = vmax.f32 %v783_v55, 0.0  ;;  %v802_v0 = vmax.f32 %v770_v56, 0.0  ;;  %v784_v1 = vadd.f32 %v752_v53, %v720_v57  ;;  %v670_v2 = vmul.f32 %v1087_v62, %v1411_v18  ;;  %v1103_v3 = vpop.f32.mrb[4].mxu1  ;;  %v546_v4 = vpop.f32.mrb[5].mxu0  ;;  %v745_v57 = vld [vmem:[%s1416_s29 + $0x50] sm:$0xff] }
  0xf8   : > { %849 = vst [vmem:[%s1453_s11 + $0x90] sm:$0xff] %v817_v58  ;;  %831 = vst [vmem:[%s1453_s11] sm:$0xff] %v799_v59  ;;  %v818_v5 = vmax.f32 %v786_v60, 0.0  ;;  %v800_v6 = vmax.f32 %v768_v61, 0.0  ;;  %v686_v8 = vmul.f32 %v1103_v3, %v1411_v18  ;;  %v668_v9 = vmul.f32 %v1411_v18, %v546_v4  ;;  %v610_v10 = vpop.f32.mrb[5].mxu1  ;;  %v1088_v11 = vpop.f32.mrb[6].mxu0 }
  0xf9   : > { %847 = vst [vmem:[%s1453_s11 + $0x80] sm:$0xff] %v815_v63  ;;  %834 = vst [vmem:[%s1453_s11 + $0x18] sm:$0xff] %v802_v0  ;;  %v816_v12 = vmax.f32 %v784_v1, 0.0  ;;  %v709_v13 = vadd.f32 %v1422_v20, %v670_v2  ;;  %v684_v16 = vmul.f32 %v1411_v18, %v610_v10  ;;  %v671_v17 = vmul.f32 %v1088_v11, %v1411_v18  ;;  %v1104_v19 = vpop.f32.mrb[6].mxu1  ;;  %v549_v21 = vpop.f32.mrb[7].mxu0  ;;  %v761_v0 = vld [vmem:[%s1416_s29 + $0xd0] sm:$0xff] }
  0xfa   : > { %850 = vst [vmem:[%s1453_s11 + $0x98] sm:$0xff] %v818_v5  ;;  %832 = vst [vmem:[%s1453_s11 + $0x8] sm:$0xff] %v800_v6  ;;  %v725_v22 = vadd.f32 %v1422_v20, %v686_v8  ;;  %v707_v23 = vadd.f32 %v1422_v20, %v668_v9  ;;  %v687_v26 = vmul.f32 %v1104_v19, %v1411_v18  ;;  %v613_v28 = vpop.f32.mrb[7].mxu1  ;;  %v743_v1 = vld [vmem:[%s1416_s29 + $0x40] sm:$0xff]  ;;  %v746_v9 = vld [vmem:[%s1416_s29 + $0x58] sm:$0xff] }
  0xfb   : > { %v669_v27 = vmul.f32 %v1411_v18, %v549_v21  ;;  %848 = vst [vmem:[%s1453_s11 + $0x88] sm:$0xff] %v816_v12  ;;  %v773_v29 = vadd.f32 %v741_v7, %v709_v13  ;;  %v723_v30 = vadd.f32 %v1422_v20, %v684_v16  ;;  %v710_v31 = vadd.f32 %v1422_v20, %v671_v17  ;;  %v759_v8 = vld [vmem:[%s1416_s29 + $0xc0] sm:$0xff]  ;;  %v762_v16 = vld [vmem:[%s1416_s29 + $0xd8] sm:$0xff]  ;;  %v744_v17 = vld [vmem:[%s1416_s29 + $0x48] sm:$0xff] }
  0xfc   : > { %v685_v34 = vmul.f32 %v1411_v18, %v613_v28  ;;  %v789_v35 = vadd.f32 %v757_v14, %v725_v22  ;;  %v771_v36 = vadd.f32 %v739_v15, %v707_v23  ;;  %v726_v37 = vadd.f32 %v1422_v20, %v687_v26 }
  0xfd   : > { %v708_v38 = vadd.f32 %v1422_v20, %v669_v27  ;;  %v805_v40 = vmax.f32 %v773_v29, 0.0  ;;  %v787_v41 = vadd.f32 %v755_v24, %v723_v30  ;;  %v774_v42 = vadd.f32 %v742_v25, %v710_v31  ;;  %v760_v25 = vld [vmem:[%s1416_s29 + $0xc8] sm:$0xff] }
  0xfe   : > { %v724_v43 = vadd.f32 %v1422_v20, %v685_v34  ;;  %v821_v44 = vmax.f32 %v789_v35, 0.0  ;;  %v803_v45 = vmax.f32 %v771_v36, 0.0  ;;  %v790_v46 = vadd.f32 %v758_v32, %v726_v37  ;;  %v1091_v48 = vpop.f32.mrb[8].mxu0 }
  0xff   : > { %v772_v47 = vadd.f32 %v740_v33, %v708_v38  ;;  %837 = vst [vmem:[%s1453_s11 + $0x30] sm:$0xff] %v805_v40  ;;  %v819_v49 = vmax.f32 %v787_v41, 0.0  ;;  %v806_v50 = vmax.f32 %v774_v42, 0.0  ;;  %v674_v52 = vmul.f32 %v1091_v48, %v1411_v18  ;;  %v1107_v53 = vpop.f32.mrb[8].mxu1  ;;  %v562_v54 = vpop.f32.mrb[9].mxu0 }
 0x100   : > { %v788_v51 = vadd.f32 %v756_v39, %v724_v43  ;;  %853 = vst [vmem:[%s1453_s11 + $0xb0] sm:$0xff] %v821_v44  ;;  %835 = vst [vmem:[%s1453_s11 + $0x20] sm:$0xff] %v803_v45  ;;  %v822_v55 = vmax.f32 %v790_v46, 0.0  ;;  %v690_v58 = vmul.f32 %v1107_v53, %v1411_v18  ;;  %v672_v59 = vmul.f32 %v1411_v18, %v562_v54  ;;  %v626_v60 = vpop.f32.mrb[9].mxu1  ;;  %v1092_v61 = vpop.f32.mrb[10].mxu0  ;;  %v749_v43 = vld [vmem:[%s1416_s29 + $0x70] sm:$0xff] }
 0x101   : > { %v804_v56 = vmax.f32 %v772_v47, 0.0  ;;  %851 = vst [vmem:[%s1453_s11 + $0xa0] sm:$0xff] %v819_v49  ;;  %838 = vst [vmem:[%s1453_s11 + $0x38] sm:$0xff] %v806_v50  ;;  %v713_v63 = vadd.f32 %v1422_v20, %v674_v52  ;;  %v688_v2 = vmul.f32 %v1411_v18, %v626_v60  ;;  %v675_v3 = vmul.f32 %v1092_v61, %v1411_v18  ;;  %v1108_v4 = vpop.f32.mrb[10].mxu1  ;;  %v565_v5 = vpop.f32.mrb[11].mxu0  ;;  %v765_v50 = vld [vmem:[%s1416_s29 + $0xf0] sm:$0xff] }
 0x102   : > { %v820_v62 = vmax.f32 %v788_v51, 0.0  ;;  %854 = vst [vmem:[%s1453_s11 + $0xb8] sm:$0xff] %v822_v55  ;;  %v729_v6 = vadd.f32 %v1422_v20, %v690_v58  ;;  %v711_v7 = vadd.f32 %v1422_v20, %v672_v59  ;;  %v691_v10 = vmul.f32 %v1108_v4, %v1411_v18  ;;  %v629_v12 = vpop.f32.mrb[11].mxu1  ;;  %v747_v51 = vld [vmem:[%s1416_s29 + $0x60] sm:$0xff]  ;;  %v750_v59 = vld [vmem:[%s1416_s29 + $0x78] sm:$0xff] }
 0x103   : > { %836 = vst [vmem:[%s1453_s11 + $0x28] sm:$0xff] %v804_v56  ;;  %v673_v11 = vmul.f32 %v1411_v18, %v565_v5  ;;  %v777_v13 = vadd.f32 %v745_v57, %v713_v63  ;;  %v727_v14 = vadd.f32 %v1422_v20, %v688_v2  ;;  %v714_v15 = vadd.f32 %v1422_v20, %v675_v3  ;;  %v763_v58 = vld [vmem:[%s1416_s29 + $0xe0] sm:$0xff]  ;;  %v766_v2 = vld [vmem:[%s1416_s29 + $0xf8] sm:$0xff]  ;;  %v748_v3 = vld [vmem:[%s1416_s29 + $0x68] sm:$0xff] }
 0x104   : > { %852 = vst [vmem:[%s1453_s11 + $0xa8] sm:$0xff] %v820_v62  ;;  %v689_v19 = vmul.f32 %v1411_v18, %v629_v12  ;;  %v793_v21 = vadd.f32 %v761_v0, %v729_v6  ;;  %v775_v22 = vadd.f32 %v743_v1, %v711_v7  ;;  %v730_v23 = vadd.f32 %v1422_v20, %v691_v10 }
 0x105   : > { %v712_v24 = vadd.f32 %v1422_v20, %v673_v11  ;;  %v809_v26 = vmax.f32 %v777_v13, 0.0  ;;  %v791_v27 = vadd.f32 %v759_v8, %v727_v14  ;;  %v778_v28 = vadd.f32 %v746_v9, %v714_v15  ;;  %v764_v9 = vld [vmem:[%s1416_s29 + $0xe8] sm:$0xff] }
 0x106   : > { %v728_v29 = vadd.f32 %v1422_v20, %v689_v19  ;;  %v825_v30 = vmax.f32 %v793_v21, 0.0  ;;  %v807_v31 = vmax.f32 %v775_v22, 0.0  ;;  %v794_v32 = vadd.f32 %v762_v16, %v730_v23  ;;  %v1095_v34 = vpop.f32.mrb[12].mxu0 }
 0x107   : > { %v776_v33 = vadd.f32 %v744_v17, %v712_v24  ;;  %841 = vst [vmem:[%s1453_s11 + $0x50] sm:$0xff] %v809_v26  ;;  %v823_v35 = vmax.f32 %v791_v27, 0.0  ;;  %v810_v36 = vmax.f32 %v778_v28, 0.0  ;;  %v678_v38 = vmul.f32 %v1095_v34, %v1411_v18  ;;  %v1111_v39 = vpop.f32.mrb[12].mxu1  ;;  %v578_v40 = vpop.f32.mrb[13].mxu0 }
 0x108   : > { %v792_v37 = vadd.f32 %v760_v25, %v728_v29  ;;  %857 = vst [vmem:[%s1453_s11 + $0xd0] sm:$0xff] %v825_v30  ;;  %839 = vst [vmem:[%s1453_s11 + $0x40] sm:$0xff] %v807_v31  ;;  %v826_v41 = vmax.f32 %v794_v32, 0.0  ;;  %v694_v44 = vmul.f32 %v1111_v39, %v1411_v18  ;;  %v676_v45 = vmul.f32 %v1411_v18, %v578_v40  ;;  %v642_v46 = vpop.f32.mrb[13].mxu1  ;;  %v1096_v47 = vpop.f32.mrb[14].mxu0 }
 0x109   : > { %v808_v42 = vmax.f32 %v776_v33, 0.0  ;;  %855 = vst [vmem:[%s1453_s11 + $0xc0] sm:$0xff] %v823_v35  ;;  %842 = vst [vmem:[%s1453_s11 + $0x58] sm:$0xff] %v810_v36  ;;  %v717_v49 = vadd.f32 %v1422_v20, %v678_v38  ;;  %v692_v52 = vmul.f32 %v1411_v18, %v642_v46  ;;  %v679_v53 = vmul.f32 %v1096_v47, %v1411_v18  ;;  %v1112_v54 = vpop.f32.mrb[14].mxu1  ;;  %v581_v55 = vpop.f32.mrb[15].mxu0 }
 0x10a   : > { %v824_v48 = vmax.f32 %v792_v37, 0.0  ;;  %858 = vst [vmem:[%s1453_s11 + $0xd8] sm:$0xff] %v826_v41  ;;  %v733_v56 = vadd.f32 %v1422_v20, %v694_v44  ;;  %v715_v57 = vadd.f32 %v1422_v20, %v676_v45  ;;  %v695_v60 = vmul.f32 %v1112_v54, %v1411_v18  ;;  %v645_v62 = vpop.f32.mrb[15].mxu1 }
 0x10b   : > { %840 = vst [vmem:[%s1453_s11 + $0x48] sm:$0xff] %v808_v42  ;;  %v677_v61 = vmul.f32 %v1411_v18, %v581_v55  ;;  %v781_v63 = vadd.f32 %v749_v43, %v717_v49  ;;  %v731_v0 = vadd.f32 %v1422_v20, %v692_v52  ;;  %v718_v1 = vadd.f32 %v1422_v20, %v679_v53 }
 0x10c   : > { %856 = vst [vmem:[%s1453_s11 + $0xc8] sm:$0xff] %v824_v48  ;;  %v693_v4 = vmul.f32 %v1411_v18, %v645_v62  ;;  %v797_v5 = vadd.f32 %v765_v50, %v733_v56  ;;  %v779_v6 = vadd.f32 %v747_v51, %v715_v57  ;;  %v734_v7 = vadd.f32 %v1422_v20, %v695_v60 }
 0x10d   : > { %v716_v8 = vadd.f32 %v1422_v20, %v677_v61  ;;  %v813_v10 = vmax.f32 %v781_v63, 0.0  ;;  %v795_v11 = vadd.f32 %v763_v58, %v731_v0  ;;  %v782_v12 = vadd.f32 %v750_v59, %v718_v1 }
 0x10e   : > { %v732_v13 = vadd.f32 %v1422_v20, %v693_v4  ;;  %v829_v18 = vmax.f32 %v797_v5, 0.0  ;;  %v811_v14 = vmax.f32 %v779_v6, 0.0  ;;  %v798_v15 = vadd.f32 %v766_v2, %v734_v7 }
 0x10f   : > { %v780_v16 = vadd.f32 %v748_v3, %v716_v8  ;;  %845 = vst [vmem:[%s1453_s11 + $0x70] sm:$0xff] %v813_v10  ;;  %v827_v17 = vmax.f32 %v795_v11, 0.0  ;;  %v814_v19 = vmax.f32 %v782_v12, 0.0 }
 0x110   : > { %v796_v21 = vadd.f32 %v764_v9, %v732_v13  ;;  %861 = vst [vmem:[%s1453_s11 + $0xf0] sm:$0xff] %v829_v18  ;;  %843 = vst [vmem:[%s1453_s11 + $0x60] sm:$0xff] %v811_v14  ;;  %v830_v20 = vmax.f32 %v798_v15, 0.0 }
 0x111   : > { %v812_v22 = vmax.f32 %v780_v16, 0.0  ;;  %859 = vst [vmem:[%s1453_s11 + $0xe0] sm:$0xff] %v827_v17  ;;  %846 = vst [vmem:[%s1453_s11 + $0x78] sm:$0xff] %v814_v19 }
 0x112   : > { %v828_v23 = vmax.f32 %v796_v21, 0.0  ;;  %862 = vst [vmem:[%s1453_s11 + $0xf8] sm:$0xff] %v830_v20 }
 0x113   : > { %844 = vst [vmem:[%s1453_s11 + $0x68] sm:$0xff] %v812_v22 }
 0x114   : > { %860 = vst [vmem:[%s1453_s11 + $0xe8] sm:$0xff] %v828_v23 }
 0x115   : > { %1205 = shalt.err (!%p1202_p5)
}
 0x116   : > { %s1206_s29 = scalar_lea.hbm %s1559_s15, 4096  ;;  %s1210_s10 = scalar_lea.hbm %s1621_s5, 8192 }
 0x117   : > { %p1207_p6 = scmp.ne.s32.totalorder %s1559_s15, %s1206_s29  ;;  %p1211_p10 = scmp.lt.u32.totalorder %s1559_s15, %s1621_s5 }
 0x118   : > { %p1212_p11 = scmp.lt.u32.totalorder %s1210_s10, %s1206_s29  ;;  %p1214_p13 = scmp.lt.u32.totalorder %s1206_s29, %s1559_s15 }
 0x119   : > { %p1208_p7 = pnand %p1207_p6, %p1345_p4 }
 0x11a   : > { %p1213_p12 = por %p1212_p11, %p1211_p10 }
 0x11b   : > { %p1209_p9 = pneg %p1208_p7 }
 0x11c   : > { %p1215_p0 = por %p1214_p13, %p1213_p12 }
 0x11e   : > { %p1216_p1 = pnand %p1215_p0, %p1209_p9 }
 0x120   : > { %1219 = shalt.err (!%p1216_p1)
}
 0x121   : > { %s1273_s12 = smov 128   ;;  %s1274_s21 = smov 8  }
 0x122   : > { %1117 = dma.vmem_to_hbm [thread:$0]  (%p1345_p4), %s1561_s13, 4096, %s1559_s15, %s1570_s16, %s1273_s12, %s1273_s12, %s1274_s21  }
 0x123 PF: > { %p1123_p2 = scmp.ge.s32.totalorder %s1270_s23, 2  ;;  %s893_s14 = sand.u32 1, %s1250_s18  }
 0x124   : > { %s894_s17 = scalar_lea.sflag [#allocation3], %s893_s14 }
 0x125   : > { %p1120_p3 = pnand %p1123_p2, %p1352_p8 }
 0x127   : > { %1245 = dma.done.wait (!%p1120_p3), %s894_s17, 4096  }
 0x128   : > { %1247 = vsyncadd (!%p1120_p3), %s894_s17, 4294963200  ;;  %s18_s23 = sadd.s32 1, %s1270_s23   ;;  %s1624_s18 = smov %s1254_s19 }
 0x129   : > { %p15_p5 = scmp.ge.s32.totalorder %s18_s23, 4   ;;  %s1625_s19 = smov %s1258_s20 }
 0x12a   : > { %s1626_s20 = smov %s1358_s6  ;;  %s1627_s21 = smov %s1266_s22 }
 0x12b   : > { %s1628_s22 = smov %s1630_s26  ;;  %17 = sbr.rel (!%p15_p5) target bundleno = 4 (0x4), region = 87 }
 0x132   :  { %899 = vsyncpa [#allocation3], 1 }
 0x133   :  { %901 = vsyncpa [#allocation3 + $0x1], 1 }

// kernel: bottleneck_forward.4
= control target key start
LH: loop header
LB: loop body
LE: loop exit
PB: predicated region body
PF: predicated region fallthrough
CT: control target
= control target key end

     0   :  { %vm118_vm0 = vsmask.f32 3328  ;;  %vm119_vm1 = vsmask.f32 7440  ;;  %vm1002_vm3 = vcmask 261120   ;;  %vm2041_vm4 = vcmask 1042432   ;;  %s17154_s1 = inlined_call_operand.vmem [shape: bf16[3,3,32,32], index: 1, kind: input, shape index: {}]   ;;  %s17155_s0 = inlined_call_operand.vmem [shape: bf16[2,18,18,32], index: 0, kind: input, shape index: {}]   ;;  %s17156_s2 = inlined_call_operand.vmem [shape: f32[1,32], index: 2, kind: input, shape index: {}]   ;;  %s17157_s3 = inlined_call_operand.vmem [shape: f32[1,32], index: 3, kind: input, shape index: {}]   ;;  %s17158_s4 = inlined_call_operand.vmem [shape: bf16[512,32], index: 4, kind: output, shape index: {}]  }
   0x1   :  { %v12093_v0 = vld [vmem:[%s17154_s1 + $0x10] sm:$0xff]   ;;  %v12094_v1 = vld [vmem:[%s17154_s1 + $0x40] sm:$0xff]   ;;  %v12095_v2 = vld [vmem:[%s17154_s1 + $0x18] sm:$0xff]   ;;  %vm2042_vm5 = vcmask 1046532   ;;  %vm9354_vm7 = vcmask 257024  }
   0x2   :  { %10965 = vmatprep.subr.bf16.mxu1 %v12093_v0  ;;  %11237 = vmatprep.subr.bf16.mxu0 %v12094_v1  ;;  %v12096_v3 = vld [vmem:[%s17154_s1 + $0x48] sm:$0xff]   ;;  %v18_v4 = vld [vmem:[%s17155_s0] sm:$0xf]  ;;  %v19_v5 = vld [vmem:[%s17155_s0 + $0x4] sm:$0xf] }
   0x3   :  { %10966 = vmatpush3.bf16.msra.mxu1 %v12093_v0  ;;  %11238 = vmatpush3.bf16.msra.mxu0 %v12094_v1  ;;  %v86_v6 = vld [vmem:[%s17155_s0 + $0x8] sm:$0x1]  ;;  %v122_v7 = vshrl.u32 %v18_v4, 16  ;;  %v125_v8 = vshll.u32 %v18_v4, 16  ;;  %v131_v9 = vshll.u32 %v19_v5, 16  ;;  %v135_v10 = vshrl.u32 %v19_v5, 16  ;;  %vm12504_vm2 = vmor %vm118_vm0, %vm119_vm1 }
   0x4   :  { %10967 = vmatprep.subr.bf16.mxu1 %v12095_v2  ;;  %11239 = vmatprep.subr.bf16.mxu0 %v12096_v3  ;;  %v141_v11 = vshll.u32 %v86_v6, 16  ;;  %v12479_v12 = vld [vmem:[%s17154_s1] sm:$0xff]   ;;  %v12484_v13 = vld [vmem:[%s17154_s1 + $0x50] sm:$0xff]   ;;  %v9795_v18 = vld [vmem:[%s17155_s0 + $0xc] sm:$0xf] }
   0x5   :  { %v124_v14 = vrot.slane %v122_v7, 4  ;;  %v127_v15 = vrot.slane %v125_v8, 5  ;;  %v133_v16 = vrot.slane %v131_v9, 5  ;;  %v137_v17 = vrot.slane %v135_v10, 4  ;;  %v12493_v20 = vld [vmem:[%s17155_s0 + $0x10] sm:$0xf]  ;;  %vm12981_vm6 = vmor %vm2041_vm4, %vm2042_vm5 }
   0x6   :  { %v143_v19 = vrot.slane %v141_v11, 5  ;;  %v12498_v21 = vld [vmem:[%s17155_s0 + $0x14] sm:$0x1]  ;;  %v3618_v22 = vshrl.u32 %v9795_v18, 16  ;;  %v3621_v25 = vshll.u32 %v9795_v18, 16  ;;  %v3627_v26 = vshll.u32 %v12493_v20, 16 }
   0x7   :  { %10968 = vmatpush3.bf16.msra.mxu1 %v12095_v2  ;;  %11240 = vmatpush3.bf16.msra.mxu0 %v12096_v3  ;;  %v128_v23 = vor.u32 %v127_v15, %v124_v14  ;;  %v138_v24 = vor.u32 %v137_v17, %v133_v16  ;;  %v3631_v29 = vshrl.u32 %v12493_v20, 16  ;;  %v3637_v30 = vshll.u32 %v12498_v21, 16  ;;  %v20_v31 = vld [vmem:[%s17155_s0 + $0xc] sm:$0xf]  ;;  %v21_v36 = vld [vmem:[%s17155_s0 + $0x10] sm:$0xf] }
   0x8   :  { %11033 = vmatprep.subr.bf16.mxu1 %v12479_v12  ;;  %11305 = vmatprep.subr.bf16.mxu0 %v12484_v13  ;;  %v3620_v28 = vrot.slane %v3618_v22, 4  ;;  %v3623_v34 = vrot.slane %v3621_v25, 5  ;;  %v3629_v35 = vrot.slane %v3627_v26, 5  ;;  %v87_v39 = vld [vmem:[%s17155_s0 + $0x14] sm:$0x1]  ;;  %v146_v40 = vshrl.u32 %v20_v31, 16 }
   0x9   :  { %v129_v32 = vrot.slane %v128_v23, 4  ;;  %v139_v33 = vrot.slane %v138_v24, 4  ;;  %v3633_v37 = vrot.slane %v3631_v29, 4  ;;  %v3639_v38 = vrot.slane %v3637_v30, 5  ;;  %v9798_v49 = vld [vmem:[%s17155_s0 + $0x18] sm:$0xf] }
   0xa   :  { %v3624_v43 = vor.u32 %v3623_v34, %v3620_v28  ;;  %v149_v44 = vshll.u32 %v20_v31, 16  ;;  %v148_v47 = vrot.slane %v146_v40, 4  ;;  %v155_v48 = vshll.u32 %v21_v36, 16  ;;  %v12529_v54 = vld [vmem:[%s17155_s0 + $0x1c] sm:$0xf] }
   0xb   :  { %v134_v41 = vsel %vm12504_vm2, %v129_v32, %v133_v16  ;;  %v144_v42 = vsel %vm12504_vm2, %v139_v33, %v143_v19  ;;  %v3634_v46 = vor.u32 %v3633_v37, %v3629_v35  ;;  %v159_v52 = vshrl.u32 %v21_v36, 16  ;;  %v12539_v63 = vld [vmem:[%s17155_s0 + $0x20] sm:$0x1]  ;;  %v22_v8 = vld [vmem:[%s17155_s0 + $0x18] sm:$0xf] }
   0xc   :  { %v9427_v45 = vcombine.low %v134_v41, %v144_v42  ;;  %v3625_v50 = vrot.slane %v3624_v43, 4  ;;  %v151_v51 = vrot.slane %v149_v44, 5  ;;  %v165_v53 = vshll.u32 %v87_v39, 16  ;;  %v23_v19 = vld [vmem:[%s17155_s0 + $0x1c] sm:$0xf] }
   0xd   :  { %v3635_v55 = vrot.slane %v3634_v46, 4  ;;  %v5077_v56 = vrot.slane %v12493_v20, 5  ;;  %v5080_v57 = vrot.slane %v12498_v21, 5  ;;  %v157_v58 = vrot.slane %v155_v48, 5  ;;  %v88_v25 = vld [vmem:[%s17155_s0 + $0x20] sm:$0x1] }
   0xe   :  { %10969 = vmatprep.mubr.msk.bf16.mxu1 %vm1002_vm3, %v9427_v45  ;;  %v3630_v59 = vsel %vm12504_vm2, %v3625_v50, %v3629_v35  ;;  %v152_v60 = vor.u32 %v151_v51, %v148_v47  ;;  %v161_v61 = vrot.slane %v159_v52, 4  ;;  %v167_v62 = vrot.slane %v165_v53, 5  ;;  %v9801_v32 = vld [vmem:[%s17155_s0 + $0x24] sm:$0xf]  ;;  %v9802_v41 = vld [vmem:[%s17155_s0 + $0x28] sm:$0xf] }
   0xf   :  { %v3640_v0 = vsel %vm12504_vm2, %v3635_v55, %v3639_v38  ;;  %v3642_v1 = vshrl.u32 %v9798_v49, 16  ;;  %v3645_v2 = vshll.u32 %v9798_v49, 16  ;;  %v3651_v3 = vshll.u32 %v12529_v54, 16  ;;  %v9803_v44 = vld [vmem:[%s17155_s0 + $0x2c] sm:$0x1] }
  0x10   :  { %v9895_v4 = vcombine.low %v3630_v59, %v3640_v0  ;;  %v153_v5 = vrot.slane %v152_v60, 4  ;;  %v162_v6 = vor.u32 %v161_v61, %v157_v58  ;;  %v3655_v7 = vshrl.u32 %v12529_v54, 16  ;;  %v24_v51 = vld [vmem:[%s17155_s0 + $0x24] sm:$0xf]  ;;  %v12099_v59 = vld [vmem:[%s17154_s1 + $0x58] sm:$0xff]  }
  0x11   :  { %v3644_v9 = vrot.slane %v3642_v1, 4  ;;  %v3647_v10 = vrot.slane %v3645_v2, 5  ;;  %v3653_v11 = vrot.slane %v3651_v3, 5  ;;  %v3661_v14 = vshll.u32 %v12539_v63, 16  ;;  %v25_v1 = vld [vmem:[%s17155_s0 + $0x28] sm:$0xf] }
  0x12   :  { %11241 = vmatprep.mubr.msk.bf16.mxu0 %vm1002_vm3, %v9895_v4  ;;  %v158_v15 = vsel %vm12504_vm2, %v153_v5, %v157_v58  ;;  %v163_v16 = vrot.slane %v162_v6, 4  ;;  %v3657_v17 = vrot.slane %v3655_v7, 4  ;;  %v5084_v18 = vrot.slane %v12529_v54, 5  ;;  %v89_v4 = vld [vmem:[%s17155_s0 + $0x2c] sm:$0x1] }
  0x13   :  { %v3648_v22 = vor.u32 %v3647_v10, %v3644_v9  ;;  %v3663_v23 = vrot.slane %v3661_v14, 5  ;;  %v5087_v24 = vrot.slane %v12539_v63, 5  ;;  %v170_v26 = vshrl.u32 %v22_v8, 16  ;;  %v54_v20 = vld [vmem:[%s17155_s0 + $0xf0] sm:$0xf] }
  0x14   :  { %v168_v28 = vsel %vm12504_vm2, %v163_v16, %v167_v62  ;;  %v3658_v29 = vor.u32 %v3657_v17, %v3653_v11  ;;  %v12564_v30 = vrot.slane %v5084_v18, 4  ;;  %v173_v31 = vshll.u32 %v22_v8, 16  ;;  %v56_v54 = vld [vmem:[%s17155_s0 + $0xfc] sm:$0xf] }
  0x15   :  { %v9428_v33 = vcombine.low %v158_v15, %v168_v28  ;;  %v3649_v34 = vrot.slane %v3648_v22, 4  ;;  %v172_v35 = vrot.slane %v170_v26, 4  ;;  %v179_v36 = vshll.u32 %v23_v19, 16  ;;  %v9805_v26 = vld [vmem:[%s17155_s0 + $0x34] sm:$0xf] }
  0x16   :  { %v3659_v37 = vrot.slane %v3658_v29, 4  ;;  %v175_v38 = vrot.slane %v173_v31, 5  ;;  %v183_v39 = vshrl.u32 %v23_v19, 16  ;;  %v189_v40 = vshll.u32 %v88_v25, 16 }
  0x17   :  { %10970 = vmatmul.mubr.msk.bf16.vlgmr.msra.gmra.mrb[0].mxu1 %vm1002_vm3, %v9428_v33  ;;  %v3654_v42 = vsel %vm12504_vm2, %v3649_v34, %v3653_v11  ;;  %v181_v43 = vrot.slane %v179_v36, 5  ;;  %v3666_v45 = vshrl.u32 %v9801_v32, 16  ;;  %v3669_v46 = vshll.u32 %v9801_v32, 16  ;;  %v9804_v11 = vld [vmem:[%s17155_s0 + $0x30] sm:$0xf] }
  0x18   :  { %11034 = vmatpush3.bf16.msra.mxu1 %v12479_v12  ;;  %v3664_v47 = vsel %vm12504_vm2, %v3659_v37, %v3663_v23  ;;  %v176_v48 = vor.u32 %v175_v38, %v172_v35  ;;  %v185_v49 = vrot.slane %v183_v39, 4  ;;  %v191_v50 = vrot.slane %v189_v40, 5  ;;  %v12100_v12 = vld [vmem:[%s17154_s1 + $0x8] sm:$0xff]   ;;  %v9806_v33 = vld [vmem:[%s17155_s0 + $0x38] sm:$0x1] }
  0x19   :  { %v9896_v52 = vcombine.low %v3654_v42, %v3664_v47  ;;  %v3668_v53 = vrot.slane %v3666_v45, 4  ;;  %v3671_v55 = vrot.slane %v3669_v46, 5  ;;  %v3675_v58 = vshll.u32 %v9802_v41, 16  ;;  %11035 = vmatprep.subr.bf16.mxu1 %v12100_v12  ;;  %v26_v42 = vld [vmem:[%s17155_s0 + $0x30] sm:$0xf] }
  0x1a   :  { %v177_v60 = vrot.slane %v176_v48, 4  ;;  %v186_v61 = vor.u32 %v185_v49, %v181_v43  ;;  %v3679_v62 = vshrl.u32 %v9802_v41, 16  ;;  %v3685_v0 = vshll.u32 %v9803_v44, 16  ;;  %v27_v47 = vld [vmem:[%s17155_s0 + $0x34] sm:$0xf] }
  0x1b   :  { %11242 = vmatmul.mubr.msk.bf16.vlgmr.msra.gmra.mrb[0].mxu0 %vm1002_vm3, %v9896_v52  ;;  %v3672_v2 = vor.u32 %v3671_v55, %v3668_v53  ;;  %v3677_v3 = vrot.slane %v3675_v58, 5  ;;  %v194_v5 = vshrl.u32 %v24_v51, 16  ;;  %v197_v6 = vshll.u32 %v24_v51, 16  ;;  %v90_v52 = vld [vmem:[%s17155_s0 + $0x38] sm:$0x1] }
  0x1c   :  { %11306 = vmatpush3.bf16.msra.mxu0 %v12484_v13  ;;  %v182_v7 = vsel %vm12504_vm2, %v177_v60, %v181_v43  ;;  %v187_v8 = vrot.slane %v186_v61, 4  ;;  %v3681_v9 = vrot.slane %v3679_v62, 4  ;;  %v3687_v10 = vrot.slane %v3685_v0, 5  ;;  %11036 = vmatpush3.bf16.msra.mxu1 %v12100_v12  ;;  %v12101_v13 = vld [vmem:[%s17154_s1 + $0x60] sm:$0xff]   ;;  %v9807_v0 = vld [vmem:[%s17155_s0 + $0x3c] sm:$0xf] }
  0x1d   :  { %v3673_v14 = vrot.slane %v3672_v2, 4  ;;  %v196_v15 = vrot.slane %v194_v5, 4  ;;  %v199_v16 = vrot.slane %v197_v6, 5  ;;  %v203_v17 = vshll.u32 %v25_v1, 16  ;;  %11307 = vmatprep.subr.bf16.mxu0 %v12099_v59  ;;  %v9808_v5 = vld [vmem:[%s17155_s0 + $0x40] sm:$0xf] }
  0x1e   :  { %v192_v19 = vsel %vm12504_vm2, %v187_v8, %v191_v50  ;;  %v3682_v22 = vor.u32 %v3681_v9, %v3677_v3  ;;  %v207_v23 = vshrl.u32 %v25_v1, 16  ;;  %v213_v25 = vshll.u32 %v89_v4, 16 }
  0x1f   :  { %v9429_v28 = vcombine.low %v182_v7, %v192_v19  ;;  %v3678_v29 = vsel %vm12504_vm2, %v3673_v14, %v3677_v3  ;;  %v200_v31 = vor.u32 %v199_v16, %v196_v15  ;;  %v205_v32 = vrot.slane %v203_v17, 5 }
  0x20   :  { %v3683_v34 = vrot.slane %v3682_v22, 4  ;;  %v209_v35 = vrot.slane %v207_v23, 4  ;;  %v215_v36 = vrot.slane %v213_v25, 5  ;;  %v3690_v37 = vshrl.u32 %v9804_v11, 16  ;;  %11308 = vmatpush3.bf16.msra.mxu0 %v12099_v59  ;;  %v28_v23 = vld [vmem:[%s17155_s0 + $0x3c] sm:$0xf] }
  0x21   :  { %10973 = vmatprep.mubr.msk.bf16.mxu1 %vm1002_vm3, %v9429_v28  ;;  %v201_v38 = vrot.slane %v200_v31, 4  ;;  %v3693_v39 = vshll.u32 %v9804_v11, 16  ;;  %v3699_v40 = vshll.u32 %v9805_v26, 16  ;;  %v3703_v41 = vshrl.u32 %v9805_v26, 16  ;;  %11373 = vmatprep.subr.bf16.mxu0 %v12101_v13  ;;  %v9809_v13 = vld [vmem:[%s17155_s0 + $0x44] sm:$0x1] }
  0x22   :  { %v3688_v43 = vsel %vm12504_vm2, %v3683_v34, %v3687_v10  ;;  %v210_v44 = vor.u32 %v209_v35, %v205_v32  ;;  %v3692_v45 = vrot.slane %v3690_v37, 4  ;;  %v3709_v46 = vshll.u32 %v9806_v33, 16  ;;  %v29_v31 = vld [vmem:[%s17155_s0 + $0x40] sm:$0xf] }
  0x23   :  { %v9897_v48 = vcombine.low %v3678_v29, %v3688_v43  ;;  %v206_v49 = vsel %vm12504_vm2, %v201_v38, %v205_v32  ;;  %v3695_v50 = vrot.slane %v3693_v39, 5  ;;  %v3701_v51 = vrot.slane %v3699_v40, 5 }
  0x24   :  { %v211_v53 = vrot.slane %v210_v44, 4  ;;  %v3705_v55 = vrot.slane %v3703_v41, 4  ;;  %v3711_v58 = vrot.slane %v3709_v46, 5  ;;  %v218_v59 = vshrl.u32 %v26_v42, 16 }
  0x25   :  { %11245 = vmatprep.mubr.msk.bf16.mxu0 %vm1002_vm3, %v9897_v48  ;;  %v3696_v12 = vor.u32 %v3695_v50, %v3692_v45  ;;  %v221_v60 = vshll.u32 %v26_v42, 16  ;;  %v227_v61 = vshll.u32 %v27_v47, 16  ;;  %v231_v62 = vshrl.u32 %v27_v47, 16  ;;  %v91_v42 = vld [vmem:[%s17155_s0 + $0x44] sm:$0x1] }
  0x26   :  { %v216_v1 = vsel %vm12504_vm2, %v211_v53, %v215_v36  ;;  %v3706_v2 = vor.u32 %v3705_v55, %v3701_v51  ;;  %v220_v3 = vrot.slane %v218_v59, 4  ;;  %v237_v4 = vshll.u32 %v90_v52, 16  ;;  %v9810_v45 = vld [vmem:[%s17155_s0 + $0x48] sm:$0xf]  ;;  %v9811_v50 = vld [vmem:[%s17155_s0 + $0x4c] sm:$0xf] }
  0x27   :  { %v9430_v6 = vcombine.low %v206_v49, %v216_v1  ;;  %v3697_v7 = vrot.slane %v3696_v12, 4  ;;  %v223_v8 = vrot.slane %v221_v60, 5  ;;  %v229_v9 = vrot.slane %v227_v61, 5 }
  0x28   :  { %v3707_v10 = vrot.slane %v3706_v2, 4  ;;  %v233_v11 = vrot.slane %v231_v62, 4  ;;  %v239_v14 = vrot.slane %v237_v4, 5  ;;  %v3714_v15 = vshrl.u32 %v9807_v0, 16 }
  0x29   :  { %10974 = vmatmul.mubr.msk.bf16.gmra.mrb[4].mxu1 %vm1002_vm3, %v9430_v6  ;;  %v3702_v16 = vsel %vm12504_vm2, %v3697_v7, %v3701_v51  ;;  %v224_v17 = vor.u32 %v223_v8, %v220_v3  ;;  %v3717_v19 = vshll.u32 %v9807_v0, 16  ;;  %v3723_v22 = vshll.u32 %v9808_v5, 16  ;;  %v9812_v0 = vld [vmem:[%s17155_s0 + $0x50] sm:$0x1]  ;;  %v30_v3 = vld [vmem:[%s17155_s0 + $0x48] sm:$0xf] }
  0x2a   :  { %v3712_v25 = vsel %vm12504_vm2, %v3707_v10, %v3711_v58  ;;  %v234_v26 = vor.u32 %v233_v11, %v229_v9  ;;  %v3716_v28 = vrot.slane %v3714_v15, 4  ;;  %v3727_v29 = vshrl.u32 %v9808_v5, 16  ;;  %v31_v8 = vld [vmem:[%s17155_s0 + $0x4c] sm:$0xf] }
  0x2b   :  { %v9898_v32 = vcombine.low %v3702_v16, %v3712_v25  ;;  %v225_v33 = vrot.slane %v224_v17, 4  ;;  %v3719_v34 = vrot.slane %v3717_v19, 5  ;;  %v3725_v35 = vrot.slane %v3723_v22, 5 }
  0x2c   :  { %v235_v36 = vrot.slane %v234_v26, 4  ;;  %v3729_v37 = vrot.slane %v3727_v29, 4  ;;  %v3733_v38 = vshll.u32 %v9809_v13, 16  ;;  %v242_v39 = vshrl.u32 %v28_v23, 16 }
  0x2d   :  { %11246 = vmatmul.mubr.msk.bf16.gmra.mrb[4].mxu0 %vm1002_vm3, %v9898_v32  ;;  %v230_v40 = vsel %vm12504_vm2, %v225_v33, %v229_v9  ;;  %v3720_v41 = vor.u32 %v3719_v34, %v3716_v28  ;;  %v245_v43 = vshll.u32 %v28_v23, 16  ;;  %v251_v44 = vshll.u32 %v29_v31, 16  ;;  %v92_v23 = vld [vmem:[%s17155_s0 + $0x50] sm:$0x1]  ;;  %v9813_v28 = vld [vmem:[%s17155_s0 + $0x54] sm:$0xf] }
  0x2e   :  { %v240_v46 = vsel %vm12504_vm2, %v235_v36, %v239_v14  ;;  %v3730_v47 = vor.u32 %v3729_v37, %v3725_v35  ;;  %v3735_v48 = vrot.slane %v3733_v38, 5  ;;  %v244_v49 = vrot.slane %v242_v39, 4 }
  0x2f   :  { %v9431_v51 = vcombine.low %v230_v40, %v240_v46  ;;  %v3721_v52 = vrot.slane %v3720_v41, 4  ;;  %v247_v53 = vrot.slane %v245_v43, 5  ;;  %v253_v55 = vrot.slane %v251_v44, 5  ;;  %v9814_v41 = vld [vmem:[%s17155_s0 + $0x58] sm:$0xf] }
  0x30   :  { %v3731_v58 = vrot.slane %v3730_v47, 4  ;;  %v255_v59 = vshrl.u32 %v29_v31, 16  ;;  %v261_v12 = vshll.u32 %v91_v42, 16  ;;  %v3738_v60 = vshrl.u32 %v9810_v45, 16  ;;  %v9815_v47 = vld [vmem:[%s17155_s0 + $0x5c] sm:$0x1] }
  0x31   :  { %10977 = vmatprep.mubr.msk.bf16.mxu1 %vm1002_vm3, %v9431_v51  ;;  %v3726_v61 = vsel %vm12504_vm2, %v3721_v52, %v3725_v35  ;;  %v248_v62 = vor.u32 %v247_v53, %v244_v49  ;;  %v3741_v1 = vshll.u32 %v9810_v45, 16  ;;  %v3747_v2 = vshll.u32 %v9811_v50, 16 }
  0x32   :  { %v3736_v4 = vsel %vm12504_vm2, %v3731_v58, %v3735_v48  ;;  %v257_v5 = vrot.slane %v255_v59, 4  ;;  %v263_v6 = vrot.slane %v261_v12, 5  ;;  %v3740_v7 = vrot.slane %v3738_v60, 4  ;;  %v32_v48 = vld [vmem:[%s17155_s0 + $0x54] sm:$0xf] }
  0x33   :  { %v9899_v9 = vcombine.low %v3726_v61, %v3736_v4  ;;  %v249_v10 = vrot.slane %v248_v62, 4  ;;  %v3743_v11 = vrot.slane %v3741_v1, 5  ;;  %v3749_v14 = vrot.slane %v3747_v2, 5  ;;  %v33_v62 = vld [vmem:[%s17155_s0 + $0x58] sm:$0xf] }
  0x34   :  { %v258_v15 = vor.u32 %v257_v5, %v253_v55  ;;  %v3751_v16 = vshrl.u32 %v9811_v50, 16  ;;  %v3757_v17 = vshll.u32 %v9812_v0, 16  ;;  %v266_v13 = vshrl.u32 %v30_v3, 16  ;;  %v93_v5 = vld [vmem:[%s17155_s0 + $0x5c] sm:$0x1] }
  0x35   :  { %11249 = vmatprep.mubr.msk.bf16.mxu0 %vm1002_vm3, %v9899_v9  ;;  %v254_v19 = vsel %vm12504_vm2, %v249_v10, %v253_v55  ;;  %v3744_v22 = vor.u32 %v3743_v11, %v3740_v7  ;;  %v269_v25 = vshll.u32 %v30_v3, 16  ;;  %v275_v26 = vshll.u32 %v31_v8, 16  ;;  %v9816_v10 = vld [vmem:[%s17155_s0 + $0x60] sm:$0xf] }
  0x36   :  { %v259_v29 = vrot.slane %v258_v15, 4  ;;  %v3753_v31 = vrot.slane %v3751_v16, 4  ;;  %v3759_v32 = vrot.slane %v3757_v17, 5  ;;  %v268_v33 = vrot.slane %v266_v13, 4 }
  0x37   :  { %v3745_v34 = vrot.slane %v3744_v22, 4  ;;  %v271_v35 = vrot.slane %v269_v25, 5  ;;  %v277_v36 = vrot.slane %v275_v26, 5  ;;  %v279_v37 = vshrl.u32 %v31_v8, 16 }
  0x38   :  { %v264_v38 = vsel %vm12504_vm2, %v259_v29, %v263_v6  ;;  %v3754_v39 = vor.u32 %v3753_v31, %v3749_v14  ;;  %v285_v40 = vshll.u32 %v92_v23, 16  ;;  %v3762_v42 = vshrl.u32 %v9813_v28, 16  ;;  %v9817_v23 = vld [vmem:[%s17155_s0 + $0x64] sm:$0xf]  ;;  %v9818_v29 = vld [vmem:[%s17155_s0 + $0x68] sm:$0x1] }
  0x39   :  { %v9432_v43 = vcombine.low %v254_v19, %v264_v38  ;;  %v3750_v44 = vsel %vm12504_vm2, %v3745_v34, %v3749_v14  ;;  %v272_v45 = vor.u32 %v271_v35, %v268_v33  ;;  %v281_v46 = vrot.slane %v279_v37, 4 }
  0x3a   :  { %v3755_v49 = vrot.slane %v3754_v39, 4  ;;  %v287_v50 = vrot.slane %v285_v40, 5  ;;  %v3764_v51 = vrot.slane %v3762_v42, 4  ;;  %v3765_v52 = vshll.u32 %v9813_v28, 16  ;;  %v34_v40 = vld [vmem:[%s17155_s0 + $0x60] sm:$0xf] }
  0x3b   :  { %10978 = vmatmul.mubr.msk.bf16.gmra.mrb[8].mxu1 %vm1002_vm3, %v9432_v43  ;;  %v273_v53 = vrot.slane %v272_v45, 4  ;;  %v282_v55 = vor.u32 %v281_v46, %v277_v36  ;;  %v3771_v58 = vshll.u32 %v9814_v41, 16  ;;  %v3775_v59 = vshrl.u32 %v9814_v41, 16  ;;  %v35_v45 = vld [vmem:[%s17155_s0 + $0x64] sm:$0xf] }
  0x3c   :  { %v3760_v12 = vsel %vm12504_vm2, %v3755_v49, %v3759_v32  ;;  %v3767_v60 = vrot.slane %v3765_v52, 5  ;;  %v3781_v61 = vshll.u32 %v9815_v47, 16  ;;  %v290_v0 = vshrl.u32 %v32_v48, 16 }
  0x3d   :  { %v9900_v1 = vcombine.low %v3750_v44, %v3760_v12  ;;  %v278_v2 = vsel %vm12504_vm2, %v273_v53, %v277_v36  ;;  %v283_v3 = vrot.slane %v282_v55, 4  ;;  %v3773_v4 = vrot.slane %v3771_v58, 5  ;;  %v94_v53 = vld [vmem:[%s17155_s0 + $0x68] sm:$0x1] }
  0x3e   :  { %v3768_v6 = vor.u32 %v3767_v60, %v3764_v51  ;;  %v3777_v7 = vrot.slane %v3775_v59, 4  ;;  %v3783_v8 = vrot.slane %v3781_v61, 5  ;;  %v292_v9 = vrot.slane %v290_v0, 4  ;;  %v9819_v61 = vld [vmem:[%s17155_s0 + $0x6c] sm:$0xf] }
  0x3f   :  { %11250 = vmatmul.mubr.msk.bf16.gmra.mrb[8].mxu0 %vm1002_vm3, %v9900_v1  ;;  %v288_v11 = vsel %vm12504_vm2, %v283_v3, %v287_v50  ;;  %v293_v14 = vshll.u32 %v32_v48, 16  ;;  %v299_v15 = vshll.u32 %v33_v62, 16  ;;  %v303_v16 = vshrl.u32 %v33_v62, 16  ;;  %v9820_v3 = vld [vmem:[%s17155_s0 + $0x70] sm:$0xf] }
  0x40   :  { %v9433_v17 = vcombine.low %v278_v2, %v288_v11  ;;  %v3769_v13 = vrot.slane %v3768_v6, 4  ;;  %v3778_v19 = vor.u32 %v3777_v7, %v3773_v4  ;;  %v309_v22 = vshll.u32 %v93_v5, 16 }
  0x41   :  { %v295_v25 = vrot.slane %v293_v14, 5  ;;  %v301_v26 = vrot.slane %v299_v15, 5  ;;  %v305_v28 = vrot.slane %v303_v16, 4  ;;  %v3786_v31 = vshrl.u32 %v9816_v10, 16 }
  0x42   :  { %10981 = vmatprep.mubr.msk.bf16.mxu1 %vm1002_vm3, %v9433_v17  ;;  %v3774_v32 = vsel %vm12504_vm2, %v3769_v13, %v3773_v4  ;;  %v3779_v33 = vrot.slane %v3778_v19, 4  ;;  %v311_v34 = vrot.slane %v309_v22, 5  ;;  %v3789_v35 = vshll.u32 %v9816_v10, 16  ;;  %v9821_v10 = vld [vmem:[%s17155_s0 + $0x74] sm:$0x1] }
  0x43   :  { %v296_v36 = vor.u32 %v295_v25, %v292_v9  ;;  %v306_v37 = vor.u32 %v305_v28, %v301_v26  ;;  %v3788_v38 = vrot.slane %v3786_v31, 4  ;;  %v3795_v39 = vshll.u32 %v9817_v23, 16  ;;  %v36_v19 = vld [vmem:[%s17155_s0 + $0x6c] sm:$0xf]  ;;  %v37_v28 = vld [vmem:[%s17155_s0 + $0x70] sm:$0xf] }
  0x44   :  { %v3784_v41 = vsel %vm12504_vm2, %v3779_v33, %v3783_v8  ;;  %v3791_v42 = vrot.slane %v3789_v35, 5  ;;  %v3799_v43 = vshrl.u32 %v9817_v23, 16  ;;  %v3805_v44 = vshll.u32 %v9818_v29, 16 }
  0x45   :  { %v9901_v46 = vcombine.low %v3774_v32, %v3784_v41  ;;  %v297_v47 = vrot.slane %v296_v36, 4  ;;  %v307_v48 = vrot.slane %v306_v37, 4  ;;  %v3797_v49 = vrot.slane %v3795_v39, 5  ;;  %v9822_v39 = vld [vmem:[%s17155_s0 + $0x78] sm:$0xf] }
  0x46   :  { %v3792_v50 = vor.u32 %v3791_v42, %v3788_v38  ;;  %v3801_v51 = vrot.slane %v3799_v43, 4  ;;  %v3807_v52 = vrot.slane %v3805_v44, 5  ;;  %v314_v55 = vshrl.u32 %v34_v40, 16  ;;  %v9823_v44 = vld [vmem:[%s17155_s0 + $0x7c] sm:$0xf] }
  0x47   :  { %11253 = vmatprep.mubr.msk.bf16.mxu0 %vm1002_vm3, %v9901_v46  ;;  %v302_v58 = vsel %vm12504_vm2, %v297_v47, %v301_v26  ;;  %v312_v59 = vsel %vm12504_vm2, %v307_v48, %v311_v34  ;;  %v317_v12 = vshll.u32 %v34_v40, 16  ;;  %v323_v60 = vshll.u32 %v35_v45, 16  ;;  %v95_v34 = vld [vmem:[%s17155_s0 + $0x74] sm:$0x1] }
  0x48   :  { %v9434_v62 = vcombine.low %v302_v58, %v312_v59  ;;  %v3793_v0 = vrot.slane %v3792_v50, 4  ;;  %v3802_v1 = vor.u32 %v3801_v51, %v3797_v49  ;;  %v316_v2 = vrot.slane %v314_v55, 4 }
  0x49   :  { %v319_v4 = vrot.slane %v317_v12, 5  ;;  %v325_v5 = vrot.slane %v323_v60, 5  ;;  %v327_v6 = vshrl.u32 %v35_v45, 16  ;;  %v333_v7 = vshll.u32 %v94_v53, 16 }
  0x4a   :  { %10982 = vmatmul.mubr.msk.bf16.gmra.mrb[12].mxu1 %vm1002_vm3, %v9434_v62  ;;  %v3798_v8 = vsel %vm12504_vm2, %v3793_v0, %v3797_v49  ;;  %v3803_v9 = vrot.slane %v3802_v1, 4  ;;  %v3810_v11 = vshrl.u32 %v9819_v61, 16  ;;  %v3813_v14 = vshll.u32 %v9819_v61, 16  ;;  %v9824_v61 = vld [vmem:[%s17155_s0 + $0x80] sm:$0x1] }
  0x4b   :  { %v320_v15 = vor.u32 %v319_v4, %v316_v2  ;;  %v329_v16 = vrot.slane %v327_v6, 4  ;;  %v335_v17 = vrot.slane %v333_v7, 5  ;;  %v3819_v13 = vshll.u32 %v9820_v3, 16 }
  0x4c   :  { %v3808_v22 = vsel %vm12504_vm2, %v3803_v9, %v3807_v52  ;;  %v3812_v23 = vrot.slane %v3810_v11, 4  ;;  %v3815_v25 = vrot.slane %v3813_v14, 5  ;;  %v3823_v26 = vshrl.u32 %v9820_v3, 16 }
  0x4d   :  { %v9902_v29 = vcombine.low %v3798_v8, %v3808_v22  ;;  %v321_v31 = vrot.slane %v320_v15, 4  ;;  %v330_v32 = vor.u32 %v329_v16, %v325_v5  ;;  %v3821_v33 = vrot.slane %v3819_v13, 5 }
  0x4e   :  { %v3816_v35 = vor.u32 %v3815_v25, %v3812_v23  ;;  %v3825_v36 = vrot.slane %v3823_v26, 4  ;;  %v3829_v37 = vshll.u32 %v9821_v10, 16  ;;  %v338_v38 = vshrl.u32 %v36_v19, 16  ;;  %v39_v10 = vld [vmem:[%s17155_s0 + $0x7c] sm:$0xf] }
  0x4f   :  { %11254 = vmatmul.mubr.msk.bf16.gmra.mrb[12].mxu0 %vm1002_vm3, %v9902_v29  ;;  %v326_v40 = vsel %vm12504_vm2, %v321_v31, %v325_v5  ;;  %v331_v41 = vrot.slane %v330_v32, 4  ;;  %v341_v42 = vshll.u32 %v36_v19, 16  ;;  %v347_v43 = vshll.u32 %v37_v28, 16  ;;  %v38_v5 = vld [vmem:[%s17155_s0 + $0x78] sm:$0xf] }
  0x50   :  { %v3817_v45 = vrot.slane %v3816_v35, 4  ;;  %v3826_v46 = vor.u32 %v3825_v36, %v3821_v33  ;;  %v3831_v47 = vrot.slane %v3829_v37, 5  ;;  %v340_v48 = vrot.slane %v338_v38, 4  ;;  %v9825_v31 = vld [vmem:[%s17155_s0 + $0x84] sm:$0xf] }
  0x51   :  { %v336_v49 = vsel %vm12504_vm2, %v331_v41, %v335_v17  ;;  %v343_v50 = vrot.slane %v341_v42, 5  ;;  %v349_v51 = vrot.slane %v347_v43, 5  ;;  %v351_v52 = vshrl.u32 %v37_v28, 16  ;;  %v96_v28 = vld [vmem:[%s17155_s0 + $0x80] sm:$0x1] }
  0x52   :  { %v9435_v53 = vcombine.low %v326_v40, %v336_v49  ;;  %v3822_v55 = vsel %vm12504_vm2, %v3817_v45, %v3821_v33  ;;  %v3827_v58 = vrot.slane %v3826_v46, 4  ;;  %v357_v59 = vshll.u32 %v95_v34, 16  ;;  %v9826_v36 = vld [vmem:[%s17155_s0 + $0x88] sm:$0xf] }
  0x53   :  { %v344_v12 = vor.u32 %v343_v50, %v340_v48  ;;  %v353_v60 = vrot.slane %v351_v52, 4  ;;  %v3834_v62 = vshrl.u32 %v9822_v39, 16  ;;  %v3837_v0 = vshll.u32 %v9822_v39, 16  ;;  %v40_v50 = vld [vmem:[%s17155_s0 + $0x84] sm:$0xf] }
  0x54   :  { %10985 = vmatprep.mubr.msk.bf16.mxu1 %vm1002_vm3, %v9435_v53  ;;  %v3832_v1 = vsel %vm12504_vm2, %v3827_v58, %v3831_v47  ;;  %v359_v2 = vrot.slane %v357_v59, 5  ;;  %v3843_v3 = vshll.u32 %v9823_v44, 16  ;;  %v3847_v4 = vshrl.u32 %v9823_v44, 16  ;;  %v9827_v47 = vld [vmem:[%s17155_s0 + $0x8c] sm:$0x1] }
  0x55   :  { %v9903_v6 = vcombine.low %v3822_v55, %v3832_v1  ;;  %v345_v7 = vrot.slane %v344_v12, 4  ;;  %v354_v8 = vor.u32 %v353_v60, %v349_v51  ;;  %v3836_v9 = vrot.slane %v3834_v62, 4  ;;  %v41_v58 = vld [vmem:[%s17155_s0 + $0x88] sm:$0xf] }
  0x56   :  { %v3839_v11 = vrot.slane %v3837_v0, 5  ;;  %v3845_v14 = vrot.slane %v3843_v3, 5  ;;  %v3849_v15 = vrot.slane %v3847_v4, 4  ;;  %v3853_v16 = vshll.u32 %v9824_v61, 16 }
  0x57   :  { %11257 = vmatprep.mubr.msk.bf16.mxu0 %vm1002_vm3, %v9903_v6  ;;  %v350_v17 = vsel %vm12504_vm2, %v345_v7, %v349_v51  ;;  %v355_v13 = vrot.slane %v354_v8, 4  ;;  %v362_v19 = vshrl.u32 %v38_v5, 16  ;;  %v365_v22 = vshll.u32 %v38_v5, 16  ;;  %v9828_v8 = vld [vmem:[%s17155_s0 + $0x90] sm:$0xf] }
  0x58   :  { %v3840_v23 = vor.u32 %v3839_v11, %v3836_v9  ;;  %v3850_v25 = vor.u32 %v3849_v15, %v3845_v14  ;;  %v3855_v26 = vrot.slane %v3853_v16, 5  ;;  %v371_v29 = vshll.u32 %v39_v10, 16 }
  0x59   :  { %v360_v32 = vsel %vm12504_vm2, %v355_v13, %v359_v2  ;;  %v364_v33 = vrot.slane %v362_v19, 4  ;;  %v367_v34 = vrot.slane %v365_v22, 5  ;;  %v375_v35 = vshrl.u32 %v39_v10, 16  ;;  %v97_v2 = vld [vmem:[%s17155_s0 + $0x8c] sm:$0x1] }
  0x5a   :  { %v9436_v37 = vcombine.low %v350_v17, %v360_v32  ;;  %v3841_v38 = vrot.slane %v3840_v23, 4  ;;  %v3851_v39 = vrot.slane %v3850_v25, 4  ;;  %v373_v40 = vrot.slane %v371_v29, 5  ;;  %v9829_v19 = vld [vmem:[%s17155_s0 + $0x94] sm:$0xf] }
  0x5b   :  { %v368_v41 = vor.u32 %v367_v34, %v364_v33  ;;  %v377_v42 = vrot.slane %v375_v35, 4  ;;  %v381_v43 = vshll.u32 %v96_v28, 16  ;;  %v3858_v44 = vshrl.u32 %v9825_v31, 16  ;;  %v9830_v32 = vld [vmem:[%s17155_s0 + $0x98] sm:$0x1] }
  0x5c   :  { %10986 = vmatmul.mubr.msk.bf16.gmra.mrb[16].mxu1 %vm1002_vm3, %v9436_v37  ;;  %v3846_v45 = vsel %vm12504_vm2, %v3841_v38, %v3845_v14  ;;  %v3856_v46 = vsel %vm12504_vm2, %v3851_v39, %v3855_v26  ;;  %v3861_v48 = vshll.u32 %v9825_v31, 16  ;;  %v3867_v49 = vshll.u32 %v9826_v36, 16  ;;  %v42_v38 = vld [vmem:[%s17155_s0 + $0x90] sm:$0xf] }
  0x5d   :  { %v9904_v51 = vcombine.low %v3846_v45, %v3856_v46  ;;  %v369_v52 = vrot.slane %v368_v41, 4  ;;  %v378_v53 = vor.u32 %v377_v42, %v373_v40  ;;  %v383_v55 = vrot.slane %v381_v43, 5  ;;  %v43_v43 = vld [vmem:[%s17155_s0 + $0x94] sm:$0xf] }
  0x5e   :  { %v3860_v59 = vrot.slane %v3858_v44, 4  ;;  %v3863_v12 = vrot.slane %v3861_v48, 5  ;;  %v3869_v60 = vrot.slane %v3867_v49, 5  ;;  %v3871_v61 = vshrl.u32 %v9826_v36, 16 }
  0x5f   :  { %11258 = vmatmul.mubr.msk.bf16.gmra.mrb[16].mxu0 %vm1002_vm3, %v9904_v51  ;;  %v374_v62 = vsel %vm12504_vm2, %v369_v52, %v373_v40  ;;  %v379_v0 = vrot.slane %v378_v53, 4  ;;  %v3877_v1 = vshll.u32 %v9827_v47, 16  ;;  %v386_v3 = vshrl.u32 %v40_v50, 16  ;;  %v98_v51 = vld [vmem:[%s17155_s0 + $0x98] sm:$0x1] }
  0x60   :  { %v3864_v4 = vor.u32 %v3863_v12, %v3860_v59  ;;  %v3873_v5 = vrot.slane %v3871_v61, 4  ;;  %v389_v6 = vshll.u32 %v40_v50, 16  ;;  %v395_v7 = vshll.u32 %v41_v58, 16  ;;  %v9831_v12 = vld [vmem:[%s17155_s0 + $0x9c] sm:$0xf] }
  0x61   :  { %v384_v9 = vsel %vm12504_vm2, %v379_v0, %v383_v55  ;;  %v3879_v10 = vrot.slane %v3877_v1, 5  ;;  %v388_v11 = vrot.slane %v386_v3, 4  ;;  %v399_v14 = vshrl.u32 %v41_v58, 16  ;;  %v9832_v1 = vld [vmem:[%s17155_s0 + $0xa0] sm:$0xf] }
  0x62   :  { %v9437_v15 = vcombine.low %v374_v62, %v384_v9  ;;  %v3865_v16 = vrot.slane %v3864_v4, 4  ;;  %v3874_v17 = vor.u32 %v3873_v5, %v3869_v60  ;;  %v391_v13 = vrot.slane %v389_v6, 5 }
  0x63   :  { %v397_v22 = vrot.slane %v395_v7, 5  ;;  %v401_v23 = vrot.slane %v399_v14, 4  ;;  %v405_v25 = vshll.u32 %v97_v2, 16  ;;  %v3882_v26 = vshrl.u32 %v9828_v8, 16 }
  0x64   :  { %10989 = vmatprep.mubr.msk.bf16.mxu1 %vm1002_vm3, %v9437_v15  ;;  %v3870_v28 = vsel %vm12504_vm2, %v3865_v16, %v3869_v60  ;;  %v3875_v29 = vrot.slane %v3874_v17, 4  ;;  %v392_v31 = vor.u32 %v391_v13, %v388_v11  ;;  %v3885_v33 = vshll.u32 %v9828_v8, 16  ;;  %v9833_v8 = vld [vmem:[%s17155_s0 + $0xa4] sm:$0x1]  ;;  %v44_v17 = vld [vmem:[%s17155_s0 + $0x9c] sm:$0xf] }
  0x65   :  { %v402_v34 = vor.u32 %v401_v23, %v397_v22  ;;  %v407_v35 = vrot.slane %v405_v25, 5  ;;  %v3884_v36 = vrot.slane %v3882_v26, 4  ;;  %v3891_v37 = vshll.u32 %v9829_v19, 16  ;;  %v45_v25 = vld [vmem:[%s17155_s0 + $0xa0] sm:$0xf] }
  0x66   :  { %v3880_v39 = vsel %vm12504_vm2, %v3875_v29, %v3879_v10  ;;  %v393_v40 = vrot.slane %v392_v31, 4  ;;  %v3887_v41 = vrot.slane %v3885_v33, 5  ;;  %v3895_v42 = vshrl.u32 %v9829_v19, 16 }
  0x67   :  { %v9905_v44 = vcombine.low %v3870_v28, %v3880_v39  ;;  %v403_v45 = vrot.slane %v402_v34, 4  ;;  %v3893_v46 = vrot.slane %v3891_v37, 5  ;;  %v3901_v47 = vshll.u32 %v9830_v32, 16  ;;  %v99_v39 = vld [vmem:[%s17155_s0 + $0xa4] sm:$0x1] }
  0x68   :  { %v398_v48 = vsel %vm12504_vm2, %v393_v40, %v397_v22  ;;  %v3888_v49 = vor.u32 %v3887_v41, %v3884_v36  ;;  %v3897_v50 = vrot.slane %v3895_v42, 4  ;;  %v410_v52 = vshrl.u32 %v42_v38, 16  ;;  %v12103_v36 = vld [vmem:[%s17154_s1 + $0x20] sm:$0xff]  }
  0x69   :  { %11261 = vmatprep.mubr.msk.bf16.mxu0 %vm1002_vm3, %v9905_v44  ;;  %v408_v53 = vsel %vm12504_vm2, %v403_v45, %v407_v35  ;;  %v3903_v55 = vrot.slane %v3901_v47, 5  ;;  %v413_v58 = vshll.u32 %v42_v38, 16  ;;  %v419_v59 = vshll.u32 %v43_v43, 16  ;;  %11101 = vmatprep.subr.bf16.mxu1 %v12103_v36 }
  0x6a   :  { %v9438_v60 = vcombine.low %v398_v48, %v408_v53  ;;  %v3889_v61 = vrot.slane %v3888_v49, 4  ;;  %v3898_v62 = vor.u32 %v3897_v50, %v3893_v46  ;;  %v412_v0 = vrot.slane %v410_v52, 4 }
  0x6b   :  { %v415_v2 = vrot.slane %v413_v58, 5  ;;  %v421_v3 = vrot.slane %v419_v59, 5  ;;  %v423_v4 = vshrl.u32 %v43_v43, 16  ;;  %v429_v5 = vshll.u32 %v98_v51, 16  ;;  %v9835_v51 = vld [vmem:[%s17155_s0 + $0xac] sm:$0xf] }
  0x6c   :  { %10990 = vmatmul.mubr.msk.bf16.gmra.mrb[20].mxu1 %vm1002_vm3, %v9438_v60  ;;  %v3894_v6 = vsel %vm12504_vm2, %v3889_v61, %v3893_v46  ;;  %v3899_v7 = vrot.slane %v3898_v62, 4  ;;  %v3906_v9 = vshrl.u32 %v9831_v12, 16  ;;  %v3909_v10 = vshll.u32 %v9831_v12, 16  ;;  %v9834_v46 = vld [vmem:[%s17155_s0 + $0xa8] sm:$0xf] }
  0x6d   :  { %v416_v11 = vor.u32 %v415_v2, %v412_v0  ;;  %v425_v14 = vrot.slane %v423_v4, 4  ;;  %v431_v15 = vrot.slane %v429_v5, 5  ;;  %v3915_v16 = vshll.u32 %v9832_v1, 16  ;;  %v9836_v60 = vld [vmem:[%s17155_s0 + $0xb0] sm:$0x1] }
  0x6e   :  { %v3904_v13 = vsel %vm12504_vm2, %v3899_v7, %v3903_v55  ;;  %v3908_v19 = vrot.slane %v3906_v9, 4  ;;  %v3911_v22 = vrot.slane %v3909_v10, 5  ;;  %v3919_v23 = vshrl.u32 %v9832_v1, 16  ;;  %v46_v4 = vld [vmem:[%s17155_s0 + $0xa8] sm:$0xf] }
  0x6f   :  { %v9906_v26 = vcombine.low %v3894_v6, %v3904_v13  ;;  %v417_v28 = vrot.slane %v416_v11, 4  ;;  %v426_v29 = vor.u32 %v425_v14, %v421_v3  ;;  %v3917_v31 = vrot.slane %v3915_v16, 5  ;;  %v47_v9 = vld [vmem:[%s17155_s0 + $0xac] sm:$0xf] }
  0x70   :  { %v3912_v32 = vor.u32 %v3911_v22, %v3908_v19  ;;  %v3921_v33 = vrot.slane %v3919_v23, 4  ;;  %v3925_v34 = vshll.u32 %v9833_v8, 16  ;;  %v434_v35 = vshrl.u32 %v44_v17, 16 }
  0x71   :  { %11262 = vmatmul.mubr.msk.bf16.gmra.mrb[20].mxu0 %vm1002_vm3, %v9906_v26  ;;  %v422_v37 = vsel %vm12504_vm2, %v417_v28, %v421_v3  ;;  %v427_v38 = vrot.slane %v426_v29, 4  ;;  %v437_v40 = vshll.u32 %v44_v17, 16  ;;  %v443_v41 = vshll.u32 %v45_v25, 16  ;;  %v100_v26 = vld [vmem:[%s17155_s0 + $0xb0] sm:$0x1] }
  0x72   :  { %v3913_v42 = vrot.slane %v3912_v32, 4  ;;  %v3922_v43 = vor.u32 %v3921_v33, %v3917_v31  ;;  %v3927_v44 = vrot.slane %v3925_v34, 5  ;;  %v436_v45 = vrot.slane %v434_v35, 4  ;;  %v9837_v29 = vld [vmem:[%s17155_s0 + $0xb4] sm:$0xf] }
  0x73   :  { %v432_v47 = vsel %vm12504_vm2, %v427_v38, %v431_v15  ;;  %v439_v48 = vrot.slane %v437_v40, 5  ;;  %v445_v49 = vrot.slane %v443_v41, 5  ;;  %v447_v50 = vshrl.u32 %v45_v25, 16  ;;  %v9838_v35 = vld [vmem:[%s17155_s0 + $0xb8] sm:$0xf] }
  0x74   :  { %v9439_v52 = vcombine.low %v422_v37, %v432_v47  ;;  %v3918_v53 = vsel %vm12504_vm2, %v3913_v42, %v3917_v31  ;;  %v3923_v55 = vrot.slane %v3922_v43, 4  ;;  %v453_v58 = vshll.u32 %v99_v39, 16 }
  0x75   :  { %v440_v59 = vor.u32 %v439_v48, %v436_v45  ;;  %v449_v12 = vrot.slane %v447_v50, 4  ;;  %v3930_v61 = vshrl.u32 %v9834_v46, 16  ;;  %v3933_v62 = vshll.u32 %v9834_v46, 16  ;;  %v9839_v46 = vld [vmem:[%s17155_s0 + $0xbc] sm:$0x1] }
  0x76   :  { %10993 = vmatprep.mubr.msk.bf16.mxu1 %vm1002_vm3, %v9439_v52  ;;  %v3928_v0 = vsel %vm12504_vm2, %v3923_v55, %v3927_v44  ;;  %v455_v1 = vrot.slane %v453_v58, 5  ;;  %v3939_v2 = vshll.u32 %v9835_v51, 16  ;;  %v3943_v3 = vshrl.u32 %v9835_v51, 16  ;;  %v49_v55 = vld [vmem:[%s17155_s0 + $0xb8] sm:$0xf] }
  0x77   :  { %v9907_v5 = vcombine.low %v3918_v53, %v3928_v0  ;;  %v441_v6 = vrot.slane %v440_v59, 4  ;;  %v450_v7 = vor.u32 %v449_v12, %v445_v49  ;;  %v3932_v8 = vrot.slane %v3930_v61, 4 }
  0x78   :  { %v3935_v10 = vrot.slane %v3933_v62, 5  ;;  %v3941_v11 = vrot.slane %v3939_v2, 5  ;;  %v3945_v14 = vrot.slane %v3943_v3, 4  ;;  %v3949_v15 = vshll.u32 %v9836_v60, 16 }
  0x79   :  { %11265 = vmatprep.mubr.msk.bf16.mxu0 %vm1002_vm3, %v9907_v5  ;;  %v446_v16 = vsel %vm12504_vm2, %v441_v6, %v445_v49  ;;  %v451_v17 = vrot.slane %v450_v7, 4  ;;  %v458_v13 = vshrl.u32 %v46_v4, 16  ;;  %v461_v19 = vshll.u32 %v46_v4, 16  ;;  %v48_v49 = vld [vmem:[%s17155_s0 + $0xb4] sm:$0xf] }
  0x7a   :  { %v3936_v22 = vor.u32 %v3935_v10, %v3932_v8  ;;  %v3946_v23 = vor.u32 %v3945_v14, %v3941_v11  ;;  %v3951_v25 = vrot.slane %v3949_v15, 5  ;;  %v467_v28 = vshll.u32 %v47_v9, 16  ;;  %v9840_v7 = vld [vmem:[%s17155_s0 + $0xc0] sm:$0xf]  ;;  %v9841_v14 = vld [vmem:[%s17155_s0 + $0xc4] sm:$0xf] }
  0x7b   :  { %v456_v31 = vsel %vm12504_vm2, %v451_v17, %v455_v1  ;;  %v460_v32 = vrot.slane %v458_v13, 4  ;;  %v463_v33 = vrot.slane %v461_v19, 5  ;;  %v471_v34 = vshrl.u32 %v47_v9, 16  ;;  %v101_v1 = vld [vmem:[%s17155_s0 + $0xbc] sm:$0x1] }
  0x7c   :  { %v9440_v36 = vcombine.low %v446_v16, %v456_v31  ;;  %v3937_v37 = vrot.slane %v3936_v22, 4  ;;  %v3947_v38 = vrot.slane %v3946_v23, 4  ;;  %v469_v39 = vrot.slane %v467_v28, 5  ;;  %v9842_v31 = vld [vmem:[%s17155_s0 + $0xc8] sm:$0x1] }
  0x7d   :  { %v464_v40 = vor.u32 %v463_v33, %v460_v32  ;;  %v473_v41 = vrot.slane %v471_v34, 4  ;;  %v477_v42 = vshll.u32 %v100_v26, 16  ;;  %v3954_v43 = vshrl.u32 %v9837_v29, 16 }
  0x7e   :  { %10994 = vmatmul.mubr.msk.bf16.gmra.mrb[24].mxu1 %vm1002_vm3, %v9440_v36  ;;  %v3942_v44 = vsel %vm12504_vm2, %v3937_v37, %v3941_v11  ;;  %v3952_v45 = vsel %vm12504_vm2, %v3947_v38, %v3951_v25  ;;  %v3957_v47 = vshll.u32 %v9837_v29, 16  ;;  %v3963_v48 = vshll.u32 %v9838_v35, 16  ;;  %v50_v37 = vld [vmem:[%s17155_s0 + $0xd8] sm:$0xf] }
  0x7f   :  { %v9908_v50 = vcombine.low %v3942_v44, %v3952_v45  ;;  %v465_v51 = vrot.slane %v464_v40, 4  ;;  %v474_v52 = vor.u32 %v473_v41, %v469_v39  ;;  %v479_v53 = vrot.slane %v477_v42, 5  ;;  %v51_v42 = vld [vmem:[%s17155_s0 + $0xdc] sm:$0xf] }
  0x80   :  { %v3956_v58 = vrot.slane %v3954_v43, 4  ;;  %v3959_v59 = vrot.slane %v3957_v47, 5  ;;  %v3965_v12 = vrot.slane %v3963_v48, 5  ;;  %v3967_v60 = vshrl.u32 %v9838_v35, 16 }
  0x81   :  { %11266 = vmatmul.mubr.msk.bf16.gmra.mrb[24].mxu0 %vm1002_vm3, %v9908_v50  ;;  %v470_v61 = vsel %vm12504_vm2, %v465_v51, %v469_v39  ;;  %v475_v62 = vrot.slane %v474_v52, 4  ;;  %v3973_v0 = vshll.u32 %v9839_v46, 16  ;;  %v482_v2 = vshrl.u32 %v48_v49, 16  ;;  %v102_v50 = vld [vmem:[%s17155_s0 + $0xe0] sm:$0x1] }
  0x82   :  { %v3960_v3 = vor.u32 %v3959_v59, %v3956_v58  ;;  %v3969_v4 = vrot.slane %v3967_v60, 4  ;;  %v485_v5 = vshll.u32 %v48_v49, 16  ;;  %v491_v6 = vshll.u32 %v49_v55, 16 }
  0x83   :  { %v480_v8 = vsel %vm12504_vm2, %v475_v62, %v479_v53  ;;  %v3975_v9 = vrot.slane %v3973_v0, 5  ;;  %v484_v10 = vrot.slane %v482_v2, 4  ;;  %v495_v11 = vshrl.u32 %v49_v55, 16  ;;  %v9961_v62 = vld [vmem:[%s17155_s0 + $0xc] sm:$0xe] }
  0x84   :  { %v9441_v15 = vcombine.low %v470_v61, %v480_v8  ;;  %v3961_v16 = vrot.slane %v3960_v3, 4  ;;  %v3970_v17 = vor.u32 %v3969_v4, %v3965_v12  ;;  %v487_v13 = vrot.slane %v485_v5, 5  ;;  %v52_v4 = vld [vmem:[%s17155_s0 + $0xe4] sm:$0xf] }
  0x85   :  { %v493_v19 = vrot.slane %v491_v6, 5  ;;  %v497_v22 = vrot.slane %v495_v11, 4  ;;  %v501_v23 = vshll.u32 %v101_v1, 16  ;;  %v3978_v25 = vshrl.u32 %v9840_v7, 16 }
  0x86   :  { %10997 = vmatprep.mubr.msk.bf16.mxu1 %vm1002_vm3, %v9441_v15  ;;  %v3966_v26 = vsel %vm12504_vm2, %v3961_v16, %v3965_v12  ;;  %v3971_v28 = vrot.slane %v3970_v17, 4  ;;  %v488_v29 = vor.u32 %v487_v13, %v484_v10  ;;  %v3981_v32 = vshll.u32 %v9840_v7, 16 }
  0x87   :  { %v498_v33 = vor.u32 %v497_v22, %v493_v19  ;;  %v503_v34 = vrot.slane %v501_v23, 5  ;;  %v3980_v35 = vrot.slane %v3978_v25, 4  ;;  %v3987_v36 = vshll.u32 %v9841_v14, 16 }
  0x88   :  { %v3976_v38 = vsel %vm12504_vm2, %v3971_v28, %v3975_v9  ;;  %v489_v39 = vrot.slane %v488_v29, 4  ;;  %v3983_v40 = vrot.slane %v3981_v32, 5  ;;  %v3991_v41 = vshrl.u32 %v9841_v14, 16  ;;  %v53_v14 = vld [vmem:[%s17155_s0 + $0xe8] sm:$0xf] }
  0x89   :  { %v9909_v43 = vcombine.low %v3966_v26, %v3976_v38  ;;  %v499_v44 = vrot.slane %v498_v33, 4  ;;  %v3989_v45 = vrot.slane %v3987_v36, 5  ;;  %v3997_v46 = vshll.u32 %v9842_v31, 16  ;;  %v103_v26 = vld [vmem:[%s17155_s0 + $0xec] sm:$0x1] }
  0x8a   :  { %v494_v47 = vsel %vm12504_vm2, %v489_v39, %v493_v19  ;;  %v3984_v48 = vor.u32 %v3983_v40, %v3980_v35  ;;  %v3993_v49 = vrot.slane %v3991_v41, 4  ;;  %v506_v51 = vshrl.u32 %v50_v37, 16  ;;  %v9962_v28 = vld [vmem:[%s17155_s0 + $0x18] sm:$0xe] }
  0x8b   :  { %11269 = vmatprep.mubr.msk.bf16.mxu0 %vm1002_vm3, %v9909_v43  ;;  %v504_v52 = vsel %vm12504_vm2, %v499_v44, %v503_v34  ;;  %v3999_v53 = vrot.slane %v3997_v46, 5  ;;  %v509_v55 = vshll.u32 %v50_v37, 16  ;;  %v515_v58 = vshll.u32 %v51_v42, 16  ;;  %v104_v43 = vld [vmem:[%s17155_s0 + $0xf8] sm:$0x1] }
  0x8c   :  { %v9442_v59 = vcombine.low %v494_v47, %v504_v52  ;;  %v3985_v12 = vrot.slane %v3984_v48, 4  ;;  %v3994_v60 = vor.u32 %v3993_v49, %v3989_v45  ;;  %v508_v61 = vrot.slane %v506_v51, 4 }
  0x8d   :  { %v511_v0 = vrot.slane %v509_v55, 5  ;;  %v517_v1 = vrot.slane %v515_v58, 5  ;;  %v519_v2 = vshrl.u32 %v51_v42, 16  ;;  %v525_v3 = vshll.u32 %v102_v50, 16  ;;  %v55_v42 = vld [vmem:[%s17155_s0 + $0xf4] sm:$0xf] }
  0x8e   :  { %10998 = vmatmul.mubr.msk.bf16.gmra.mrb[28].mxu1 %vm1002_vm3, %v9442_v59  ;;  %v3990_v5 = vsel %vm12504_vm2, %v3985_v12, %v3989_v45  ;;  %v3995_v6 = vrot.slane %v3994_v60, 4  ;;  %v9993_v11 = vrot.slane %v9961_v62, 9  ;;  %v5079_v16 = vrot.slane %v5077_v56, 4  ;;  %v12207_v12 = vld [vmem:[%s17155_s0 + $0x28] sm:$0xf] }
  0x8f   :  { %v512_v7 = vor.u32 %v511_v0, %v508_v61  ;;  %v521_v8 = vrot.slane %v519_v2, 4  ;;  %v527_v9 = vrot.slane %v525_v3, 5  ;;  %v530_v17 = vshrl.u32 %v52_v4, 16  ;;  %v12104_v61 = vld [vmem:[%s17154_s1 + $0x68] sm:$0xff]  }
  0x90   :  { %v4000_v15 = vsel %vm12504_vm2, %v3995_v6, %v3999_v53  ;;  %v533_v13 = vshll.u32 %v52_v4, 16  ;;  %v5078_v25 = vsel %vm12981_vm6, %v9993_v11, %v5077_v56  ;;  %v5081_v29 = vsel %vm12981_vm6, %v5079_v16, %v5080_v57  ;;  %v12208_v2 = vld [vmem:[%s17155_s0 + $0x2c] sm:$0x1]  ;;  %v57_v4 = vld [vmem:[%s17155_s0 + $0x100] sm:$0xf] }
  0x91   :  { %v9910_v19 = vcombine.low %v3990_v5, %v4000_v15  ;;  %v513_v22 = vrot.slane %v512_v7, 4  ;;  %v522_v23 = vor.u32 %v521_v8, %v517_v1  ;;  %v532_v31 = vrot.slane %v530_v17, 4 }
  0x92   :  { %v535_v32 = vrot.slane %v533_v13, 5  ;;  %v539_v33 = vshll.u32 %v53_v14, 16  ;;  %v10029_v35 = vcombine.low %v5078_v25, %v5081_v29  ;;  %v543_v36 = vshrl.u32 %v53_v14, 16  ;;  %v12209_v14 = vld [vmem:[%s17154_s1 + $0x60] sm:$0xff]   ;;  %v9964_v13 = vld [vmem:[%s17155_s0 + $0x30] sm:$0xe] }
  0x93   :  { %11270 = vmatmul.mubr.msk.bf16.gmra.mrb[28].mxu0 %vm1002_vm3, %v9910_v19  ;;  %v518_v56 = vsel %vm12504_vm2, %v513_v22, %v517_v1  ;;  %v523_v34 = vrot.slane %v522_v23, 4  ;;  %v549_v38 = vshll.u32 %v103_v26, 16  ;;  %v9994_v39 = vrot.slane %v9962_v28, 9 }
  0x94   :  { %v536_v37 = vor.u32 %v535_v32, %v532_v31  ;;  %v541_v21 = vrot.slane %v539_v33, 5  ;;  %11309 = vmatprep.mubr.msk.bf16.mxu0 %vm1002_vm3, %v10029_v35  ;;  %v545_v40 = vrot.slane %v543_v36, 4  ;;  %v5088_v41 = vsel %vm12981_vm6, %v12564_v30, %v5087_v24  ;;  %v9963_v24 = vld [vmem:[%s17155_s0 + $0x24] sm:$0xe] }
  0x95   :  { %v528_v57 = vsel %vm12504_vm2, %v523_v34, %v527_v9  ;;  %v554_v44 = vshrl.u32 %v54_v20, 16  ;;  %v551_v47 = vrot.slane %v549_v38, 5  ;;  %v5085_v63 = vsel %vm12981_vm6, %v9994_v39, %v5084_v18  ;;  %v105_v9 = vld [vmem:[%s17155_s0 + $0x104] sm:$0x1]  ;;  %v58_v34 = vld [vmem:[%s17155_s0 + $0x108] sm:$0xf] }
  0x96   :  { %v9443_v45 = vcombine.low %v518_v56, %v528_v57  ;;  %v537_v46 = vrot.slane %v536_v37, 4  ;;  %v546_v30 = vor.u32 %v545_v40, %v541_v21  ;;  %v10030_v48 = vcombine.low %v5085_v63, %v5088_v41  ;;  %v59_v39 = vld [vmem:[%s17155_s0 + $0x10c] sm:$0xf]  ;;  %v106_v57 = vld [vmem:[%s17155_s0 + $0x110] sm:$0x1] }
  0x97   :  { %v556_v49 = vrot.slane %v554_v44, 4  ;;  %v557_v50 = vshll.u32 %v54_v20, 16  ;;  %v563_v52 = vshll.u32 %v55_v42, 16  ;;  %v567_v53 = vshrl.u32 %v55_v42, 16 }
  0x98   :  { %11001 = vmatprep.mubr.msk.bf16.mxu1 %vm1002_vm3, %v9443_v45  ;;  %v542_v51 = vsel %vm12504_vm2, %v537_v46, %v541_v21  ;;  %v573_v55 = vshll.u32 %v104_v43, 16  ;;  %v547_v18 = vrot.slane %v546_v30, 4  ;;  %v9995_v59 = vrot.slane %v9963_v24, 9  ;;  %v12210_v21 = vld [vmem:[%s17155_s0 + $0x34] sm:$0xf] }
  0x99   :  { %v559_v58 = vrot.slane %v557_v50, 5  ;;  %v5091_v60 = vrot.slane %v12207_v12, 5  ;;  %v565_v62 = vrot.slane %v563_v52, 5  ;;  %v569_v0 = vrot.slane %v567_v53, 4  ;;  %v12211_v43 = vld [vmem:[%s17155_s0 + $0x38] sm:$0x1] }
  0x9a   :  { %v575_v1 = vrot.slane %v573_v55, 5  ;;  %v5094_v3 = vrot.slane %v12208_v2, 5  ;;  %v552_v5 = vsel %vm12504_vm2, %v547_v18, %v551_v47  ;;  %v578_v16 = vshrl.u32 %v56_v54, 16  ;;  %v9965_v45 = vld [vmem:[%s17155_s0 + $0x3c] sm:$0xe] }
  0x9b   :  { %11310 = vmatmul.mubr.msk.bf16.vlgmr.msra.gmra.mrb[0].mxu0 %vm1002_vm3, %v10030_v48  ;;  %v560_v6 = vor.u32 %v559_v58, %v556_v49  ;;  %v5092_v7 = vsel %vm12981_vm6, %v9995_v59, %v5091_v60  ;;  %v5093_v8 = vrot.slane %v5091_v60, 4  ;;  %v9444_v11 = vcombine.low %v542_v51, %v552_v5  ;;  %v60_v30 = vld [vmem:[%s17155_s0 + $0x114] sm:$0xf]  ;;  %v61_v52 = vld [vmem:[%s17155_s0 + $0x118] sm:$0xf] }
  0x9c   :  { %11374 = vmatpush3.bf16.msra.mxu0 %v12209_v14  ;;  %v570_v15 = vor.u32 %v569_v0, %v565_v62  ;;  %v581_v17 = vshll.u32 %v56_v54, 16  ;;  %v587_v23 = vshll.u32 %v57_v4, 16  ;;  %v591_v25 = vshrl.u32 %v57_v4, 16  ;;  %v12213_v5 = vld [vmem:[%s17155_s0 + $0x44] sm:$0x1] }
  0x9d   :  { %v561_v19 = vrot.slane %v560_v6, 4  ;;  %v5095_v22 = vsel %vm12981_vm6, %v5093_v8, %v5094_v3  ;;  %11375 = vmatprep.subr.bf16.mxu0 %v12104_v61  ;;  %11002 = vmatmul.mubr.msk.bf16.gmra.mrb[32].mxu1 %vm1002_vm3, %v9444_v11  ;;  %v580_v29 = vrot.slane %v578_v16, 4  ;;  %v597_v56 = vshll.u32 %v105_v9, 16  ;;  %v12212_v3 = vld [vmem:[%s17155_s0 + $0x40] sm:$0xf] }
  0x9e   :  { %v571_v26 = vrot.slane %v570_v15, 4  ;;  %v10031_v28 = vcombine.low %v5092_v7, %v5095_v22  ;;  %v583_v31 = vrot.slane %v581_v17, 5  ;;  %v589_v33 = vrot.slane %v587_v23, 5  ;;  %v107_v7 = vld [vmem:[%s17155_s0 + $0x11c] sm:$0x1] }
  0x9f   :  { %v566_v32 = vsel %vm12504_vm2, %v561_v19, %v565_v62  ;;  %v593_v20 = vrot.slane %v591_v25, 4  ;;  %v9996_v37 = vrot.slane %v9964_v13, 9  ;;  %v5098_v38 = vrot.slane %v12210_v21, 5  ;;  %v9966_v16 = vld [vmem:[%s17155_s0 + $0x48] sm:$0xe] }
  0xa0   :  { %v576_v35 = vsel %vm12504_vm2, %v571_v26, %v575_v1  ;;  %11313 = vmatprep.mubr.msk.bf16.mxu0 %vm1002_vm3, %v10031_v28  ;;  %v584_v36 = vor.u32 %v583_v31, %v580_v29  ;;  %11376 = vmatpush3.bf16.msra.mxu0 %v12104_v61  ;;  %v599_v42 = vrot.slane %v597_v56, 5  ;;  %v5101_v44 = vrot.slane %v12211_v43, 5  ;;  %v63_v56 = vld [vmem:[%s17155_s0 + $0x124] sm:$0xf]  ;;  %v9967_v43 = vld [vmem:[%s17155_s0 + $0x54] sm:$0xe] }
  0xa1   :  { %v9445_v40 = vcombine.low %v566_v32, %v576_v35  ;;  %v594_v41 = vor.u32 %v593_v20, %v589_v33  ;;  %v5099_v47 = vsel %vm12981_vm6, %v9996_v37, %v5098_v38  ;;  %v5100_v63 = vrot.slane %v5098_v38, 4  ;;  %v62_v20 = vld [vmem:[%s17155_s0 + $0x120] sm:$0xf] }
  0xa2   :  { %v585_v46 = vrot.slane %v584_v36, 4  ;;  %v602_v24 = vshrl.u32 %v58_v34, 16  ;;  %v605_v49 = vshll.u32 %v58_v34, 16  ;;  %v611_v50 = vshll.u32 %v59_v39, 16 }
  0xa3   :  { %11005 = vmatprep.mubr.msk.bf16.mxu1 %vm1002_vm3, %v9445_v40  ;;  %v595_v48 = vrot.slane %v594_v41, 4  ;;  %v615_v51 = vshrl.u32 %v59_v39, 16  ;;  %v5102_v55 = vsel %vm12981_vm6, %v5100_v63, %v5101_v44  ;;  %v621_v18 = vshll.u32 %v106_v57, 16  ;;  %v12214_v39 = vld [vmem:[%s17155_s0 + $0x4c] sm:$0xf] }
  0xa4   :  { %v590_v53 = vsel %vm12504_vm2, %v585_v46, %v589_v33  ;;  %v604_v54 = vrot.slane %v602_v24, 4  ;;  %v10032_v59 = vcombine.low %v5099_v47, %v5102_v55  ;;  %v607_v12 = vrot.slane %v605_v49, 5  ;;  %v12215_v40 = vld [vmem:[%s17155_s0 + $0x50] sm:$0x1]  ;;  %v64_v63 = vld [vmem:[%s17155_s0 + $0x12c] sm:$0xf] }
  0xa5   :  { %v600_v58 = vsel %vm12504_vm2, %v595_v48, %v599_v42  ;;  %v613_v60 = vrot.slane %v611_v50, 5  ;;  %v617_v62 = vrot.slane %v615_v51, 4  ;;  %v623_v0 = vrot.slane %v621_v18, 5  ;;  %v108_v42 = vld [vmem:[%s17155_s0 + $0x128] sm:$0x1] }
  0xa6   :  { %v9446_v61 = vcombine.low %v590_v53, %v600_v58  ;;  %v9997_v1 = vrot.slane %v9965_v45, 9  ;;  %11314 = vmatmul.mubr.msk.bf16.gmra.mrb[4].mxu0 %vm1002_vm3, %v10032_v59  ;;  %v608_v2 = vor.u32 %v607_v12, %v604_v54  ;;  %v5105_v4 = vrot.slane %v12212_v3, 5  ;;  %v65_v55 = vld [vmem:[%s17155_s0 + $0x130] sm:$0xf] }
  0xa7   :  { %v5108_v6 = vrot.slane %v12213_v5, 5  ;;  %v626_v8 = vshrl.u32 %v60_v30, 16  ;;  %v618_v9 = vor.u32 %v617_v62, %v613_v60  ;;  %v629_v11 = vshll.u32 %v60_v30, 16  ;;  %v12123_v12 = vld [vmem:[%s17154_s1 + $0x70] sm:$0xff]  }
  0xa8   :  { %11006 = vmatmul.mubr.msk.bf16.gmra.mrb[36].mxu1 %vm1002_vm3, %v9446_v61  ;;  %v635_v14 = vshll.u32 %v61_v52, 16  ;;  %v639_v15 = vshrl.u32 %v61_v52, 16  ;;  %v609_v17 = vrot.slane %v608_v2, 4  ;;  %v5106_v13 = vsel %vm12981_vm6, %v9997_v1, %v5105_v4  ;;  %v109_v1 = vld [vmem:[%s17155_s0 + $0x134] sm:$0x1]  ;;  %11441 = vmatprep.subr.bf16.mxu0 %v12123_v12 }
  0xa9   :  { %v5107_v19 = vrot.slane %v5105_v4, 4  ;;  %v628_v22 = vrot.slane %v626_v8, 4  ;;  %v619_v23 = vrot.slane %v618_v9, 4  ;;  %v631_v25 = vrot.slane %v629_v11, 5  ;;  %v9968_v2 = vld [vmem:[%s17155_s0 + $0x60] sm:$0xe] }
  0xaa   :  { %v637_v26 = vrot.slane %v635_v14, 5  ;;  %v641_v28 = vrot.slane %v639_v15, 4  ;;  %v614_v29 = vsel %vm12504_vm2, %v609_v17, %v613_v60  ;;  %v645_v32 = vshll.u32 %v107_v7, 16  ;;  %v12216_v4 = vld [vmem:[%s17155_s0 + $0x58] sm:$0xf] }
  0xab   :  { %v5109_v31 = vsel %vm12981_vm6, %v5107_v19, %v5108_v6  ;;  %v9998_v33 = vrot.slane %v9966_v16, 9  ;;  %v624_v34 = vsel %vm12504_vm2, %v619_v23, %v623_v0  ;;  %v632_v36 = vor.u32 %v631_v25, %v628_v22  ;;  %v12217_v6 = vld [vmem:[%s17155_s0 + $0x5c] sm:$0x1]  ;;  %v66_v16 = vld [vmem:[%s17155_s0 + $0x138] sm:$0xf] }
  0xac   :  { %v10033_v35 = vcombine.low %v5106_v13, %v5109_v31  ;;  %v642_v37 = vor.u32 %v641_v28, %v637_v26  ;;  %v9447_v21 = vcombine.low %v614_v29, %v624_v34  ;;  %v647_v38 = vrot.slane %v645_v32, 5  ;;  %v67_v23 = vld [vmem:[%s17155_s0 + $0x13c] sm:$0xf] }
  0xad   :  { %v5112_v57 = vrot.slane %v12214_v39, 5  ;;  %v5115_v41 = vrot.slane %v12215_v40, 5  ;;  %v633_v44 = vrot.slane %v632_v36, 4  ;;  %v650_v46 = vshrl.u32 %v62_v20, 16 }
  0xae   :  { %11317 = vmatprep.mubr.msk.bf16.mxu0 %vm1002_vm3, %v10033_v35  ;;  %v643_v45 = vrot.slane %v642_v37, 4  ;;  %v653_v47 = vshll.u32 %v62_v20, 16  ;;  %11009 = vmatprep.mubr.msk.bf16.mxu1 %vm1002_vm3, %v9447_v21  ;;  %v659_v48 = vshll.u32 %v63_v56, 16  ;;  %v663_v49 = vshrl.u32 %v63_v56, 16  ;;  %v110_v37 = vld [vmem:[%s17155_s0 + $0x140] sm:$0x1] }
  0xaf   :  { %v5113_v24 = vsel %vm12981_vm6, %v9998_v33, %v5112_v57  ;;  %v5114_v30 = vrot.slane %v5112_v57, 4  ;;  %v638_v50 = vsel %vm12504_vm2, %v633_v44, %v637_v26  ;;  %v652_v52 = vrot.slane %v650_v46, 4  ;;  %v12219_v57 = vld [vmem:[%s17155_s0 + $0x68] sm:$0x1] }
  0xb0   :  { %v648_v51 = vsel %vm12504_vm2, %v643_v45, %v647_v38  ;;  %v655_v53 = vrot.slane %v653_v47, 5  ;;  %v661_v58 = vrot.slane %v659_v48, 5  ;;  %v665_v59 = vrot.slane %v663_v49, 4  ;;  %v12218_v38 = vld [vmem:[%s17155_s0 + $0x64] sm:$0xf] }
  0xb1   :  { %v9448_v54 = vcombine.low %v638_v50, %v648_v51  ;;  %v5116_v18 = vsel %vm12981_vm6, %v5114_v30, %v5115_v41  ;;  %v669_v62 = vshll.u32 %v108_v42, 16  ;;  %v9999_v0 = vrot.slane %v9967_v43, 9  ;;  %v9969_v42 = vld [vmem:[%s17155_s0 + $0x6c] sm:$0xe]  ;;  %v68_v48 = vld [vmem:[%s17155_s0 + $0x144] sm:$0xf] }
  0xb2   :  { %v10034_v60 = vcombine.low %v5113_v24, %v5116_v18  ;;  %v656_v61 = vor.u32 %v655_v53, %v652_v52  ;;  %v666_v3 = vor.u32 %v665_v59, %v661_v58  ;;  %v5119_v5 = vrot.slane %v12216_v4, 5  ;;  %v69_v53 = vld [vmem:[%s17155_s0 + $0x148] sm:$0xf]  ;;  %v111_v59 = vld [vmem:[%s17155_s0 + $0x14c] sm:$0x1] }
  0xb3   :  { %11010 = vmatmul.mubr.msk.bf16.gmra.mrb[40].mxu1 %vm1002_vm3, %v9448_v54  ;;  %v5122_v7 = vrot.slane %v12217_v6, 5  ;;  %v674_v8 = vshrl.u32 %v64_v63, 16  ;;  %v671_v11 = vrot.slane %v669_v62, 5  ;;  %v677_v14 = vshll.u32 %v64_v63, 16  ;;  %v12220_v62 = vld [vmem:[%s17155_s0 + $0x70] sm:$0xf] }
  0xb4   :  { %11318 = vmatmul.mubr.msk.bf16.gmra.mrb[8].mxu0 %vm1002_vm3, %v10034_v60  ;;  %v657_v9 = vrot.slane %v656_v61, 4  ;;  %v683_v15 = vshll.u32 %v65_v55, 16  ;;  %v667_v17 = vrot.slane %v666_v3, 4  ;;  %v5120_v13 = vsel %vm12981_vm6, %v9999_v0, %v5119_v5  ;;  %v12221_v4 = vld [vmem:[%s17155_s0 + $0x74] sm:$0x1] }
  0xb5   :  { %v5121_v19 = vrot.slane %v5119_v5, 4  ;;  %v676_v22 = vrot.slane %v674_v8, 4  ;;  %v679_v26 = vrot.slane %v677_v14, 5  ;;  %v687_v29 = vshrl.u32 %v65_v55, 16  ;;  %v9970_v6 = vld [vmem:[%s17155_s0 + $0x78] sm:$0xe] }
  0xb6   :  { %v662_v25 = vsel %vm12504_vm2, %v657_v9, %v661_v58  ;;  %v685_v28 = vrot.slane %v683_v15, 5  ;;  %v672_v31 = vsel %vm12504_vm2, %v667_v17, %v671_v11  ;;  %v693_v33 = vshll.u32 %v109_v1, 16  ;;  %v70_v14 = vld [vmem:[%s17155_s0 + $0x150] sm:$0xf] }
  0xb7   :  { %v5123_v32 = vsel %vm12981_vm6, %v5121_v19, %v5122_v7  ;;  %v10000_v20 = vrot.slane %v9968_v2, 9  ;;  %v9449_v56 = vcombine.low %v662_v25, %v672_v31  ;;  %v680_v35 = vor.u32 %v679_v26, %v676_v22  ;;  %v71_v19 = vld [vmem:[%s17155_s0 + $0x154] sm:$0xf] }
  0xb8   :  { %v10035_v34 = vcombine.low %v5120_v13, %v5123_v32  ;;  %v689_v36 = vrot.slane %v687_v29, 4  ;;  %v695_v21 = vrot.slane %v693_v33, 5  ;;  %v5126_v39 = vrot.slane %v12218_v38, 5 }
  0xb9   :  { %v5129_v40 = vrot.slane %v12219_v57, 5  ;;  %v698_v41 = vshrl.u32 %v66_v16, 16  ;;  %11013 = vmatprep.mubr.msk.bf16.mxu1 %vm1002_vm3, %v9449_v56  ;;  %v681_v43 = vrot.slane %v680_v35, 4  ;;  %v701_v45 = vshll.u32 %v66_v16, 16  ;;  %v112_v35 = vld [vmem:[%s17155_s0 + $0x158] sm:$0x1] }
  0xba   :  { %11321 = vmatprep.mubr.msk.bf16.mxu0 %vm1002_vm3, %v10035_v34  ;;  %v690_v44 = vor.u32 %v689_v36, %v685_v28  ;;  %v707_v46 = vshll.u32 %v67_v23, 16  ;;  %v5127_v47 = vsel %vm12981_vm6, %v10000_v20, %v5126_v39  ;;  %v5128_v63 = vrot.slane %v5126_v39, 4  ;;  %v9971_v36 = vld [vmem:[%s17155_s0 + $0x84] sm:$0xe]  ;;  %v12223_v39 = vld [vmem:[%s17155_s0 + $0x80] sm:$0x1] }
  0xbb   :  { %v700_v24 = vrot.slane %v698_v41, 4  ;;  %v711_v30 = vshrl.u32 %v67_v23, 16  ;;  %v686_v49 = vsel %vm12504_vm2, %v681_v43, %v685_v28  ;;  %v703_v51 = vrot.slane %v701_v45, 5 }
  0xbc   :  { %v691_v50 = vrot.slane %v690_v44, 4  ;;  %v709_v52 = vrot.slane %v707_v46, 5  ;;  %v5130_v55 = vsel %vm12981_vm6, %v5128_v63, %v5129_v40  ;;  %v717_v18 = vshll.u32 %v110_v37, 16 }
  0xbd   :  { %v713_v54 = vrot.slane %v711_v30, 4  ;;  %v10001_v58 = vrot.slane %v9969_v42, 9  ;;  %v10036_v60 = vcombine.low %v5127_v47, %v5130_v55  ;;  %v704_v61 = vor.u32 %v703_v51, %v700_v24  ;;  %v72_v24 = vld [vmem:[%s17155_s0 + $0x15c] sm:$0xf]  ;;  %v73_v51 = vld [vmem:[%s17155_s0 + $0x160] sm:$0xf] }
  0xbe   :  { %v696_v12 = vsel %vm12504_vm2, %v691_v50, %v695_v21  ;;  %v5133_v0 = vrot.slane %v12220_v62, 5  ;;  %v719_v3 = vrot.slane %v717_v18, 5  ;;  %v5136_v5 = vrot.slane %v12221_v4, 5  ;;  %v12222_v21 = vld [vmem:[%s17155_s0 + $0x7c] sm:$0xf] }
  0xbf   :  { %v9450_v1 = vcombine.low %v686_v49, %v696_v12  ;;  %v714_v2 = vor.u32 %v713_v54, %v709_v52  ;;  %11322 = vmatmul.mubr.msk.bf16.gmra.mrb[12].mxu0 %vm1002_vm3, %v10036_v60  ;;  %v705_v7 = vrot.slane %v704_v61, 4  ;;  %v722_v11 = vshrl.u32 %v68_v48, 16  ;;  %v12224_v62 = vld [vmem:[%s17155_s0 + $0x88] sm:$0xf]  ;;  %v9972_v4 = vld [vmem:[%s17155_s0 + $0x90] sm:$0xe] }
  0xc0   :  { %v5134_v8 = vsel %vm12981_vm6, %v10001_v58, %v5133_v0  ;;  %v5135_v9 = vrot.slane %v5133_v0, 4  ;;  %v725_v16 = vshll.u32 %v68_v48, 16  ;;  %v731_v17 = vshll.u32 %v69_v53, 16 }
  0xc1   :  { %11014 = vmatmul.mubr.msk.bf16.gmra.mrb[44].mxu1 %vm1002_vm3, %v9450_v1  ;;  %v715_v15 = vrot.slane %v714_v2, 4  ;;  %v735_v13 = vshrl.u32 %v69_v53, 16  ;;  %v710_v22 = vsel %vm12504_vm2, %v705_v7, %v709_v52  ;;  %v724_v25 = vrot.slane %v722_v11, 4  ;;  %v12225_v1 = vld [vmem:[%s17155_s0 + $0x8c] sm:$0x1] }
  0xc2   :  { %v5137_v23 = vsel %vm12981_vm6, %v5135_v9, %v5136_v5  ;;  %v741_v26 = vshll.u32 %v111_v59, 16  ;;  %v727_v31 = vrot.slane %v725_v16, 5  ;;  %v733_v32 = vrot.slane %v731_v17, 5  ;;  %v74_v9 = vld [vmem:[%s17155_s0 + $0x168] sm:$0xf] }
  0xc3   :  { %v720_v28 = vsel %vm12504_vm2, %v715_v15, %v719_v3  ;;  %v10037_v29 = vcombine.low %v5134_v8, %v5137_v23  ;;  %v737_v20 = vrot.slane %v735_v13, 4  ;;  %v10002_v34 = vrot.slane %v9970_v6, 9  ;;  %v113_v3 = vld [vmem:[%s17155_s0 + $0x164] sm:$0x1]  ;;  %v75_v23 = vld [vmem:[%s17155_s0 + $0x16c] sm:$0xf] }
  0xc4   :  { %v9451_v33 = vcombine.low %v710_v22, %v720_v28  ;;  %v743_v56 = vrot.slane %v741_v26, 5  ;;  %v728_v37 = vor.u32 %v727_v31, %v724_v25  ;;  %v5140_v38 = vrot.slane %v12222_v21, 5  ;;  %v12227_v21 = vld [vmem:[%s17155_s0 + $0x98] sm:$0x1] }
  0xc5   :  { %11325 = vmatprep.mubr.msk.bf16.mxu0 %vm1002_vm3, %v10037_v29  ;;  %v5143_v57 = vrot.slane %v12223_v39, 5  ;;  %v746_v40 = vshrl.u32 %v70_v14, 16  ;;  %v738_v41 = vor.u32 %v737_v20, %v733_v32  ;;  %v749_v42 = vshll.u32 %v70_v14, 16 }
  0xc6   :  { %11017 = vmatprep.mubr.msk.bf16.mxu1 %vm1002_vm3, %v9451_v33  ;;  %v755_v43 = vshll.u32 %v71_v19, 16  ;;  %v759_v44 = vshrl.u32 %v71_v19, 16  ;;  %v729_v45 = vrot.slane %v728_v37, 4  ;;  %v5141_v46 = vsel %vm12981_vm6, %v10002_v34, %v5140_v38  ;;  %v9973_v34 = vld [vmem:[%s17155_s0 + $0x9c] sm:$0xe] }
  0xc7   :  { %v5142_v47 = vrot.slane %v5140_v38, 4  ;;  %v748_v63 = vrot.slane %v746_v40, 4  ;;  %v739_v30 = vrot.slane %v738_v41, 4  ;;  %v751_v48 = vrot.slane %v749_v42, 5 }
  0xc8   :  { %v757_v49 = vrot.slane %v755_v43, 5  ;;  %v761_v50 = vrot.slane %v759_v44, 4  ;;  %v734_v52 = vsel %vm12504_vm2, %v729_v45, %v733_v32  ;;  %v765_v55 = vshll.u32 %v112_v35, 16  ;;  %v13322_v43 = vld [vmem:[%s17155_s0 + $0x174] sm:$0xf] }
  0xc9   :  { %v5144_v53 = vsel %vm12981_vm6, %v5142_v47, %v5143_v57  ;;  %v10003_v54 = vrot.slane %v9971_v36, 9  ;;  %v744_v18 = vsel %vm12504_vm2, %v739_v30, %v743_v56  ;;  %v752_v59 = vor.u32 %v751_v48, %v748_v63  ;;  %v114_v56 = vld [vmem:[%s17155_s0 + $0x170] sm:$0x1]  ;;  %v12226_v36 = vld [vmem:[%s17155_s0 + $0x94] sm:$0xf] }
  0xca   :  { %v10038_v58 = vcombine.low %v5141_v46, %v5144_v53  ;;  %v762_v12 = vor.u32 %v761_v50, %v757_v49  ;;  %v9452_v60 = vcombine.low %v734_v52, %v744_v18  ;;  %v767_v61 = vrot.slane %v765_v55, 5  ;;  %v13329_v63 = vld [vmem:[%s17155_s0 + $0x178] sm:$0xf] }
  0xcb   :  { %v5147_v0 = vrot.slane %v12224_v62, 5  ;;  %v5150_v2 = vrot.slane %v12225_v1, 5  ;;  %v753_v5 = vrot.slane %v752_v59, 4  ;;  %v770_v7 = vshrl.u32 %v72_v24, 16  ;;  %v115_v59 = vld [vmem:[%s17155_s0 + $0x17c] sm:$0x1] }
  0xcc   :  { %11326 = vmatmul.mubr.msk.bf16.gmra.mrb[16].mxu0 %vm1002_vm3, %v10038_v58  ;;  %v763_v6 = vrot.slane %v762_v12, 4  ;;  %v773_v8 = vshll.u32 %v72_v24, 16  ;;  %11018 = vmatmul.mubr.msk.bf16.gmra.mrb[48].mxu1 %vm1002_vm3, %v9452_v60  ;;  %v779_v15 = vshll.u32 %v73_v51, 16  ;;  %v783_v16 = vshrl.u32 %v73_v51, 16  ;;  %v9974_v12 = vld [vmem:[%s17155_s0 + $0xa8] sm:$0xe] }
  0xcd   :  { %v5148_v11 = vsel %vm12981_vm6, %v10003_v54, %v5147_v0  ;;  %v5149_v14 = vrot.slane %v5147_v0, 4  ;;  %v758_v17 = vsel %vm12504_vm2, %v753_v5, %v757_v49  ;;  %v772_v19 = vrot.slane %v770_v7, 4  ;;  %v12229_v0 = vld [vmem:[%s17155_s0 + $0xa4] sm:$0x1] }
  0xce   :  { %v768_v13 = vsel %vm12504_vm2, %v763_v6, %v767_v61  ;;  %v775_v22 = vrot.slane %v773_v8, 5  ;;  %v781_v28 = vrot.slane %v779_v15, 5  ;;  %v785_v29 = vrot.slane %v783_v16, 4  ;;  %v12228_v61 = vld [vmem:[%s17155_s0 + $0xa0] sm:$0xf] }
  0xcf   :  { %v9453_v25 = vcombine.low %v758_v17, %v768_v13  ;;  %v5151_v26 = vsel %vm12981_vm6, %v5149_v14, %v5150_v2  ;;  %v789_v33 = vshll.u32 %v113_v3, 16  ;;  %v10004_v20 = vrot.slane %v9972_v4, 9  ;;  %v13360_v14 = vld [vmem:[%s17155_s0 + $0x180] sm:$0xf] }
  0xd0   :  { %v10039_v31 = vcombine.low %v5148_v11, %v5151_v26  ;;  %v776_v32 = vor.u32 %v775_v22, %v772_v19  ;;  %v786_v35 = vor.u32 %v785_v29, %v781_v28  ;;  %v5154_v37 = vrot.slane %v12226_v36, 5  ;;  %v13367_v19 = vld [vmem:[%s17155_s0 + $0x184] sm:$0xf]  ;;  %v12231_v36 = vld [vmem:[%s17155_s0 + $0xb0] sm:$0x1] }
  0xd1   :  { %11021 = vmatprep.mubr.msk.bf16.mxu1 %vm1002_vm3, %v9453_v25  ;;  %v5157_v38 = vrot.slane %v12227_v21, 5  ;;  %v794_v39 = vshrl.u32 %v74_v9, 16  ;;  %v791_v40 = vrot.slane %v789_v33, 5  ;;  %v797_v41 = vshll.u32 %v74_v9, 16  ;;  %v12230_v33 = vld [vmem:[%s17155_s0 + $0xac] sm:$0xf] }
  0xd2   :  { %11329 = vmatprep.mubr.msk.bf16.mxu0 %vm1002_vm3, %v10039_v31  ;;  %v777_v57 = vrot.slane %v776_v32, 4  ;;  %v803_v42 = vshll.u32 %v75_v23, 16  ;;  %v787_v44 = vrot.slane %v786_v35, 4  ;;  %v5155_v45 = vsel %vm12981_vm6, %v10004_v20, %v5154_v37  ;;  %v9975_v21 = vld [vmem:[%s17155_s0 + $0xb4] sm:$0xe] }
  0xd3   :  { %v5156_v46 = vrot.slane %v5154_v37, 4  ;;  %v796_v47 = vrot.slane %v794_v39, 4  ;;  %v799_v30 = vrot.slane %v797_v41, 5  ;;  %v807_v49 = vshrl.u32 %v75_v23, 16  ;;  %v13392_v41 = vld [vmem:[%s17155_s0 + $0x18c] sm:$0xf] }
  0xd4   :  { %v782_v24 = vsel %vm12504_vm2, %v777_v57, %v781_v28  ;;  %v805_v48 = vrot.slane %v803_v42, 5  ;;  %v792_v50 = vsel %vm12504_vm2, %v787_v44, %v791_v40  ;;  %v813_v52 = vshll.u32 %v114_v56, 16  ;;  %v116_v28 = vld [vmem:[%s17155_s0 + $0x188] sm:$0x1] }
  0xd5   :  { %v5158_v51 = vsel %vm12981_vm6, %v5156_v46, %v5157_v38  ;;  %v10005_v53 = vrot.slane %v9973_v34, 9  ;;  %v9454_v55 = vcombine.low %v782_v24, %v792_v50  ;;  %v800_v18 = vor.u32 %v799_v30, %v796_v47 }
  0xd6   :  { %v10040_v54 = vcombine.low %v5155_v45, %v5158_v51  ;;  %v809_v58 = vrot.slane %v807_v49, 4  ;;  %v815_v60 = vrot.slane %v813_v52, 5  ;;  %v5161_v62 = vrot.slane %v12228_v61, 5  ;;  %v13405_v49 = vld [vmem:[%s17155_s0 + $0x190] sm:$0xf] }
  0xd7   :  { %v5164_v1 = vrot.slane %v12229_v0, 5  ;;  %v818_v2 = vshrl.u32 %v13322_v43, 16  ;;  %11022 = vmatmul.mubr.msk.bf16.gmra.mrb[52].mxu1 %vm1002_vm3, %v9454_v55  ;;  %v801_v3 = vrot.slane %v800_v18, 4  ;;  %v821_v5 = vshll.u32 %v13322_v43, 16  ;;  %v12232_v61 = vld [vmem:[%s17155_s0 + $0xb8] sm:$0xf] }
  0xd8   :  { %11330 = vmatmul.mubr.msk.bf16.gmra.mrb[20].mxu0 %vm1002_vm3, %v10040_v54  ;;  %v810_v4 = vor.u32 %v809_v58, %v805_v48  ;;  %v827_v6 = vshll.u32 %v13329_v63, 16  ;;  %v5162_v7 = vsel %vm12981_vm6, %v10005_v53, %v5161_v62  ;;  %v5163_v8 = vrot.slane %v5161_v62, 4  ;;  %v12233_v0 = vld [vmem:[%s17155_s0 + $0xbc] sm:$0x1] }
  0xd9   :  { %v820_v9 = vrot.slane %v818_v2, 4  ;;  %v831_v11 = vshrl.u32 %v13329_v63, 16  ;;  %v806_v15 = vsel %vm12504_vm2, %v801_v3, %v805_v48  ;;  %v823_v17 = vrot.slane %v821_v5, 5 }
  0xda   :  { %v811_v16 = vrot.slane %v810_v4, 4  ;;  %v829_v13 = vrot.slane %v827_v6, 5  ;;  %v5165_v22 = vsel %vm12981_vm6, %v5163_v8, %v5164_v1  ;;  %v837_v25 = vshll.u32 %v115_v59, 16  ;;  %v117_v59 = vld [vmem:[%s17155_s0 + $0x194] sm:$0x1] }
  0xdb   :  { %v833_v23 = vrot.slane %v831_v11, 4  ;;  %v10006_v26 = vrot.slane %v9974_v12, 9  ;;  %v10041_v31 = vcombine.low %v5162_v7, %v5165_v22  ;;  %v824_v32 = vor.u32 %v823_v17, %v820_v9  ;;  %v9976_v12 = vld [vmem:[%s17155_s0 + $0xc0] sm:$0xe]  ;;  %v9844_v22 = vld [vmem:[%s17155_s0 + $0xe8] sm:$0xf] }
  0xdc   :  { %v816_v29 = vsel %vm12504_vm2, %v811_v16, %v815_v60  ;;  %v5168_v20 = vrot.slane %v12230_v33, 5  ;;  %v839_v35 = vrot.slane %v837_v25, 5  ;;  %v5171_v37 = vrot.slane %v12231_v36, 5  ;;  %v12234_v36 = vld [vmem:[%s17155_s0 + $0xc4] sm:$0xf] }
  0xdd   :  { %v9455_v56 = vcombine.low %v806_v15, %v816_v29  ;;  %v834_v34 = vor.u32 %v833_v23, %v829_v13  ;;  %11333 = vmatprep.mubr.msk.bf16.mxu0 %vm1002_vm3, %v10041_v31  ;;  %v825_v38 = vrot.slane %v824_v32, 4  ;;  %v842_v40 = vshrl.u32 %v13360_v14, 16  ;;  %v9977_v23 = vld [vmem:[%s17155_s0 + $0xe4] sm:$0xe] }
  0xde   :  { %v5169_v39 = vsel %vm12981_vm6, %v10006_v26, %v5168_v20  ;;  %v5170_v57 = vrot.slane %v5168_v20, 4  ;;  %v845_v44 = vshll.u32 %v13360_v14, 16  ;;  %v851_v45 = vshll.u32 %v13367_v19, 16 }
  0xdf   :  { %11025 = vmatprep.mubr.msk.bf16.mxu1 %vm1002_vm3, %v9455_v56  ;;  %v835_v42 = vrot.slane %v834_v34, 4  ;;  %v855_v46 = vshrl.u32 %v13367_v19, 16  ;;  %v830_v47 = vsel %vm12504_vm2, %v825_v38, %v829_v13  ;;  %v844_v30 = vrot.slane %v842_v40, 4  ;;  %v9845_v56 = vld [vmem:[%s17155_s0 + $0xec] sm:$0x1] }
  0xe0   :  { %v5172_v24 = vsel %vm12981_vm6, %v5170_v57, %v5171_v37  ;;  %v861_v48 = vshll.u32 %v116_v28, 16  ;;  %v847_v52 = vrot.slane %v845_v44, 5  ;;  %v853_v53 = vrot.slane %v851_v45, 5  ;;  %v13459_v44 = vld [vmem:[%s17155_s0 + $0xf8] sm:$0x1] }
  0xe1   :  { %v840_v50 = vsel %vm12504_vm2, %v835_v42, %v839_v35  ;;  %v10042_v51 = vcombine.low %v5169_v39, %v5172_v24  ;;  %v857_v54 = vrot.slane %v855_v46, 4  ;;  %v10007_v58 = vrot.slane %v9975_v21, 9  ;;  %v12235_v21 = vld [vmem:[%s17155_s0 + $0xc8] sm:$0x1]  ;;  %v13454_v42 = vld [vmem:[%s17155_s0 + $0xf4] sm:$0xf] }
  0xe2   :  { %v9456_v55 = vcombine.low %v830_v47, %v840_v50  ;;  %v863_v18 = vrot.slane %v861_v48, 5  ;;  %v848_v60 = vor.u32 %v847_v52, %v844_v30  ;;  %v5175_v62 = vrot.slane %v12232_v61, 5  ;;  %17170 = vst [vmem:[#allocation2_spill] sm:$0xff] %v13459_v44  ;;  %v9978_v45 = vld [vmem:[%s17155_s0 + $0xf0] sm:$0xe] }
  0xe3   :  { %11334 = vmatmul.mubr.msk.bf16.gmra.mrb[24].mxu0 %vm1002_vm3, %v10042_v51  ;;  %v5178_v1 = vrot.slane %v12233_v0, 5  ;;  %v866_v2 = vshrl.u32 %v13392_v41, 16  ;;  %v858_v3 = vor.u32 %v857_v54, %v853_v53  ;;  %v869_v4 = vshll.u32 %v13392_v41, 16  ;;  %v12236_v51 = vld [vmem:[%s17155_s0] sm:$0xf] }
  0xe4   :  { %11026 = vmatmul.mubr.msk.bf16.gmra.mrb[56].mxu1 %vm1002_vm3, %v9456_v55  ;;  %v875_v5 = vshll.u32 %v13405_v49, 16  ;;  %v879_v6 = vshrl.u32 %v13405_v49, 16  ;;  %v849_v7 = vrot.slane %v848_v60, 4  ;;  %v5176_v8 = vsel %vm12981_vm6, %v10007_v58, %v5175_v62  ;;  %v13477_v52 = vld [vmem:[%s17155_s0 + $0x4] sm:$0xf] }
  0xe5   :  { %v5177_v9 = vrot.slane %v5175_v62, 4  ;;  %v868_v11 = vrot.slane %v866_v2, 4  ;;  %v859_v15 = vrot.slane %v858_v3, 4  ;;  %v871_v16 = vrot.slane %v869_v4, 5  ;;  %v9850_v55 = vld [vmem:[%s17155_s0 + $0x100] sm:$0xf] }
  0xe6   :  { %v877_v17 = vrot.slane %v875_v5, 5  ;;  %v881_v13 = vrot.slane %v879_v6, 4  ;;  %v854_v25 = vsel %vm12504_vm2, %v849_v7, %v853_v53  ;;  %v885_v28 = vshll.u32 %v117_v59, 16  ;;  %v9851_v60 = vld [vmem:[%s17155_s0 + $0x104] sm:$0x1] }
  0xe7   :  { %v5179_v26 = vsel %vm12981_vm6, %v5177_v9, %v5178_v1  ;;  %v10008_v29 = vrot.slane %v9976_v12, 9  ;;  %v864_v31 = vsel %vm12504_vm2, %v859_v15, %v863_v18  ;;  %v872_v33 = vor.u32 %v871_v16, %v868_v11  ;;  %v9979_v61 = vld [vmem:[%s17155_s0 + $0xfc] sm:$0xe]  ;;  %v9853_v4 = vld [vmem:[%s17155_s0 + $0x10c] sm:$0xf] }
  0xe8   :  { %v10043_v32 = vcombine.low %v5176_v8, %v5179_v26  ;;  %v882_v20 = vor.u32 %v881_v13, %v877_v17  ;;  %v9457_v34 = vcombine.low %v854_v25, %v864_v31  ;;  %v887_v35 = vrot.slane %v885_v28, 5  ;;  %v9854_v5 = vld [vmem:[%s17155_s0 + $0x110] sm:$0x1]  ;;  %v9980_v6 = vld [vmem:[%s17155_s0 + $0x108] sm:$0xe] }
  0xe9   :  { %v5182_v37 = vrot.slane %v12234_v36, 5  ;;  %v5185_v38 = vrot.slane %v12235_v21, 5  ;;  %v873_v39 = vrot.slane %v872_v33, 4  ;;  %v10009_v40 = vrot.slane %v9977_v23, 9  ;;  %v9856_v15 = vld [vmem:[%s17155_s0 + $0x118] sm:$0xf] }
  0xea   :  { %11337 = vmatprep.mubr.msk.bf16.mxu0 %vm1002_vm3, %v10043_v32  ;;  %v883_v57 = vrot.slane %v882_v20, 4  ;;  %11029 = vmatprep.mubr.msk.bf16.mxu1 %vm1002_vm3, %v9457_v34  ;;  %v5189_v24 = vrot.slane %v9844_v22, 5  ;;  %v5192_v30 = vrot.slane %v9845_v56, 5  ;;  %v9493_v53 = vcombine.low %v12236_v51, %v13477_v52  ;;  %v9857_v16 = vld [vmem:[%s17155_s0 + $0x11c] sm:$0x1] }
  0xeb   :  { %v5183_v46 = vsel %vm12981_vm6, %v10008_v29, %v5182_v37  ;;  %v5184_v47 = vrot.slane %v5182_v37, 4  ;;  %v878_v48 = vsel %vm12504_vm2, %v873_v39, %v877_v17  ;;  %v10010_v0 = vrot.slane %v9978_v45, 9  ;;  %v9981_v17 = vld [vmem:[%s17155_s0 + $0x114] sm:$0xe]  ;;  %v12238_v13 = vld [vmem:[%s17155_s0 + $0xc] sm:$0xf] }
  0xec   :  { %v888_v50 = vsel %vm12504_vm2, %v883_v57, %v887_v35  ;;  %v5190_v58 = vsel %vm12981_vm6, %v10009_v40, %v5189_v24  ;;  %v5191_v59 = vrot.slane %v5189_v24, 4  ;;  %v5196_v1 = vrot.slane %v13454_v42, 5  ;;  %v13527_v22 = vld [vmem:[%s17155_s0 + $0x10] sm:$0xf]  ;;  %v9859_v20 = vld [vmem:[%s17155_s0 + $0x124] sm:$0xf] }
  0xed   :  { %v9458_v54 = vcombine.low %v878_v48, %v888_v50  ;;  %v5186_v18 = vsel %vm12981_vm6, %v5184_v47, %v5185_v38  ;;  %v5199_v2 = vrot.slane %v13459_v44, 5  ;;  %v10011_v9 = vrot.slane %v9979_v61, 9  ;;  %v12240_v56 = vld [vmem:[%s17155_s0 + $0x18] sm:$0xf]  ;;  %v13543_v34 = vld [vmem:[%s17155_s0 + $0x1c] sm:$0xf] }
  0xee   :  { %v10044_v12 = vcombine.low %v5183_v46, %v5186_v18  ;;  %v5193_v62 = vsel %vm12981_vm6, %v5191_v59, %v5192_v30  ;;  %v5197_v7 = vsel %vm12981_vm6, %v10010_v0, %v5196_v1  ;;  %v5198_v8 = vrot.slane %v5196_v1, 4  ;;  %v12121_v45 = vld [vmem:[%s17154_s1 + $0x28] sm:$0xff]   ;;  %v9862_v46 = vld [vmem:[%s17155_s0 + $0x130] sm:$0xf]  ;;  %v12242_v47 = vld [vmem:[%s17154_s1 + $0x20] sm:$0xff]  }
  0xef   :  { %11030 = vmatmul.mubr.msk.bf16.gmra.mrb[60].mxu1 %vm1002_vm3, %v9458_v54  ;;  %v10045_v3 = vcombine.low %v5190_v58, %v5193_v62  ;;  %v5203_v11 = vrot.slane %v9850_v55, 5  ;;  %v9494_v23 = vcombine.low %v12238_v13, %v13527_v22  ;;  %v5206_v25 = vrot.slane %v9851_v60, 5  ;;  %v9860_v30 = vld [vmem:[%s17155_s0 + $0x128] sm:$0x1]  ;;  %v9982_v51 = vld [vmem:[%s17155_s0 + $0x120] sm:$0xe] }
  0xf0   :  { %11338 = vmatmul.mubr.msk.bf16.gmra.mrb[28].mxu0 %vm1002_vm3, %v10044_v12  ;;  %11037 = vmatprep.mubr.msk.bf16.mxu1 %vm1002_vm3, %v9493_v53  ;;  %v5200_v26 = vsel %vm12981_vm6, %v5198_v8, %v5199_v2  ;;  %v5210_v31 = vrot.slane %v9853_v4, 5  ;;  %v10012_v33 = vrot.slane %v9980_v6, 9  ;;  %v9495_v35 = vcombine.low %v12240_v56, %v13543_v34  ;;  %v9983_v55 = vld [vmem:[%s17155_s0 + $0x12c] sm:$0xe]  ;;  %v13577_v54 = vld [vmem:[%s17154_s1 + $0x30] sm:$0xff]  }
  0xf1   :  { %11341 = vmatprep.mubr.msk.bf16.mxu0 %vm1002_vm3, %v10045_v3  ;;  %v5204_v28 = vsel %vm12981_vm6, %v10011_v9, %v5203_v11  ;;  %v5205_v29 = vrot.slane %v5203_v11, 4  ;;  %v10046_v32 = vcombine.low %v5197_v7, %v5200_v26  ;;  %v5213_v21 = vrot.slane %v9854_v5, 5  ;;  %v12243_v12 = vld [vmem:[%s17155_s0 + $0x24] sm:$0xf]  ;;  %v13589_v60 = vld [vmem:[%s17155_s0 + $0x28] sm:$0xf] }
  0xf2   :  { %v5212_v37 = vrot.slane %v5210_v31, 4  ;;  %v10013_v39 = vrot.slane %v9981_v17, 9  ;;  %v5217_v57 = vrot.slane %v9856_v15, 5  ;;  %v5220_v40 = vrot.slane %v9857_v16, 5  ;;  %v9863_v62 = vld [vmem:[%s17155_s0 + $0x134] sm:$0x1] }
  0xf3   :  { %v5207_v36 = vsel %vm12981_vm6, %v5205_v29, %v5206_v25  ;;  %v5211_v48 = vsel %vm12981_vm6, %v10012_v33, %v5210_v31  ;;  %v5224_v53 = vrot.slane %v9859_v20, 5  ;;  %v5231_v59 = vrot.slane %v9862_v46, 5  ;;  %v12245_v1 = vld [vmem:[%s17155_s0 + $0x30] sm:$0xf]  ;;  %v13601_v2 = vld [vmem:[%s17155_s0 + $0x34] sm:$0xf] }
  0xf4   :  { %v10047_v38 = vcombine.low %v5204_v28, %v5207_v36  ;;  %v5219_v24 = vrot.slane %v5217_v57, 4  ;;  %v5214_v50 = vsel %vm12981_vm6, %v5212_v37, %v5213_v21  ;;  %v5218_v18 = vsel %vm12981_vm6, %v10013_v39, %v5217_v57  ;;  %v9865_v5 = vld [vmem:[%s17155_s0 + $0x13c] sm:$0xf]  ;;  %v9868_v16 = vld [vmem:[%s17155_s0 + $0x148] sm:$0xf] }
  0xf5   :  { %v9496_v61 = vcombine.low %v12243_v12, %v13589_v60  ;;  %v10048_v0 = vcombine.low %v5211_v48, %v5214_v50  ;;  %v9497_v3 = vcombine.low %v12245_v1, %v13601_v2  ;;  %v10014_v4 = vrot.slane %v9982_v51, 9  ;;  %v9866_v17 = vld [vmem:[%s17155_s0 + $0x140] sm:$0x1]  ;;  %v9984_v25 = vld [vmem:[%s17155_s0 + $0x138] sm:$0xe]  ;;  %v12158_v44 = vld [vmem:[%s17155_s0 + $0x108] sm:$0xff]  }
  0xf6   :  { %v5221_v58 = vsel %vm12981_vm6, %v5219_v24, %v5220_v40  ;;  %v5226_v7 = vrot.slane %v5224_v53, 4  ;;  %v5227_v8 = vrot.slane %v9860_v30, 5  ;;  %v10015_v9 = vrot.slane %v9983_v55, 9  ;;  %v13635_v33 = vld [vmem:[%s17155_s0 + $0x40] sm:$0xf] }
  0xf7   :  { %11038 = vmatmul.mubr.msk.bf16.vlgmr.msra.gmra.mrb[0].mxu1 %vm1002_vm3, %v9494_v23  ;;  %v10049_v6 = vcombine.low %v5218_v18, %v5221_v58  ;;  %v5233_v11 = vrot.slane %v5231_v59, 4  ;;  %v5234_v15 = vrot.slane %v9863_v62, 5  ;;  %v5225_v13 = vsel %vm12981_vm6, %v10014_v4, %v5224_v53  ;;  %v9869_v56 = vld [vmem:[%s17155_s0 + $0x14c] sm:$0x1]  ;;  %v12249_v37 = vld [vmem:[%s17155_s0 + $0x48] sm:$0xf] }
  0xf8   :  { %11102 = vmatpush3.bf16.msra.mxu1 %v12242_v47  ;;  %11342 = vmatmul.mubr.msk.bf16.gmra.mrb[32].mxu0 %vm1002_vm3, %v10046_v32  ;;  %v5228_v23 = vsel %vm12981_vm6, %v5226_v7, %v5227_v8  ;;  %v5238_v26 = vrot.slane %v9865_v5, 5  ;;  %v5232_v28 = vsel %vm12981_vm6, %v10015_v9, %v5231_v59  ;;  %v5245_v31 = vrot.slane %v9868_v16, 5  ;;  %v12247_v32 = vld [vmem:[%s17155_s0 + $0x3c] sm:$0xf]  ;;  %v13650_v21 = vld [vmem:[%s17155_s0 + $0x4c] sm:$0xf] }
  0xf9   :  { %11041 = vmatprep.mubr.msk.bf16.mxu1 %vm1002_vm3, %v9495_v35  ;;  %11345 = vmatprep.mubr.msk.bf16.mxu0 %vm1002_vm3, %v10047_v38  ;;  %v5235_v29 = vsel %vm12981_vm6, %v5233_v11, %v5234_v15  ;;  %v9498_v20 = vcombine.low %v12247_v32, %v13635_v33  ;;  %v9985_v35 = vld [vmem:[%s17155_s0 + $0x144] sm:$0xe]  ;;  %v10050_v36 = vcombine.low %v5225_v13, %v5228_v23  ;;  %v9871_v39 = vld [vmem:[%s17155_s0 + $0x154] sm:$0xf]  ;;  %v10016_v40 = vrot.slane %v9984_v25, 9 }
  0xfa   :  { %11103 = vmatprep.subr.bf16.mxu1 %v12121_v45  ;;  %v9499_v38 = vcombine.low %v12249_v37, %v13650_v21  ;;  %v10051_v57 = vcombine.low %v5232_v28, %v5235_v29  ;;  %v5241_v46 = vrot.slane %v9866_v17, 5  ;;  %v10017_v47 = vrot.slane %v9985_v35, 9  ;;  %v9874_v48 = vld [vmem:[%s17155_s0 + $0x160] sm:$0xf]  ;;  %v9872_v50 = vld [vmem:[%s17155_s0 + $0x158] sm:$0x1] }
  0xfb   :  { %v5247_v24 = vrot.slane %v5245_v31, 4  ;;  %v5248_v30 = vrot.slane %v9869_v56, 5  ;;  %v5239_v51 = vsel %vm12981_vm6, %v10016_v40, %v5238_v26  ;;  %v9986_v55 = vld [vmem:[%s17155_s0 + $0x150] sm:$0xe]  ;;  %v5252_v18 = vrot.slane %v9871_v39, 5 }
  0xfc   :  { %11104 = vmatpush3.bf16.msra.mxu1 %v12121_v45  ;;  %v5240_v45 = vrot.slane %v5238_v26, 4  ;;  %v9987_v58 = vld [vmem:[%s17155_s0 + $0x15c] sm:$0xe]  ;;  %v5246_v59 = vsel %vm12981_vm6, %v10017_v47, %v5245_v31  ;;  %v12251_v62 = vld [vmem:[%s17155_s0 + $0x54] sm:$0xf]  ;;  %v10018_v8 = vrot.slane %v9986_v55, 9 }
  0xfd   :  { %11169 = vmatprep.subr.bf16.mxu1 %v13577_v54  ;;  %v5249_v12 = vsel %vm12981_vm6, %v5247_v24, %v5248_v30  ;;  %v12253_v5 = vld [vmem:[%s17155_s0 + $0x60] sm:$0xf]  ;;  %v5255_v9 = vrot.slane %v9872_v50, 5  ;;  %v9877_v11 = vld [vmem:[%s17155_s0 + $0x16c] sm:$0xf]  ;;  %v5254_v16 = vrot.slane %v5252_v18, 4 }
  0xfe   :  { %v5242_v53 = vsel %vm12981_vm6, %v5240_v45, %v5241_v46  ;;  %v10053_v15 = vcombine.low %v5246_v59, %v5249_v12  ;;  %v10019_v17 = vrot.slane %v9987_v58, 9  ;;  %v9880_v13 = vld [vmem:[%s17155_s0 + $0x178] sm:$0xf]  ;;  %v5253_v26 = vsel %vm12981_vm6, %v10018_v8, %v5252_v18  ;;  %v9988_v56 = vld [vmem:[%s17155_s0 + $0x168] sm:$0xe] }
  0xff   :  { %11042 = vmatmul.mubr.msk.bf16.gmra.mrb[4].mxu1 %vm1002_vm3, %v9496_v61  ;;  %v5259_v61 = vrot.slane %v9874_v48, 5  ;;  %v10052_v4 = vcombine.low %v5239_v51, %v5242_v53  ;;  %v5256_v28 = vsel %vm12981_vm6, %v5254_v16, %v5255_v9  ;;  %v5266_v29 = vrot.slane %v9877_v11, 5  ;;  %v13731_v37 = vld [vmem:[%s17155_s0 + $0x70] sm:$0xf]  ;;  %v9881_v39 = vld [vmem:[%s17155_s0 + $0x17c] sm:$0x1] }
 0x100   :  { %11346 = vmatmul.mubr.msk.bf16.gmra.mrb[36].mxu0 %vm1002_vm3, %v10048_v0  ;;  %11045 = vmatprep.mubr.msk.bf16.mxu1 %vm1002_vm3, %v9497_v3  ;;  %v13686_v0 = vld [vmem:[%s17155_s0 + $0x58] sm:$0xf]  ;;  %v9875_v3 = vld [vmem:[%s17155_s0 + $0x164] sm:$0x1]  ;;  %v5273_v35 = vrot.slane %v9880_v13, 5  ;;  %v10054_v40 = vcombine.low %v5253_v26, %v5256_v28  ;;  %v10020_v30 = vrot.slane %v9988_v56, 9 }
 0x101   :  { %11349 = vmatprep.mubr.msk.bf16.mxu0 %vm1002_vm3, %v10049_v6  ;;  %v9500_v1 = vcombine.low %v12251_v62, %v13686_v0  ;;  %v13698_v6 = vld [vmem:[%s17155_s0 + $0x64] sm:$0xf]  ;;  %v5261_v23 = vrot.slane %v5259_v61, 4  ;;  %v5262_v25 = vrot.slane %v9875_v3, 5  ;;  %v5260_v31 = vsel %vm12981_vm6, %v10019_v17, %v5259_v61  ;;  %v12257_v45 = vld [vmem:[%s17155_s0 + $0x78] sm:$0xf] }
 0x102   :  { %v9501_v7 = vcombine.low %v12253_v5, %v13698_v6  ;;  %v13746_v46 = vld [vmem:[%s17155_s0 + $0x7c] sm:$0xf]  ;;  %v5268_v48 = vrot.slane %v5266_v29, 4  ;;  %v5275_v53 = vrot.slane %v5273_v35, 4  ;;  %v5276_v55 = vrot.slane %v9881_v39, 5 }
 0x103   :  { %v5263_v32 = vsel %vm12981_vm6, %v5261_v23, %v5262_v25  ;;  %v9503_v47 = vcombine.low %v12257_v45, %v13746_v46  ;;  %v9883_v18 = vld [vmem:[%s17155_s0 + $0x184] sm:$0xf]  ;;  %v9886_v58 = vld [vmem:[%s17155_s0 + $0x190] sm:$0xf]  ;;  %v5267_v59 = vsel %vm12981_vm6, %v10020_v30, %v5266_v29  ;;  %v9884_v3 = vld [vmem:[%s17155_s0 + $0x188] sm:$0x1] }
 0x104   :  { %v10055_v24 = vcombine.low %v5260_v31, %v5263_v32  ;;  %v5280_v61 = vrot.slane %v9883_v18, 5  ;;  %v5287_v5 = vrot.slane %v9886_v58, 5  ;;  %v13779_v8 = vld [vmem:[%s17155_s0 + $0x88] sm:$0xf]  ;;  %v9887_v11 = vld [vmem:[%s17155_s0 + $0x194] sm:$0x1] }
 0x105   :  { %v12261_v17 = vld [vmem:[%s17155_s0 + $0x90] sm:$0xf]  ;;  %v13794_v13 = vld [vmem:[%s17155_s0 + $0x94] sm:$0xf]  ;;  %v5283_v29 = vrot.slane %v9884_v3, 5 }
 0x106   :  { %v9505_v23 = vcombine.low %v12261_v17, %v13794_v13  ;;  %v5282_v28 = vrot.slane %v5280_v61, 4  ;;  %v5289_v32 = vrot.slane %v5287_v5, 4  ;;  %v9889_v56 = vld [vmem:[%s17155_s0 + $0x19c] sm:$0xf]  ;;  %v9992_v45 = vld [vmem:[%s17155_s0 + $0x198] sm:$0xe] }
 0x107   :  { %11046 = vmatmul.mubr.msk.bf16.gmra.mrb[8].mxu1 %vm1002_vm3, %v9498_v20  ;;  %v9878_v20 = vld [vmem:[%s17155_s0 + $0x170] sm:$0x1]  ;;  %v10024_v18 = vrot.slane %v9992_v45, 9  ;;  %v12131_v45 = vld [vmem:[%s17155_s0 + $0x48] sm:$0xff]  }
 0x108   :  { %11350 = vmatmul.mubr.msk.bf16.gmra.mrb[40].mxu0 %vm1002_vm3, %v10050_v36  ;;  %11049 = vmatprep.mubr.msk.bf16.mxu1 %vm1002_vm3, %v9499_v38  ;;  %v12255_v36 = vld [vmem:[%s17155_s0 + $0x6c] sm:$0xf]  ;;  %v5269_v50 = vrot.slane %v9878_v20, 5  ;;  %v5290_v20 = vrot.slane %v9887_v11, 5  ;;  %v12122_v11 = vld [vmem:[%s17155_s0 + $0x18] sm:$0xff]  }
 0x109   :  { %11353 = vmatprep.mubr.msk.bf16.mxu0 %vm1002_vm3, %v10051_v57  ;;  %v9502_v38 = vcombine.low %v12255_v36, %v13731_v37  ;;  %v9989_v57 = vld [vmem:[%s17155_s0 + $0x174] sm:$0xe]  ;;  %v5284_v36 = vsel %vm12981_vm6, %v5282_v28, %v5283_v29 }
 0x10a   :  { %v10021_v51 = vrot.slane %v9989_v57, 9  ;;  %v5270_v12 = vsel %vm12981_vm6, %v5268_v48, %v5269_v50  ;;  %v5291_v57 = vsel %vm12981_vm6, %v5289_v32, %v5290_v20  ;;  %v12265_v50 = vld [vmem:[%s17155_s0 + $0xa8] sm:$0xf]  ;;  %v12127_v29 = vld [vmem:[%s17155_s0 + $0x30] sm:$0xff]   ;;  %v12173_v20 = vld [vmem:[%s17154_s1 + $0x80] sm:$0xff]  }
 0x10b   :  { %v10056_v16 = vcombine.low %v5267_v59, %v5270_v12  ;;  %v12275_v32 = vld [vmem:[%s17154_s1 + $0x70] sm:$0xff]  }
 0x10c   :  { %v5274_v62 = vsel %vm12981_vm6, %v10021_v51, %v5273_v35  ;;  %v13833_v51 = vld [vmem:[%s17155_s0 + $0xac] sm:$0xf] }
 0x10f   :  { %11050 = vmatmul.mubr.msk.bf16.gmra.mrb[12].mxu1 %vm1002_vm3, %v9500_v1  ;;  %v5277_v1 = vsel %vm12981_vm6, %v5275_v53, %v5276_v55  ;;  %v9507_v53 = vcombine.low %v12265_v50, %v13833_v51  ;;  %v12133_v50 = vld [vmem:[%s17155_s0 + $0x54] sm:$0xff]  }
 0x110   :  { %11354 = vmatmul.mubr.msk.bf16.gmra.mrb[44].mxu0 %vm1002_vm3, %v10052_v4  ;;  %11053 = vmatprep.mubr.msk.bf16.mxu1 %vm1002_vm3, %v9501_v7  ;;  %v9990_v4 = vld [vmem:[%s17155_s0 + $0x180] sm:$0xe]  ;;  %v12259_v7 = vld [vmem:[%s17155_s0 + $0x84] sm:$0xf]  ;;  %v10057_v25 = vcombine.low %v5274_v62, %v5277_v1  ;;  %v12267_v62 = vld [vmem:[%s17155_s0 + $0xb4] sm:$0xf] }
 0x111   :  { %11357 = vmatprep.mubr.msk.bf16.mxu0 %vm1002_vm3, %v10053_v15  ;;  %v9504_v9 = vcombine.low %v12259_v7, %v13779_v8  ;;  %v9991_v15 = vld [vmem:[%s17155_s0 + $0x18c] sm:$0xe]  ;;  %v10022_v26 = vrot.slane %v9990_v4, 9  ;;  %v13850_v1 = vld [vmem:[%s17155_s0 + $0xb8] sm:$0xf] }
 0x112   :  { %v10023_v31 = vrot.slane %v9991_v15, 9  ;;  %v9508_v3 = vcombine.low %v12267_v62, %v13850_v1  ;;  %v13859_v7 = vld [vmem:[%s17155_s0 + $0xdc] sm:$0xf]  ;;  %v12271_v15 = vld [vmem:[%s17155_s0 + $0xe4] sm:$0xf]  ;;  %v12137_v62 = vld [vmem:[%s17155_s0 + $0x6c] sm:$0xff]  }
 0x113   :  { %v5281_v35 = vsel %vm12981_vm6, %v10022_v26, %v5280_v61  ;;  %v13887_v26 = vld [vmem:[%s17155_s0 + $0xf4] sm:$0xf] }
 0x114   :  { %v5288_v39 = vsel %vm12981_vm6, %v10023_v31, %v5287_v5  ;;  %v10058_v48 = vcombine.low %v5281_v35, %v5284_v36  ;;  %v12269_v5 = vld [vmem:[%s17155_s0 + $0xd8] sm:$0xf]  ;;  %v13912_v35 = vld [vmem:[%s17155_s0 + $0x100] sm:$0xf] }
 0x115   :  { %v10059_v55 = vcombine.low %v5288_v39, %v5291_v57  ;;  %v12156_v31 = vld [vmem:[%s17154_s1 + $0x78] sm:$0xff]   ;;  %v12278_v39 = vld [vmem:[%s17155_s0 + $0x108] sm:$0xf]  ;;  %v13924_v57 = vld [vmem:[%s17155_s0 + $0x10c] sm:$0xf] }
 0x117   :  { %11054 = vmatmul.mubr.msk.bf16.gmra.mrb[16].mxu1 %vm1002_vm3, %v9502_v38  ;;  %v5294_v38 = vrot.slane %v9889_v56, 5  ;;  %v12276_v56 = vld [vmem:[%s17155_s0 + $0xfc] sm:$0xf] }
 0x118   :  { %11358 = vmatmul.mubr.msk.bf16.gmra.mrb[48].mxu0 %vm1002_vm3, %v10054_v40  ;;  %11057 = vmatprep.mubr.msk.bf16.mxu1 %vm1002_vm3, %v9503_v47  ;;  %v9890_v40 = vld [vmem:[%s17155_s0 + $0x1a0] sm:$0x1]  ;;  %v12263_v47 = vld [vmem:[%s17155_s0 + $0x9c] sm:$0xf]  ;;  %v9512_v36 = vcombine.low %v12276_v56, %v13912_v35  ;;  %v2053_v56 = vrot.slane %v13527_v22, 5 }
 0x119   :  { %11361 = vmatprep.mubr.msk.bf16.mxu0 %vm1002_vm3, %v10055_v24  ;;  %v13824_v24 = vld [vmem:[%s17155_s0 + $0xa0] sm:$0xf]  ;;  %v5296_v58 = vrot.slane %v5294_v38, 4  ;;  %v5297_v59 = vrot.slane %v9890_v40, 5  ;;  %v5295_v12 = vsel %vm12981_vm6, %v10024_v18, %v5294_v38  ;;  %v9513_v40 = vcombine.low %v12278_v39, %v13924_v57  ;;  %v1946_v39 = vld [vmem:[%s17155_s0 + $0xc] sm:$0xe] }
 0x11a   :  { %v9506_v30 = vcombine.low %v12263_v47, %v13824_v24  ;;  %v12129_v38 = vld [vmem:[%s17155_s0 + $0x3c] sm:$0xff]   ;;  %v12280_v47 = vld [vmem:[%s17155_s0 + $0x114] sm:$0xf] }
 0x11b   :  { %v5298_v61 = vsel %vm12981_vm6, %v5296_v58, %v5297_v59  ;;  %v12135_v58 = vld [vmem:[%s17155_s0 + $0x60] sm:$0xff]   ;;  %v12284_v59 = vld [vmem:[%s17155_s0 + $0x12c] sm:$0xf] }
 0x11c   :  { %v10060_v4 = vcombine.low %v5295_v12, %v5298_v61  ;;  %v13968_v12 = vld [vmem:[%s17155_s0 + $0x130] sm:$0xf] }
 0x11d   :  { %v9516_v61 = vcombine.low %v12284_v59, %v13968_v12 }
 0x11f   :  { %11058 = vmatmul.mubr.msk.bf16.gmra.mrb[20].mxu1 %vm1002_vm3, %v9504_v9  ;;  %v9509_v9 = vcombine.low %v12269_v5, %v13859_v7 }
 0x120   :  { %11362 = vmatmul.mubr.msk.bf16.gmra.mrb[52].mxu0 %vm1002_vm3, %v10056_v16  ;;  %11061 = vmatprep.mubr.msk.bf16.mxu1 %vm1002_vm3, %v9505_v23  ;;  %v13875_v16 = vld [vmem:[%s17155_s0 + $0xe8] sm:$0xf] }
 0x121   :  { %11365 = vmatprep.mubr.msk.bf16.mxu0 %vm1002_vm3, %v10057_v25  ;;  %v9510_v17 = vcombine.low %v12271_v15, %v13875_v16  ;;  %v12125_v23 = vld [vmem:[%s17155_s0 + $0x24] sm:$0xff]   ;;  %v12273_v25 = vld [vmem:[%s17155_s0 + $0xf0] sm:$0xf] }
 0x122   :  { %v9511_v28 = vcombine.low %v12273_v25, %v13887_v26  ;;  %v13996_v15 = vld [vmem:[%s17155_s0 + $0x148] sm:$0xf]  ;;  %v12290_v25 = vld [vmem:[%s17155_s0 + $0x150] sm:$0xf] }
 0x123   :  { %17171 = vst [vmem:[#allocation3_spill] sm:$0xff] %v13996_v15 }
 0x127   :  { %11062 = vmatmul.mubr.msk.bf16.gmra.mrb[24].mxu1 %vm1002_vm3, %v9506_v30  ;;  %v13940_v30 = vld [vmem:[%s17155_s0 + $0x118] sm:$0xf] }
 0x128   :  { %11366 = vmatmul.mubr.msk.bf16.gmra.mrb[56].mxu0 %vm1002_vm3, %v10058_v48  ;;  %11065 = vmatprep.mubr.msk.bf16.mxu1 %vm1002_vm3, %v9507_v53  ;;  %v9514_v48 = vcombine.low %v12280_v47, %v13940_v30  ;;  %v12282_v53 = vld [vmem:[%s17155_s0 + $0x120] sm:$0xf] }
 0x129   :  { %11369 = vmatprep.mubr.msk.bf16.mxu0 %vm1002_vm3, %v10059_v55  ;;  %v13952_v55 = vld [vmem:[%s17155_s0 + $0x124] sm:$0xf] }
 0x12a   :  { %v9515_v18 = vcombine.low %v12282_v53, %v13952_v55  ;;  %v1947_v53 = vld [vmem:[%s17155_s0 + $0x18] sm:$0xe] }
 0x12f   :  { %11066 = vmatmul.mubr.msk.bf16.gmra.mrb[28].mxu1 %vm1002_vm3, %v9508_v3  ;;  %v12286_v3 = vld [vmem:[%s17155_s0 + $0x138] sm:$0xf] }
 0x130   :  { %11370 = vmatmul.mubr.msk.bf16.gmra.mrb[60].mxu0 %vm1002_vm3, %v10060_v4  ;;  %11069 = vmatprep.mubr.msk.bf16.mxu1 %vm1002_vm3, %v9509_v9  ;;  %v13980_v4 = vld [vmem:[%s17155_s0 + $0x13c] sm:$0xf] }
 0x131   :  { %11377 = vmatprep.mubr.msk.bf16.mxu0 %vm1002_vm3, %v12122_v11  ;;  %v9517_v5 = vcombine.low %v12286_v3, %v13980_v4  ;;  %v12139_v9 = vld [vmem:[%s17155_s0 + $0x78] sm:$0xff]   ;;  %v12288_v11 = vld [vmem:[%s17155_s0 + $0x144] sm:$0xf] }
 0x132   :  { %v12145_v3 = vld [vmem:[%s17155_s0 + $0x9c] sm:$0xff]  }
 0x137   :  { %11070 = vmatmul.mubr.msk.bf16.gmra.mrb[32].mxu1 %vm1002_vm3, %v9510_v17  ;;  %v9518_v17 = vcombine.low %v12288_v11, %v13996_v15 }
 0x138   :  { %11378 = vmatmul.mubr.msk.bf16.vlgmr.msra.gmra.mrb[0].mxu0 %vm1002_vm3, %v12125_v23  ;;  %11073 = vmatprep.mubr.msk.bf16.mxu1 %vm1002_vm3, %v9511_v28  ;;  %v12141_v23 = vld [vmem:[%s17155_s0 + $0x84] sm:$0xff]   ;;  %v14008_v28 = vld [vmem:[%s17155_s0 + $0x154] sm:$0xf] }
 0x139   :  { %11442 = vmatpush3.bf16.msra.mxu0 %v12275_v32  ;;  %11381 = vmatprep.mubr.msk.bf16.mxu0 %vm1002_vm3, %v12127_v29  ;;  %17172 = vst [vmem:[#allocation4_spill] sm:$0xff] %v14008_v28  ;;  %v9519_v29 = vcombine.low %v12290_v25, %v14008_v28  ;;  %v4035_v32 = vshll.u32 %v13454_v42, 16 }
 0x13a   :  { %11443 = vmatprep.subr.bf16.mxu0 %v12156_v31 }
 0x13b   :  { %v14035_v47 = vrot.slane %v4035_v32, 5  ;;  %v1948_v32 = vld [vmem:[%s17155_s0 + $0x24] sm:$0xe] }
 0x13d   :  { %11444 = vmatpush3.bf16.msra.mxu0 %v12156_v31  ;;  %v12143_v31 = vld [vmem:[%s17155_s0 + $0x90] sm:$0xff]   ;;  %17173 = vst [vmem:[#allocation5_spill] sm:$0xff] %v14035_v47  ;;  %v12157_v47 = vld [vmem:[%s17155_s0 + $0xfc] sm:$0xff]  }
 0x13e   :  { %11509 = vmatprep.subr.bf16.mxu0 %v12173_v20  ;;  %v4039_v20 = vshrl.u32 %v13454_v42, 16  ;;  %v12292_v42 = vld [vmem:[%s17155_s0 + $0x8] sm:$0x1] }
 0x13f   :  { %11074 = vmatmul.mubr.msk.bf16.gmra.mrb[36].mxu1 %vm1002_vm3, %v9512_v36  ;;  %v1945_v36 = vld [vmem:[%s17155_s0] sm:$0xe]  ;;  %v2049_v22 = vrot.slane %v12292_v42, 5 }
 0x140   :  { %11382 = vmatmul.mubr.msk.bf16.gmra.mrb[4].mxu0 %vm1002_vm3, %v12129_v38  ;;  %11077 = vmatprep.mubr.msk.bf16.mxu1 %vm1002_vm3, %v9513_v40  ;;  %v2046_v38 = vrot.slane %v13477_v52, 5  ;;  %v2060_v40 = vrot.slane %v13543_v34, 5  ;;  %v12293_v52 = vld [vmem:[%s17155_s0 + $0x14] sm:$0x1]  ;;  %v14048_v34 = vld [vmem:[%s17155_s0 + $0x160] sm:$0xf] }
 0x141   :  { %11385 = vmatprep.mubr.msk.bf16.mxu0 %vm1002_vm3, %v12131_v45  ;;  %v2056_v45 = vrot.slane %v12293_v52, 5  ;;  %17175 = vst [vmem:[#allocation7_spill] sm:$0xff] %v14048_v34 }
 0x142   :  { %v2048_v59 = vrot.slane %v2046_v38, 4  ;;  %v2062_v25 = vrot.slane %v2060_v40, 4 }
 0x144   :  { %v14080_v52 = vsel %vm12981_vm6, %v2048_v59, %v2049_v22  ;;  %v9522_v22 = vcombine.low %v13322_v43, %v13329_v63  ;;  %v12299_v43 = vld [vmem:[%s17155_s0 + $0x2c] sm:$0x1] }
 0x145   :  { %v2070_v63 = vrot.slane %v12299_v43, 5  ;;  %v12301_v43 = vld [vmem:[%s17155_s0 + $0x44] sm:$0x1] }
 0x147   :  { %11078 = vmatmul.mubr.msk.bf16.gmra.mrb[40].mxu1 %vm1002_vm3, %v9514_v48  ;;  %v14037_v48 = vrot.slane %v4039_v20, 4  ;;  %v2067_v20 = vrot.slane %v13589_v60, 5 }
 0x148   :  { %11386 = vmatmul.mubr.msk.bf16.gmra.mrb[8].mxu0 %vm1002_vm3, %v12133_v50  ;;  %11081 = vmatprep.mubr.msk.bf16.mxu1 %vm1002_vm3, %v9515_v18  ;;  %v9559_v50 = vrot.slane %v1945_v36, 9  ;;  %v12294_v18 = vld [vmem:[%s17155_s0 + $0x15c] sm:$0xf] }
 0x149   :  { %11389 = vmatprep.mubr.msk.bf16.mxu0 %vm1002_vm3, %v12135_v58  ;;  %17174 = vst [vmem:[#allocation6_spill] sm:$0xff] %v14037_v48  ;;  %v9520_v58 = vcombine.low %v12294_v18, %v14048_v34  ;;  %v1949_v18 = vld [vmem:[%s17155_s0 + $0x30] sm:$0xe]  ;;  %v2069_v59 = vrot.slane %v2067_v20, 4  ;;  %v12313_v34 = vld [vmem:[%s17154_s1 + $0x40] sm:$0xff]  }
 0x14a   :  { %v14075_v42 = vsel %vm12981_vm6, %v9559_v50, %v2046_v38  ;;  %v2074_v38 = vrot.slane %v13601_v2, 5  ;;  %v9562_v50 = vrot.slane %v1948_v32, 9 }
 0x14f   :  { %11082 = vmatmul.mubr.msk.bf16.gmra.mrb[44].mxu1 %vm1002_vm3, %v9516_v61  ;;  %v9560_v61 = vrot.slane %v1946_v39, 9 }
 0x150   :  { %11390 = vmatmul.mubr.msk.bf16.gmra.mrb[12].mxu0 %vm1002_vm3, %v12137_v62  ;;  %11085 = vmatprep.mubr.msk.bf16.mxu1 %vm1002_vm3, %v9517_v5  ;;  %v2055_v62 = vrot.slane %v2053_v56, 4  ;;  %v12296_v5 = vld [vmem:[%s17155_s0 + $0x168] sm:$0xf] }
 0x151   :  { %11393 = vmatprep.mubr.msk.bf16.mxu0 %vm1002_vm3, %v12139_v9  ;;  %v12297_v9 = vld [vmem:[%s17155_s0 + $0x16c] sm:$0xf] }
 0x152   :  { %v9521_v11 = vcombine.low %v12296_v5, %v12297_v9  ;;  %v14088_v60 = vsel %vm12981_vm6, %v2055_v62, %v2056_v45  ;;  %v2081_v62 = vrot.slane %v13635_v33, 5  ;;  %v2076_v5 = vrot.slane %v2074_v38, 4  ;;  %v12300_v9 = vld [vmem:[%s17155_s0 + $0x38] sm:$0x1] }
 0x153   :  { %v12149_v33 = vld [vmem:[%s17155_s0 + $0xb4] sm:$0xff]  }
 0x157   :  { %11086 = vmatmul.mubr.msk.bf16.gmra.mrb[48].mxu1 %vm1002_vm3, %v9518_v17  ;;  %v12147_v17 = vld [vmem:[%s17155_s0 + $0xa8] sm:$0xff]  }
 0x158   :  { %11394 = vmatmul.mubr.msk.bf16.gmra.mrb[16].mxu0 %vm1002_vm3, %v12141_v23  ;;  %11089 = vmatprep.mubr.msk.bf16.mxu1 %vm1002_vm3, %v9519_v29  ;;  %v9561_v23 = vrot.slane %v1947_v53, 9  ;;  %v12298_v29 = vld [vmem:[%s17155_s0 + $0x20] sm:$0x1]  ;;  %v14084_v53 = vsel %vm12981_vm6, %v9560_v61, %v2053_v56  ;;  %v9523_v56 = vcombine.low %v13360_v14, %v13367_v19  ;;  %v1950_v14 = vld [vmem:[%s17155_s0 + $0x3c] sm:$0xe]  ;;  %v9563_v61 = vrot.slane %v1949_v18, 9 }
 0x159   :  { %11397 = vmatprep.mubr.msk.bf16.mxu0 %vm1002_vm3, %v12143_v31  ;;  %v2063_v31 = vrot.slane %v12298_v29, 5  ;;  %v9564_v32 = vrot.slane %v1950_v14, 9  ;;  %v12151_v18 = vld [vmem:[%s17155_s0 + $0xc0] sm:$0xff]   ;;  %v2083_v14 = vrot.slane %v2081_v62, 4 }
 0x15b   :  { %v14109_v2 = vsel %vm12981_vm6, %v2062_v25, %v2063_v31  ;;  %v2095_v25 = vrot.slane %v13686_v0, 5  ;;  %v14140_v31 = vsel %vm12981_vm6, %v9562_v50, %v2067_v20  ;;  %v14148_v0 = vsel %vm12981_vm6, %v2069_v59, %v2070_v63  ;;  %v1953_v20 = vld [vmem:[%s17155_s0 + $0x60] sm:$0xe]  ;;  %v12302_v59 = vld [vmem:[%s17155_s0 + $0x50] sm:$0x1] }
 0x15c   :  { %v14159_v50 = vsel %vm12981_vm6, %v9563_v61, %v2074_v38  ;;  %v2091_v63 = vrot.slane %v12302_v59, 5  ;;  %v12303_v61 = vld [vmem:[%s17155_s0 + $0x5c] sm:$0x1]  ;;  %v14194_v45 = vsel %vm12981_vm6, %v9564_v32, %v2081_v62  ;;  %v17180_v15 = vcombine.low %v14140_v31, %v14148_v0 }
 0x15d   :  { %v2097_v38 = vrot.slane %v2095_v25, 4  ;;  %v2098_v29 = vrot.slane %v12303_v61, 5 }
 0x15f   :  { %11090 = vmatmul.mubr.msk.bf16.gmra.mrb[52].mxu1 %vm1002_vm3, %v9520_v58  ;;  %v14105_v58 = vsel %vm12981_vm6, %v9561_v23, %v2060_v40  ;;  %v1952_v23 = vld [vmem:[%s17155_s0 + $0x54] sm:$0xe]  ;;  %v14214_v62 = vsel %vm12981_vm6, %v2097_v38, %v2098_v29  ;;  %v1956_v29 = vld [vmem:[%s17155_s0 + $0x84] sm:$0xe]  ;;  %v1957_v38 = vld [vmem:[%s17155_s0 + $0x90] sm:$0xe] }
 0x160   :  { %11398 = vmatmul.mubr.msk.bf16.gmra.mrb[20].mxu0 %vm1002_vm3, %v12145_v3  ;;  %11093 = vmatprep.mubr.msk.bf16.mxu1 %vm1002_vm3, %v9521_v11  ;;  %v1951_v3 = vld [vmem:[%s17155_s0 + $0x48] sm:$0xe]  ;;  %v2077_v11 = vrot.slane %v12300_v9, 5  ;;  %v2084_v9 = vrot.slane %v12301_v43, 5  ;;  %v9566_v39 = vrot.slane %v1952_v23, 9  ;;  %v9567_v23 = vrot.slane %v1953_v20, 9 }
 0x161   :  { %11401 = vmatprep.mubr.msk.bf16.mxu0 %vm1002_vm3, %v12147_v17  ;;  %v2088_v17 = vrot.slane %v13650_v21, 5  ;;  %v2102_v21 = vrot.slane %v13698_v6, 5  ;;  %v9565_v36 = vrot.slane %v1951_v3, 9  ;;  %v2109_v6 = vrot.slane %v13731_v37, 5  ;;  %v1954_v3 = vld [vmem:[%s17155_s0 + $0x6c] sm:$0xe] }
 0x162   :  { %v14170_v37 = vsel %vm12981_vm6, %v2076_v5, %v2077_v11  ;;  %v1955_v5 = vld [vmem:[%s17155_s0 + $0x78] sm:$0xe]  ;;  %v2116_v11 = vrot.slane %v13746_v46, 5  ;;  %v9568_v61 = vrot.slane %v1954_v3, 9  ;;  %v12305_v20 = vld [vmem:[%s17155_s0 + $0x74] sm:$0x1]  ;;  %v14198_v46 = vsel %vm12981_vm6, %v2083_v14, %v2084_v9 }
 0x163   :  { %v2090_v43 = vrot.slane %v2088_v17, 4  ;;  %v2104_v59 = vrot.slane %v2102_v21, 4  ;;  %v2112_v19 = vrot.slane %v12305_v20, 5  ;;  %v14210_v20 = vsel %vm12981_vm6, %v9566_v39, %v2095_v25  ;;  %v12153_v9 = vld [vmem:[%s17155_s0 + $0xcc] sm:$0xff]   ;;  %v12306_v39 = vld [vmem:[%s17155_s0 + $0x80] sm:$0x1] }
 0x164   :  { %v9569_v32 = vrot.slane %v1955_v5, 9  ;;  %v2118_v14 = vrot.slane %v2116_v11, 4  ;;  %v2119_v25 = vrot.slane %v12306_v39, 5  ;;  %v9570_v39 = vrot.slane %v1956_v29, 9  ;;  %v12308_v29 = vld [vmem:[%s17155_s0 + $0x98] sm:$0x1] }
 0x165   :  { %v14206_v3 = vsel %vm12981_vm6, %v2090_v43, %v2091_v63  ;;  %v12155_v63 = vld [vmem:[%s17155_s0 + $0xf0] sm:$0xff]   ;;  %v2123_v43 = vrot.slane %v13779_v8, 5  ;;  %v2137_v8 = vrot.slane %v13824_v24, 5  ;;  %v2144_v5 = vrot.slane %v13833_v51, 5 }
 0x166   :  { %v14282_v24 = vsel %vm12981_vm6, %v2118_v14, %v2119_v25  ;;  %v9571_v51 = vrot.slane %v1957_v38, 9  ;;  %v2133_v14 = vrot.slane %v12308_v29, 5  ;;  %v12309_v38 = vld [vmem:[%s17155_s0 + $0xa4] sm:$0x1]  ;;  %v2151_v29 = vrot.slane %v13850_v1, 5 }
 0x167   :  { %11094 = vmatmul.mubr.msk.bf16.gmra.mrb[56].mxu1 %vm1002_vm3, %v9522_v22  ;;  %v12304_v22 = vld [vmem:[%s17155_s0 + $0x68] sm:$0x1] }
 0x168   :  { %11402 = vmatmul.mubr.msk.bf16.gmra.mrb[24].mxu0 %vm1002_vm3, %v12149_v33  ;;  %11097 = vmatprep.mubr.msk.bf16.mxu1 %vm1002_vm3, %v9523_v56  ;;  %v2105_v40 = vrot.slane %v12304_v22, 5  ;;  %v2111_v56 = vrot.slane %v2109_v6, 4 }
 0x169   :  { %11405 = vmatprep.mubr.msk.bf16.mxu0 %vm1002_vm3, %v12151_v18  ;;  %v14202_v18 = vsel %vm12981_vm6, %v9565_v36, %v2088_v17  ;;  %v14221_v36 = vsel %vm12981_vm6, %v9567_v23, %v2102_v21  ;;  %v14238_v21 = vsel %vm12981_vm6, %v9568_v61, %v2109_v6  ;;  %v2130_v23 = vrot.slane %v13794_v13, 5  ;;  %v1959_v6 = vld [vmem:[%s17155_s0 + $0xa8] sm:$0xe] }
 0x16a   :  { %v14225_v17 = vsel %vm12981_vm6, %v2104_v59, %v2105_v40  ;;  %v14242_v40 = vsel %vm12981_vm6, %v2111_v56, %v2112_v19  ;;  %v1958_v19 = vld [vmem:[%s17155_s0 + $0x9c] sm:$0xe]  ;;  %v17176_v61 = vcombine.low %v13392_v41, %v13405_v49  ;;  %v14267_v56 = vsel %vm12981_vm6, %v9569_v32, %v2116_v11  ;;  %v12307_v11 = vld [vmem:[%s17155_s0 + $0x8c] sm:$0x1] }
 0x16b   :  { %v17177_v41 = vcombine.low %v14075_v42, %v14080_v52  ;;  %v2126_v32 = vrot.slane %v12307_v11, 5  ;;  %v2125_v42 = vrot.slane %v2123_v43, 4  ;;  %v2132_v52 = vrot.slane %v2130_v23, 4 }
 0x16c   :  { %v9572_v25 = vrot.slane %v1958_v19, 9  ;;  %v2140_v11 = vrot.slane %v12309_v38, 5  ;;  %v9573_v49 = vrot.slane %v1959_v6, 9  ;;  %v2146_v59 = vrot.slane %v2144_v5, 4  ;;  %v1960_v19 = vld [vmem:[%s17155_s0 + $0xb4] sm:$0xe] }
 0x16d   :  { %v14314_v38 = vsel %vm12981_vm6, %v9570_v39, %v2123_v43  ;;  %v14321_v1 = vsel %vm12981_vm6, %v2125_v42, %v2126_v32  ;;  %v14329_v6 = vsel %vm12981_vm6, %v2132_v52, %v2133_v14  ;;  %v9574_v42 = vrot.slane %v1960_v19, 9  ;;  %v12172_v52 = vld [vmem:[%s17154_s1 + $0x38] sm:$0xff]  }
 0x16e   :  { %v14333_v43 = vsel %vm12981_vm6, %v9572_v25, %v2137_v8  ;;  %v14341_v32 = vsel %vm12981_vm6, %v9573_v49, %v2144_v5  ;;  %v17178_v14 = vcombine.low %v14084_v53, %v14088_v60  ;;  %v2153_v49 = vrot.slane %v2151_v29, 4  ;;  %v1961_v25 = vld [vmem:[%s17155_s0 + $0xd8] sm:$0xe] }
 0x16f   :  { %11098 = vmatmul.mubr.msk.bf16.gmra.mrb[60].mxu1 %vm1002_vm3, %v17176_v61  ;;  %v10230_v61 = vld [vmem:[%s17155_s0 + $0x1c] sm:$0xf]  ;;  %v2158_v60 = vrot.slane %v13859_v7, 5 }
 0x170   :  { %11406 = vmatmul.mubr.msk.bf16.gmra.mrb[28].mxu0 %vm1002_vm3, %v12153_v9  ;;  %11105 = vmatprep.mubr.msk.bf16.mxu1 %vm1002_vm3, %v17177_v41  ;;  %v10229_v9 = vld [vmem:[%s17155_s0 + $0x18] sm:$0xf]  ;;  %v2139_v41 = vrot.slane %v2137_v8, 4  ;;  %v6662_v48 = vshrl.u32 %v10230_v61, 16  ;;  %v10232_v8 = vld [vmem:[%s17155_s0 + $0x24] sm:$0xf] }
 0x171   :  { %11409 = vmatprep.mubr.msk.bf16.mxu0 %vm1002_vm3, %v12155_v63  ;;  %v12310_v63 = vld [vmem:[%s17155_s0 + $0xb0] sm:$0x1]  ;;  %v6649_v22 = vshrl.u32 %v10229_v9, 16  ;;  %v6652_v33 = vshll.u32 %v10229_v9, 16  ;;  %v14325_v9 = vsel %vm12981_vm6, %v9571_v51, %v2130_v23  ;;  %v12311_v23 = vld [vmem:[%s17155_s0 + $0xbc] sm:$0x1] }
 0x172   :  { %v2147_v13 = vrot.slane %v12310_v63, 5  ;;  %v6658_v63 = vshll.u32 %v10230_v61, 16  ;;  %v14337_v39 = vsel %vm12981_vm6, %v2139_v41, %v2140_v11  ;;  %v2154_v51 = vrot.slane %v12311_v23, 5  ;;  %v10235_v23 = vld [vmem:[%s17155_s0 + $0x30] sm:$0xf] }
 0x173   :  { %v6651_v61 = vrot.slane %v6649_v22, 4  ;;  %v6654_v41 = vrot.slane %v6652_v33, 5  ;;  %v17179_v22 = vcombine.low %v14105_v58, %v14109_v2  ;;  %v6676_v33 = vshll.u32 %v10232_v8, 16  ;;  %v12312_v2 = vld [vmem:[%s17155_s0 + $0xe0] sm:$0x1] }
 0x174   :  { %v14358_v5 = vsel %vm12981_vm6, %v2146_v59, %v2147_v13  ;;  %v14368_v11 = vrot.slane %v6658_v63, 5  ;;  %v6664_v59 = vrot.slane %v6662_v48, 4  ;;  %v10233_v13 = vld [vmem:[%s17155_s0 + $0x28] sm:$0xf]  ;;  %v6673_v48 = vshrl.u32 %v10232_v8, 16 }
 0x175   :  { %v14389_v58 = vsel %vm12981_vm6, %v9574_v42, %v2151_v29  ;;  %v2161_v63 = vrot.slane %v12312_v2, 5  ;;  %v14399_v8 = vsel %vm12981_vm6, %v2153_v49, %v2154_v51  ;;  %v1962_v29 = vld [vmem:[%s17155_s0 + $0xe4] sm:$0xe]  ;;  %v6682_v42 = vshll.u32 %v10233_v13, 16  ;;  %v12159_v2 = vld [vmem:[%s17155_s0 + $0x114] sm:$0xff]  }
 0x176   :  { %v2160_v19 = vrot.slane %v2158_v60, 4  ;;  %v6665_v7 = vor.u32 %v6664_v59, %v14368_v11  ;;  %v2165_v49 = vrot.slane %v13875_v16, 5  ;;  %v6700_v53 = vshll.u32 %v10235_v23, 16  ;;  %v12314_v59 = vld [vmem:[%s17155_s0 + $0xec] sm:$0x1] }
 0x177   :  { %11106 = vmatmul.mubr.msk.bf16.vlgmr.msra.gmra.mrb[0].mxu1 %vm1002_vm3, %v17178_v14  ;;  %v6655_v14 = vor.u32 %v6654_v41, %v6651_v61  ;;  %v12160_v61 = vld [vmem:[%s17155_s0 + $0x120] sm:$0xff]   ;;  %v6675_v41 = vrot.slane %v6673_v48, 4  ;;  %v9576_v28 = vrot.slane %v1962_v29, 9  ;;  %v2168_v16 = vrot.slane %v12314_v59, 5 }
 0x178   :  { %11170 = vmatpush3.bf16.msra.mxu1 %v13577_v54  ;;  %11410 = vmatmul.mubr.msk.bf16.gmra.mrb[32].mxu0 %vm1002_vm3, %v12157_v47  ;;  %v10231_v47 = vld [vmem:[%s17155_s0 + $0x20] sm:$0x1]  ;;  %v6697_v54 = vshrl.u32 %v10235_v23, 16  ;;  %v14432_v23 = vrot.slane %v6682_v42, 5  ;;  %v6666_v31 = vrot.slane %v6665_v7, 4 }
 0x179   :  { %11109 = vmatprep.mubr.msk.bf16.mxu1 %vm1002_vm3, %v17179_v22  ;;  %11413 = vmatprep.mubr.msk.bf16.mxu0 %vm1002_vm3, %v12158_v44  ;;  %v9575_v44 = vrot.slane %v1961_v25, 9  ;;  %v6686_v25 = vshrl.u32 %v10233_v13, 16  ;;  %v10236_v22 = vld [vmem:[%s17155_s0 + $0x34] sm:$0xf]  ;;  %v6668_v51 = vshll.u32 %v10231_v47, 16  ;;  %v6678_v13 = vrot.slane %v6676_v33, 5 }
 0x17a   :  { %11171 = vmatprep.subr.bf16.mxu1 %v12172_v52  ;;  %v6710_v47 = vshrl.u32 %v10236_v22, 16  ;;  %v6656_v33 = vrot.slane %v6655_v14, 4  ;;  %v6699_v42 = vrot.slane %v6697_v54, 4 }
 0x17b   :  { %v14427_v48 = vsel %vm12981_vm6, %v9575_v44, %v2158_v60  ;;  %v6688_v29 = vrot.slane %v6686_v25, 4  ;;  %v6670_v0 = vrot.slane %v6668_v51, 5  ;;  %v2167_v60 = vrot.slane %v2165_v49, 4 }
 0x17c   :  { %11172 = vmatpush3.bf16.msra.mxu1 %v12172_v52  ;;  %v6706_v52 = vshll.u32 %v10236_v22, 16  ;;  %v17181_v22 = vcombine.low %v14159_v50, %v14170_v37  ;;  %v6679_v14 = vor.u32 %v6678_v13, %v6675_v41  ;;  %v6702_v25 = vrot.slane %v6700_v53, 5  ;;  %v10238_v50 = vld [vmem:[%s17155_s0 + $0x3c] sm:$0xf] }
 0x17d   :  { %11577 = vmatprep.subr.bf16.mxu1 %v12313_v34  ;;  %v10234_v34 = vld [vmem:[%s17155_s0 + $0x2c] sm:$0x1]  ;;  %v14451_v37 = vsel %vm12981_vm6, %v9576_v28, %v2165_v49  ;;  %v6661_v53 = vsel %vm12504_vm2, %v6656_v33, %v14368_v11  ;;  %v6689_v51 = vor.u32 %v6688_v29, %v14432_v23  ;;  %v2172_v28 = vrot.slane %v13887_v26, 5  ;;  %v10237_v49 = vld [vmem:[%s17155_s0 + $0x38] sm:$0x1] }
 0x17e   :  { %v14453_v7 = vrot.slane %v6706_v52, 5  ;;  %v6671_v41 = vsel %vm12504_vm2, %v6666_v31, %v6670_v0  ;;  %v14475_v13 = vsel %vm12981_vm6, %v2167_v60, %v2168_v16  ;;  %v1963_v11 = vld [vmem:[%s17155_s0 + $0xf0] sm:$0xe]  ;;  %v6721_v26 = vshrl.u32 %v10238_v50, 16  ;;  %v12162_v52 = vld [vmem:[%s17155_s0 + $0x138] sm:$0xff]  }
 0x17f   :  { %11110 = vmatmul.mubr.msk.bf16.gmra.mrb[4].mxu1 %vm1002_vm3, %v17180_v15  ;;  %v14441_v15 = vsel %vm12981_vm6, %v2160_v19, %v2161_v63  ;;  %v6692_v19 = vshll.u32 %v10234_v34, 16  ;;  %v6712_v63 = vrot.slane %v6710_v47, 4  ;;  %v6724_v59 = vshll.u32 %v10238_v50, 16  ;;  %v1964_v16 = vld [vmem:[%s17155_s0 + $0xfc] sm:$0xe] }
 0x180   :  { %11414 = vmatmul.mubr.msk.bf16.gmra.mrb[36].mxu0 %vm1002_vm3, %v12159_v2  ;;  %11113 = vmatprep.mubr.msk.bf16.mxu1 %vm1002_vm3, %v17181_v22  ;;  %v10239_v2 = vld [vmem:[%s17155_s0 + $0x40] sm:$0xf]  ;;  %v6680_v47 = vrot.slane %v6679_v14, 4  ;;  %v6703_v33 = vor.u32 %v6702_v25, %v6699_v42  ;;  %v6716_v0 = vshll.u32 %v10237_v49, 16  ;;  %v2179_v60 = vrot.slane %v13912_v35, 5 }
 0x181   :  { %11417 = vmatprep.mubr.msk.bf16.mxu0 %vm1002_vm3, %v12160_v61  ;;  %v12161_v61 = vld [vmem:[%s17155_s0 + $0x12c] sm:$0xff]   ;;  %v6730_v34 = vshll.u32 %v10239_v2, 16  ;;  %v6734_v29 = vshrl.u32 %v10239_v2, 16  ;;  %v6694_v22 = vrot.slane %v6692_v19, 5  ;;  %v6713_v31 = vor.u32 %v6712_v63, %v14453_v7  ;;  %v12315_v25 = vld [vmem:[%s17155_s0 + $0xf8] sm:$0x1] }
 0x182   :  { %v17182_v50 = vcombine.low %v14194_v45, %v14198_v46  ;;  %v6690_v54 = vrot.slane %v6689_v51, 4  ;;  %v9577_v14 = vrot.slane %v1963_v11, 9  ;;  %v2174_v42 = vrot.slane %v2172_v28, 4 }
 0x183   :  { %v2175_v19 = vrot.slane %v12315_v25, 5  ;;  %v17183_v63 = vcombine.low %v14202_v18, %v14206_v3  ;;  %v14500_v35 = vcombine.low %v6661_v53, %v6671_v41  ;;  %v6723_v46 = vrot.slane %v6721_v26, 4  ;;  %v10241_v18 = vld [vmem:[%s17155_s0 + $0x48] sm:$0xf]  ;;  %v12316_v41 = vld [vmem:[%s17155_s0 + $0x104] sm:$0x1] }
 0x184   :  { %v6726_v2 = vrot.slane %v6724_v59, 5  ;;  %v6704_v51 = vrot.slane %v6703_v33, 4  ;;  %v9578_v49 = vrot.slane %v1964_v16, 9  ;;  %v14505_v11 = vrot.slane %v6730_v34, 5  ;;  %v10240_v59 = vld [vmem:[%s17155_s0 + $0x44] sm:$0x1] }
 0x185   :  { %v6714_v3 = vrot.slane %v6713_v31, 4  ;;  %v2181_v53 = vrot.slane %v2179_v60, 4  ;;  %v2182_v26 = vrot.slane %v12316_v41, 5  ;;  %v6695_v33 = vsel %vm12504_vm2, %v6690_v54, %v6694_v22  ;;  %v10242_v31 = vld [vmem:[%s17155_s0 + $0x4c] sm:$0xf]  ;;  %v12164_v16 = vld [vmem:[%s17155_s0 + $0x150] sm:$0xff]  }
 0x186   :  { %v14523_v34 = vsel %vm12981_vm6, %v9577_v14, %v2172_v28  ;;  %v1965_v54 = vld [vmem:[%s17155_s0 + $0x108] sm:$0xe]  ;;  %v2186_v28 = vrot.slane %v13924_v57, 5  ;;  %v6748_v22 = vshll.u32 %v10241_v18, 16  ;;  %v6709_v14 = vsel %vm12504_vm2, %v6704_v51, %v14453_v7  ;;  %v10243_v41 = vld [vmem:[%s17155_s0 + $0x50] sm:$0x1] }
 0x187   :  { %11114 = vmatmul.mubr.msk.bf16.gmra.mrb[8].mxu1 %vm1002_vm3, %v17182_v50  ;;  %v6736_v50 = vrot.slane %v6734_v29, 4  ;;  %v14527_v29 = vsel %vm12981_vm6, %v2174_v42, %v2175_v19  ;;  %v14547_v42 = vsel %vm12981_vm6, %v9578_v49, %v2179_v60  ;;  %v6740_v19 = vshll.u32 %v10240_v59, 16  ;;  %v12317_v49 = vld [vmem:[%s17155_s0 + $0x110] sm:$0x1] }
 0x188   :  { %11418 = vmatmul.mubr.msk.bf16.gmra.mrb[40].mxu0 %vm1002_vm3, %v12161_v61  ;;  %11117 = vmatprep.mubr.msk.bf16.mxu1 %vm1002_vm3, %v17183_v63  ;;  %v6718_v61 = vrot.slane %v6716_v0, 5  ;;  %v12163_v0 = vld [vmem:[%s17155_s0 + $0x144] sm:$0xff]   ;;  %v14554_v63 = vsel %vm12981_vm6, %v2181_v53, %v2182_v26  ;;  %v9579_v51 = vrot.slane %v1965_v54, 9  ;;  %v2188_v53 = vrot.slane %v2186_v28, 4 }
 0x189   :  { %11421 = vmatprep.mubr.msk.bf16.mxu0 %vm1002_vm3, %v12162_v52  ;;  %v6685_v52 = vsel %vm12504_vm2, %v6680_v47, %v14432_v23  ;;  %v6727_v23 = vor.u32 %v6726_v2, %v6723_v46  ;;  %v6745_v47 = vshrl.u32 %v10241_v18, 16  ;;  %v6737_v25 = vor.u32 %v6736_v50, %v14505_v11 }
 0x18a   :  { %v6719_v57 = vsel %vm12504_vm2, %v6714_v3, %v6718_v61  ;;  %v6754_v46 = vshll.u32 %v10242_v31, 16  ;;  %v6758_v2 = vshrl.u32 %v10242_v31, 16  ;;  %v17184_v18 = vcombine.low %v14210_v20, %v14214_v62  ;;  %v10244_v3 = vld [vmem:[%s17155_s0 + $0x54] sm:$0xf]  ;;  %v10245_v20 = vld [vmem:[%s17155_s0 + $0x58] sm:$0xf] }
 0x18b   :  { %v14560_v7 = vcombine.low %v6685_v52, %v6695_v33  ;;  %v2189_v50 = vrot.slane %v12317_v49, 5  ;;  %v17185_v62 = vcombine.low %v14221_v36, %v14225_v17  ;;  %v14578_v61 = vrot.slane %v6727_v23, 4  ;;  %v10247_v17 = vld [vmem:[%s17155_s0 + $0x60] sm:$0xf]  ;;  %v1966_v49 = vld [vmem:[%s17155_s0 + $0x114] sm:$0xe] }
 0x18c   :  { %v6747_v26 = vrot.slane %v6745_v47, 4  ;;  %v6750_v59 = vrot.slane %v6748_v22, 5  ;;  %v14584_v52 = vcombine.low %v6709_v14, %v6719_v57  ;;  %v14588_v31 = vrot.slane %v6737_v25, 4  ;;  %v10248_v22 = vld [vmem:[%s17155_s0 + $0x64] sm:$0xf]  ;;  %v12165_v57 = vld [vmem:[%s17155_s0 + $0x15c] sm:$0xff]  }
 0x18d   :  { %v14590_v36 = vrot.slane %v6740_v19, 5  ;;  %v6760_v23 = vrot.slane %v6758_v2, 4  ;;  %v6769_v54 = vshrl.u32 %v10244_v3, 16  ;;  %v6772_v47 = vshll.u32 %v10244_v3, 16 }
 0x18e   :  { %v6764_v14 = vshll.u32 %v10243_v41, 16  ;;  %v6778_v25 = vshll.u32 %v10245_v20, 16  ;;  %v6782_v19 = vshrl.u32 %v10245_v20, 16  ;;  %v6793_v3 = vshrl.u32 %v10247_v17, 16 }
 0x18f   :  { %11118 = vmatmul.mubr.msk.bf16.gmra.mrb[12].mxu1 %vm1002_vm3, %v17184_v18  ;;  %v6751_v18 = vor.u32 %v6750_v59, %v6747_v26  ;;  %v6796_v20 = vshll.u32 %v10247_v17, 16  ;;  %v6806_v41 = vshrl.u32 %v10248_v22, 16  ;;  %v17186_v26 = vcombine.low %v14238_v21, %v14242_v40 }
 0x190   :  { %11422 = vmatmul.mubr.msk.bf16.gmra.mrb[44].mxu0 %vm1002_vm3, %v12163_v0  ;;  %11121 = vmatprep.mubr.msk.bf16.mxu1 %vm1002_vm3, %v17185_v62  ;;  %v14595_v0 = vrot.slane %v6754_v46, 5  ;;  %v12166_v46 = vld [vmem:[%s17155_s0 + $0x168] sm:$0xff]   ;;  %v6802_v62 = vshll.u32 %v10248_v22, 16  ;;  %v14634_v59 = vrot.slane %v6764_v14, 5  ;;  %v14636_v17 = vrot.slane %v6778_v25, 5 }
 0x191   :  { %11425 = vmatprep.mubr.msk.bf16.mxu0 %vm1002_vm3, %v12164_v16  ;;  %v14602_v16 = vsel %vm12981_vm6, %v9579_v51, %v2186_v28  ;;  %v14616_v28 = vsel %vm12981_vm6, %v2188_v53, %v2189_v50  ;;  %v2193_v51 = vrot.slane %v13940_v30, 5  ;;  %v10246_v50 = vld [vmem:[%s17155_s0 + $0x5c] sm:$0x1]  ;;  %v6771_v30 = vrot.slane %v6769_v54, 4 }
 0x192   :  { %v6761_v60 = vor.u32 %v6760_v23, %v14595_v0  ;;  %v6774_v53 = vrot.slane %v6772_v47, 5  ;;  %v6784_v22 = vrot.slane %v6782_v19, 4  ;;  %v1967_v23 = vld [vmem:[%s17155_s0 + $0x120] sm:$0xe]  ;;  %v2200_v45 = vrot.slane %v13952_v55, 5 }
 0x193   :  { %v17187_v54 = vcombine.low %v14267_v56, %v14282_v24  ;;  %v6752_v21 = vrot.slane %v6751_v18, 4  ;;  %v9580_v40 = vrot.slane %v1966_v49, 9  ;;  %v2195_v47 = vrot.slane %v2193_v51, 4  ;;  %v12318_v14 = vld [vmem:[%s17155_s0 + $0x11c] sm:$0x1] }
 0x194   :  { %v2196_v25 = vrot.slane %v12318_v14, 5  ;;  %v10249_v19 = vld [vmem:[%s17155_s0 + $0x68] sm:$0x1]  ;;  %v6795_v55 = vrot.slane %v6793_v3, 4  ;;  %v6808_v56 = vrot.slane %v6806_v41, 4  ;;  %v6762_v18 = vrot.slane %v6761_v60, 4 }
 0x195   :  { %v10250_v24 = vld [vmem:[%s17155_s0 + $0x6c] sm:$0xf]  ;;  %v6775_v49 = vor.u32 %v6774_v53, %v6771_v30  ;;  %v9581_v44 = vrot.slane %v1967_v23, 9  ;;  %v6785_v14 = vor.u32 %v6784_v22, %v14636_v17  ;;  %v2202_v2 = vrot.slane %v2200_v45, 4  ;;  %v12168_v22 = vld [vmem:[%s17155_s0 + $0x180] sm:$0xff]  }
 0x196   :  { %v6757_v60 = vsel %vm12504_vm2, %v6752_v21, %v14595_v0  ;;  %v14671_v41 = vsel %vm12981_vm6, %v9580_v40, %v2193_v51  ;;  %v6817_v30 = vshrl.u32 %v10250_v24, 16  ;;  %v6820_v53 = vshll.u32 %v10250_v24, 16  ;;  %v10251_v21 = vld [vmem:[%s17155_s0 + $0x70] sm:$0xf] }
 0x197   :  { %11122 = vmatmul.mubr.msk.bf16.gmra.mrb[16].mxu1 %vm1002_vm3, %v17186_v26  ;;  %v14654_v26 = vrot.slane %v6802_v62, 5  ;;  %v12167_v62 = vld [vmem:[%s17155_s0 + $0x174] sm:$0xff]   ;;  %v14681_v23 = vsel %vm12981_vm6, %v2195_v47, %v2196_v25  ;;  %v2207_v51 = vrot.slane %v13968_v12, 5  ;;  %v6767_v40 = vsel %vm12504_vm2, %v6762_v18, %v14634_v59 }
 0x198   :  { %11426 = vmatmul.mubr.msk.bf16.gmra.mrb[48].mxu0 %vm1002_vm3, %v12165_v57  ;;  %11125 = vmatprep.mubr.msk.bf16.mxu1 %vm1002_vm3, %v17187_v54  ;;  %v6798_v57 = vrot.slane %v6796_v20, 5  ;;  %v6788_v54 = vshll.u32 %v10246_v50, 16  ;;  %v6812_v20 = vshll.u32 %v10249_v19, 16  ;;  %v1968_v50 = vld [vmem:[%s17155_s0 + $0x12c] sm:$0xe]  ;;  %v6776_v24 = vrot.slane %v6775_v49, 4 }
 0x199   :  { %11429 = vmatprep.mubr.msk.bf16.mxu0 %vm1002_vm3, %v12166_v46  ;;  %v12319_v46 = vld [vmem:[%s17155_s0 + $0x128] sm:$0x1]  ;;  %v6809_v0 = vor.u32 %v6808_v56, %v14654_v26  ;;  %v14693_v33 = vsel %vm12981_vm6, %v9581_v44, %v2200_v45  ;;  %v17188_v47 = vcombine.low %v14314_v38, %v14321_v1  ;;  %v6786_v12 = vrot.slane %v6785_v14, 4  ;;  %v10253_v1 = vld [vmem:[%s17155_s0 + $0x78] sm:$0xf] }
 0x19a   :  { %v2203_v3 = vrot.slane %v12319_v46, 5  ;;  %v6799_v19 = vor.u32 %v6798_v57, %v6795_v55  ;;  %v6790_v46 = vrot.slane %v6788_v54, 5  ;;  %v6814_v55 = vrot.slane %v6812_v20, 5  ;;  %v12320_v54 = vld [vmem:[%s17155_s0 + $0x134] sm:$0x1] }
 0x19b   :  { %v9582_v57 = vrot.slane %v1968_v50, 9  ;;  %v17189_v59 = vcombine.low %v14325_v9, %v14329_v6  ;;  %v6819_v44 = vrot.slane %v6817_v30, 4  ;;  %v6822_v45 = vrot.slane %v6820_v53, 5  ;;  %v12169_v53 = vld [vmem:[%s17155_s0 + $0x18c] sm:$0xff]  }
 0x19c   :  { %v14701_v25 = vsel %vm12981_vm6, %v2202_v2, %v2203_v3  ;;  %v6826_v56 = vshll.u32 %v10251_v21, 16  ;;  %v6830_v38 = vshrl.u32 %v10251_v21, 16  ;;  %v6800_v2 = vrot.slane %v6799_v19, 4  ;;  %v10254_v21 = vld [vmem:[%s17155_s0 + $0x7c] sm:$0xf] }
 0x19d   :  { %v6810_v18 = vrot.slane %v6809_v0, 4  ;;  %v2209_v49 = vrot.slane %v2207_v51, 4  ;;  %v2210_v6 = vrot.slane %v12320_v54, 5  ;;  %v17190_v9 = vsel %vm12504_vm2, %v14588_v31, %v14590_v36 }
 0x19e   :  { %v17191_v14 = vsel %vm12504_vm2, %v14578_v61, %v14505_v11  ;;  %v9615_v20 = vcombine.low %v14602_v16, %v14616_v28  ;;  %v9616_v50 = vcombine.low %v14671_v41, %v14681_v23  ;;  %v6781_v30 = vsel %vm12504_vm2, %v6776_v24, %v14636_v17  ;;  %v10252_v11 = vld [vmem:[%s17155_s0 + $0x74] sm:$0x1]  ;;  %v1969_v61 = vld [vmem:[%s17155_s0 + $0x138] sm:$0xe]  ;;  %v10267_v16 = vld [vmem:[%s17155_s0 + $0xb0] sm:$0x1] }
 0x19f   :  { %11126 = vmatmul.mubr.msk.bf16.gmra.mrb[20].mxu1 %vm1002_vm3, %v17188_v47  ;;  %v14725_v3 = vcombine.low %v17191_v14, %v17190_v9  ;;  %v6791_v31 = vsel %vm12504_vm2, %v6786_v12, %v6790_v46  ;;  %v6841_v36 = vshrl.u32 %v10253_v1, 16  ;;  %v14749_v19 = vrot.slane %v6826_v56, 5 }
 0x1a0   :  { %11430 = vmatmul.mubr.msk.bf16.gmra.mrb[52].mxu0 %vm1002_vm3, %v12167_v62  ;;  %11129 = vmatprep.mubr.msk.bf16.mxu1 %vm1002_vm3, %v17189_v59  ;;  %v14729_v62 = vcombine.low %v6757_v60, %v6767_v40  ;;  %v6844_v60 = vshll.u32 %v10253_v1, 16  ;;  %v6832_v0 = vrot.slane %v6830_v38, 4  ;;  %v12170_v40 = vld [vmem:[%s17155_s0 + $0x198] sm:$0xff]   ;;  %v6805_v24 = vsel %vm12504_vm2, %v6800_v2, %v14654_v26  ;;  %v10256_v59 = vld [vmem:[%s17155_s0 + $0x84] sm:$0xf] }
 0x1a1   :  { %11433 = vmatprep.mubr.msk.bf16.mxu0 %vm1002_vm3, %v12168_v22  ;;  %v6823_v22 = vor.u32 %v6822_v45, %v6819_v44  ;;  %v6815_v46 = vsel %vm12504_vm2, %v6810_v18, %v6814_v55  ;;  %v14764_v47 = vsel %vm12981_vm6, %v9582_v57, %v2207_v51  ;;  %v14768_v12 = vsel %vm12981_vm6, %v2209_v49, %v2210_v6  ;;  %v10257_v55 = vld [vmem:[%s17155_s0 + $0x88] sm:$0xf] }
 0x1a2   :  { %v14773_v44 = vcombine.low %v6781_v30, %v6791_v31  ;;  %v6836_v45 = vshll.u32 %v10252_v11, 16  ;;  %v9583_v56 = vrot.slane %v1969_v61, 9  ;;  %v2214_v26 = vrot.slane %v13980_v4, 5  ;;  %v12321_v61 = vld [vmem:[%s17155_s0 + $0x140] sm:$0x1] }
 0x1a3   :  { %v17192_v51 = vcombine.low %v14333_v43, %v14337_v39  ;;  %v6843_v57 = vrot.slane %v6841_v36, 4  ;;  %v6846_v38 = vrot.slane %v6844_v60, 5  ;;  %v6850_v1 = vshll.u32 %v10254_v21, 16  ;;  %v10255_v39 = vld [vmem:[%s17155_s0 + $0x80] sm:$0x1] }
 0x1a4   :  { %v6854_v2 = vshrl.u32 %v10254_v21, 16  ;;  %v17193_v18 = vcombine.low %v14341_v32, %v14358_v5  ;;  %v14788_v4 = vcombine.low %v6805_v24, %v6815_v46  ;;  %v14792_v54 = vrot.slane %v6823_v22, 4  ;;  %v1970_v32 = vld [vmem:[%s17155_s0 + $0x144] sm:$0xe]  ;;  %v10259_v60 = vld [vmem:[%s17155_s0 + $0x90] sm:$0xf] }
 0x1a5   :  { %v6833_v43 = vor.u32 %v6832_v0, %v14749_v19  ;;  %v6865_v5 = vshrl.u32 %v10256_v59, 16  ;;  %v6868_v6 = vshll.u32 %v10256_v59, 16  ;;  %v6874_v9 = vshll.u32 %v10257_v55, 16  ;;  %v17194_v21 = vld [vmem:[#allocation3_spill] sm:$0xff]  ;;  %v10260_v24 = vld [vmem:[%s17155_s0 + $0x94] sm:$0xf] }
 0x1a6   :  { %v6878_v14 = vshrl.u32 %v10257_v55, 16  ;;  %v14802_v30 = vrot.slane %v6836_v45, 5  ;;  %v14806_v31 = vsel %vm12981_vm6, %v9583_v56, %v2214_v26  ;;  %v2216_v11 = vrot.slane %v2214_v26, 4  ;;  %v12171_v46 = vld [vmem:[%s17155_s0 + $0x1a4] sm:$0xff]   ;;  %v10258_v55 = vld [vmem:[%s17155_s0 + $0x8c] sm:$0x1] }
 0x1a7   :  { %11130 = vmatmul.mubr.msk.bf16.gmra.mrb[24].mxu1 %vm1002_vm3, %v17192_v51  ;;  %v2217_v36 = vrot.slane %v12321_v61, 5  ;;  %v14814_v22 = vrot.slane %v6850_v1, 5  ;;  %v6856_v0 = vrot.slane %v6854_v2, 4  ;;  %v6829_v59 = vsel %vm12504_vm2, %v14792_v54, %v14749_v19  ;;  %v10266_v19 = vld [vmem:[%s17155_s0 + $0xac] sm:$0xf] }
 0x1a8   :  { %11434 = vmatmul.mubr.msk.bf16.gmra.mrb[56].mxu0 %vm1002_vm3, %v12169_v53  ;;  %11133 = vmatprep.mubr.msk.bf16.mxu1 %vm1002_vm3, %v17193_v18  ;;  %v6847_v53 = vor.u32 %v6846_v38, %v6843_v57  ;;  %v14827_v45 = vrot.slane %v6833_v43, 4  ;;  %v6860_v56 = vshll.u32 %v10255_v39, 16  ;;  %v9584_v26 = vrot.slane %v1970_v32, 9 }
 0x1a9   :  { %11437 = vmatprep.mubr.msk.bf16.mxu0 %vm1002_vm3, %v12170_v40  ;;  %v2221_v40 = vrot.slane %v17194_v21, 5  ;;  %v6867_v51 = vrot.slane %v6865_v5, 4  ;;  %v6870_v57 = vrot.slane %v6868_v6, 5  ;;  %v14832_v38 = vrot.slane %v6874_v9, 5  ;;  %v12322_v5 = vld [vmem:[%s17155_s0 + $0x14c] sm:$0x1] }
 0x1aa   :  { %v6880_v1 = vrot.slane %v6878_v14, 4  ;;  %v6889_v2 = vshrl.u32 %v10259_v60, 16  ;;  %v6892_v18 = vshll.u32 %v10259_v60, 16  ;;  %v6898_v61 = vshll.u32 %v10260_v24, 16 }
 0x1ab   :  { %v6902_v21 = vshrl.u32 %v10260_v24, 16  ;;  %v17195_v49 = vcombine.low %v14389_v58, %v14399_v8  ;;  %v14838_v43 = vrot.slane %v6847_v53, 4  ;;  %v6857_v39 = vor.u32 %v6856_v0, %v14814_v22  ;;  %v1971_v53 = vld [vmem:[%s17155_s0 + $0x150] sm:$0xe] }
 0x1ac   :  { %v2223_v32 = vrot.slane %v2221_v40, 4  ;;  %v2224_v6 = vrot.slane %v12322_v5, 5  ;;  %v17196_v9 = vcombine.low %v14427_v48, %v14441_v15  ;;  %v6839_v58 = vsel %vm12504_vm2, %v14827_v45, %v14802_v30  ;;  %v17197_v0 = vld [vmem:[#allocation4_spill] sm:$0xff] }
 0x1ad   :  { %v14855_v8 = vsel %vm12981_vm6, %v2216_v11, %v2217_v36  ;;  %v6884_v14 = vshll.u32 %v10258_v55, 16  ;;  %v14863_v48 = vsel %vm12981_vm6, %v9584_v26, %v2221_v40  ;;  %v6871_v15 = vor.u32 %v6870_v57, %v6867_v51  ;;  %v10262_v36 = vld [vmem:[%s17155_s0 + $0x9c] sm:$0xf]  ;;  %v10261_v51 = vld [vmem:[%s17155_s0 + $0x98] sm:$0x1] }
 0x1ae   :  { %v6881_v60 = vor.u32 %v6880_v1, %v14832_v38  ;;  %v2228_v11 = vrot.slane %v17197_v0, 5  ;;  %v6891_v24 = vrot.slane %v6889_v2, 4  ;;  %v6853_v40 = vsel %vm12504_vm2, %v14838_v43, %v14814_v22  ;;  %v1972_v57 = vld [vmem:[%s17155_s0 + $0x15c] sm:$0xe]  ;;  %v17198_v1 = vld [vmem:[#allocation7_spill] sm:$0xff] }
 0x1af   :  { %11134 = vmatmul.mubr.msk.bf16.gmra.mrb[28].mxu1 %vm1002_vm3, %v17195_v49  ;;  %v14857_v49 = vrot.slane %v6860_v56, 5  ;;  %v6904_v56 = vrot.slane %v6902_v21, 4  ;;  %v6858_v26 = vrot.slane %v6857_v39, 4  ;;  %v14881_v55 = vsel %vm12981_vm6, %v2223_v32, %v2224_v6  ;;  %v10263_v22 = vld [vmem:[%s17155_s0 + $0xa0] sm:$0xf] }
 0x1b0   :  { %11438 = vmatmul.mubr.msk.bf16.gmra.mrb[60].mxu0 %vm1002_vm3, %v12171_v46  ;;  %11137 = vmatprep.mubr.msk.bf16.mxu1 %vm1002_vm3, %v17196_v9  ;;  %v6894_v46 = vrot.slane %v6892_v18, 5  ;;  %v2235_v2 = vrot.slane %v17198_v1, 5  ;;  %v6886_v18 = vrot.slane %v6884_v14, 5  ;;  %v6913_v21 = vshrl.u32 %v10262_v36, 16  ;;  %v12323_v6 = vld [vmem:[%s17155_s0 + $0x158] sm:$0x1] }
 0x1b1   :  { %11445 = vmatprep.mubr.msk.bf16.mxu0 %vm1002_vm3, %v14500_v35  ;;  %v14873_v35 = vrot.slane %v6898_v61, 5  ;;  %v9585_v61 = vrot.slane %v1971_v53, 9  ;;  %v6916_v43 = vshll.u32 %v10262_v36, 16  ;;  %v6872_v39 = vrot.slane %v6871_v15, 4  ;;  %v12175_v53 = vld [vmem:[%s17154_s1 + $0x88] sm:$0xff]  }
 0x1b2   :  { %v6882_v32 = vrot.slane %v6881_v60, 4  ;;  %v2230_v5 = vrot.slane %v2228_v11, 4  ;;  %v2231_v9 = vrot.slane %v12323_v6, 5  ;;  %v6895_v0 = vor.u32 %v6894_v46, %v6891_v24  ;;  %v12324_v60 = vld [vmem:[%s17155_s0 + $0x164] sm:$0x1] }
 0x1b3   :  { %v6905_v17 = vor.u32 %v6904_v56, %v14873_v35  ;;  %v6908_v1 = vshll.u32 %v10261_v51, 16  ;;  %v9586_v14 = vrot.slane %v1972_v57, 9  ;;  %v17199_v36 = vcombine.low %v14451_v37, %v14475_v13  ;;  %v10264_v51 = vld [vmem:[%s17155_s0 + $0xa4] sm:$0x1] }
 0x1b4   :  { %v2237_v15 = vrot.slane %v2235_v2, 4  ;;  %v2238_v6 = vrot.slane %v12324_v60, 5  ;;  %v6922_v24 = vshll.u32 %v10263_v22, 16  ;;  %v6926_v46 = vshrl.u32 %v10263_v22, 16 }
 0x1b5   :  { %v17200_v56 = vcombine.low %v14523_v34, %v14527_v29  ;;  %v6863_v37 = vsel %vm12504_vm2, %v6858_v26, %v14857_v49  ;;  %v14918_v13 = vsel %vm12981_vm6, %v9585_v61, %v2228_v11  ;;  %v6915_v57 = vrot.slane %v6913_v21, 4  ;;  %v12325_v34 = vld [vmem:[%s17154_s1 + $0x80] sm:$0xff]  }
 0x1b6   :  { %v6918_v22 = vrot.slane %v6916_v43, 5  ;;  %v6877_v29 = vsel %vm12504_vm2, %v6872_v39, %v14832_v38  ;;  %v6887_v49 = vsel %vm12504_vm2, %v6882_v32, %v6886_v18  ;;  %v14939_v11 = vsel %vm12981_vm6, %v2230_v5, %v2231_v9  ;;  %v10265_v38 = vld [vmem:[%s17155_s0 + $0xa8] sm:$0xf] }
 0x1b7   :  { %11138 = vmatmul.mubr.msk.bf16.gmra.mrb[32].mxu1 %vm1002_vm3, %v17199_v36  ;;  %v14941_v26 = vrot.slane %v6895_v0, 4  ;;  %v14943_v61 = vrot.slane %v6905_v17, 4  ;;  %v14945_v21 = vrot.slane %v6908_v1, 5  ;;  %v14956_v18 = vsel %vm12981_vm6, %v2237_v15, %v2238_v6  ;;  %v1973_v0 = vld [vmem:[%s17155_s0 + $0x168] sm:$0xe] }
 0x1b8   :  { %11446 = vmatmul.mubr.msk.bf16.vlgmr.msra.gmra.mrb[0].mxu0 %vm1002_vm3, %v14560_v7  ;;  %11141 = vmatprep.mubr.msk.bf16.mxu1 %vm1002_vm3, %v17200_v56  ;;  %v17201_v7 = vld [vmem:[#allocation2_spill] sm:$0xff]  ;;  %v14958_v43 = vrot.slane %v6922_v24, 5  ;;  %v6928_v39 = vrot.slane %v6926_v46, 4  ;;  %v6932_v17 = vshll.u32 %v10264_v51, 16  ;;  %v9619_v32 = vcombine.low %v14806_v31, %v14855_v8  ;;  %v10268_v15 = vld [vmem:[%s17155_s0 + $0xb4] sm:$0xf] }
 0x1b9   :  { %v17202_v36 = vshll.u32 %v17201_v7, 16  ;;  %11510 = vmatpush3.bf16.msra.mxu0 %v12325_v34  ;;  %11449 = vmatprep.mubr.msk.bf16.mxu0 %vm1002_vm3, %v14584_v52  ;;  %v14949_v52 = vsel %vm12981_vm6, %v9586_v14, %v2235_v2  ;;  %v14970_v2 = vcombine.low %v6829_v59, %v6839_v58  ;;  %v6919_v9 = vor.u32 %v6918_v22, %v6915_v57  ;;  %v10271_v57 = vld [vmem:[%s17155_s0 + $0xc0] sm:$0xf]  ;;  %v10272_v34 = vld [vmem:[%s17155_s0 + $0xc4] sm:$0xf] }
 0x1ba   :  { %11511 = vmatprep.subr.bf16.mxu0 %v12175_v53  ;;  %v14979_v1 = vcombine.low %v6853_v40, %v6863_v37  ;;  %v6937_v54 = vshrl.u32 %v10265_v38, 16  ;;  %v6940_v59 = vshll.u32 %v10265_v38, 16  ;;  %v14986_v45 = vcombine.low %v6877_v29, %v6887_v49  ;;  %v12326_v37 = vld [vmem:[%s17155_s0 + $0x16c] sm:$0xf] }
 0x1bb   :  { %v14925_v60 = vrot.slane %v17202_v36, 5  ;;  %v6901_v58 = vsel %vm12504_vm2, %v14941_v26, %v14873_v35  ;;  %v6911_v40 = vsel %vm12504_vm2, %v14943_v61, %v14945_v21  ;;  %v17203_v6 = vcombine.low %v14547_v42, %v14554_v63  ;;  %v12327_v63 = vld [vmem:[%s17155_s0 + $0x170] sm:$0x1] }
 0x1bc   :  { %v6929_v24 = vor.u32 %v6928_v39, %v14958_v43  ;;  %v15009_v46 = vrot.slane %v6932_v17, 5  ;;  %v9587_v56 = vrot.slane %v1973_v0, 9  ;;  %v2242_v51 = vrot.slane %v12326_v37, 5 }
 0x1bd   :  { %11512 = vmatpush3.bf16.msra.mxu0 %v12175_v53  ;;  %v10269_v53 = vld [vmem:[%s17155_s0 + $0xb8] sm:$0xf]  ;;  %v15023_v42 = vrot.slane %v6919_v9, 4  ;;  %v2245_v22 = vrot.slane %v12327_v63, 5  ;;  %v6946_v7 = vshll.u32 %v10266_v19, 16  ;;  %v6950_v36 = vshrl.u32 %v10266_v19, 16 }
 0x1be   :  { %v6939_v28 = vrot.slane %v6937_v54, 4  ;;  %v6964_v29 = vshll.u32 %v10268_v15, 16  ;;  %v6970_v49 = vshll.u32 %v10269_v53, 16  ;;  %v6974_v38 = vshrl.u32 %v10269_v53, 16 }
 0x1bf   :  { %11142 = vmatmul.mubr.msk.bf16.gmra.mrb[36].mxu1 %vm1002_vm3, %v17203_v6  ;;  %v6985_v39 = vshrl.u32 %v10271_v57, 16  ;;  %v6988_v17 = vshll.u32 %v10271_v57, 16  ;;  %v15038_v9 = vsel %vm12981_vm6, %v9587_v56, %v2242_v51  ;;  %v2244_v0 = vrot.slane %v2242_v51, 4 }
 0x1c0   :  { %11450 = vmatmul.mubr.msk.bf16.gmra.mrb[4].mxu0 %vm1002_vm3, %v14725_v3  ;;  %11145 = vmatprep.mubr.msk.bf16.mxu1 %vm1002_vm3, %v9615_v20  ;;  %v6942_v3 = vrot.slane %v6940_v59, 5  ;;  %v6961_v20 = vshrl.u32 %v10268_v15, 16  ;;  %v6994_v19 = vshll.u32 %v10272_v34, 16  ;;  %v6998_v6 = vshrl.u32 %v10272_v34, 16  ;;  %v1974_v59 = vld [vmem:[%s17155_s0 + $0x174] sm:$0xe] }
 0x1c1   :  { %11453 = vmatprep.mubr.msk.bf16.mxu0 %vm1002_vm3, %v14729_v62  ;;  %v15040_v62 = vrot.slane %v6929_v24, 4  ;;  %v15042_v37 = vrot.slane %v6946_v7, 5  ;;  %v6952_v63 = vrot.slane %v6950_v36, 4  ;;  %v6956_v54 = vshll.u32 %v10267_v16, 16  ;;  %v10270_v24 = vld [vmem:[%s17155_s0 + $0xbc] sm:$0x1] }
 0x1c2   :  { %v6943_v53 = vor.u32 %v6942_v3, %v6939_v28  ;;  %v6963_v56 = vrot.slane %v6961_v20, 4  ;;  %v6966_v51 = vrot.slane %v6964_v29, 5  ;;  %v15054_v57 = vrot.slane %v6970_v49, 5  ;;  %v12328_v28 = vld [vmem:[%s17155_s0 + $0x178] sm:$0xf] }
 0x1c3   :  { %v6976_v7 = vrot.slane %v6974_v38, 4  ;;  %v6987_v36 = vrot.slane %v6985_v39, 4  ;;  %v6990_v34 = vrot.slane %v6988_v17, 5  ;;  %v9588_v16 = vrot.slane %v1974_v59, 9  ;;  %v10273_v20 = vld [vmem:[%s17155_s0 + $0xc8] sm:$0x1] }
 0x1c4   :  { %v2249_v3 = vrot.slane %v12328_v28, 5  ;;  %v15066_v29 = vrot.slane %v6994_v19, 5  ;;  %v7000_v49 = vrot.slane %v6998_v6, 4  ;;  %v17204_v41 = vcombine.low %v14693_v33, %v14701_v25  ;;  %v12330_v6 = vld [vmem:[%s17155_s0 + $0x17c] sm:$0x1] }
 0x1c5   :  { %v6953_v38 = vor.u32 %v6952_v63, %v15042_v37  ;;  %v15083_v39 = vrot.slane %v6956_v54, 5  ;;  %v15090_v33 = vrot.slane %v6943_v53, 4  ;;  %v6967_v25 = vor.u32 %v6966_v51, %v6963_v56  ;;  %v12331_v28 = vld [vmem:[%s17155_s0 + $0x190] sm:$0xf] }
 0x1c6   :  { %v6980_v17 = vshll.u32 %v10270_v24, 16  ;;  %v2252_v63 = vrot.slane %v12330_v6, 5  ;;  %v6991_v54 = vor.u32 %v6990_v34, %v6987_v36  ;;  %v7004_v59 = vshll.u32 %v10273_v20, 16  ;;  %v1976_v24 = vld [vmem:[%s17155_s0 + $0x18c] sm:$0xe] }
 0x1c7   :  { %11146 = vmatmul.mubr.msk.bf16.gmra.mrb[40].mxu1 %vm1002_vm3, %v9616_v50  ;;  %v15080_v50 = vsel %vm12981_vm6, %v2244_v0, %v2245_v22  ;;  %v1975_v22 = vld [vmem:[%s17155_s0 + $0x180] sm:$0xe]  ;;  %v12329_v0 = vld [vmem:[%s17155_s0 + $0x184] sm:$0xf]  ;;  %v15104_v53 = vsel %vm12981_vm6, %v9588_v16, %v2249_v3  ;;  %v2251_v56 = vrot.slane %v2249_v3, 4  ;;  %v7001_v51 = vor.u32 %v7000_v49, %v15066_v29 }
 0x1c8   :  { %11454 = vmatmul.mubr.msk.bf16.gmra.mrb[8].mxu0 %vm1002_vm3, %v14773_v44  ;;  %11149 = vmatprep.mubr.msk.bf16.mxu1 %vm1002_vm3, %v17204_v41  ;;  %v10274_v44 = vld [vmem:[%s17155_s0 + $0xcc] sm:$0xf]  ;;  %v2256_v19 = vrot.slane %v12329_v0, 5  ;;  %v2263_v41 = vrot.slane %v12331_v28, 5  ;;  %v6954_v0 = vrot.slane %v6953_v38, 4  ;;  %v6968_v3 = vrot.slane %v6967_v25, 4 }
 0x1c9   :  { %11457 = vmatprep.mubr.msk.bf16.mxu0 %vm1002_vm3, %v14788_v4  ;;  %v6977_v4 = vor.u32 %v6976_v7, %v15054_v57  ;;  %v9589_v7 = vrot.slane %v1975_v22, 9  ;;  %v10275_v36 = vld [vmem:[%s17155_s0 + $0xd0] sm:$0xf]  ;;  %v7009_v34 = vshrl.u32 %v10274_v44, 16  ;;  %v7012_v16 = vshll.u32 %v10274_v44, 16 }
 0x1ca   :  { %v6982_v20 = vrot.slane %v6980_v17, 5  ;;  %v2258_v49 = vrot.slane %v2256_v19, 4  ;;  %v12332_v6 = vld [vmem:[%s17155_s0 + $0x188] sm:$0x1]  ;;  %v6992_v5 = vrot.slane %v6991_v54, 4  ;;  %v7006_v15 = vrot.slane %v7004_v59, 5 }
 0x1cb   :  { %v2259_v14 = vrot.slane %v12332_v6, 5  ;;  %v6978_v30 = vrot.slane %v6977_v4, 4  ;;  %v9590_v28 = vrot.slane %v1976_v24, 9  ;;  %v17205_v38 = vcombine.low %v14764_v47, %v14768_v12  ;;  %v12333_v44 = vld [vmem:[%s17155_s0 + $0x194] sm:$0x1] }
 0x1cc   :  { %v7002_v22 = vrot.slane %v7001_v51, 4  ;;  %v2265_v23 = vrot.slane %v2263_v41, 4  ;;  %v2266_v25 = vrot.slane %v12333_v44, 5  ;;  %v7018_v17 = vshll.u32 %v10275_v36, 16  ;;  %v10276_v12 = vld [vmem:[%s17155_s0 + $0xd4] sm:$0x1] }
 0x1cd   :  { %v6949_v47 = vsel %vm12504_vm2, %v15090_v33, %v15042_v37  ;;  %v7011_v4 = vrot.slane %v7009_v34, 4  ;;  %v7014_v54 = vrot.slane %v7012_v16, 5  ;;  %v7022_v59 = vshrl.u32 %v10275_v36, 16  ;;  %v10283_v34 = vld [vmem:[%s17155_s0 + $0x108] sm:$0xf] }
 0x1ce   :  { %v6959_v31 = vsel %vm12504_vm2, %v6954_v0, %v15083_v39  ;;  %v15146_v8 = vsel %vm12981_vm6, %v2251_v56, %v2252_v63  ;;  %v6983_v37 = vsel %vm12504_vm2, %v6978_v30, %v6982_v20  ;;  %v15162_v39 = vsel %vm12981_vm6, %v2258_v49, %v2259_v14  ;;  %v10286_v6 = vld [vmem:[%s17155_s0 + $0x114] sm:$0xf] }
 0x1cf   :  { %11150 = vmatmul.mubr.msk.bf16.gmra.mrb[44].mxu1 %vm1002_vm3, %v17205_v38  ;;  %v6997_v33 = vsel %vm12504_vm2, %v6992_v5, %v15066_v29  ;;  %v7007_v63 = vsel %vm12504_vm2, %v7002_v22, %v7006_v15  ;;  %v15178_v30 = vsel %vm12981_vm6, %v2265_v23, %v2266_v25  ;;  %v15180_v14 = vrot.slane %v7018_v17, 5 }
 0x1d0   :  { %11458 = vmatmul.mubr.msk.bf16.gmra.mrb[12].mxu0 %vm1002_vm3, %v14970_v2  ;;  %11153 = vmatprep.mubr.msk.bf16.mxu1 %vm1002_vm3, %v9619_v32  ;;  %v6973_v2 = vsel %vm12504_vm2, %v6968_v3, %v15054_v57  ;;  %v15153_v32 = vsel %vm12981_vm6, %v9589_v7, %v2256_v19  ;;  %v15169_v57 = vsel %vm12981_vm6, %v9590_v28, %v2263_v41  ;;  %v10278_v19 = vld [vmem:[%s17155_s0 + $0xf4] sm:$0xf]  ;;  %v7028_v56 = vshll.u32 %v10276_v12, 16 }
 0x1d1   :  { %11461 = vmatprep.mubr.msk.bf16.mxu0 %vm1002_vm3, %v14979_v1  ;;  %v10277_v1 = vld [vmem:[%s17155_s0 + $0xf0] sm:$0xf]  ;;  %v7015_v51 = vor.u32 %v7014_v54, %v7011_v4  ;;  %v7024_v5 = vrot.slane %v7022_v59, 4  ;;  %v10339_v15 = vcombine.low %v6901_v58, %v6911_v40  ;;  %v9623_v23 = vcombine.low %v15038_v9, %v15080_v50  ;;  %v10280_v58 = vld [vmem:[%s17155_s0 + $0xfc] sm:$0xf] }
 0x1d2   :  { %v7033_v29 = vshrl.u32 %v10277_v1, 16  ;;  %v7036_v24 = vshll.u32 %v10277_v1, 16  ;;  %v7042_v41 = vshll.u32 %v10278_v19, 16  ;;  %v7046_v0 = vshrl.u32 %v10278_v19, 16  ;;  %v10281_v40 = vld [vmem:[%s17155_s0 + $0x100] sm:$0xf] }
 0x1d3   :  { %v17206_v7 = vsel %vm12504_vm2, %v15040_v62, %v15009_v46  ;;  %v17207_v61 = vsel %vm12504_vm2, %v15023_v42, %v14958_v43  ;;  %v10341_v36 = vcombine.low %v6949_v47, %v6959_v31  ;;  %v9624_v35 = vcombine.low %v15104_v53, %v15146_v8  ;;  %v10279_v50 = vld [vmem:[%s17155_s0 + $0xf8] sm:$0x1]  ;;  %v10282_v19 = vld [vmem:[%s17155_s0 + $0x104] sm:$0x1] }
 0x1d4   :  { %v10340_v21 = vcombine.low %v17207_v61, %v17206_v7  ;;  %v9625_v26 = vcombine.low %v15153_v32, %v15162_v39  ;;  %v17208_v46 = vcombine.low %v14863_v48, %v14881_v55  ;;  %v15218_v43 = vcombine.low %v6973_v2, %v6983_v37  ;;  %v10284_v48 = vld [vmem:[%s17155_s0 + $0x10c] sm:$0xf]  ;;  %v10288_v61 = vld [vmem:[%s17155_s0 + $0x11c] sm:$0x1] }
 0x1d5   :  { %v15220_v42 = vcombine.low %v6997_v33, %v7007_v63  ;;  %v9626_v9 = vcombine.low %v15169_v57, %v15178_v30  ;;  %v15224_v62 = vrot.slane %v7028_v56, 5  ;;  %v17209_v55 = vcombine.low %v14918_v13, %v14939_v11  ;;  %v10287_v13 = vld [vmem:[%s17155_s0 + $0x118] sm:$0xf] }
 0x1d6   :  { %v15241_v16 = vrot.slane %v7015_v51, 4  ;;  %v7025_v3 = vor.u32 %v7024_v5, %v15180_v14  ;;  %v7035_v20 = vrot.slane %v7033_v29, 4  ;;  %v7038_v49 = vrot.slane %v7036_v24, 5  ;;  %v10285_v29 = vld [vmem:[%s17155_s0 + $0x110] sm:$0x1] }
 0x1d7   :  { %11154 = vmatmul.mubr.msk.bf16.gmra.mrb[48].mxu1 %vm1002_vm3, %v17208_v46  ;;  %v15248_v28 = vrot.slane %v7042_v41, 5  ;;  %v7057_v38 = vshrl.u32 %v10280_v58, 16  ;;  %v7060_v22 = vshll.u32 %v10280_v58, 16  ;;  %v7066_v11 = vshll.u32 %v10281_v40, 16 }
 0x1d8   :  { %11462 = vmatmul.mubr.msk.bf16.gmra.mrb[16].mxu0 %vm1002_vm3, %v14986_v45  ;;  %11157 = vmatprep.mubr.msk.bf16.mxu1 %vm1002_vm3, %v17209_v55  ;;  %v7048_v45 = vrot.slane %v7046_v0, 4  ;;  %v7070_v44 = vshrl.u32 %v10281_v40, 16  ;;  %v7081_v25 = vshrl.u32 %v10283_v34, 16  ;;  %v7084_v17 = vshll.u32 %v10283_v34, 16  ;;  %v10289_v34 = vld [vmem:[%s17155_s0 + $0x120] sm:$0xf] }
 0x1d9   :  { %11465 = vmatprep.mubr.msk.bf16.mxu0 %vm1002_vm3, %v10339_v15  ;;  %v7090_v47 = vshll.u32 %v10284_v48, 16  ;;  %v7094_v12 = vshrl.u32 %v10284_v48, 16  ;;  %v7105_v4 = vshrl.u32 %v10286_v6, 16  ;;  %v7108_v54 = vshll.u32 %v10286_v6, 16 }
 0x1da   :  { %v7026_v59 = vrot.slane %v7025_v3, 4  ;;  %v7052_v31 = vshll.u32 %v10279_v50, 16  ;;  %v7114_v2 = vshll.u32 %v10287_v13, 16  ;;  %v7118_v1 = vshrl.u32 %v10287_v13, 16 }
 0x1db   :  { %v7039_v37 = vor.u32 %v7038_v49, %v7035_v20  ;;  %v7049_v33 = vor.u32 %v7048_v45, %v15248_v28  ;;  %v7059_v63 = vrot.slane %v7057_v38, 4  ;;  %v7062_v56 = vrot.slane %v7060_v22, 5 }
 0x1dc   :  { %v15257_v51 = vrot.slane %v7066_v11, 5  ;;  %v7072_v5 = vrot.slane %v7070_v44, 4  ;;  %v7083_v24 = vrot.slane %v7081_v25, 4  ;;  %v7086_v15 = vrot.slane %v7084_v17, 5 }
 0x1dd   :  { %v17210_v41 = vcombine.low %v14949_v52, %v14956_v18  ;;  %v15266_v0 = vrot.slane %v7090_v47, 5  ;;  %v7096_v7 = vrot.slane %v7094_v12, 4  ;;  %v7107_v58 = vrot.slane %v7105_v4, 4  ;;  %v10292_v12 = vld [vmem:[%s17155_s0 + $0x12c] sm:$0xf] }
 0x1de   :  { %v7110_v40 = vrot.slane %v7108_v54, 5  ;;  %v7021_v52 = vsel %vm12504_vm2, %v15241_v16, %v15180_v14  ;;  %v7054_v18 = vrot.slane %v7052_v31, 5  ;;  %v15277_v46 = vrot.slane %v7114_v2, 5  ;;  %v10290_v14 = vld [vmem:[%s17155_s0 + $0x124] sm:$0xf] }
 0x1df   :  { %11158 = vmatmul.mubr.msk.bf16.gmra.mrb[52].mxu1 %vm1002_vm3, %v17210_v41  ;;  %v7120_v50 = vrot.slane %v7118_v1, 4  ;;  %v7050_v48 = vrot.slane %v7049_v33, 4  ;;  %v7076_v55 = vshll.u32 %v10282_v19, 16  ;;  %v7063_v16 = vor.u32 %v7062_v56, %v7059_v63  ;;  %v10293_v2 = vld [vmem:[%s17155_s0 + $0x130] sm:$0xf] }
 0x1e0   :  { %11466 = vmatmul.mubr.msk.bf16.gmra.mrb[20].mxu0 %vm1002_vm3, %v10340_v21  ;;  %11161 = vmatprep.mubr.msk.bf16.mxu1 %vm1002_vm3, %v9623_v23  ;;  %v7031_v21 = vsel %vm12504_vm2, %v7026_v59, %v15224_v62  ;;  %v7040_v23 = vrot.slane %v7039_v37, 4  ;;  %v7073_v3 = vor.u32 %v7072_v5, %v15257_v51  ;;  %v7087_v20 = vor.u32 %v7086_v15, %v7083_v24  ;;  %v10295_v19 = vld [vmem:[%s17155_s0 + $0x138] sm:$0xf]  ;;  %v10291_v56 = vld [vmem:[%s17155_s0 + $0x128] sm:$0x1] }
 0x1e1   :  { %11469 = vmatprep.mubr.msk.bf16.mxu0 %vm1002_vm3, %v10341_v36  ;;  %v7100_v49 = vshll.u32 %v10285_v29, 16  ;;  %v7097_v6 = vor.u32 %v7096_v7, %v15266_v0  ;;  %v7111_v45 = vor.u32 %v7110_v40, %v7107_v58  ;;  %v7124_v36 = vshll.u32 %v10288_v61, 16  ;;  %v12174_v58 = vld [vmem:[%s17155_s0 + $0xc] sm:$0xff]  }
 0x1e2   :  { %v7129_v38 = vshrl.u32 %v10289_v34, 16  ;;  %v7121_v22 = vor.u32 %v7120_v50, %v15277_v46  ;;  %v7132_v62 = vshll.u32 %v10289_v34, 16  ;;  %v7138_v13 = vshll.u32 %v10290_v14, 16  ;;  %v10294_v50 = vld [vmem:[%s17155_s0 + $0x134] sm:$0x1] }
 0x1e3   :  { %v7142_v11 = vshrl.u32 %v10290_v14, 16  ;;  %v10344_v44 = vcombine.low %v7021_v52, %v7031_v21  ;;  %v7045_v25 = vsel %vm12504_vm2, %v7040_v23, %v15248_v28  ;;  %v7055_v17 = vsel %vm12504_vm2, %v7050_v48, %v7054_v18  ;;  %v17211_v48 = vld [vmem:[#allocation6_spill] sm:$0xff] }
 0x1e4   :  { %v7078_v47 = vrot.slane %v7076_v55, 5  ;;  %v7064_v4 = vrot.slane %v7063_v16, 4  ;;  %v7074_v54 = vrot.slane %v7073_v3, 4  ;;  %v7088_v59 = vrot.slane %v7087_v20, 4  ;;  %v17212_v55 = vld [vmem:[#allocation5_spill] sm:$0xff] }
 0x1e5   :  { %v7102_v31 = vrot.slane %v7100_v49, 5  ;;  %v7098_v28 = vrot.slane %v7097_v6, 4  ;;  %v7112_v1 = vrot.slane %v7111_v45, 4  ;;  %v7126_v37 = vrot.slane %v7124_v36, 5  ;;  %v9846_v6 = vld [vmem:[%s17155_s0 + $0xf0] sm:$0xf] }
 0x1e6   :  { %v7131_v33 = vrot.slane %v7129_v38, 4  ;;  %v7122_v63 = vrot.slane %v7121_v22, 4  ;;  %v7134_v53 = vrot.slane %v7132_v62, 5  ;;  %v15316_v8 = vrot.slane %v7138_v13, 5  ;;  %v10298_v62 = vld [vmem:[%s17155_s0 + $0x144] sm:$0xf] }
 0x1e7   :  { %11162 = vmatmul.mubr.msk.bf16.gmra.mrb[56].mxu1 %vm1002_vm3, %v9624_v35  ;;  %v7144_v35 = vrot.slane %v7142_v11, 4  ;;  %v7153_v5 = vshrl.u32 %v10292_v12, 16  ;;  %v7156_v29 = vshll.u32 %v10292_v12, 16  ;;  %v7166_v24 = vshrl.u32 %v10293_v2, 16  ;;  %v12176_v12 = vld [vmem:[%s17155_s0 + $0x18] sm:$0xff]  }
 0x1e8   :  { %11470 = vmatmul.mubr.msk.bf16.gmra.mrb[24].mxu0 %vm1002_vm3, %v15218_v43  ;;  %11165 = vmatprep.mubr.msk.bf16.mxu1 %vm1002_vm3, %v9625_v26  ;;  %v7162_v43 = vshll.u32 %v10293_v2, 16  ;;  %v10345_v15 = vcombine.low %v7045_v25, %v7055_v17  ;;  %v7069_v32 = vsel %vm12504_vm2, %v7064_v4, %v15257_v51  ;;  %v7177_v39 = vshrl.u32 %v10295_v19, 16  ;;  %v10296_v51 = vld [vmem:[%s17155_s0 + $0x13c] sm:$0xf]  ;;  %v10299_v17 = vld [vmem:[%s17155_s0 + $0x148] sm:$0xf] }
 0x1e9   :  { %11473 = vmatprep.mubr.msk.bf16.mxu0 %vm1002_vm3, %v15220_v42  ;;  %v7180_v26 = vshll.u32 %v10295_v19, 16  ;;  %v7079_v41 = vsel %vm12504_vm2, %v7074_v54, %v7078_v47  ;;  %v7093_v42 = vsel %vm12504_vm2, %v7088_v59, %v15266_v0  ;;  %v7103_v7 = vsel %vm12504_vm2, %v7098_v28, %v7102_v31  ;;  %v10301_v31 = vld [vmem:[%s17155_s0 + $0x150] sm:$0xf]  ;;  %v10297_v28 = vld [vmem:[%s17155_s0 + $0x140] sm:$0x1] }
 0x1ea   :  { %v7117_v61 = vsel %vm12504_vm2, %v7112_v1, %v15277_v46  ;;  %v7127_v40 = vsel %vm12504_vm2, %v7122_v63, %v7126_v37  ;;  %v7135_v52 = vor.u32 %v7134_v53, %v7131_v33  ;;  %v7145_v0 = vor.u32 %v7144_v35, %v15316_v8 }
 0x1eb   :  { %v7148_v18 = vshll.u32 %v10291_v56, 16  ;;  %v7155_v46 = vrot.slane %v7153_v5, 4  ;;  %v7158_v34 = vrot.slane %v7156_v29, 5  ;;  %v15348_v21 = vrot.slane %v7162_v43, 5  ;;  %v12177_v56 = vld [vmem:[%s17155_s0 + $0x24] sm:$0xff]  }
 0x1ec   :  { %v7168_v23 = vrot.slane %v7166_v24, 4  ;;  %v17213_v14 = vor.u32 %v17211_v48, %v17212_v55  ;;  %v7179_v3 = vrot.slane %v7177_v39, 4  ;;  %v7182_v20 = vrot.slane %v7180_v26, 5  ;;  %v10302_v29 = vld [vmem:[%s17155_s0 + $0x154] sm:$0xf] }
 0x1ed   :  { %v7186_v49 = vshll.u32 %v10296_v51, 16  ;;  %v10346_v45 = vcombine.low %v7069_v32, %v7079_v41  ;;  %v10347_v36 = vcombine.low %v7093_v42, %v7103_v7  ;;  %v15362_v38 = vcombine.low %v7117_v61, %v7127_v40  ;;  %v10304_v41 = vld [vmem:[%s17155_s0 + $0x15c] sm:$0xf]  ;;  %v12334_v40 = vld [vmem:[%s17154_s1 + $0x40] sm:$0xff]  }
 0x1ee   :  { %v15353_v16 = vrot.slane %v17213_v14, 4  ;;  %v7190_v22 = vshrl.u32 %v10296_v51, 16  ;;  %v15369_v13 = vrot.slane %v7135_v52, 4  ;;  %v15371_v11 = vrot.slane %v7145_v0, 4  ;;  %v10305_v51 = vld [vmem:[%s17155_s0 + $0x160] sm:$0xf] }
 0x1ef   :  { %11166 = vmatmul.mubr.msk.bf16.gmra.mrb[60].mxu1 %vm1002_vm3, %v9626_v9  ;;  %v15373_v57 = vrot.slane %v7148_v18, 5  ;;  %v7172_v30 = vshll.u32 %v10294_v50, 16  ;;  %v7159_v9 = vor.u32 %v7158_v34, %v7155_v46  ;;  %v7169_v25 = vor.u32 %v7168_v23, %v15348_v21  ;;  %v10300_v52 = vld [vmem:[%s17155_s0 + $0x14c] sm:$0x1] }
 0x1f0   :  { %11474 = vmatmul.mubr.msk.bf16.gmra.mrb[28].mxu0 %vm1002_vm3, %v10344_v44  ;;  %11173 = vmatprep.mubr.msk.bf16.mxu1 %vm1002_vm3, %v12174_v58  ;;  %v4026_v47 = vshrl.u32 %v9846_v6, 16  ;;  %v4029_v44 = vshll.u32 %v9846_v6, 16  ;;  %v7183_v4 = vor.u32 %v7182_v20, %v7179_v3  ;;  %v15383_v54 = vrot.slane %v7186_v49, 5  ;;  %v12335_v49 = vld [vmem:[%s17154_s1 + $0x48] sm:$0xff]  }
 0x1f1   :  { %11477 = vmatprep.mubr.msk.bf16.mxu0 %vm1002_vm3, %v10345_v15  ;;  %v7201_v59 = vshrl.u32 %v10298_v62, 16  ;;  %v4048_v2 = vsel %vm12504_vm2, %v15353_v16, %v14925_v60  ;;  %v7192_v1 = vrot.slane %v7190_v22, 4  ;;  %v7204_v37 = vshll.u32 %v10298_v62, 16 }
 0x1f2   :  { %v4028_v33 = vrot.slane %v4026_v47, 4  ;;  %v4031_v19 = vrot.slane %v4029_v44, 5  ;;  %v7141_v63 = vsel %vm12504_vm2, %v15369_v13, %v15316_v8  ;;  %v7151_v53 = vsel %vm12504_vm2, %v15371_v11, %v15373_v57 }
 0x1f3   :  { %v7210_v35 = vshll.u32 %v10299_v17, 16  ;;  %v7214_v60 = vshrl.u32 %v10299_v17, 16  ;;  %v15406_v5 = vrot.slane %v7172_v30, 5  ;;  %v7225_v43 = vshrl.u32 %v10301_v31, 16  ;;  %v10303_v30 = vld [vmem:[%s17155_s0 + $0x158] sm:$0x1] }
 0x1f4   :  { %v7228_v24 = vshll.u32 %v10301_v31, 16  ;;  %v4032_v8 = vor.u32 %v4031_v19, %v4028_v33  ;;  %v15411_v15 = vrot.slane %v7159_v9, 4  ;;  %v15413_v32 = vrot.slane %v7169_v25, 4  ;;  %v10306_v19 = vld [vmem:[%s17155_s0 + $0x164] sm:$0x1] }
 0x1f5   :  { %v15415_v39 = vrot.slane %v7183_v4, 4  ;;  %v7196_v26 = vshll.u32 %v10297_v28, 16  ;;  %v7193_v42 = vor.u32 %v7192_v1, %v15383_v54  ;;  %v7203_v7 = vrot.slane %v7201_v59, 4  ;;  %v10307_v4 = vld [vmem:[%s17155_s0 + $0x168] sm:$0xf] }
 0x1f6   :  { %v7206_v61 = vrot.slane %v7204_v37, 5  ;;  %v4033_v58 = vrot.slane %v4032_v8, 4  ;;  %v15432_v0 = vrot.slane %v7210_v35, 5  ;;  %v7216_v18 = vrot.slane %v7214_v60, 4  ;;  %v10308_v28 = vld [vmem:[%s17155_s0 + $0x16c] sm:$0xf] }
 0x1f7   :  { %11174 = vmatmul.mubr.msk.bf16.vlgmr.msra.gmra.mrb[0].mxu1 %vm1002_vm3, %v12176_v12  ;;  %v7234_v50 = vshll.u32 %v10302_v29, 16  ;;  %v7238_v46 = vshrl.u32 %v10302_v29, 16  ;;  %v7227_v34 = vrot.slane %v7225_v43, 4  ;;  %v7230_v23 = vrot.slane %v7228_v24, 5 }
 0x1f8   :  { %11579 = vmatpush3.bf16.msra.mxu1 %v12334_v40  ;;  %11478 = vmatmul.mubr.msk.bf16.gmra.mrb[32].mxu0 %vm1002_vm3, %v10346_v45  ;;  %v7249_v48 = vshrl.u32 %v10304_v41, 16  ;;  %v4038_v14 = vsel %vm12504_vm2, %v4033_v58, %v17212_v55  ;;  %v7252_v16 = vshll.u32 %v10304_v41, 16  ;;  %v7258_v3 = vshll.u32 %v10305_v51, 16  ;;  %v12178_v45 = vld [vmem:[%s17155_s0 + $0x30] sm:$0xff]   ;;  %v12179_v55 = vld [vmem:[%s17155_s0 + $0x3c] sm:$0xff]  }
 0x1f9   :  { %11177 = vmatprep.mubr.msk.bf16.mxu1 %vm1002_vm3, %v12177_v56  ;;  %11481 = vmatprep.mubr.msk.bf16.mxu0 %vm1002_vm3, %v10347_v36  ;;  %v7262_v20 = vshrl.u32 %v10305_v51, 16  ;;  %v15442_v6 = vcombine.low %v4038_v14, %v4048_v2  ;;  %v7194_v36 = vrot.slane %v7193_v42, 4  ;;  %v7198_v22 = vrot.slane %v7196_v26, 5  ;;  %v10309_v42 = vld [vmem:[%s17155_s0 + $0x170] sm:$0x1] }
 0x1fa   :  { %11578 = vmatprep.subr.bf16.mxu1 %v12335_v49  ;;  %v7207_v62 = vor.u32 %v7206_v61, %v7203_v7  ;;  %v7220_v13 = vshll.u32 %v10300_v52, 16  ;;  %v10349_v11 = vcombine.low %v7141_v63, %v7151_v53  ;;  %v7217_v57 = vor.u32 %v7216_v18, %v15432_v0  ;;  %v10311_v7 = vld [vmem:[%s17155_s0 + $0x178] sm:$0xf] }
 0x1fb   :  { %v15454_v9 = vrot.slane %v7234_v50, 5  ;;  %v7240_v25 = vrot.slane %v7238_v46, 4  ;;  %v7165_v17 = vsel %vm12504_vm2, %v15411_v15, %v15348_v21  ;;  %v7175_v47 = vsel %vm12504_vm2, %v15413_v32, %v15406_v5  ;;  %v12180_v15 = vld [vmem:[%s17155_s0 + $0x48] sm:$0xff]   ;;  %v12181_v61 = vld [vmem:[%s17155_s0 + $0x54] sm:$0xff]  }
 0x1fc   :  { %11580 = vmatpush3.bf16.msra.mxu1 %v12335_v49  ;;  %v7189_v44 = vsel %vm12504_vm2, %v15415_v39, %v15383_v54  ;;  %v7231_v12 = vor.u32 %v7230_v23, %v7227_v34  ;;  %v7251_v59 = vrot.slane %v7249_v48, 4  ;;  %v7254_v31 = vrot.slane %v7252_v16, 5  ;;  %v10314_v23 = vld [vmem:[%s17155_s0 + $0x184] sm:$0xf] }
 0x1fd   :  { %v15471_v2 = vrot.slane %v7258_v3, 5  ;;  %v7264_v21 = vrot.slane %v7262_v20, 4  ;;  %v7199_v1 = vsel %vm12504_vm2, %v7194_v36, %v7198_v22  ;;  %v7208_v54 = vrot.slane %v7207_v62, 4 }
 0x1fe   :  { %v7222_v37 = vrot.slane %v7220_v13, 5  ;;  %v7244_v33 = vshll.u32 %v10303_v30, 16  ;;  %v7218_v63 = vrot.slane %v7217_v57, 4  ;;  %v7241_v53 = vor.u32 %v7240_v25, %v15454_v9  ;;  %v12182_v25 = vld [vmem:[%s17155_s0 + $0x60] sm:$0xff]  }
 0x1ff   :  { %11178 = vmatmul.mubr.msk.bf16.gmra.mrb[4].mxu1 %vm1002_vm3, %v12178_v45  ;;  %v7273_v35 = vshrl.u32 %v10307_v4, 16  ;;  %v7276_v60 = vshll.u32 %v10307_v4, 16  ;;  %v7282_v56 = vshll.u32 %v10308_v28, 16  ;;  %v7286_v5 = vshrl.u32 %v10308_v28, 16  ;;  %v10316_v28 = vld [vmem:[%s17155_s0 + $0x18c] sm:$0xf] }
 0x200   :  { %11482 = vmatmul.mubr.msk.bf16.gmra.mrb[36].mxu0 %vm1002_vm3, %v15362_v38  ;;  %11181 = vmatprep.mubr.msk.bf16.mxu1 %vm1002_vm3, %v12179_v55  ;;  %v7232_v29 = vrot.slane %v7231_v12, 4  ;;  %v7255_v43 = vor.u32 %v7254_v31, %v7251_v59  ;;  %v7265_v24 = vor.u32 %v7264_v21, %v15471_v2  ;;  %v7268_v8 = vshll.u32 %v10306_v19, 16  ;;  %v10310_v38 = vld [vmem:[%s17155_s0 + $0x174] sm:$0xf]  ;;  %v10312_v12 = vld [vmem:[%s17155_s0 + $0x17c] sm:$0x1] }
 0x201   :  { %11485 = vmatprep.mubr.msk.bf16.mxu0 %vm1002_vm3, %v10349_v11  ;;  %v10350_v32 = vcombine.low %v7165_v17, %v7175_v47  ;;  %v10351_v39 = vcombine.low %v7189_v44, %v7199_v1  ;;  %v7213_v26 = vsel %vm12504_vm2, %v7208_v54, %v15432_v0  ;;  %v7246_v41 = vrot.slane %v7244_v33, 5  ;;  %v10313_v0 = vld [vmem:[%s17155_s0 + $0x180] sm:$0xf] }
 0x202   :  { %v7223_v51 = vsel %vm12504_vm2, %v7218_v63, %v7222_v37  ;;  %v7242_v58 = vrot.slane %v7241_v53, 4  ;;  %v7275_v40 = vrot.slane %v7273_v35, 4  ;;  %v7278_v52 = vrot.slane %v7276_v60, 5  ;;  %v10315_v37 = vld [vmem:[%s17155_s0 + $0x188] sm:$0x1] }
 0x203   :  { %v15511_v18 = vrot.slane %v7282_v56, 5  ;;  %v7288_v50 = vrot.slane %v7286_v5, 4  ;;  %v7297_v46 = vshrl.u32 %v10310_v38, 16  ;;  %v7300_v34 = vshll.u32 %v10310_v38, 16  ;;  %v10317_v56 = vld [vmem:[%s17155_s0 + $0x190] sm:$0xf] }
 0x204   :  { %v7237_v48 = vsel %vm12504_vm2, %v7232_v29, %v15454_v9  ;;  %v7256_v14 = vrot.slane %v7255_v43, 4  ;;  %v7266_v16 = vrot.slane %v7265_v24, 4  ;;  %v7270_v3 = vrot.slane %v7268_v8, 5  ;;  %v10319_v38 = vld [vmem:[%s17155_s0 + $0x198] sm:$0xf] }
 0x205   :  { %v7306_v20 = vshll.u32 %v10311_v7, 16  ;;  %v7310_v49 = vshrl.u32 %v10311_v7, 16  ;;  %v7321_v45 = vshrl.u32 %v10313_v0, 16  ;;  %v7324_v36 = vshll.u32 %v10313_v0, 16 }
 0x206   :  { %v7247_v22 = vsel %vm12504_vm2, %v7242_v58, %v7246_v41  ;;  %v7292_v62 = vshll.u32 %v10309_v42, 16  ;;  %v7330_v13 = vshll.u32 %v10314_v23, 16  ;;  %v7334_v55 = vshrl.u32 %v10314_v23, 16 }
 0x207   :  { %11182 = vmatmul.mubr.msk.bf16.gmra.mrb[8].mxu1 %vm1002_vm3, %v12180_v15  ;;  %v7279_v11 = vor.u32 %v7278_v52, %v7275_v40  ;;  %v7289_v57 = vor.u32 %v7288_v50, %v15511_v18  ;;  %v7299_v30 = vrot.slane %v7297_v46, 4  ;;  %v7302_v9 = vrot.slane %v7300_v34, 5  ;;  %v10320_v15 = vld [vmem:[%s17155_s0 + $0x19c] sm:$0xf] }
 0x208   :  { %11486 = vmatmul.mubr.msk.bf16.gmra.mrb[40].mxu0 %vm1002_vm3, %v10350_v32  ;;  %11185 = vmatprep.mubr.msk.bf16.mxu1 %vm1002_vm3, %v12181_v61  ;;  %v10352_v17 = vcombine.low %v7213_v26, %v7223_v51  ;;  %v7261_v47 = vsel %vm12504_vm2, %v7256_v14, %v15471_v2  ;;  %v7271_v44 = vsel %vm12504_vm2, %v7266_v16, %v7270_v3  ;;  %v15537_v4 = vrot.slane %v7306_v20, 5  ;;  %v12183_v2 = vld [vmem:[%s17155_s0 + $0x6c] sm:$0xff]   ;;  %v12184_v50 = vld [vmem:[%s17155_s0 + $0x78] sm:$0xff]  }
 0x209   :  { %11489 = vmatprep.mubr.msk.bf16.mxu0 %vm1002_vm3, %v10351_v39  ;;  %v7312_v59 = vrot.slane %v7310_v49, 4  ;;  %v7323_v31 = vrot.slane %v7321_v45, 4  ;;  %v7326_v21 = vrot.slane %v7324_v36, 5  ;;  %v10353_v1 = vcombine.low %v7237_v48, %v7247_v22  ;;  %v10318_v45 = vld [vmem:[%s17155_s0 + $0x194] sm:$0x1] }
 0x20a   :  { %v7294_v54 = vrot.slane %v7292_v62, 5  ;;  %v15548_v33 = vrot.slane %v7330_v13, 5  ;;  %v7336_v19 = vrot.slane %v7334_v55, 4  ;;  %v7280_v63 = vrot.slane %v7279_v11, 4  ;;  %v10322_v36 = vld [vmem:[%s17155_s0 + $0x1a4] sm:$0xf] }
 0x20b   :  { %v7290_v53 = vrot.slane %v7289_v57, 4  ;;  %v7303_v35 = vor.u32 %v7302_v9, %v7299_v30  ;;  %v7316_v60 = vshll.u32 %v10312_v12, 16  ;;  %v10354_v5 = vcombine.low %v7261_v47, %v7271_v44  ;;  %v10323_v11 = vld [vmem:[%s17155_s0 + $0x1a8] sm:$0xf] }
 0x20c   :  { %v7313_v29 = vor.u32 %v7312_v59, %v15537_v4  ;;  %v7327_v43 = vor.u32 %v7326_v21, %v7323_v31  ;;  %v7340_v24 = vshll.u32 %v10315_v37, 16  ;;  %v7345_v8 = vshrl.u32 %v10316_v28, 16 }
 0x20d   :  { %v7337_v32 = vor.u32 %v7336_v19, %v15548_v33  ;;  %v7348_v39 = vshll.u32 %v10316_v28, 16  ;;  %v7354_v26 = vshll.u32 %v10317_v56, 16  ;;  %v7358_v41 = vshrl.u32 %v10317_v56, 16 }
 0x20e   :  { %v7285_v42 = vsel %vm12504_vm2, %v7280_v63, %v15511_v18  ;;  %v7295_v7 = vsel %vm12504_vm2, %v7290_v53, %v7294_v54  ;;  %v7304_v61 = vrot.slane %v7303_v35, 4  ;;  %v7318_v51 = vrot.slane %v7316_v60, 5  ;;  %v12185_v18 = vld [vmem:[%s17155_s0 + $0x84] sm:$0xff]   ;;  %v12186_v54 = vld [vmem:[%s17155_s0 + $0x90] sm:$0xff]  }
 0x20f   :  { %11186 = vmatmul.mubr.msk.bf16.gmra.mrb[12].mxu1 %vm1002_vm3, %v12182_v25  ;;  %v7369_v58 = vshrl.u32 %v10319_v38, 16  ;;  %v7372_v40 = vshll.u32 %v10319_v38, 16  ;;  %v7378_v52 = vshll.u32 %v10320_v15, 16  ;;  %v7382_v0 = vshrl.u32 %v10320_v15, 16  ;;  %v10321_v25 = vld [vmem:[%s17155_s0 + $0x1a0] sm:$0x1] }
 0x210   :  { %11490 = vmatmul.mubr.msk.bf16.gmra.mrb[44].mxu0 %vm1002_vm3, %v10352_v17  ;;  %11189 = vmatprep.mubr.msk.bf16.mxu1 %vm1002_vm3, %v12183_v2  ;;  %v7314_v46 = vrot.slane %v7313_v29, 4  ;;  %v7328_v34 = vrot.slane %v7327_v43, 4  ;;  %v7342_v23 = vrot.slane %v7340_v24, 5  ;;  %v7347_v48 = vrot.slane %v7345_v8, 4  ;;  %v10324_v38 = vld [vmem:[%s17155_s0 + $0x1ac] sm:$0x1] }
 0x211   :  { %11493 = vmatprep.mubr.msk.bf16.mxu0 %vm1002_vm3, %v10353_v1  ;;  %v7338_v14 = vrot.slane %v7337_v32, 4  ;;  %v7350_v16 = vrot.slane %v7348_v39, 5  ;;  %v7356_v3 = vrot.slane %v7354_v26, 5  ;;  %v7360_v20 = vrot.slane %v7358_v41, 4 }
 0x212   :  { %v10355_v49 = vcombine.low %v7285_v42, %v7295_v7  ;;  %v7371_v22 = vrot.slane %v7369_v58, 4  ;;  %v7374_v62 = vrot.slane %v7372_v40, 5  ;;  %v7380_v13 = vrot.slane %v7378_v52, 5  ;;  %v12188_v58 = vld [vmem:[%s17155_s0 + $0xa8] sm:$0xff]   ;;  %v10395_v40 = vld [vmem:[%s17155_s0 + $0x18] sm:$0xe] }
 0x213   :  { %v7384_v55 = vrot.slane %v7382_v0, 4  ;;  %v7309_v57 = vsel %vm12504_vm2, %v7304_v61, %v15537_v4  ;;  %v7319_v30 = vsel %vm12504_vm2, %v7314_v46, %v7318_v51  ;;  %v7333_v9 = vsel %vm12504_vm2, %v7328_v34, %v15548_v33  ;;  %v12187_v33 = vld [vmem:[%s17155_s0 + $0x9c] sm:$0xff]   ;;  %v12189_v0 = vld [vmem:[%s17155_s0 + $0xb4] sm:$0xff]  }
 0x214   :  { %v7343_v17 = vsel %vm12504_vm2, %v7338_v14, %v7342_v23  ;;  %v7351_v47 = vor.u32 %v7350_v16, %v7347_v48  ;;  %v7361_v44 = vor.u32 %v7360_v20, %v7356_v3  ;;  %v7364_v12 = vshll.u32 %v10318_v45, 16  ;;  %v12336_v61 = vld [vmem:[%s17155_s0 + $0x1c] sm:$0xf]  ;;  %v12337_v14 = vld [vmem:[%s17155_s0 + $0x20] sm:$0x1] }
 0x215   :  { %v7393_v4 = vshrl.u32 %v10322_v36, 16  ;;  %v7396_v59 = vshll.u32 %v10322_v36, 16  ;;  %v7402_v31 = vshll.u32 %v10323_v11, 16  ;;  %v7406_v21 = vshrl.u32 %v10323_v11, 16  ;;  %v10396_v36 = vld [vmem:[%s17155_s0 + $0x24] sm:$0xe] }
 0x216   :  { %v7375_v28 = vor.u32 %v7374_v62, %v7371_v22  ;;  %v7385_v2 = vor.u32 %v7384_v55, %v7380_v13  ;;  %v7388_v1 = vshll.u32 %v10321_v25, 16  ;;  %v10356_v37 = vcombine.low %v7309_v57, %v7319_v30  ;;  %v12190_v11 = vld [vmem:[%s17155_s0 + $0xc0] sm:$0xff]   ;;  %v10397_v57 = vld [vmem:[%s17155_s0 + $0x30] sm:$0xe] }
 0x217   :  { %11190 = vmatmul.mubr.msk.bf16.gmra.mrb[16].mxu1 %vm1002_vm3, %v12184_v50  ;;  %v10357_v19 = vcombine.low %v7333_v9, %v7343_v17  ;;  %v7352_v63 = vrot.slane %v7351_v47, 4  ;;  %v7362_v53 = vrot.slane %v7361_v44, 4  ;;  %v7366_v35 = vrot.slane %v7364_v12, 5  ;;  %v12191_v9 = vld [vmem:[%s17155_s0 + $0xe4] sm:$0xff]   ;;  %v12340_v47 = vld [vmem:[%s17155_s0 + $0x2c] sm:$0x1] }
 0x218   :  { %11494 = vmatmul.mubr.msk.bf16.gmra.mrb[48].mxu0 %vm1002_vm3, %v10354_v5  ;;  %11193 = vmatprep.mubr.msk.bf16.mxu1 %vm1002_vm3, %v12185_v18  ;;  %v7395_v60 = vrot.slane %v7393_v4, 4  ;;  %v7398_v56 = vrot.slane %v7396_v59, 5  ;;  %v7404_v5 = vrot.slane %v7402_v31, 5  ;;  %v7408_v29 = vrot.slane %v7406_v21, 4  ;;  %v12341_v31 = vld [vmem:[%s17155_s0 + $0x38] sm:$0x1] }
 0x219   :  { %11497 = vmatprep.mubr.msk.bf16.mxu0 %vm1002_vm3, %v10355_v49  ;;  %v7376_v43 = vrot.slane %v7375_v28, 4  ;;  %v7386_v24 = vrot.slane %v7385_v2, 4  ;;  %v7390_v8 = vrot.slane %v7388_v1, 5  ;;  %v7357_v15 = vsel %vm12504_vm2, %v7352_v63, %v7356_v3  ;;  %v12338_v3 = vld [vmem:[%s17155_s0 + $0x28] sm:$0xf] }
 0x21a   :  { %v7367_v32 = vsel %vm12504_vm2, %v7362_v53, %v7366_v35  ;;  %v7399_v39 = vor.u32 %v7398_v56, %v7395_v60  ;;  %v7409_v26 = vor.u32 %v7408_v29, %v7404_v5  ;;  %v7412_v41 = vshll.u32 %v10324_v38, 16  ;;  %v10398_v28 = vld [vmem:[%s17155_s0 + $0x3c] sm:$0xe]  ;;  %v12342_v2 = vld [vmem:[%s17155_s0 + $0x40] sm:$0xf] }
 0x21b   :  { %v7381_v42 = vsel %vm12504_vm2, %v7376_v43, %v7380_v13  ;;  %v7391_v7 = vsel %vm12504_vm2, %v7386_v24, %v7390_v8  ;;  %v8108_v51 = vrot.slane %v12336_v61, 5  ;;  %v10358_v52 = vcombine.low %v7357_v15, %v7367_v32  ;;  %v12339_v13 = vld [vmem:[%s17155_s0 + $0x34] sm:$0xf]  ;;  %v12344_v35 = vld [vmem:[%s17155_s0 + $0x58] sm:$0xf]  ;;  %v12193_v15 = vld [vmem:[%s17155_s0 + $0xfc] sm:$0xff]  }
 0x21c   :  { %v10359_v50 = vcombine.low %v7381_v42, %v7391_v7  ;;  %v7400_v46 = vrot.slane %v7399_v39, 4  ;;  %v7410_v34 = vrot.slane %v7409_v26, 4  ;;  %v7414_v23 = vrot.slane %v7412_v41, 5  ;;  %v10400_v53 = vld [vmem:[%s17155_s0 + $0x54] sm:$0xe] }
 0x21d   :  { %v10427_v48 = vrot.slane %v10395_v40, 9  ;;  %v8110_v18 = vrot.slane %v8108_v51, 4  ;;  %v8111_v16 = vrot.slane %v12337_v14, 5  ;;  %v8115_v20 = vrot.slane %v12338_v3, 5  ;;  %v12345_v43 = vld [vmem:[%s17155_s0 + $0x44] sm:$0x1] }
 0x21e   :  { %v7405_v49 = vsel %vm12504_vm2, %v7400_v46, %v7404_v5  ;;  %v7415_v45 = vsel %vm12504_vm2, %v7410_v34, %v7414_v23  ;;  %v8122_v55 = vrot.slane %v12339_v13, 5  ;;  %v10428_v25 = vrot.slane %v10396_v36, 9  ;;  %v12192_v8 = vld [vmem:[%s17155_s0 + $0xf0] sm:$0xff]   ;;  %v10401_v40 = vld [vmem:[%s17155_s0 + $0x60] sm:$0xe] }
 0x21f   :  { %11194 = vmatmul.mubr.msk.bf16.gmra.mrb[20].mxu1 %vm1002_vm3, %v12186_v54  ;;  %v8109_v22 = vsel %vm12981_vm6, %v10427_v48, %v8108_v51  ;;  %v8112_v62 = vsel %vm12981_vm6, %v8110_v18, %v8111_v16  ;;  %v10360_v30 = vcombine.low %v7405_v49, %v7415_v45  ;;  %v8117_v17 = vrot.slane %v8115_v20, 4  ;;  %v12346_v42 = vld [vmem:[%s17155_s0 + $0x50] sm:$0x1]  ;;  %v12347_v51 = vld [vmem:[%s17155_s0 + $0x5c] sm:$0x1] }
 0x220   :  { %11498 = vmatmul.mubr.msk.bf16.gmra.mrb[52].mxu0 %vm1002_vm3, %v10356_v37  ;;  %11197 = vmatprep.mubr.msk.bf16.mxu1 %vm1002_vm3, %v12187_v33  ;;  %v8118_v44 = vrot.slane %v12340_v47, 5  ;;  %v10463_v12 = vcombine.low %v8109_v22, %v8112_v62  ;;  %v10429_v4 = vrot.slane %v10397_v57, 9  ;;  %v8124_v59 = vrot.slane %v8122_v55, 4  ;;  %v10399_v33 = vld [vmem:[%s17155_s0 + $0x48] sm:$0xe] }
 0x221   :  { %11501 = vmatprep.mubr.msk.bf16.mxu0 %vm1002_vm3, %v10357_v19  ;;  %v8125_v21 = vrot.slane %v12341_v31, 5  ;;  %v8129_v1 = vrot.slane %v12342_v2, 5  ;;  %v8116_v54 = vsel %vm12981_vm6, %v10428_v25, %v8115_v20  ;;  %v12343_v19 = vld [vmem:[%s17155_s0 + $0x4c] sm:$0xf]  ;;  %v8143_v60 = vrot.slane %v12344_v35, 5 }
 0x222   :  { %v8119_v37 = vsel %vm12981_vm6, %v8117_v17, %v8118_v44  ;;  %v8136_v63 = vrot.slane %v12343_v19, 5  ;;  %v8123_v56 = vsel %vm12981_vm6, %v10429_v4, %v8122_v55  ;;  %v10430_v29 = vrot.slane %v10398_v28, 9  ;;  %v10402_v46 = vld [vmem:[%s17155_s0 + $0x6c] sm:$0xe]  ;;  %v12349_v34 = vld [vmem:[%s17155_s0 + $0x70] sm:$0xf] }
 0x223   :  { %v8126_v5 = vsel %vm12981_vm6, %v8124_v59, %v8125_v21  ;;  %v8132_v24 = vrot.slane %v12345_v43, 5  ;;  %v10464_v38 = vcombine.low %v8116_v54, %v8119_v37  ;;  %v8131_v32 = vrot.slane %v8129_v1, 4  ;;  %v12350_v18 = vld [vmem:[%s17155_s0 + $0x7c] sm:$0xf]  ;;  %v10403_v45 = vld [vmem:[%s17155_s0 + $0x78] sm:$0xe] }
 0x224   :  { %v10431_v39 = vrot.slane %v10399_v33, 9  ;;  %v10432_v26 = vrot.slane %v10400_v53, 9  ;;  %v8138_v41 = vrot.slane %v8136_v63, 4  ;;  %v8139_v7 = vrot.slane %v12346_v42, 5  ;;  %v12351_v62 = vld [vmem:[%s17155_s0 + $0x68] sm:$0x1] }
 0x225   :  { %v8145_v61 = vrot.slane %v8143_v60, 4  ;;  %v8157_v23 = vrot.slane %v12349_v34, 5  ;;  %v8130_v48 = vsel %vm12981_vm6, %v10430_v29, %v8129_v1  ;;  %v8164_v14 = vrot.slane %v12350_v18, 5  ;;  %v10404_v25 = vld [vmem:[%s17155_s0 + $0x84] sm:$0xe]  ;;  %v12194_v44 = vld [vmem:[%s17155_s0 + $0x108] sm:$0xff]  }
 0x226   :  { %v8133_v16 = vsel %vm12981_vm6, %v8131_v32, %v8132_v24  ;;  %v15741_v3 = vsel %vm12981_vm6, %v10431_v39, %v8136_v63  ;;  %v15745_v20 = vsel %vm12981_vm6, %v10432_v26, %v8143_v60  ;;  %v10433_v49 = vrot.slane %v10401_v40, 9  ;;  %v12353_v17 = vld [vmem:[%s17155_s0 + $0x88] sm:$0xf]  ;;  %v12354_v59 = vld [vmem:[%s17155_s0 + $0x80] sm:$0x1]  ;;  %v12195_v63 = vld [vmem:[%s17155_s0 + $0x114] sm:$0xff]  }
 0x227   :  { %11198 = vmatmul.mubr.msk.bf16.gmra.mrb[24].mxu1 %vm1002_vm3, %v12188_v58  ;;  %v8146_v58 = vrot.slane %v12347_v51, 5  ;;  %v8140_v36 = vsel %vm12981_vm6, %v8138_v41, %v8139_v7  ;;  %v8153_v13 = vrot.slane %v12351_v62, 5  ;;  %v10434_v55 = vrot.slane %v10402_v46, 9  ;;  %v10405_v2 = vld [vmem:[%s17155_s0 + $0x90] sm:$0xe] }
 0x228   :  { %11502 = vmatmul.mubr.msk.bf16.gmra.mrb[56].mxu0 %vm1002_vm3, %v10358_v52  ;;  %11201 = vmatprep.mubr.msk.bf16.mxu1 %vm1002_vm3, %v12189_v0  ;;  %v10465_v52 = vcombine.low %v8123_v56, %v8126_v5  ;;  %v12348_v0 = vld [vmem:[%s17155_s0 + $0x64] sm:$0xf]  ;;  %v8159_v57 = vrot.slane %v8157_v23, 4  ;;  %v8171_v47 = vrot.slane %v12353_v17, 5  ;;  %v8166_v4 = vrot.slane %v8164_v14, 4 }
 0x229   :  { %11505 = vmatprep.mubr.msk.bf16.mxu0 %vm1002_vm3, %v10359_v50  ;;  %v8150_v50 = vrot.slane %v12348_v0, 5  ;;  %v15756_v22 = vsel %vm12981_vm6, %v8145_v61, %v8146_v58  ;;  %v8167_v31 = vrot.slane %v12354_v59, 5  ;;  %v10466_v21 = vcombine.low %v8130_v48, %v8133_v16  ;;  %v12355_v1 = vld [vmem:[%s17155_s0 + $0x94] sm:$0xf]  ;;  %v10406_v37 = vld [vmem:[%s17155_s0 + $0x9c] sm:$0xe] }
 0x22a   :  { %v10467_v28 = vcombine.low %v15741_v3, %v8140_v36  ;;  %v8178_v54 = vrot.slane %v12355_v1, 5  ;;  %v12356_v33 = vld [vmem:[%s17155_s0 + $0xa0] sm:$0xf]  ;;  %v10468_v53 = vcombine.low %v15745_v20, %v15756_v22  ;;  %v15801_v60 = vsel %vm12981_vm6, %v10434_v55, %v8157_v23  ;;  %v12357_v24 = vld [vmem:[%s17155_s0 + $0x8c] sm:$0x1] }
 0x22b   :  { %v8185_v19 = vrot.slane %v12356_v33, 5  ;;  %v15797_v35 = vsel %vm12981_vm6, %v10433_v49, %v8150_v50  ;;  %v10436_v56 = vrot.slane %v10404_v25, 9  ;;  %v8173_v43 = vrot.slane %v8171_v47, 4  ;;  %v12358_v42 = vld [vmem:[%s17155_s0 + $0x98] sm:$0x1] }
 0x22c   :  { %v15823_v32 = vsel %vm12981_vm6, %v8166_v4, %v8167_v31  ;;  %v10437_v39 = vrot.slane %v10405_v2, 9  ;;  %v10438_v26 = vrot.slane %v10406_v37, 9  ;;  %v8180_v41 = vrot.slane %v8178_v54, 4  ;;  %v12359_v51 = vld [vmem:[%s17155_s0 + $0xa4] sm:$0x1] }
 0x22d   :  { %v8181_v7 = vrot.slane %v12358_v42, 5  ;;  %v8187_v61 = vrot.slane %v8185_v19, 4  ;;  %v8188_v58 = vrot.slane %v12359_v51, 5  ;;  %v10407_v0 = vld [vmem:[%s17155_s0 + $0xa8] sm:$0xe] }
 0x22e   :  { %v12360_v48 = vld [vmem:[%s17155_s0 + $0xac] sm:$0xf]  ;;  %v15863_v36 = vsel %vm12981_vm6, %v10437_v39, %v8178_v54  ;;  %v15867_v62 = vsel %vm12981_vm6, %v10438_v26, %v8185_v19  ;;  %v12362_v17 = vld [vmem:[%s17155_s0 + $0xb8] sm:$0xf]  ;;  %v12363_v59 = vld [vmem:[%s17155_s0 + $0xb0] sm:$0x1] }
 0x22f   :  { %11202 = vmatmul.mubr.msk.bf16.gmra.mrb[28].mxu1 %vm1002_vm3, %v12190_v11  ;;  %v8152_v11 = vrot.slane %v8150_v50, 4  ;;  %v10408_v50 = vld [vmem:[%s17155_s0 + $0xb4] sm:$0xe]  ;;  %v8192_v18 = vrot.slane %v12360_v48, 5  ;;  %v15874_v55 = vsel %vm12981_vm6, %v8180_v41, %v8181_v7  ;;  %v8195_v31 = vrot.slane %v12363_v59, 5 }
 0x230   :  { %11506 = vmatmul.mubr.msk.bf16.gmra.mrb[60].mxu0 %vm1002_vm3, %v10360_v30  ;;  %11205 = vmatprep.mubr.msk.bf16.mxu1 %vm1002_vm3, %v12191_v9  ;;  %v12352_v30 = vld [vmem:[%s17155_s0 + $0x74] sm:$0x1]  ;;  %v10473_v1 = vcombine.low %v15863_v36, %v15874_v55  ;;  %v12364_v37 = vld [vmem:[%s17155_s0 + $0xc4] sm:$0xf]  ;;  %v12365_v19 = vld [vmem:[%s17155_s0 + $0xd0] sm:$0xf] }
 0x231   :  { %11513 = vmatprep.mubr.msk.bf16.mxu0 %vm1002_vm3, %v10463_v12  ;;  %v8160_v9 = vrot.slane %v12352_v30, 5  ;;  %v10435_v12 = vrot.slane %v10403_v45, 9  ;;  %v15805_v5 = vsel %vm12981_vm6, %v8152_v11, %v8153_v13  ;;  %v12196_v13 = vld [vmem:[%s17155_s0 + $0x120] sm:$0xff]   ;;  %v15878_v11 = vsel %vm12981_vm6, %v8187_v61, %v8188_v58  ;;  %v10411_v7 = vld [vmem:[%s17155_s0 + $0xf0] sm:$0xe] }
 0x232   :  { %v10469_v40 = vcombine.low %v15797_v35, %v15805_v5  ;;  %v10440_v30 = vrot.slane %v10408_v50, 9  ;;  %v8194_v4 = vrot.slane %v8192_v18, 4  ;;  %v10474_v54 = vcombine.low %v15867_v62, %v15878_v11  ;;  %v9849_v35 = vld [vmem:[%s17155_s0 + $0xfc] sm:$0xf]  ;;  %v12368_v61 = vld [vmem:[%s17155_s0 + $0xf4] sm:$0xf] }
 0x233   :  { %v15809_v29 = vsel %vm12981_vm6, %v8159_v57, %v8160_v9  ;;  %v10439_v57 = vrot.slane %v10407_v0, 9  ;;  %v12197_v9 = vld [vmem:[%s17155_s0 + $0x12c] sm:$0xff]   ;;  %v8206_v33 = vrot.slane %v12364_v37, 5  ;;  %v8220_v51 = vrot.slane %v12368_v61, 5  ;;  %v12369_v50 = vld [vmem:[%s17155_s0 + $0xc8] sm:$0x1] }
 0x234   :  { %v10470_v49 = vcombine.low %v15801_v60, %v15809_v29  ;;  %v15941_v20 = vsel %vm12981_vm6, %v8194_v4, %v8195_v31  ;;  %v4053_v58 = vshll.u32 %v9849_v35, 16  ;;  %v12373_v31 = vld [vmem:[%s17155_s0 + $0x100] sm:$0xf]  ;;  %v12386_v62 = vld [vmem:[%s17155_s0 + $0x130] sm:$0xf] }
 0x235   :  { %v8208_v0 = vrot.slane %v8206_v33, 4  ;;  %v4155_v11 = vshll.u32 %v12386_v62, 16 }
 0x236   :  { %v4055_v37 = vrot.slane %v4053_v58, 5  ;;  %v12200_v58 = vld [vmem:[%s17155_s0 + $0x150] sm:$0xff]  }
 0x237   :  { %11206 = vmatmul.mubr.msk.bf16.gmra.mrb[32].mxu1 %vm1002_vm3, %v12192_v8  ;;  %v8174_v8 = vrot.slane %v12357_v24, 5 }
 0x238   :  { %11514 = vmatmul.mubr.msk.bf16.vlgmr.msra.gmra.mrb[0].mxu0 %vm1002_vm3, %v10464_v38  ;;  %11209 = vmatprep.mubr.msk.bf16.mxu1 %vm1002_vm3, %v12193_v15  ;;  %v9843_v38 = vld [vmem:[%s17155_s0 + $0xe4] sm:$0xf]  ;;  %v15819_v15 = vsel %vm12981_vm6, %v10435_v12, %v8164_v14  ;;  %v12361_v14 = vld [vmem:[%s17155_s0 + $0xe8] sm:$0xf] }
 0x239   :  { %11517 = vmatprep.mubr.msk.bf16.mxu0 %vm1002_vm3, %v10465_v52  ;;  %v15838_v52 = vsel %vm12981_vm6, %v10436_v56, %v8171_v47  ;;  %v4002_v46 = vshrl.u32 %v9843_v38, 16  ;;  %v4005_v34 = vshll.u32 %v9843_v38, 16  ;;  %v15849_v23 = vsel %vm12981_vm6, %v8173_v43, %v8174_v8  ;;  %v12366_v43 = vld [vmem:[%s17155_s0 + $0xbc] sm:$0x1]  ;;  %v10410_v8 = vld [vmem:[%s17155_s0 + $0xcc] sm:$0xe] }
 0x23a   :  { %v4011_v16 = vshll.u32 %v12361_v14, 16  ;;  %v4015_v3 = vshrl.u32 %v12361_v14, 16  ;;  %v10471_v45 = vcombine.low %v15819_v15, %v15823_v32  ;;  %v10472_v25 = vcombine.low %v15838_v52, %v15849_v23  ;;  %v12367_v38 = vld [vmem:[%s17155_s0 + $0xec] sm:$0x1]  ;;  %v12370_v14 = vld [vmem:[%s17155_s0 + $0xd4] sm:$0x1] }
 0x23b   :  { %v8199_v47 = vrot.slane %v12362_v17, 5  ;;  %v4007_v12 = vrot.slane %v4005_v34, 5  ;;  %v15912_v56 = vsel %vm12981_vm6, %v10439_v57, %v8192_v18  ;;  %v8202_v24 = vrot.slane %v12366_v43, 5  ;;  %v12199_v18 = vld [vmem:[%s17155_s0 + $0x144] sm:$0xff]   ;;  %v12371_v57 = vld [vmem:[%s17155_s0 + $0xf8] sm:$0x1] }
 0x23c   :  { %v4017_v2 = vrot.slane %v4015_v3, 4  ;;  %v4021_v39 = vshll.u32 %v12367_v38, 16  ;;  %v10442_v34 = vrot.slane %v10410_v8, 9  ;;  %v8222_v17 = vrot.slane %v8220_v51, 4  ;;  %v12375_v15 = vld [vmem:[%s17155_s0 + $0x10c] sm:$0xf] }
 0x23d   :  { %v15916_v5 = vsel %vm12981_vm6, %v10440_v30, %v8199_v47  ;;  %v8201_v26 = vrot.slane %v8199_v47, 4  ;;  %v8223_v30 = vrot.slane %v12371_v57, 5  ;;  %v10412_v47 = vld [vmem:[%s17155_s0 + $0xfc] sm:$0xe]  ;;  %v8234_v32 = vrot.slane %v12375_v15, 5 }
 0x23e   :  { %v4023_v3 = vrot.slane %v4021_v39, 5  ;;  %v12381_v15 = vld [vmem:[%s17155_s0 + $0x118] sm:$0xf] }
 0x23f   :  { %11210 = vmatmul.mubr.msk.bf16.gmra.mrb[36].mxu1 %vm1002_vm3, %v12194_v44  ;;  %v4004_v44 = vrot.slane %v4002_v46, 4  ;;  %v8209_v46 = vrot.slane %v12369_v50, 5 }
 0x240   :  { %11518 = vmatmul.mubr.msk.bf16.gmra.mrb[4].mxu0 %vm1002_vm3, %v10466_v21  ;;  %11213 = vmatprep.mubr.msk.bf16.mxu1 %vm1002_vm3, %v12195_v63  ;;  %v10409_v21 = vld [vmem:[%s17155_s0 + $0xc0] sm:$0xe]  ;;  %v8213_v63 = vrot.slane %v12365_v19, 5  ;;  %v10475_v19 = vcombine.low %v15912_v56, %v15941_v20 }
 0x241   :  { %11521 = vmatprep.mubr.msk.bf16.mxu0 %vm1002_vm3, %v10467_v28  ;;  %v15894_v28 = vrot.slane %v4011_v16, 5  ;;  %v10441_v41 = vrot.slane %v10409_v21, 9  ;;  %v4008_v42 = vor.u32 %v4007_v12, %v4004_v44  ;;  %v8216_v16 = vrot.slane %v12370_v14, 5  ;;  %v12372_v44 = vld [vmem:[%s17155_s0 + $0x100] sm:$0xf] }
 0x242   :  { %v8215_v48 = vrot.slane %v8213_v63, 4  ;;  %v4059_v12 = vshll.u32 %v12372_v44, 16  ;;  %v4063_v4 = vshrl.u32 %v12372_v44, 16  ;;  %v8227_v21 = vrot.slane %v12373_v31, 5  ;;  %v12376_v14 = vld [vmem:[%s17155_s0 + $0x104] sm:$0x1] }
 0x243   :  { %v4018_v22 = vor.u32 %v4017_v2, %v15894_v28  ;;  %v15976_v43 = vsel %vm12981_vm6, %v10441_v41, %v8206_v33  ;;  %v15980_v8 = vsel %vm12981_vm6, %v8208_v0, %v8209_v46  ;;  %v15985_v38 = vsel %vm12981_vm6, %v10442_v34, %v8213_v63  ;;  %v12204_v56 = vld [vmem:[%s17155_s0 + $0x180] sm:$0xff]  }
 0x244   :  { %v15989_v39 = vsel %vm12981_vm6, %v8215_v48, %v8216_v16  ;;  %v10444_v33 = vrot.slane %v10412_v47, 9  ;;  %v16008_v41 = vsel %vm12981_vm6, %v8222_v17, %v8223_v30  ;;  %v8229_v29 = vrot.slane %v8227_v21, 4  ;;  %v12201_v48 = vld [vmem:[%s17155_s0 + $0x15c] sm:$0xff]  }
 0x245   :  { %v4019_v59 = vrot.slane %v4018_v22, 4  ;;  %v10477_v0 = vcombine.low %v15976_v43, %v15980_v8  ;;  %v10478_v50 = vcombine.low %v15985_v38, %v15989_v39  ;;  %v4069_v16 = vshll.u32 %v12376_v14, 16  ;;  %v12203_v14 = vld [vmem:[%s17155_s0 + $0x174] sm:$0xff]   ;;  %v12391_v43 = vld [vmem:[%s17155_s0 + $0x13c] sm:$0xf] }
 0x246   :  { %v16040_v34 = vsel %vm12981_vm6, %v10444_v33, %v8227_v21  ;;  %v8236_v44 = vrot.slane %v8234_v32, 4  ;;  %v10414_v21 = vld [vmem:[%s17155_s0 + $0x114] sm:$0xe]  ;;  %v12379_v33 = vld [vmem:[%s17155_s0 + $0x118] sm:$0xf]  ;;  %v4179_v8 = vshll.u32 %v12391_v43, 16 }
 0x247   :  { %11214 = vmatmul.mubr.msk.bf16.gmra.mrb[40].mxu1 %vm1002_vm3, %v12196_v13  ;;  %v10443_v13 = vrot.slane %v10411_v7, 9  ;;  %v4065_v7 = vrot.slane %v4063_v4, 4  ;;  %v4024_v60 = vsel %vm12504_vm2, %v4019_v59, %v4023_v3 }
 0x248   :  { %11522 = vmatmul.mubr.msk.bf16.gmra.mrb[8].mxu0 %vm1002_vm3, %v10468_v53  ;;  %11217 = vmatprep.mubr.msk.bf16.mxu1 %vm1002_vm3, %v12197_v9  ;;  %v4050_v53 = vshrl.u32 %v9849_v35, 16  ;;  %v4009_v9 = vrot.slane %v4008_v42, 4  ;;  %v15972_v35 = vsel %vm12981_vm6, %v8201_v26, %v8202_v24  ;;  %v9852_v26 = vld [vmem:[%s17155_s0 + $0x108] sm:$0xf]  ;;  %v16010_v42 = vrot.slane %v4059_v12, 5 }
 0x249   :  { %11525 = vmatprep.mubr.msk.bf16.mxu0 %vm1002_vm3, %v10469_v40  ;;  %v12198_v40 = vld [vmem:[%s17155_s0 + $0x138] sm:$0xff]   ;;  %v15993_v24 = vsel %vm12981_vm6, %v10443_v13, %v8220_v51  ;;  %v10413_v51 = vld [vmem:[%s17155_s0 + $0x108] sm:$0xe]  ;;  %v10476_v22 = vcombine.low %v15916_v5, %v15972_v35  ;;  %v9855_v13 = vld [vmem:[%s17155_s0 + $0x114] sm:$0xf] }
 0x24a   :  { %v4052_v2 = vrot.slane %v4050_v53, 4  ;;  %v4014_v63 = vsel %vm12504_vm2, %v4009_v9, %v15894_v28  ;;  %v4077_v53 = vshll.u32 %v9852_v26, 16  ;;  %v10479_v46 = vcombine.low %v15993_v24, %v16008_v41  ;;  %v12377_v9 = vld [vmem:[%s17155_s0 + $0x10c] sm:$0xf]  ;;  %v12378_v12 = vld [vmem:[%s17155_s0 + $0x110] sm:$0x1] }
 0x24b   :  { %v10445_v3 = vrot.slane %v10413_v51, 9  ;;  %v4083_v17 = vshll.u32 %v12377_v9, 16  ;;  %v4087_v47 = vshrl.u32 %v12377_v9, 16  ;;  %v8237_v4 = vrot.slane %v12378_v12, 5  ;;  %v9858_v51 = vld [vmem:[%s17155_s0 + $0x120] sm:$0xf] }
 0x24c   :  { %v4056_v61 = vor.u32 %v4055_v37, %v4052_v2  ;;  %v4079_v31 = vrot.slane %v4077_v53, 5  ;;  %v4098_v2 = vshrl.u32 %v9855_v13, 16  ;;  %v4101_v37 = vshll.u32 %v9855_v13, 16  ;;  %v12382_v13 = vld [vmem:[%s17155_s0 + $0x124] sm:$0xf] }
 0x24d   :  { %v16096_v23 = vrot.slane %v4083_v17, 5  ;;  %v16106_v36 = vsel %vm12981_vm6, %v8236_v44, %v8237_v4  ;;  %v4131_v9 = vshll.u32 %v12382_v13, 16  ;;  %v4135_v17 = vshrl.u32 %v12382_v13, 16  ;;  %v12398_v24 = vld [vmem:[%s17155_s0 + $0x14c] sm:$0x1] }
 0x24e   :  { %v16058_v30 = vrot.slane %v4056_v61, 4  ;;  %v4100_v53 = vrot.slane %v4098_v2, 4  ;;  %v8272_v41 = vrot.slane %v12398_v24, 5 }
 0x24f   :  { %11218 = vmatmul.mubr.msk.bf16.gmra.mrb[44].mxu1 %vm1002_vm3, %v12198_v40  ;;  %v16045_v40 = vcombine.low %v4014_v63, %v4024_v60  ;;  %v4111_v63 = vshrl.u32 %v12379_v33, 16 }
 0x250   :  { %11526 = vmatmul.mubr.msk.bf16.gmra.mrb[12].mxu0 %vm1002_vm3, %v10470_v49  ;;  %11221 = vmatprep.mubr.msk.bf16.mxu1 %vm1002_vm3, %v12199_v18  ;;  %v12374_v49 = vld [vmem:[%s17155_s0 + $0x104] sm:$0x1]  ;;  %v4066_v18 = vor.u32 %v4065_v7, %v16010_v42  ;;  %v4062_v52 = vsel %vm12504_vm2, %v16058_v30, %v16010_v42 }
 0x251   :  { %11529 = vmatprep.mubr.msk.bf16.mxu0 %vm1002_vm3, %v10471_v45  ;;  %v8230_v28 = vrot.slane %v12374_v49, 5  ;;  %v4074_v45 = vshrl.u32 %v9852_v26, 16  ;;  %v4107_v26 = vshll.u32 %v12379_v33, 16  ;;  %v16086_v49 = vsel %vm12981_vm6, %v10445_v3, %v8234_v32 }
 0x252   :  { %v16080_v60 = vrot.slane %v4066_v18, 4  ;;  %v8241_v32 = vrot.slane %v12381_v15, 5  ;;  %v4113_v18 = vrot.slane %v4111_v63, 4  ;;  %v4125_v3 = vshll.u32 %v9858_v51, 16 }
 0x253   :  { %v16056_v57 = vsel %vm12981_vm6, %v8229_v29, %v8230_v28  ;;  %v4076_v59 = vrot.slane %v4074_v45, 4  ;;  %v16082_v29 = vrot.slane %v4069_v16, 5  ;;  %v12380_v28 = vld [vmem:[%s17155_s0 + $0x110] sm:$0x1]  ;;  %v12202_v45 = vld [vmem:[%s17155_s0 + $0x168] sm:$0xff]   ;;  %v4122_v16 = vshrl.u32 %v9858_v51, 16 }
 0x254   :  { %v10480_v7 = vcombine.low %v16040_v34, %v16056_v57  ;;  %v4093_v61 = vshll.u32 %v12380_v28, 16  ;;  %v10481_v44 = vcombine.low %v16086_v49, %v16106_v36  ;;  %v12385_v28 = vld [vmem:[%s17155_s0 + $0x124] sm:$0xf]  ;;  %v4137_v15 = vrot.slane %v4135_v17, 4 }
 0x255   :  { %v4080_v55 = vor.u32 %v4079_v31, %v4076_v59  ;;  %v8243_v31 = vrot.slane %v8241_v32, 4  ;;  %v4124_v51 = vrot.slane %v4122_v16, 4 }
 0x256   :  { %v16129_v4 = vrot.slane %v4093_v61, 5  ;;  %v8248_v61 = vrot.slane %v12385_v28, 5 }
 0x257   :  { %11222 = vmatmul.mubr.msk.bf16.gmra.mrb[48].mxu1 %vm1002_vm3, %v12200_v58  ;;  %v4103_v58 = vrot.slane %v4101_v37, 5  ;;  %v16131_v59 = vrot.slane %v4080_v55, 4  ;;  %v12384_v37 = vld [vmem:[%s17155_s0 + $0x11c] sm:$0x1]  ;;  %v4127_v55 = vrot.slane %v4125_v3, 5 }
 0x258   :  { %11530 = vmatmul.mubr.msk.bf16.gmra.mrb[16].mxu0 %vm1002_vm3, %v10472_v25  ;;  %11225 = vmatprep.mubr.msk.bf16.mxu1 %vm1002_vm3, %v12201_v48  ;;  %v4089_v25 = vrot.slane %v4087_v47, 4  ;;  %v16114_v48 = vrot.slane %v4107_v26, 5  ;;  %v4072_v47 = vsel %vm12504_vm2, %v16080_v60, %v16082_v29  ;;  %v4117_v33 = vshll.u32 %v12384_v37, 16  ;;  %v9861_v26 = vld [vmem:[%s17155_s0 + $0x12c] sm:$0xf] }
 0x259   :  { %11533 = vmatprep.mubr.msk.bf16.mxu0 %vm1002_vm3, %v10473_v1  ;;  %v10446_v1 = vrot.slane %v10414_v21, 9  ;;  %v12383_v21 = vld [vmem:[%s17155_s0 + $0x11c] sm:$0x1]  ;;  %v4104_v60 = vor.u32 %v4103_v58, %v4100_v53  ;;  %v8250_v16 = vrot.slane %v8248_v61, 4  ;;  %v12387_v3 = vld [vmem:[%s17155_s0 + $0x128] sm:$0x1]  ;;  %v16186_v17 = vcombine.low %v4062_v52, %v4072_v47 }
 0x25a   :  { %v4090_v12 = vor.u32 %v4089_v25, %v16096_v23  ;;  %v8244_v2 = vrot.slane %v12383_v21, 5  ;;  %v4114_v29 = vor.u32 %v4113_v18, %v16114_v48  ;;  %v10415_v25 = vld [vmem:[%s17155_s0 + $0x120] sm:$0xe]  ;;  %v4119_v18 = vrot.slane %v4117_v33, 5  ;;  %v12388_v21 = vld [vmem:[%s17155_s0 + $0x128] sm:$0x1] }
 0x25b   :  { %v16145_v63 = vsel %vm12981_vm6, %v10446_v1, %v8241_v32  ;;  %v16159_v1 = vrot.slane %v4131_v9, 5  ;;  %v4146_v32 = vshrl.u32 %v9861_v26, 16  ;;  %v4105_v20 = vrot.slane %v4104_v60, 4  ;;  %v12205_v9 = vld [vmem:[%s17155_s0 + $0x18c] sm:$0xff]  }
 0x25c   :  { %v4091_v53 = vrot.slane %v4090_v12, 4  ;;  %v16170_v58 = vsel %vm12981_vm6, %v8243_v31, %v8244_v2  ;;  %v8251_v13 = vrot.slane %v12387_v3, 5  ;;  %v4128_v12 = vor.u32 %v4127_v55, %v4124_v51  ;;  %v10416_v37 = vld [vmem:[%s17155_s0 + $0x12c] sm:$0xe]  ;;  %v12389_v55 = vld [vmem:[%s17155_s0 + $0x130] sm:$0xf] }
 0x25d   :  { %v4138_v31 = vor.u32 %v4137_v15, %v16159_v1  ;;  %v4141_v2 = vshll.u32 %v12388_v21, 16  ;;  %v4148_v33 = vrot.slane %v4146_v32, 4  ;;  %v16195_v60 = vrot.slane %v4155_v11, 5 }
 0x25e   :  { %v4086_v42 = vsel %vm12504_vm2, %v16131_v59, %v16096_v23  ;;  %v4096_v30 = vsel %vm12504_vm2, %v4091_v53, %v16129_v4  ;;  %v10482_v52 = vcombine.low %v16145_v63, %v16170_v58  ;;  %v4110_v23 = vsel %vm12504_vm2, %v4105_v20, %v16114_v48 }
 0x25f   :  { %11226 = vmatmul.mubr.msk.bf16.gmra.mrb[52].mxu1 %vm1002_vm3, %v12202_v45  ;;  %v4149_v45 = vshll.u32 %v9861_v26, 16  ;;  %v16221_v59 = vsel %vm12981_vm6, %v8250_v16, %v8251_v13  ;;  %v10448_v28 = vrot.slane %v10416_v37, 9  ;;  %v16230_v51 = vrot.slane %v4138_v31, 4  ;;  %v10417_v37 = vld [vmem:[%s17155_s0 + $0x138] sm:$0xe] }
 0x260   :  { %11534 = vmatmul.mubr.msk.bf16.gmra.mrb[20].mxu0 %vm1002_vm3, %v10474_v54  ;;  %11229 = vmatprep.mubr.msk.bf16.mxu1 %vm1002_vm3, %v12203_v14  ;;  %v4159_v54 = vshrl.u32 %v12386_v62, 16  ;;  %v10447_v14 = vrot.slane %v10415_v25, 9  ;;  %v9864_v25 = vld [vmem:[%s17155_s0 + $0x138] sm:$0xf]  ;;  %v16232_v48 = vrot.slane %v4141_v2, 5  ;;  %v8255_v15 = vrot.slane %v12389_v55, 5 }
 0x261   :  { %11537 = vmatprep.mubr.msk.bf16.mxu0 %vm1002_vm3, %v10475_v19  ;;  %v4115_v19 = vrot.slane %v4114_v29, 4  ;;  %v4151_v26 = vrot.slane %v4149_v45, 5  ;;  %v4170_v45 = vshrl.u32 %v9864_v25, 16  ;;  %v16245_v62 = vcombine.low %v4086_v42, %v4096_v30 }
 0x262   :  { %v4161_v29 = vrot.slane %v4159_v54, 4  ;;  %v16208_v47 = vsel %vm12981_vm6, %v10447_v14, %v8248_v61  ;;  %v16228_v61 = vrot.slane %v4128_v12, 4  ;;  %v4173_v54 = vshll.u32 %v9864_v25, 16  ;;  %v12392_v14 = vld [vmem:[%s17155_s0 + $0x134] sm:$0x1] }
 0x263   :  { %v4120_v4 = vsel %vm12504_vm2, %v4115_v19, %v4119_v18  ;;  %v4152_v5 = vor.u32 %v4151_v26, %v4148_v33  ;;  %v10483_v11 = vcombine.low %v16208_v47, %v16221_v59  ;;  %v16259_v18 = vsel %vm12981_vm6, %v10448_v28, %v8255_v15  ;;  %v9867_v19 = vld [vmem:[%s17155_s0 + $0x144] sm:$0xf]  ;;  %v12395_v28 = vld [vmem:[%s17155_s0 + $0x148] sm:$0xf] }
 0x264   :  { %v4162_v35 = vor.u32 %v4161_v29, %v16195_v60  ;;  %v16255_v53 = vcombine.low %v4110_v23, %v4120_v4  ;;  %v4183_v20 = vshrl.u32 %v12391_v43, 16  ;;  %v4134_v16 = vsel %vm12504_vm2, %v16228_v61, %v16159_v1  ;;  %v10418_v29 = vld [vmem:[%s17155_s0 + $0x144] sm:$0xe]  ;;  %v12394_v23 = vld [vmem:[%s17155_s0 + $0x148] sm:$0xf] }
 0x265   :  { %v4144_v3 = vsel %vm12504_vm2, %v16230_v51, %v16232_v48  ;;  %v8257_v13 = vrot.slane %v8255_v15, 4  ;;  %v4153_v31 = vrot.slane %v4152_v5, 4  ;;  %v4172_v33 = vrot.slane %v4170_v45, 4  ;;  %v12396_v5 = vld [vmem:[%s17155_s0 + $0x140] sm:$0x1] }
 0x266   :  { %v4163_v21 = vrot.slane %v4162_v35, 4  ;;  %v4175_v1 = vrot.slane %v4173_v54, 5  ;;  %v16281_v26 = vrot.slane %v4179_v8, 5  ;;  %v4194_v42 = vshrl.u32 %v9867_v19, 16  ;;  %v12407_v47 = vld [vmem:[%s17155_s0 + $0x164] sm:$0x1] }
 0x267   :  { %11230 = vmatmul.mubr.msk.bf16.gmra.mrb[56].mxu1 %vm1002_vm3, %v12204_v56  ;;  %v8258_v56 = vrot.slane %v12392_v14, 5  ;;  %v4197_v30 = vshll.u32 %v9867_v19, 16  ;;  %v4185_v25 = vrot.slane %v4183_v20, 4  ;;  %v8269_v4 = vrot.slane %v12394_v23, 5 }
 0x268   :  { %11538 = vmatmul.mubr.msk.bf16.gmra.mrb[24].mxu0 %vm1002_vm3, %v10476_v22  ;;  %11233 = vmatprep.mubr.msk.bf16.mxu1 %vm1002_vm3, %v12205_v9  ;;  %v12390_v22 = vld [vmem:[%s17155_s0 + $0x134] sm:$0x1]  ;;  %v12393_v9 = vld [vmem:[%s17155_s0 + $0x13c] sm:$0xf]  ;;  %v4203_v61 = vshll.u32 %v12395_v28, 16  ;;  %v4207_v51 = vshrl.u32 %v12395_v28, 16  ;;  %v4158_v38 = vsel %vm12504_vm2, %v4153_v31, %v16195_v60  ;;  %v16327_v14 = vcombine.low %v4134_v16, %v4144_v3 }
 0x269   :  { %11541 = vmatprep.mubr.msk.bf16.mxu0 %vm1002_vm3, %v10477_v0  ;;  %v4165_v32 = vshll.u32 %v12390_v22, 16  ;;  %v12206_v0 = vld [vmem:[%s17155_s0 + $0x198] sm:$0xff]   ;;  %v8262_v12 = vrot.slane %v12393_v9, 5  ;;  %v16301_v48 = vsel %vm12981_vm6, %v8257_v13, %v8258_v56  ;;  %v10449_v55 = vrot.slane %v10417_v37, 9  ;;  %v9870_v60 = vld [vmem:[%s17155_s0 + $0x150] sm:$0xf] }
 0x26a   :  { %v8265_v35 = vrot.slane %v12396_v5, 5  ;;  %v10450_v22 = vrot.slane %v10418_v29, 9  ;;  %v4199_v45 = vrot.slane %v4197_v30, 5  ;;  %v4186_v54 = vor.u32 %v4185_v25, %v16281_v26  ;;  %v10419_v16 = vld [vmem:[%s17155_s0 + $0x150] sm:$0xe] }
 0x26b   :  { %v4167_v2 = vrot.slane %v4165_v32, 5  ;;  %v8264_v15 = vrot.slane %v8262_v12, 4  ;;  %v4176_v32 = vor.u32 %v4175_v1, %v4172_v33  ;;  %v8271_v43 = vrot.slane %v8269_v4, 4  ;;  %v12399_v37 = vld [vmem:[%s17155_s0 + $0x154] sm:$0xf] }
 0x26c   :  { %v16325_v8 = vrot.slane %v4203_v61, 5  ;;  %v10484_v56 = vcombine.low %v16259_v18, %v16301_v48  ;;  %v16333_v20 = vsel %vm12981_vm6, %v10449_v55, %v8262_v12  ;;  %v4218_v3 = vshrl.u32 %v9870_v60, 16  ;;  %v9873_v1 = vld [vmem:[%s17155_s0 + $0x15c] sm:$0xf]  ;;  %v12400_v25 = vld [vmem:[%s17155_s0 + $0x14c] sm:$0x1] }
 0x26d   :  { %v4168_v39 = vsel %vm12504_vm2, %v4163_v21, %v4167_v2  ;;  %v16337_v19 = vsel %vm12981_vm6, %v8264_v15, %v8265_v35  ;;  %v4221_v31 = vshll.u32 %v9870_v60, 16  ;;  %v16346_v21 = vrot.slane %v4176_v32, 4  ;;  %v12402_v61 = vld [vmem:[%s17155_s0 + $0x154] sm:$0xf]  ;;  %v12403_v35 = vld [vmem:[%s17155_s0 + $0x160] sm:$0xf] }
 0x26e   :  { %v16339_v13 = vcombine.low %v4158_v38, %v4168_v39  ;;  %v16350_v12 = vsel %vm12981_vm6, %v10450_v22, %v8269_v4  ;;  %v8276_v33 = vrot.slane %v12399_v37, 5  ;;  %v4187_v29 = vrot.slane %v4186_v54, 4  ;;  %v12401_v4 = vld [vmem:[%s17155_s0 + $0x158] sm:$0x1]  ;;  %v9876_v54 = vld [vmem:[%s17155_s0 + $0x168] sm:$0xf] }
 0x26f   :  { %11234 = vmatmul.mubr.msk.bf16.gmra.mrb[60].mxu1 %vm1002_vm3, %v12206_v0  ;;  %v4209_v0 = vrot.slane %v4207_v51, 4  ;;  %v4213_v23 = vshll.u32 %v12400_v25, 16  ;;  %v8279_v28 = vrot.slane %v12401_v4, 5  ;;  %v4227_v51 = vshll.u32 %v12402_v61, 16 }
 0x270   :  { %11542 = vmatmul.mubr.msk.bf16.gmra.mrb[28].mxu0 %vm1002_vm3, %v10478_v50  ;;  %11273 = vmatprep.mubr.msk.bf16.mxu1 %vm1002_vm3, %v16045_v40  ;;  %v12397_v50 = vld [vmem:[%s17155_s0 + $0x140] sm:$0x1]  ;;  %v4231_v55 = vshrl.u32 %v12402_v61, 16  ;;  %v4220_v34 = vrot.slane %v4218_v3, 4  ;;  %v4223_v57 = vrot.slane %v4221_v31, 5  ;;  %v8278_v5 = vrot.slane %v8276_v33, 4 }
 0x271   :  { %11545 = vmatprep.mubr.msk.bf16.mxu0 %vm1002_vm3, %v10479_v46  ;;  %v4189_v40 = vshll.u32 %v12397_v50, 16  ;;  %v4196_v46 = vrot.slane %v4194_v42, 4  ;;  %v16362_v42 = vsel %vm12981_vm6, %v8271_v43, %v8272_v41  ;;  %v4210_v30 = vor.u32 %v4209_v0, %v16325_v8  ;;  %v10420_v41 = vld [vmem:[%s17155_s0 + $0x15c] sm:$0xe]  ;;  %v12404_v31 = vld [vmem:[%s17155_s0 + $0x158] sm:$0x1] }
 0x272   :  { %v4251_v38 = vshll.u32 %v12403_v35, 16  ;;  %v4255_v39 = vshrl.u32 %v12403_v35, 16  ;;  %v10485_v50 = vcombine.low %v16333_v20, %v16337_v19  ;;  %v4182_v49 = vsel %vm12504_vm2, %v16346_v21, %v16281_v26  ;;  %v12408_v61 = vld [vmem:[%s17155_s0 + $0x164] sm:$0x1] }
 0x273   :  { %v16341_v9 = vrot.slane %v4189_v40, 5  ;;  %v4200_v2 = vor.u32 %v4199_v45, %v4196_v46  ;;  %v4211_v36 = vrot.slane %v4210_v30, 4  ;;  %v10486_v22 = vcombine.low %v16350_v12, %v16362_v42  ;;  %v12417_v12 = vld [vmem:[%s17155_s0 + $0x184] sm:$0xf] }
 0x274   :  { %v16402_v24 = vrot.slane %v4227_v51, 5  ;;  %v4224_v26 = vor.u32 %v4223_v57, %v4220_v34  ;;  %v4233_v46 = vrot.slane %v4231_v55, 4  ;;  %v16415_v0 = vsel %vm12981_vm6, %v8278_v5, %v8279_v28  ;;  %v9879_v55 = vld [vmem:[%s17155_s0 + $0x174] sm:$0xf]  ;;  %v10421_v34 = vld [vmem:[%s17155_s0 + $0x168] sm:$0xe] }
 0x275   :  { %v4201_v15 = vrot.slane %v4200_v2, 4  ;;  %v4192_v40 = vsel %vm12504_vm2, %v4187_v29, %v16341_v9  ;;  %v16417_v9 = vrot.slane %v4251_v38, 5  ;;  %v4237_v21 = vshll.u32 %v12404_v31, 16  ;;  %v12412_v31 = vld [vmem:[%s17155_s0 + $0x178] sm:$0xf] }
 0x276   :  { %v10452_v2 = vrot.slane %v10420_v41, 9  ;;  %v16442_v25 = vcombine.low %v4182_v49, %v4192_v40  ;;  %v16444_v63 = vrot.slane %v4224_v26, 4  ;;  %v4234_v58 = vor.u32 %v4233_v46, %v16402_v24 }
 0x277   :  { %11274 = vmatmul.mubr.msk.bf16.vlgmr.msra.gmra.mrb[32].mxu1 %vm1002_vm3, %v15442_v6  ;;  %v10451_v6 = vrot.slane %v10419_v16, 9  ;;  %v4206_v43 = vsel %vm12504_vm2, %v4201_v15, %v16325_v8  ;;  %v4257_v16 = vrot.slane %v4255_v39, 4  ;;  %v12405_v8 = vld [vmem:[%s17155_s0 + $0x160] sm:$0xf]  ;;  %v4261_v59 = vshll.u32 %v12407_v47, 16 }
 0x278   :  { %11546 = vmatmul.mubr.msk.bf16.gmra.mrb[32].mxu0 %vm1002_vm3, %v10480_v7  ;;  %11277 = vmatprep.mubr.msk.bf16.mxu1 %vm1002_vm3, %v16186_v17  ;;  %v4242_v7 = vshrl.u32 %v9873_v1, 16  ;;  %v4245_v17 = vshll.u32 %v9873_v1, 16  ;;  %v8283_v37 = vrot.slane %v12405_v8, 5  ;;  %v12406_v1 = vld [vmem:[%s17155_s0 + $0x16c] sm:$0xf]  ;;  %v8286_v51 = vrot.slane %v12408_v61, 5 }
 0x279   :  { %11549 = vmatprep.mubr.msk.bf16.mxu0 %vm1002_vm3, %v10481_v44  ;;  %v4215_v44 = vrot.slane %v4213_v23, 5  ;;  %v16400_v32 = vsel %vm12981_vm6, %v10451_v6, %v8276_v33  ;;  %v4269_v33 = vshll.u32 %v9876_v54, 16  ;;  %v4275_v29 = vshll.u32 %v12406_v1, 16  ;;  %v12409_v39 = vld [vmem:[%s17155_s0 + $0x16c] sm:$0xf] }
 0x27a   :  { %v4244_v45 = vrot.slane %v4242_v7, 4  ;;  %v4247_v60 = vrot.slane %v4245_v17, 5  ;;  %v4279_v30 = vshrl.u32 %v12406_v1, 16  ;;  %v10487_v23 = vcombine.low %v16400_v32, %v16415_v0 }
 0x27b   :  { %v4216_v3 = vsel %vm12504_vm2, %v4211_v36, %v4215_v44  ;;  %v4258_v6 = vor.u32 %v4257_v16, %v16417_v9  ;;  %v16457_v4 = vsel %vm12981_vm6, %v10452_v2, %v8283_v37  ;;  %v8285_v28 = vrot.slane %v8283_v37, 4  ;;  %v12411_v16 = vld [vmem:[%s17155_s0 + $0x170] sm:$0x1] }
 0x27c   :  { %v4271_v7 = vrot.slane %v4269_v33, 5  ;;  %v16468_v17 = vrot.slane %v4275_v29, 5  ;;  %v4281_v15 = vrot.slane %v4279_v30, 4  ;;  %v4230_v5 = vsel %vm12504_vm2, %v16444_v63, %v16402_v24  ;;  %v10422_v24 = vld [vmem:[%s17155_s0 + $0x174] sm:$0xe] }
 0x27d   :  { %v4235_v35 = vrot.slane %v4234_v58, 4  ;;  %v8290_v49 = vrot.slane %v12409_v39, 5  ;;  %v4259_v36 = vrot.slane %v4258_v6, 4  ;;  %v4263_v44 = vrot.slane %v4261_v59, 5  ;;  %v9882_v29 = vld [vmem:[%s17155_s0 + $0x180] sm:$0xf] }
 0x27e   :  { %v4290_v40 = vshrl.u32 %v9879_v55, 16  ;;  %v4293_v41 = vshll.u32 %v9879_v55, 16  ;;  %v16481_v26 = vsel %vm12981_vm6, %v8285_v28, %v8286_v51  ;;  %v10453_v46 = vrot.slane %v10421_v34, 9  ;;  %v12415_v51 = vld [vmem:[%s17155_s0 + $0x17c] sm:$0x1] }
 0x27f   :  { %11278 = vmatmul.mubr.msk.bf16.gmra.mrb[36].mxu1 %vm1002_vm3, %v16245_v62  ;;  %v4266_v62 = vshrl.u32 %v9876_v54, 16  ;;  %v4264_v8 = vsel %vm12504_vm2, %v4259_v36, %v4263_v44  ;;  %v10454_v37 = vrot.slane %v10422_v24, 9  ;;  %v4309_v55 = vshll.u32 %v12415_v51, 16  ;;  %v12424_v51 = vld [vmem:[%s17155_s0 + $0x19c] sm:$0xf] }
 0x280   :  { %11550 = vmatmul.mubr.msk.bf16.gmra.mrb[36].mxu0 %vm1002_vm3, %v10482_v52  ;;  %11281 = vmatprep.mubr.msk.bf16.mxu1 %vm1002_vm3, %v16255_v53  ;;  %v4248_v52 = vor.u32 %v4247_v60, %v4244_v45  ;;  %v16447_v53 = vcombine.low %v4206_v43, %v4216_v3  ;;  %v12410_v45 = vld [vmem:[%s17155_s0 + $0x178] sm:$0xf]  ;;  %v4282_v43 = vor.u32 %v4281_v15, %v16468_v17  ;;  %v4285_v3 = vshll.u32 %v12411_v16, 16  ;;  %v10423_v15 = vld [vmem:[%s17155_s0 + $0x180] sm:$0xe] }
 0x281   :  { %11553 = vmatprep.mubr.msk.bf16.mxu0 %vm1002_vm3, %v10483_v11  ;;  %v4239_v11 = vrot.slane %v4237_v21, 5  ;;  %v4268_v57 = vrot.slane %v4266_v62, 4  ;;  %v4299_v60 = vshll.u32 %v12410_v45, 16  ;;  %v4303_v54 = vshrl.u32 %v12410_v45, 16  ;;  %v12414_v62 = vld [vmem:[%s17155_s0 + $0x17c] sm:$0x1] }
 0x282   :  { %v4249_v38 = vrot.slane %v4248_v52, 4  ;;  %v8297_v21 = vrot.slane %v12412_v31, 5  ;;  %v4292_v20 = vrot.slane %v4290_v40, 4  ;;  %v4295_v19 = vrot.slane %v4293_v41, 5  ;;  %v12419_v16 = vld [vmem:[%s17155_s0 + $0x188] sm:$0x1] }
 0x283   :  { %v4240_v18 = vsel %vm12504_vm2, %v4235_v35, %v4239_v11  ;;  %v16521_v33 = vrot.slane %v4299_v60, 5  ;;  %v4305_v1 = vrot.slane %v4303_v54, 4  ;;  %v4283_v63 = vrot.slane %v4282_v43, 4  ;;  %v12416_v35 = vld [vmem:[%s17155_s0 + $0x184] sm:$0xf] }
 0x284   :  { %v4254_v48 = vsel %vm12504_vm2, %v4249_v38, %v16417_v9  ;;  %v8300_v9 = vrot.slane %v12414_v62, 5  ;;  %v4287_v58 = vrot.slane %v4285_v3, 5  ;;  %v8299_v52 = vrot.slane %v8297_v21, 4 }
 0x285   :  { %v9920_v6 = vcombine.low %v4230_v5, %v4240_v18  ;;  %v9921_v47 = vcombine.low %v4254_v48, %v4264_v8  ;;  %v16528_v59 = vsel %vm12981_vm6, %v10453_v46, %v8290_v49  ;;  %v16536_v28 = vsel %vm12981_vm6, %v10454_v37, %v8297_v21  ;;  %v12420_v37 = vld [vmem:[%s17155_s0 + $0x188] sm:$0x1] }
 0x286   :  { %v4296_v61 = vor.u32 %v4295_v19, %v4292_v20  ;;  %v4314_v34 = vshrl.u32 %v9882_v29, 16  ;;  %v4317_v5 = vshll.u32 %v9882_v29, 16  ;;  %v4323_v38 = vshll.u32 %v12416_v35, 16 }
 0x287   :  { %11282 = vmatmul.mubr.msk.bf16.gmra.mrb[40].mxu1 %vm1002_vm3, %v16327_v14  ;;  %v4272_v14 = vor.u32 %v4271_v7, %v4268_v57  ;;  %v9885_v57 = vld [vmem:[%s17155_s0 + $0x18c] sm:$0xf]  ;;  %v4306_v7 = vor.u32 %v4305_v1, %v16521_v33  ;;  %v4327_v39 = vshrl.u32 %v12416_v35, 16  ;;  %v16566_v36 = vsel %vm12981_vm6, %v8299_v52, %v8300_v9  ;;  %v12421_v1 = vld [vmem:[%s17155_s0 + $0x190] sm:$0xf] }
 0x288   :  { %11554 = vmatmul.mubr.msk.bf16.gmra.mrb[40].mxu0 %vm1002_vm3, %v10484_v56  ;;  %11285 = vmatprep.mubr.msk.bf16.mxu1 %vm1002_vm3, %v16339_v13  ;;  %v8292_v56 = vrot.slane %v8290_v49, 4  ;;  %v12413_v13 = vld [vmem:[%s17155_s0 + $0x170] sm:$0x1]  ;;  %v4288_v49 = vsel %vm12504_vm2, %v4283_v63, %v4287_v58  ;;  %v8304_v42 = vrot.slane %v12417_v12, 5  ;;  %v4297_v41 = vrot.slane %v4296_v61, 4 }
 0x289   :  { %11557 = vmatprep.mubr.msk.bf16.mxu0 %vm1002_vm3, %v10485_v50  ;;  %v8293_v2 = vrot.slane %v12413_v13, 5  ;;  %v10488_v50 = vcombine.low %v16457_v4, %v16481_v26  ;;  %v4273_v30 = vrot.slane %v4272_v14, 4  ;;  %v4311_v46 = vrot.slane %v4309_v55, 5  ;;  %v12422_v58 = vld [vmem:[%s17155_s0 + $0x19c] sm:$0xf] }
 0x28a   :  { %v10455_v24 = vrot.slane %v10423_v15, 9  ;;  %v4316_v45 = vrot.slane %v4314_v34, 4  ;;  %v4307_v60 = vrot.slane %v4306_v7, 4  ;;  %v4319_v54 = vrot.slane %v4317_v5, 5  ;;  %v12423_v26 = vld [vmem:[%s17155_s0 + $0x194] sm:$0x1] }
 0x28b   :  { %v16532_v11 = vsel %vm12981_vm6, %v8292_v56, %v8293_v2  ;;  %v16578_v14 = vrot.slane %v4323_v38, 5  ;;  %v4329_v43 = vrot.slane %v4327_v39, 4  ;;  %v8307_v3 = vrot.slane %v12419_v16, 5  ;;  %v9888_v56 = vld [vmem:[%s17155_s0 + $0x198] sm:$0xf] }
 0x28c   :  { %v10489_v32 = vcombine.low %v16528_v59, %v16532_v11  ;;  %v10490_v13 = vcombine.low %v16536_v28, %v16566_v36  ;;  %v4302_v2 = vsel %vm12504_vm2, %v4297_v41, %v16521_v33  ;;  %v8305_v8 = vsel %vm12981_vm6, %v10455_v24, %v8304_v42  ;;  %v10424_v33 = vld [vmem:[%s17155_s0 + $0x18c] sm:$0xe]  ;;  %v12425_v15 = vld [vmem:[%s17155_s0 + $0x194] sm:$0x1]  ;;  %v10425_v35 = vld [vmem:[%s17155_s0 + $0x198] sm:$0xe] }
 0x28d   :  { %v4333_v20 = vshll.u32 %v12420_v37, 16  ;;  %v4312_v19 = vsel %vm12504_vm2, %v4307_v60, %v4311_v46  ;;  %v4320_v62 = vor.u32 %v4319_v54, %v4316_v45  ;;  %v4330_v9 = vor.u32 %v4329_v43, %v16578_v14  ;;  %v12427_v43 = vld [vmem:[%s17155_s0 + $0x1a0] sm:$0x1] }
 0x28e   :  { %v8311_v29 = vrot.slane %v12421_v1, 5  ;;  %v4365_v63 = vshll.u32 %v9888_v56, 16  ;;  %v4371_v52 = vshll.u32 %v12422_v58, 16  ;;  %v10456_v61 = vrot.slane %v10424_v33, 9 }
 0x28f   :  { %11286 = vmatmul.mubr.msk.bf16.gmra.mrb[44].mxu1 %vm1002_vm3, %v16442_v25  ;;  %v4278_v25 = vsel %vm12504_vm2, %v4273_v30, %v16468_v17  ;;  %v12418_v17 = vld [vmem:[%s17155_s0 + $0x190] sm:$0xf]  ;;  %v4362_v30 = vshrl.u32 %v9888_v56, 16  ;;  %v4335_v28 = vrot.slane %v4333_v20, 5  ;;  %v8318_v55 = vrot.slane %v12424_v51, 5 }
 0x290   :  { %11558 = vmatmul.mubr.msk.bf16.gmra.mrb[44].mxu0 %vm1002_vm3, %v10486_v22  ;;  %11289 = vmatprep.mubr.msk.bf16.mxu1 %vm1002_vm3, %v16447_v53  ;;  %v4338_v22 = vshrl.u32 %v9885_v57, 16  ;;  %v4341_v53 = vshll.u32 %v9885_v57, 16  ;;  %v4347_v44 = vshll.u32 %v12418_v17, 16  ;;  %v4351_v40 = vshrl.u32 %v12418_v17, 16 }
 0x291   :  { %11561 = vmatprep.mubr.msk.bf16.mxu0 %vm1002_vm3, %v10487_v23  ;;  %v9922_v0 = vcombine.low %v4278_v25, %v4288_v49  ;;  %v8306_v23 = vrot.slane %v8304_v42, 4  ;;  %v4321_v34 = vrot.slane %v4320_v62, 4  ;;  %v4331_v57 = vrot.slane %v4330_v9, 4  ;;  %v12429_v62 = vld [vmem:[%s17155_s0 + $0x1ac] sm:$0x1] }
 0x292   :  { %v4340_v31 = vrot.slane %v4338_v22, 4  ;;  %v4343_v21 = vrot.slane %v4341_v53, 5  ;;  %v16585_v18 = vrot.slane %v4347_v44, 5  ;;  %v4353_v48 = vrot.slane %v4351_v40, 4  ;;  %v12426_v44 = vld [vmem:[%s17155_s0 + $0x1a0] sm:$0x1] }
 0x293   :  { %v8308_v59 = vsel %vm12981_vm6, %v8306_v23, %v8307_v3  ;;  %v8313_v7 = vrot.slane %v8311_v29, 4  ;;  %v8314_v5 = vrot.slane %v12425_v15, 5  ;;  %v4364_v38 = vrot.slane %v4362_v30, 4  ;;  %v12428_v23 = vld [vmem:[%s17155_s0 + $0x1a8] sm:$0xf] }
 0x294   :  { %v4344_v11 = vor.u32 %v4343_v21, %v4340_v31  ;;  %v4354_v4 = vor.u32 %v4353_v48, %v16585_v18  ;;  %v4367_v39 = vrot.slane %v4365_v63, 5  ;;  %v4373_v25 = vrot.slane %v4371_v52, 5  ;;  %v10426_v21 = vld [vmem:[%s17155_s0 + $0x1a4] sm:$0xe] }
 0x295   :  { %v10491_v36 = vcombine.low %v8305_v8, %v8308_v59  ;;  %v10457_v53 = vrot.slane %v10425_v35, 9  ;;  %v8320_v17 = vrot.slane %v8318_v55, 4  ;;  %v8321_v40 = vrot.slane %v12426_v44, 5 }
 0x296   :  { %v4345_v12 = vrot.slane %v4344_v11, 4  ;;  %v4355_v42 = vrot.slane %v4354_v4, 4  ;;  %v4326_v41 = vsel %vm12504_vm2, %v4321_v34, %v16578_v14  ;;  %v8312_v46 = vsel %vm12981_vm6, %v10456_v61, %v8311_v29 }
 0x297   :  { %11290 = vmatmul.mubr.msk.bf16.gmra.mrb[48].mxu1 %vm1002_vm3, %v9920_v6  ;;  %v4375_v6 = vshrl.u32 %v12422_v58, 16  ;;  %v8315_v24 = vsel %vm12981_vm6, %v8313_v7, %v8314_v5  ;;  %v4336_v45 = vsel %vm12504_vm2, %v4331_v57, %v4335_v28  ;;  %v4368_v60 = vor.u32 %v4367_v39, %v4364_v38 }
 0x298   :  { %11562 = vmatmul.mubr.msk.bf16.gmra.mrb[48].mxu0 %vm1002_vm3, %v10488_v50  ;;  %11293 = vmatprep.mubr.msk.bf16.mxu1 %vm1002_vm3, %v9921_v47  ;;  %v4357_v50 = vshll.u32 %v12423_v26, 16  ;;  %v9923_v47 = vcombine.low %v4302_v2, %v4312_v19  ;;  %v4381_v14 = vshll.u32 %v12427_v43, 16  ;;  %v8325_v16 = vrot.slane %v12428_v23, 5 }
 0x299   :  { %11565 = vmatprep.mubr.msk.bf16.mxu0 %vm1002_vm3, %v10489_v32  ;;  %v4377_v49 = vrot.slane %v4375_v6, 4  ;;  %v4350_v32 = vsel %vm12504_vm2, %v4345_v12, %v16585_v18  ;;  %v8319_v3 = vsel %vm12981_vm6, %v10457_v53, %v8318_v55  ;;  %v8322_v31 = vsel %vm12981_vm6, %v8320_v17, %v8321_v40 }
 0x29a   :  { %v4359_v22 = vrot.slane %v4357_v50, 5  ;;  %v9924_v48 = vcombine.low %v4326_v41, %v4336_v45  ;;  %v10492_v18 = vcombine.low %v8312_v46, %v8315_v24  ;;  %v4383_v8 = vrot.slane %v4381_v14, 5  ;;  %v16738_v46 = vld [vmem:[%s17156_s2] ss:$0 sm:$0xff] }
 0x29b   :  { %v4378_v54 = vor.u32 %v4377_v49, %v4373_v25  ;;  %v10493_v37 = vcombine.low %v8319_v3, %v8322_v31  ;;  %v10458_v20 = vrot.slane %v10426_v21, 9  ;;  %v8327_v19 = vrot.slane %v8325_v16, 4 }
 0x29c   :  { %v8328_v9 = vrot.slane %v12429_v62, 5 }
 0x29d   :  { %v4379_v2 = vrot.slane %v4378_v54, 4  ;;  %v8326_v29 = vsel %vm12981_vm6, %v10458_v20, %v8325_v16 }
 0x29e   :  { %v8329_v30 = vsel %vm12981_vm6, %v8327_v19, %v8328_v9 }
 0x29f   :  { %11294 = vmatmul.mubr.msk.bf16.gmra.mrb[52].mxu1 %vm1002_vm3, %v9922_v0  ;;  %v4360_v0 = vsel %vm12504_vm2, %v4355_v42, %v4359_v22  ;;  %v4384_v1 = vsel %vm12504_vm2, %v4379_v2, %v4383_v8  ;;  %v10494_v58 = vcombine.low %v8326_v29, %v8329_v30 }
 0x2a0   :  { %11566 = vmatmul.mubr.msk.bf16.gmra.mrb[52].mxu0 %vm1002_vm3, %v10490_v13  ;;  %11297 = vmatprep.mubr.msk.bf16.mxu1 %vm1002_vm3, %v9923_v47  ;;  %v9925_v56 = vcombine.low %v4350_v32, %v4360_v0  ;;  %v4369_v13 = vrot.slane %v4368_v60, 4  ;;  %v16743_v60 = vld [vmem:[%s17157_s3] ss:$0 sm:$0xff] }
 0x2a1   :  { %11569 = vmatprep.mubr.msk.bf16.mxu0 %vm1002_vm3, %v10491_v36 }
 0x2a2   :  { %v4374_v33 = vsel %vm12504_vm2, %v4369_v13, %v4373_v25 }
 0x2a3   :  { %v9926_v63 = vcombine.low %v4374_v33, %v4384_v1 }
 0x2a7   :  { %11298 = vmatmul.mubr.msk.bf16.gmra.mrb[56].mxu1 %vm1002_vm3, %v9924_v48 }
 0x2a8   :  { %11570 = vmatmul.mubr.msk.bf16.gmra.mrb[56].mxu0 %vm1002_vm3, %v10492_v18  ;;  %11301 = vmatprep.mubr.msk.bf16.mxu1 %vm1002_vm3, %v9925_v56 }
 0x2a9   :  { %11573 = vmatprep.mubr.msk.bf16.mxu0 %vm1002_vm3, %v10493_v37 }
 0x2af   :  { %11302 = vmatmul.mubr.msk.bf16.gmra.mrb[60].mxu1 %vm1002_vm3, %v9926_v63 }
 0x2b0   :  { %11574 = vmatmul.mubr.msk.bf16.gmra.mrb[60].mxu0 %vm1002_vm3, %v10494_v58 }
 0x2ca   :  { %v11175_v52 = vpop.f32.mrb[0].mxu1 }
 0x2cb   :  { %v3202_v6 = vpop.f32.mrb[1].mxu1 }
 0x2cc   :  { %v11176_v59 = vpop.f32.mrb[2].mxu1 }
 0x2cd   :  { %v3205_v11 = vpop.f32.mrb[3].mxu1 }
 0x2d2   :  { %v11179_v27 = vpop.f32.mrb[4].mxu1 }
 0x2d3   :  { %v3218_v4 = vpop.f32.mrb[5].mxu1 }
 0x2d4   :  { %v11180_v26 = vpop.f32.mrb[6].mxu1 }
 0x2d5   :  { %v16685_v50 = vpop.f32.mrb[7].mxu1 }
 0x2da   :  { %v16687_v47 = vpop.f32.mrb[8].mxu1 }
 0x2db   :  { %v16689_v28 = vpop.f32.mrb[9].mxu1 }
 0x2dc   :  { %v16691_v10 = vpop.f32.mrb[10].mxu1 }
 0x2dd   :  { %v16693_v61 = vpop.f32.mrb[11].mxu1 }
 0x2e2   :  { %v16695_v51 = vpop.f32.mrb[12].mxu1 }
 0x2e3   :  { %v16697_v55 = vpop.f32.mrb[13].mxu1 }
 0x2e4   :  { %v16699_v34 = vpop.f32.mrb[14].mxu1 }
 0x2e5   :  { %v16701_v57 = vpop.f32.mrb[15].mxu1 }
 0x2ea   :  { %v16703_v7 = vpop.f32.mrb[16].mxu1 }
 0x2eb   :  { %v16705_v15 = vpop.f32.mrb[17].mxu1 }
 0x2ec   :  { %v16707_v5 = vpop.f32.mrb[18].mxu1 }
 0x2ed   :  { %v16709_v35 = vpop.f32.mrb[19].mxu1 }
 0x2f2   :  { %v16711_v38 = vpop.f32.mrb[20].mxu1 }
 0x2f3   :  { %v16713_v39 = vpop.f32.mrb[21].mxu1 }
 0x2f4   :  { %v16715_v25 = vpop.f32.mrb[22].mxu1 }
 0x2f5   :  { %v16717_v49 = vpop.f32.mrb[23].mxu1 }
 0x2fa   :  { %v16719_v36 = vpop.f32.mrb[24].mxu1 }
 0x2fb   :  { %v16721_v12 = vpop.f32.mrb[25].mxu1 }
 0x2fc   :  { %v16723_v42 = vpop.f32.mrb[26].mxu1 }
 0x2fd   :  { %v16725_v22 = vpop.f32.mrb[27].mxu1 }
 0x302   :  { %v16727_v53 = vpop.f32.mrb[28].mxu1 }
 0x303   :  { %v16729_v17 = vpop.f32.mrb[29].mxu1 }
 0x304   :  { %v16731_v44 = vpop.f32.mrb[30].mxu1 }
 0x305   :  { %v16733_v40 = vpop.f32.mrb[31].mxu1 }
 0x30b   :  { %v11515_v41 = vpop.f32.mrb[0].mxu0 }
 0x30c   :  { %v11581_v24 = vadd.f32 %v11515_v41, %v11175_v52  ;;  %v8573_v45 = vpop.f32.mrb[1].mxu0 }
 0x30d   :  { %v11582_v54 = vadd.f32 %v8573_v45, %v3202_v6  ;;  %v11516_v43 = vpop.f32.mrb[2].mxu0 }
 0x30e   :  { %v8901_v14 = vmul.f32 %v11581_v24, %v16738_v46  ;;  %v11583_v32 = vadd.f32 %v11516_v43, %v11176_v59  ;;  %v8576_v0 = vpop.f32.mrb[3].mxu0 }
 0x30f   :  { %v8899_v23 = vmul.f32 %v11582_v54, %v16738_v46  ;;  %v11584_v16 = vadd.f32 %v8576_v0, %v3205_v11 }
 0x310   :  { %v8972_v3 = vadd.f32 %v16743_v60, %v8901_v14  ;;  %v8902_v31 = vmul.f32 %v11583_v32, %v16738_v46 }
 0x311   :  { %v8970_v21 = vadd.f32 %v16743_v60, %v8899_v23  ;;  %v8900_v48 = vmul.f32 %v11584_v16, %v16738_v46 }
 0x312   :  { %v9036_v18 = vmax.f32 %v8972_v3, 0.0  ;;  %v8973_v56 = vadd.f32 %v16743_v60, %v8902_v31 }
 0x313   :  { %v9034_v13 = vmax.f32 %v8970_v21, 0.0  ;;  %v8971_v2 = vadd.f32 %v16743_v60, %v8900_v48  ;;  %v11519_v8 = vpop.f32.mrb[4].mxu0 }
 0x314   :  { %v10597_v37 = vpack.c.bf16 %v9036_v18, %v9036_v18  ;;  %v9037_v20 = vmax.f32 %v8973_v56, 0.0  ;;  %v11585_v19 = vadd.f32 %v11519_v8, %v11179_v27  ;;  %v8589_v62 = vpop.f32.mrb[5].mxu0 }
 0x315   :  { %v10595_v9 = vpack.c.bf16 %v9034_v13, %v9034_v13  ;;  %v9035_v33 = vmax.f32 %v8971_v2, 0.0  ;;  %v11586_v1 = vadd.f32 %v8589_v62, %v3218_v4  ;;  %v11520_v29 = vpop.f32.mrb[6].mxu0 }
 0x316   :  { %9357 = vst.msk [vmem:[%s17158_s4 + $0x8] sm:$0xf] %vm9354_vm7, %v10597_v37  ;;  %v10598_v30 = vpack.c.bf16 %v9037_v20, %v9037_v20  ;;  %v8905_v63 = vmul.f32 %v11585_v19, %v16738_v46  ;;  %v11587_v58 = vadd.f32 %v11520_v29, %v11180_v26  ;;  %v8592_v52 = vpop.f32.mrb[7].mxu0 }
 0x317   :  { %9355 = vst.msk [vmem:[%s17158_s4] sm:$0xf] %vm9354_vm7, %v10595_v9  ;;  %v10596_v6 = vpack.c.bf16 %v9035_v33, %v9035_v33  ;;  %v8903_v59 = vmul.f32 %v11586_v1, %v16738_v46  ;;  %v11588_v11 = vadd.f32 %v8592_v52, %v16685_v50 }
 0x318   :  { %9358 = vst.msk [vmem:[%s17158_s4 + $0xc] sm:$0xf] %vm9354_vm7, %v10598_v30  ;;  %v8976_v27 = vadd.f32 %v16743_v60, %v8905_v63  ;;  %v8906_v4 = vmul.f32 %v11587_v58, %v16738_v46 }
 0x319   :  { %9356 = vst.msk [vmem:[%s17158_s4 + $0x4] sm:$0xf] %vm9354_vm7, %v10596_v6  ;;  %v8974_v26 = vadd.f32 %v16743_v60, %v8903_v59  ;;  %v8904_v41 = vmul.f32 %v11588_v11, %v16738_v46 }
 0x31a   :  { %v9040_v24 = vmax.f32 %v8976_v27, 0.0  ;;  %v8977_v50 = vadd.f32 %v16743_v60, %v8906_v4 }
 0x31b   :  { %v9038_v45 = vmax.f32 %v8974_v26, 0.0  ;;  %v8975_v54 = vadd.f32 %v16743_v60, %v8904_v41  ;;  %v11523_v43 = vpop.f32.mrb[8].mxu0 }
 0x31c   :  { %v10601_v14 = vpack.c.bf16 %v9040_v24, %v9040_v24  ;;  %v9041_v32 = vmax.f32 %v8977_v50, 0.0  ;;  %v11589_v0 = vadd.f32 %v11523_v43, %v16687_v47  ;;  %v8605_v23 = vpop.f32.mrb[9].mxu0 }
 0x31d   :  { %v10599_v16 = vpack.c.bf16 %v9038_v45, %v9038_v45  ;;  %v9039_v3 = vmax.f32 %v8975_v54, 0.0  ;;  %v11590_v31 = vadd.f32 %v8605_v23, %v16689_v28  ;;  %v11524_v21 = vpop.f32.mrb[10].mxu0 }
 0x31e   :  { %9361 = vst.msk [vmem:[%s17158_s4 + $0x18] sm:$0xf] %vm9354_vm7, %v10601_v14  ;;  %v10602_v48 = vpack.c.bf16 %v9041_v32, %v9041_v32  ;;  %v8909_v18 = vmul.f32 %v11589_v0, %v16738_v46  ;;  %v11591_v56 = vadd.f32 %v11524_v21, %v16691_v10  ;;  %v8608_v13 = vpop.f32.mrb[11].mxu0 }
 0x31f   :  { %9359 = vst.msk [vmem:[%s17158_s4 + $0x10] sm:$0xf] %vm9354_vm7, %v10599_v16  ;;  %v10600_v47 = vpack.c.bf16 %v9039_v3, %v9039_v3  ;;  %v8907_v28 = vmul.f32 %v11590_v31, %v16738_v46  ;;  %v11592_v2 = vadd.f32 %v8608_v13, %v16693_v61 }
 0x320   :  { %9362 = vst.msk [vmem:[%s17158_s4 + $0x1c] sm:$0xf] %vm9354_vm7, %v10602_v48  ;;  %v8980_v8 = vadd.f32 %v16743_v60, %v8909_v18  ;;  %v8910_v10 = vmul.f32 %v11591_v56, %v16738_v46 }
 0x321   :  { %9360 = vst.msk [vmem:[%s17158_s4 + $0x14] sm:$0xf] %vm9354_vm7, %v10600_v47  ;;  %v8978_v37 = vadd.f32 %v16743_v60, %v8907_v28  ;;  %v8908_v20 = vmul.f32 %v11592_v2, %v16738_v46 }
 0x322   :  { %v9044_v19 = vmax.f32 %v8980_v8, 0.0  ;;  %v8981_v61 = vadd.f32 %v16743_v60, %v8910_v10 }
 0x323   :  { %v9042_v62 = vmax.f32 %v8978_v37, 0.0  ;;  %v8979_v9 = vadd.f32 %v16743_v60, %v8908_v20  ;;  %v11527_v33 = vpop.f32.mrb[12].mxu0 }
 0x324   :  { %v10605_v1 = vpack.c.bf16 %v9044_v19, %v9044_v19  ;;  %v9045_v29 = vmax.f32 %v8981_v61, 0.0  ;;  %v11593_v30 = vadd.f32 %v11527_v33, %v16695_v51  ;;  %v8621_v63 = vpop.f32.mrb[13].mxu0 }
 0x325   :  { %v10603_v58 = vpack.c.bf16 %v9042_v62, %v9042_v62  ;;  %v9043_v52 = vmax.f32 %v8979_v9, 0.0  ;;  %v11594_v6 = vadd.f32 %v8621_v63, %v16697_v55  ;;  %v11528_v59 = vpop.f32.mrb[14].mxu0 }
 0x326   :  { %9365 = vst.msk [vmem:[%s17158_s4 + $0x28] sm:$0xf] %vm9354_vm7, %v10605_v1  ;;  %v10606_v11 = vpack.c.bf16 %v9045_v29, %v9045_v29  ;;  %v8913_v27 = vmul.f32 %v11593_v30, %v16738_v46  ;;  %v11595_v4 = vadd.f32 %v11528_v59, %v16699_v34  ;;  %v8624_v26 = vpop.f32.mrb[15].mxu0 }
 0x327   :  { %9363 = vst.msk [vmem:[%s17158_s4 + $0x20] sm:$0xf] %vm9354_vm7, %v10603_v58  ;;  %v10604_v51 = vpack.c.bf16 %v9043_v52, %v9043_v52  ;;  %v8911_v55 = vmul.f32 %v11594_v6, %v16738_v46  ;;  %v11596_v41 = vadd.f32 %v8624_v26, %v16701_v57 }
 0x328   :  { %9366 = vst.msk [vmem:[%s17158_s4 + $0x2c] sm:$0xf] %vm9354_vm7, %v10606_v11  ;;  %v8984_v24 = vadd.f32 %v16743_v60, %v8913_v27  ;;  %v8914_v34 = vmul.f32 %v11595_v4, %v16738_v46 }
 0x329   :  { %9364 = vst.msk [vmem:[%s17158_s4 + $0x24] sm:$0xf] %vm9354_vm7, %v10604_v51  ;;  %v8982_v50 = vadd.f32 %v16743_v60, %v8911_v55  ;;  %v8912_v45 = vmul.f32 %v11596_v41, %v16738_v46 }
 0x32a   :  { %v9048_v54 = vmax.f32 %v8984_v24, 0.0  ;;  %v8985_v57 = vadd.f32 %v16743_v60, %v8914_v34 }
 0x32b   :  { %v9046_v43 = vmax.f32 %v8982_v50, 0.0  ;;  %v8983_v14 = vadd.f32 %v16743_v60, %v8912_v45  ;;  %v11531_v32 = vpop.f32.mrb[16].mxu0 }
 0x32c   :  { %v10609_v0 = vpack.c.bf16 %v9048_v54, %v9048_v54  ;;  %v9049_v23 = vmax.f32 %v8985_v57, 0.0  ;;  %v11597_v16 = vadd.f32 %v11531_v32, %v16703_v7  ;;  %v8637_v3 = vpop.f32.mrb[17].mxu0 }
 0x32d   :  { %v10607_v31 = vpack.c.bf16 %v9046_v43, %v9046_v43  ;;  %v9047_v21 = vmax.f32 %v8983_v14, 0.0  ;;  %v11598_v48 = vadd.f32 %v8637_v3, %v16705_v15  ;;  %v11532_v18 = vpop.f32.mrb[18].mxu0 }
 0x32e   :  { %9369 = vst.msk [vmem:[%s17158_s4 + $0x38] sm:$0xf] %vm9354_vm7, %v10609_v0  ;;  %v10610_v56 = vpack.c.bf16 %v9049_v23, %v9049_v23  ;;  %v8917_v13 = vmul.f32 %v11597_v16, %v16738_v46  ;;  %v11599_v47 = vadd.f32 %v11532_v18, %v16707_v5  ;;  %v8640_v28 = vpop.f32.mrb[19].mxu0 }
 0x32f   :  { %9367 = vst.msk [vmem:[%s17158_s4 + $0x30] sm:$0xf] %vm9354_vm7, %v10607_v31  ;;  %v10608_v7 = vpack.c.bf16 %v9047_v21, %v9047_v21  ;;  %v8915_v15 = vmul.f32 %v11598_v48, %v16738_v46  ;;  %v11600_v2 = vadd.f32 %v8640_v28, %v16709_v35 }
 0x330   :  { %9370 = vst.msk [vmem:[%s17158_s4 + $0x3c] sm:$0xf] %vm9354_vm7, %v10610_v56  ;;  %v8988_v8 = vadd.f32 %v16743_v60, %v8917_v13  ;;  %v8918_v5 = vmul.f32 %v11599_v47, %v16738_v46 }
 0x331   :  { %9368 = vst.msk [vmem:[%s17158_s4 + $0x34] sm:$0xf] %vm9354_vm7, %v10608_v7  ;;  %v8986_v10 = vadd.f32 %v16743_v60, %v8915_v15  ;;  %v8916_v37 = vmul.f32 %v11600_v2, %v16738_v46 }
 0x332   :  { %v9052_v20 = vmax.f32 %v8988_v8, 0.0  ;;  %v8989_v35 = vadd.f32 %v16743_v60, %v8918_v5 }
 0x333   :  { %v9050_v19 = vmax.f32 %v8986_v10, 0.0  ;;  %v8987_v61 = vadd.f32 %v16743_v60, %v8916_v37  ;;  %v11535_v62 = vpop.f32.mrb[20].mxu0 }
 0x334   :  { %v10613_v9 = vpack.c.bf16 %v9052_v20, %v9052_v20  ;;  %v9053_v33 = vmax.f32 %v8989_v35, 0.0  ;;  %v11601_v1 = vadd.f32 %v11535_v62, %v16711_v38  ;;  %v8653_v29 = vpop.f32.mrb[21].mxu0 }
 0x335   :  { %v10611_v30 = vpack.c.bf16 %v9050_v19, %v9050_v19  ;;  %v9051_v63 = vmax.f32 %v8987_v61, 0.0  ;;  %v11602_v58 = vadd.f32 %v8653_v29, %v16713_v39  ;;  %v11536_v52 = vpop.f32.mrb[22].mxu0 }
 0x336   :  { %9373 = vst.msk [vmem:[%s17158_s4 + $0x48] sm:$0xf] %vm9354_vm7, %v10613_v9  ;;  %v10614_v6 = vpack.c.bf16 %v9053_v33, %v9053_v33  ;;  %v8921_v59 = vmul.f32 %v11601_v1, %v16738_v46  ;;  %v11603_v11 = vadd.f32 %v11536_v52, %v16715_v25  ;;  %v8656_v27 = vpop.f32.mrb[23].mxu0 }
 0x337   :  { %9371 = vst.msk [vmem:[%s17158_s4 + $0x40] sm:$0xf] %vm9354_vm7, %v10611_v30  ;;  %v10612_v38 = vpack.c.bf16 %v9051_v63, %v9051_v63  ;;  %v8919_v39 = vmul.f32 %v11602_v58, %v16738_v46  ;;  %v11604_v4 = vadd.f32 %v8656_v27, %v16717_v49 }
 0x338   :  { %9374 = vst.msk [vmem:[%s17158_s4 + $0x4c] sm:$0xf] %vm9354_vm7, %v10614_v6  ;;  %v8992_v26 = vadd.f32 %v16743_v60, %v8921_v59  ;;  %v8922_v25 = vmul.f32 %v11603_v11, %v16738_v46 }
 0x339   :  { %9372 = vst.msk [vmem:[%s17158_s4 + $0x44] sm:$0xf] %vm9354_vm7, %v10612_v38  ;;  %v8990_v51 = vadd.f32 %v16743_v60, %v8919_v39  ;;  %v8920_v55 = vmul.f32 %v11604_v4, %v16738_v46 }
 0x33a   :  { %v9056_v41 = vmax.f32 %v8992_v26, 0.0  ;;  %v8993_v49 = vadd.f32 %v16743_v60, %v8922_v25 }
 0x33b   :  { %v9054_v24 = vmax.f32 %v8990_v51, 0.0  ;;  %v8991_v34 = vadd.f32 %v16743_v60, %v8920_v55  ;;  %v11539_v50 = vpop.f32.mrb[24].mxu0 }
 0x33c   :  { %v10617_v45 = vpack.c.bf16 %v9056_v41, %v9056_v41  ;;  %v9057_v54 = vmax.f32 %v8993_v49, 0.0  ;;  %v11605_v57 = vadd.f32 %v11539_v50, %v16719_v36  ;;  %v8669_v43 = vpop.f32.mrb[25].mxu0 }
 0x33d   :  { %v10615_v14 = vpack.c.bf16 %v9054_v24, %v9054_v24  ;;  %v9055_v32 = vmax.f32 %v8991_v34, 0.0  ;;  %v11606_v0 = vadd.f32 %v8669_v43, %v16721_v12  ;;  %v11540_v23 = vpop.f32.mrb[26].mxu0 }
 0x33e   :  { %9377 = vst.msk [vmem:[%s17158_s4 + $0x58] sm:$0xf] %vm9354_vm7, %v10617_v45  ;;  %v10618_v16 = vpack.c.bf16 %v9057_v54, %v9057_v54  ;;  %v8925_v3 = vmul.f32 %v11605_v57, %v16738_v46  ;;  %v11607_v31 = vadd.f32 %v11540_v23, %v16723_v42  ;;  %v8672_v21 = vpop.f32.mrb[27].mxu0 }
 0x33f   :  { %9375 = vst.msk [vmem:[%s17158_s4 + $0x50] sm:$0xf] %vm9354_vm7, %v10615_v14  ;;  %v10616_v36 = vpack.c.bf16 %v9055_v32, %v9055_v32  ;;  %v8923_v12 = vmul.f32 %v11606_v0, %v16738_v46  ;;  %v11608_v48 = vadd.f32 %v8672_v21, %v16725_v22 }
 0x340   :  { %9378 = vst.msk [vmem:[%s17158_s4 + $0x5c] sm:$0xf] %vm9354_vm7, %v10618_v16  ;;  %v8996_v18 = vadd.f32 %v16743_v60, %v8925_v3  ;;  %v8926_v42 = vmul.f32 %v11607_v31, %v16738_v46 }
 0x341   :  { %9376 = vst.msk [vmem:[%s17158_s4 + $0x54] sm:$0xf] %vm9354_vm7, %v10616_v36  ;;  %v8994_v56 = vadd.f32 %v16743_v60, %v8923_v12  ;;  %v8924_v13 = vmul.f32 %v11608_v48, %v16738_v46 }
 0x342   :  { %v9060_v47 = vmax.f32 %v8996_v18, 0.0  ;;  %v8997_v22 = vadd.f32 %v16743_v60, %v8926_v42 }
 0x343   :  { %v9058_v28 = vmax.f32 %v8994_v56, 0.0  ;;  %v8995_v7 = vadd.f32 %v16743_v60, %v8924_v13  ;;  %v11543_v15 = vpop.f32.mrb[28].mxu0 }
 0x344   :  { %v10621_v2 = vpack.c.bf16 %v9060_v47, %v9060_v47  ;;  %v9061_v8 = vmax.f32 %v8997_v22, 0.0  ;;  %v11609_v5 = vadd.f32 %v11543_v15, %v16727_v53  ;;  %v8685_v10 = vpop.f32.mrb[29].mxu0 }
 0x345   :  { %v10619_v37 = vpack.c.bf16 %v9058_v28, %v9058_v28  ;;  %v9059_v20 = vmax.f32 %v8995_v7, 0.0  ;;  %v11610_v35 = vadd.f32 %v8685_v10, %v16729_v17  ;;  %v11544_v19 = vpop.f32.mrb[30].mxu0 }
 0x346   :  { %9381 = vst.msk [vmem:[%s17158_s4 + $0x68] sm:$0xf] %vm9354_vm7, %v10621_v2  ;;  %v10622_v61 = vpack.c.bf16 %v9061_v8, %v9061_v8  ;;  %v8929_v62 = vmul.f32 %v11609_v5, %v16738_v46  ;;  %v11611_v9 = vadd.f32 %v11544_v19, %v16731_v44  ;;  %v8688_v33 = vpop.f32.mrb[31].mxu0 }
 0x347   :  { %9379 = vst.msk [vmem:[%s17158_s4 + $0x60] sm:$0xf] %vm9354_vm7, %v10619_v37  ;;  %v10620_v53 = vpack.c.bf16 %v9059_v20, %v9059_v20  ;;  %v8927_v17 = vmul.f32 %v11610_v35, %v16738_v46  ;;  %v11612_v1 = vadd.f32 %v8688_v33, %v16733_v40 }
 0x348   :  { %9382 = vst.msk [vmem:[%s17158_s4 + $0x6c] sm:$0xf] %vm9354_vm7, %v10622_v61  ;;  %v9000_v29 = vadd.f32 %v16743_v60, %v8929_v62  ;;  %v8930_v44 = vmul.f32 %v11611_v9, %v16738_v46 }
 0x349   :  { %9380 = vst.msk [vmem:[%s17158_s4 + $0x64] sm:$0xf] %vm9354_vm7, %v10620_v53  ;;  %v8998_v30 = vadd.f32 %v16743_v60, %v8927_v17  ;;  %v8928_v63 = vmul.f32 %v11612_v1, %v16738_v46 }
 0x34a   :  { %v9064_v58 = vmax.f32 %v9000_v29, 0.0  ;;  %v9001_v40 = vadd.f32 %v16743_v60, %v8930_v44  ;;  %v11275_v52 = vpop.f32.mrb[32].mxu1 }
 0x34b   :  { %v9062_v6 = vmax.f32 %v8998_v30, 0.0  ;;  %v8999_v59 = vadd.f32 %v16743_v60, %v8928_v63  ;;  %v11547_v11 = vpop.f32.mrb[32].mxu0  ;;  %v4756_v27 = vpop.f32.mrb[33].mxu1 }
 0x34c   :  { %v10625_v38 = vpack.c.bf16 %v9064_v58, %v9064_v58  ;;  %v9065_v39 = vmax.f32 %v9001_v40, 0.0  ;;  %v11613_v4 = vadd.f32 %v11547_v11, %v11275_v52  ;;  %v8701_v26 = vpop.f32.mrb[33].mxu0  ;;  %v11276_v25 = vpop.f32.mrb[34].mxu1 }
 0x34d   :  { %v10623_v51 = vpack.c.bf16 %v9062_v6, %v9062_v6  ;;  %v9063_v55 = vmax.f32 %v8999_v59, 0.0  ;;  %v11614_v41 = vadd.f32 %v8701_v26, %v4756_v27  ;;  %v11548_v49 = vpop.f32.mrb[34].mxu0  ;;  %v4759_v24 = vpop.f32.mrb[35].mxu1 }
 0x34e   :  { %9385 = vst.msk [vmem:[%s17158_s4 + $0x78] sm:$0xf] %vm9354_vm7, %v10625_v38  ;;  %v10626_v34 = vpack.c.bf16 %v9065_v39, %v9065_v39  ;;  %v8933_v50 = vmul.f32 %v11613_v4, %v16738_v46  ;;  %v11615_v45 = vadd.f32 %v11548_v49, %v11276_v25  ;;  %v8704_v54 = vpop.f32.mrb[35].mxu0 }
 0x34f   :  { %9383 = vst.msk [vmem:[%s17158_s4 + $0x70] sm:$0xf] %vm9354_vm7, %v10623_v51  ;;  %v10624_v57 = vpack.c.bf16 %v9063_v55, %v9063_v55  ;;  %v8931_v43 = vmul.f32 %v11614_v41, %v16738_v46  ;;  %v11616_v14 = vadd.f32 %v8704_v54, %v4759_v24 }
 0x350   :  { %9386 = vst.msk [vmem:[%s17158_s4 + $0x7c] sm:$0xf] %vm9354_vm7, %v10626_v34  ;;  %v9004_v32 = vadd.f32 %v16743_v60, %v8933_v50  ;;  %v8934_v0 = vmul.f32 %v11615_v45, %v16738_v46 }
 0x351   :  { %9384 = vst.msk [vmem:[%s17158_s4 + $0x74] sm:$0xf] %vm9354_vm7, %v10624_v57  ;;  %v9002_v23 = vadd.f32 %v16743_v60, %v8931_v43  ;;  %v8932_v16 = vmul.f32 %v11616_v14, %v16738_v46 }
 0x352   :  { %v9068_v3 = vmax.f32 %v9004_v32, 0.0  ;;  %v9005_v31 = vadd.f32 %v16743_v60, %v8934_v0  ;;  %v11279_v21 = vpop.f32.mrb[36].mxu1 }
 0x353   :  { %v9066_v36 = vmax.f32 %v9002_v23, 0.0  ;;  %v9003_v12 = vadd.f32 %v16743_v60, %v8932_v16  ;;  %v11551_v48 = vpop.f32.mrb[36].mxu0  ;;  %v4772_v18 = vpop.f32.mrb[37].mxu1 }
 0x354   :  { %v10629_v42 = vpack.c.bf16 %v9068_v3, %v9068_v3  ;;  %v9069_v56 = vmax.f32 %v9005_v31, 0.0  ;;  %v11617_v13 = vadd.f32 %v11551_v48, %v11279_v21  ;;  %v8717_v47 = vpop.f32.mrb[37].mxu0  ;;  %v11280_v22 = vpop.f32.mrb[38].mxu1 }
 0x355   :  { %v10627_v28 = vpack.c.bf16 %v9066_v36, %v9066_v36  ;;  %v9067_v7 = vmax.f32 %v9003_v12, 0.0  ;;  %v11618_v15 = vadd.f32 %v8717_v47, %v4772_v18  ;;  %v11552_v2 = vpop.f32.mrb[38].mxu0  ;;  %v4775_v8 = vpop.f32.mrb[39].mxu1 }
 0x356   :  { %9389 = vst.msk [vmem:[%s17158_s4 + $0x88] sm:$0xf] %vm9354_vm7, %v10629_v42  ;;  %v10630_v5 = vpack.c.bf16 %v9069_v56, %v9069_v56  ;;  %v8937_v10 = vmul.f32 %v11617_v13, %v16738_v46  ;;  %v11619_v37 = vadd.f32 %v11552_v2, %v11280_v22  ;;  %v8720_v20 = vpop.f32.mrb[39].mxu0 }
 0x357   :  { %9387 = vst.msk [vmem:[%s17158_s4 + $0x80] sm:$0xf] %vm9354_vm7, %v10627_v28  ;;  %v10628_v35 = vpack.c.bf16 %v9067_v7, %v9067_v7  ;;  %v8935_v19 = vmul.f32 %v11618_v15, %v16738_v46  ;;  %v11620_v61 = vadd.f32 %v8720_v20, %v4775_v8 }
 0x358   :  { %9390 = vst.msk [vmem:[%s17158_s4 + $0x8c] sm:$0xf] %vm9354_vm7, %v10630_v5  ;;  %v9008_v62 = vadd.f32 %v16743_v60, %v8937_v10  ;;  %v8938_v9 = vmul.f32 %v11619_v37, %v16738_v46 }
 0x359   :  { %9388 = vst.msk [vmem:[%s17158_s4 + $0x84] sm:$0xf] %vm9354_vm7, %v10628_v35  ;;  %v9006_v33 = vadd.f32 %v16743_v60, %v8935_v19  ;;  %v8936_v53 = vmul.f32 %v11620_v61, %v16738_v46 }
 0x35a   :  { %v9072_v17 = vmax.f32 %v9008_v62, 0.0  ;;  %v9009_v1 = vadd.f32 %v16743_v60, %v8938_v9  ;;  %v11283_v29 = vpop.f32.mrb[40].mxu1 }
 0x35b   :  { %v9070_v44 = vmax.f32 %v9006_v33, 0.0  ;;  %v9007_v30 = vadd.f32 %v16743_v60, %v8936_v53  ;;  %v11555_v63 = vpop.f32.mrb[40].mxu0  ;;  %v4788_v58 = vpop.f32.mrb[41].mxu1 }
 0x35c   :  { %v10633_v40 = vpack.c.bf16 %v9072_v17, %v9072_v17  ;;  %v9073_v52 = vmax.f32 %v9009_v1, 0.0  ;;  %v11621_v6 = vadd.f32 %v11555_v63, %v11283_v29  ;;  %v8733_v59 = vpop.f32.mrb[41].mxu0  ;;  %v11284_v11 = vpop.f32.mrb[42].mxu1 }
 0x35d   :  { %v10631_v27 = vpack.c.bf16 %v9070_v44, %v9070_v44  ;;  %v9071_v38 = vmax.f32 %v9007_v30, 0.0  ;;  %v11622_v39 = vadd.f32 %v8733_v59, %v4788_v58  ;;  %v11556_v4 = vpop.f32.mrb[42].mxu0  ;;  %v4791_v26 = vpop.f32.mrb[43].mxu1 }
 0x35e   :  { %9393 = vst.msk [vmem:[%s17158_s4 + $0x98] sm:$0xf] %vm9354_vm7, %v10633_v40  ;;  %v10634_v25 = vpack.c.bf16 %v9073_v52, %v9073_v52  ;;  %v8941_v51 = vmul.f32 %v11621_v6, %v16738_v46  ;;  %v11623_v55 = vadd.f32 %v11556_v4, %v11284_v11  ;;  %v8736_v41 = vpop.f32.mrb[43].mxu0 }
 0x35f   :  { %9391 = vst.msk [vmem:[%s17158_s4 + $0x90] sm:$0xf] %vm9354_vm7, %v10631_v27  ;;  %v10632_v49 = vpack.c.bf16 %v9071_v38, %v9071_v38  ;;  %v8939_v24 = vmul.f32 %v11622_v39, %v16738_v46  ;;  %v11624_v34 = vadd.f32 %v8736_v41, %v4791_v26 }
 0x360   :  { %9394 = vst.msk [vmem:[%s17158_s4 + $0x9c] sm:$0xf] %vm9354_vm7, %v10634_v25  ;;  %v9012_v50 = vadd.f32 %v16743_v60, %v8941_v51  ;;  %v8942_v45 = vmul.f32 %v11623_v55, %v16738_v46 }
 0x361   :  { %9392 = vst.msk [vmem:[%s17158_s4 + $0x94] sm:$0xf] %vm9354_vm7, %v10632_v49  ;;  %v9010_v54 = vadd.f32 %v16743_v60, %v8939_v24  ;;  %v8940_v57 = vmul.f32 %v11624_v34, %v16738_v46 }
 0x362   :  { %v9076_v43 = vmax.f32 %v9012_v50, 0.0  ;;  %v9013_v14 = vadd.f32 %v16743_v60, %v8942_v45  ;;  %v11287_v32 = vpop.f32.mrb[44].mxu1 }
 0x363   :  { %v9074_v0 = vmax.f32 %v9010_v54, 0.0  ;;  %v9011_v23 = vadd.f32 %v16743_v60, %v8940_v57  ;;  %v11559_v16 = vpop.f32.mrb[44].mxu0  ;;  %v4804_v3 = vpop.f32.mrb[45].mxu1 }
 0x364   :  { %v10637_v31 = vpack.c.bf16 %v9076_v43, %v9076_v43  ;;  %v9077_v21 = vmax.f32 %v9013_v14, 0.0  ;;  %v11625_v36 = vadd.f32 %v11559_v16, %v11287_v32  ;;  %v8749_v12 = vpop.f32.mrb[45].mxu0  ;;  %v11288_v48 = vpop.f32.mrb[46].mxu1 }
 0x365   :  { %v10635_v18 = vpack.c.bf16 %v9074_v0, %v9074_v0  ;;  %v9075_v42 = vmax.f32 %v9011_v23, 0.0  ;;  %v11626_v56 = vadd.f32 %v8749_v12, %v4804_v3  ;;  %v11560_v13 = vpop.f32.mrb[46].mxu0  ;;  %v4807_v47 = vpop.f32.mrb[47].mxu1 }
 0x366   :  { %9397 = vst.msk [vmem:[%s17158_s4 + $0xa8] sm:$0xf] %vm9354_vm7, %v10637_v31  ;;  %v10638_v22 = vpack.c.bf16 %v9077_v21, %v9077_v21  ;;  %v8945_v28 = vmul.f32 %v11625_v36, %v16738_v46  ;;  %v11627_v7 = vadd.f32 %v11560_v13, %v11288_v48  ;;  %v8752_v15 = vpop.f32.mrb[47].mxu0 }
 0x367   :  { %9395 = vst.msk [vmem:[%s17158_s4 + $0xa0] sm:$0xf] %vm9354_vm7, %v10635_v18  ;;  %v10636_v2 = vpack.c.bf16 %v9075_v42, %v9075_v42  ;;  %v8943_v8 = vmul.f32 %v11626_v56, %v16738_v46  ;;  %v11628_v5 = vadd.f32 %v8752_v15, %v4807_v47 }
 0x368   :  { %9398 = vst.msk [vmem:[%s17158_s4 + $0xac] sm:$0xf] %vm9354_vm7, %v10638_v22  ;;  %v9016_v10 = vadd.f32 %v16743_v60, %v8945_v28  ;;  %v8946_v37 = vmul.f32 %v11627_v7, %v16738_v46 }
 0x369   :  { %9396 = vst.msk [vmem:[%s17158_s4 + $0xa4] sm:$0xf] %vm9354_vm7, %v10636_v2  ;;  %v9014_v20 = vadd.f32 %v16743_v60, %v8943_v8  ;;  %v8944_v35 = vmul.f32 %v11628_v5, %v16738_v46 }
 0x36a   :  { %v9080_v19 = vmax.f32 %v9016_v10, 0.0  ;;  %v9017_v61 = vadd.f32 %v16743_v60, %v8946_v37  ;;  %v11291_v62 = vpop.f32.mrb[48].mxu1 }
 0x36b   :  { %v9078_v9 = vmax.f32 %v9014_v20, 0.0  ;;  %v9015_v33 = vadd.f32 %v16743_v60, %v8944_v35  ;;  %v11563_v53 = vpop.f32.mrb[48].mxu0  ;;  %v4820_v17 = vpop.f32.mrb[49].mxu1 }
 0x36c   :  { %v10641_v1 = vpack.c.bf16 %v9080_v19, %v9080_v19  ;;  %v9081_v29 = vmax.f32 %v9017_v61, 0.0  ;;  %v11629_v44 = vadd.f32 %v11563_v53, %v11291_v62  ;;  %v8765_v30 = vpop.f32.mrb[49].mxu0  ;;  %v11292_v63 = vpop.f32.mrb[50].mxu1 }
 0x36d   :  { %v10639_v58 = vpack.c.bf16 %v9078_v9, %v9078_v9  ;;  %v9079_v40 = vmax.f32 %v9015_v33, 0.0  ;;  %v11630_v52 = vadd.f32 %v8765_v30, %v4820_v17  ;;  %v11564_v6 = vpop.f32.mrb[50].mxu0  ;;  %v4823_v59 = vpop.f32.mrb[51].mxu1 }
 0x36e   :  { %9401 = vst.msk [vmem:[%s17158_s4 + $0xb8] sm:$0xf] %vm9354_vm7, %v10641_v1  ;;  %v10642_v11 = vpack.c.bf16 %v9081_v29, %v9081_v29  ;;  %v8949_v27 = vmul.f32 %v11629_v44, %v16738_v46  ;;  %v11631_v38 = vadd.f32 %v11564_v6, %v11292_v63  ;;  %v8768_v39 = vpop.f32.mrb[51].mxu0 }
 0x36f   :  { %9399 = vst.msk [vmem:[%s17158_s4 + $0xb0] sm:$0xf] %vm9354_vm7, %v10639_v58  ;;  %v10640_v4 = vpack.c.bf16 %v9079_v40, %v9079_v40  ;;  %v8947_v26 = vmul.f32 %v11630_v52, %v16738_v46  ;;  %v11632_v25 = vadd.f32 %v8768_v39, %v4823_v59 }
 0x370   :  { %9402 = vst.msk [vmem:[%s17158_s4 + $0xbc] sm:$0xf] %vm9354_vm7, %v10642_v11  ;;  %v9020_v51 = vadd.f32 %v16743_v60, %v8949_v27  ;;  %v8950_v55 = vmul.f32 %v11631_v38, %v16738_v46 }
 0x371   :  { %9400 = vst.msk [vmem:[%s17158_s4 + $0xb4] sm:$0xf] %vm9354_vm7, %v10640_v4  ;;  %v9018_v41 = vadd.f32 %v16743_v60, %v8947_v26  ;;  %v8948_v49 = vmul.f32 %v11632_v25, %v16738_v46 }
 0x372   :  { %v9084_v24 = vmax.f32 %v9020_v51, 0.0  ;;  %v9021_v34 = vadd.f32 %v16743_v60, %v8950_v55  ;;  %v11295_v50 = vpop.f32.mrb[52].mxu1 }
 0x373   :  { %v9082_v45 = vmax.f32 %v9018_v41, 0.0  ;;  %v9019_v54 = vadd.f32 %v16743_v60, %v8948_v49  ;;  %v11567_v57 = vpop.f32.mrb[52].mxu0  ;;  %v4836_v43 = vpop.f32.mrb[53].mxu1 }
 0x374   :  { %v10645_v14 = vpack.c.bf16 %v9084_v24, %v9084_v24  ;;  %v9085_v32 = vmax.f32 %v9021_v34, 0.0  ;;  %v11633_v0 = vadd.f32 %v11567_v57, %v11295_v50  ;;  %v8781_v23 = vpop.f32.mrb[53].mxu0  ;;  %v11296_v16 = vpop.f32.mrb[54].mxu1 }
 0x375   :  { %v10643_v3 = vpack.c.bf16 %v9082_v45, %v9082_v45  ;;  %v9083_v31 = vmax.f32 %v9019_v54, 0.0  ;;  %v11634_v21 = vadd.f32 %v8781_v23, %v4836_v43  ;;  %v11568_v36 = vpop.f32.mrb[54].mxu0  ;;  %v4839_v12 = vpop.f32.mrb[55].mxu1 }
 0x376   :  { %9405 = vst.msk [vmem:[%s17158_s4 + $0xc8] sm:$0xf] %vm9354_vm7, %v10645_v14  ;;  %v10646_v48 = vpack.c.bf16 %v9085_v32, %v9085_v32  ;;  %v8953_v18 = vmul.f32 %v11633_v0, %v16738_v46  ;;  %v11635_v42 = vadd.f32 %v11568_v36, %v11296_v16  ;;  %v8784_v56 = vpop.f32.mrb[55].mxu0 }
 0x377   :  { %9403 = vst.msk [vmem:[%s17158_s4 + $0xc0] sm:$0xf] %vm9354_vm7, %v10643_v3  ;;  %v10644_v13 = vpack.c.bf16 %v9083_v31, %v9083_v31  ;;  %v8951_v47 = vmul.f32 %v11634_v21, %v16738_v46  ;;  %v11636_v22 = vadd.f32 %v8784_v56, %v4839_v12 }
 0x378   :  { %9406 = vst.msk [vmem:[%s17158_s4 + $0xcc] sm:$0xf] %vm9354_vm7, %v10646_v48  ;;  %v9024_v28 = vadd.f32 %v16743_v60, %v8953_v18  ;;  %v8954_v7 = vmul.f32 %v11635_v42, %v16738_v46 }
 0x379   :  { %9404 = vst.msk [vmem:[%s17158_s4 + $0xc4] sm:$0xf] %vm9354_vm7, %v10644_v13  ;;  %v9022_v15 = vadd.f32 %v16743_v60, %v8951_v47  ;;  %v8952_v2 = vmul.f32 %v11636_v22, %v16738_v46 }
 0x37a   :  { %v9088_v8 = vmax.f32 %v9024_v28, 0.0  ;;  %v9025_v5 = vadd.f32 %v16743_v60, %v8954_v7  ;;  %v11299_v10 = vpop.f32.mrb[56].mxu1 }
 0x37b   :  { %v9086_v37 = vmax.f32 %v9022_v15, 0.0  ;;  %v9023_v20 = vadd.f32 %v16743_v60, %v8952_v2  ;;  %v11571_v35 = vpop.f32.mrb[56].mxu0  ;;  %v4852_v19 = vpop.f32.mrb[57].mxu1 }
 0x37c   :  { %v10649_v61 = vpack.c.bf16 %v9088_v8, %v9088_v8  ;;  %v9089_v62 = vmax.f32 %v9025_v5, 0.0  ;;  %v11637_v9 = vadd.f32 %v11571_v35, %v11299_v10  ;;  %v8797_v33 = vpop.f32.mrb[57].mxu0  ;;  %v11300_v53 = vpop.f32.mrb[58].mxu1 }
 0x37d   :  { %v10647_v17 = vpack.c.bf16 %v9086_v37, %v9086_v37  ;;  %v9087_v1 = vmax.f32 %v9023_v20, 0.0  ;;  %v11638_v29 = vadd.f32 %v8797_v33, %v4852_v19  ;;  %v11572_v44 = vpop.f32.mrb[58].mxu0  ;;  %v4855_v30 = vpop.f32.mrb[59].mxu1 }
 0x37e   :  { %9409 = vst.msk [vmem:[%s17158_s4 + $0xd8] sm:$0xf] %vm9354_vm7, %v10649_v61  ;;  %v10650_v63 = vpack.c.bf16 %v9089_v62, %v9089_v62  ;;  %v8957_v58 = vmul.f32 %v11637_v9, %v16738_v46  ;;  %v11639_v40 = vadd.f32 %v11572_v44, %v11300_v53  ;;  %v8800_v52 = vpop.f32.mrb[59].mxu0 }
 0x37f   :  { %9407 = vst.msk [vmem:[%s17158_s4 + $0xd0] sm:$0xf] %vm9354_vm7, %v10647_v17  ;;  %v10648_v6 = vpack.c.bf16 %v9087_v1, %v9087_v1  ;;  %v8955_v59 = vmul.f32 %v11638_v29, %v16738_v46  ;;  %v11640_v11 = vadd.f32 %v8800_v52, %v4855_v30 }
 0x380   :  { %9410 = vst.msk [vmem:[%s17158_s4 + $0xdc] sm:$0xf] %vm9354_vm7, %v10650_v63  ;;  %v9028_v27 = vadd.f32 %v16743_v60, %v8957_v58  ;;  %v8958_v38 = vmul.f32 %v11639_v40, %v16738_v46 }
 0x381   :  { %9408 = vst.msk [vmem:[%s17158_s4 + $0xd4] sm:$0xf] %vm9354_vm7, %v10648_v6  ;;  %v9026_v39 = vadd.f32 %v16743_v60, %v8955_v59  ;;  %v8956_v4 = vmul.f32 %v11640_v11, %v16738_v46 }
 0x382   :  { %v9092_v26 = vmax.f32 %v9028_v27, 0.0  ;;  %v9029_v25 = vadd.f32 %v16743_v60, %v8958_v38  ;;  %v11303_v51 = vpop.f32.mrb[60].mxu1 }
 0x383   :  { %v9090_v55 = vmax.f32 %v9026_v39, 0.0  ;;  %v9027_v41 = vadd.f32 %v16743_v60, %v8956_v4  ;;  %v11575_v49 = vpop.f32.mrb[60].mxu0  ;;  %v4868_v24 = vpop.f32.mrb[61].mxu1 }
 0x384   :  { %v10653_v34 = vpack.c.bf16 %v9092_v26, %v9092_v26  ;;  %v9093_v50 = vmax.f32 %v9029_v25, 0.0  ;;  %v11641_v45 = vadd.f32 %v11575_v49, %v11303_v51  ;;  %v8813_v54 = vpop.f32.mrb[61].mxu0  ;;  %v11304_v57 = vpop.f32.mrb[62].mxu1 }
 0x385   :  { %v10651_v43 = vpack.c.bf16 %v9090_v55, %v9090_v55  ;;  %v9091_v14 = vmax.f32 %v9027_v41, 0.0  ;;  %v11642_v32 = vadd.f32 %v8813_v54, %v4868_v24  ;;  %v11576_v0 = vpop.f32.mrb[62].mxu0  ;;  %v4871_v23 = vpop.f32.mrb[63].mxu1 }
 0x386   :  { %9413 = vst.msk [vmem:[%s17158_s4 + $0xe8] sm:$0xf] %vm9354_vm7, %v10653_v34  ;;  %v10654_v16 = vpack.c.bf16 %v9093_v50, %v9093_v50  ;;  %v8961_v3 = vmul.f32 %v11641_v45, %v16738_v46  ;;  %v11643_v31 = vadd.f32 %v11576_v0, %v11304_v57  ;;  %v8816_v21 = vpop.f32.mrb[63].mxu0 }
 0x387   :  { %9411 = vst.msk [vmem:[%s17158_s4 + $0xe0] sm:$0xf] %vm9354_vm7, %v10651_v43  ;;  %v10652_v36 = vpack.c.bf16 %v9091_v14, %v9091_v14  ;;  %v8959_v12 = vmul.f32 %v11642_v32, %v16738_v46  ;;  %v11644_v48 = vadd.f32 %v8816_v21, %v4871_v23 }
 0x388   :  { %9414 = vst.msk [vmem:[%s17158_s4 + $0xec] sm:$0xf] %vm9354_vm7, %v10654_v16  ;;  %v9032_v18 = vadd.f32 %v16743_v60, %v8961_v3  ;;  %v8962_v42 = vmul.f32 %v11643_v31, %v16738_v46 }
 0x389   :  { %9412 = vst.msk [vmem:[%s17158_s4 + $0xe4] sm:$0xf] %vm9354_vm7, %v10652_v36  ;;  %v9030_v56 = vadd.f32 %v16743_v60, %v8959_v12  ;;  %v8960_v13 = vmul.f32 %v11644_v48, %v16738_v46 }
 0x38a   :  { %v9096_v47 = vmax.f32 %v9032_v18, 0.0  ;;  %v9033_v22 = vadd.f32 %v16743_v60, %v8962_v42 }
 0x38b   :  { %v9094_v28 = vmax.f32 %v9030_v56, 0.0  ;;  %v9031_v7 = vadd.f32 %v16743_v60, %v8960_v13 }
 0x38c   :  { %v10657_v15 = vpack.c.bf16 %v9096_v47, %v9096_v47  ;;  %v9097_v2 = vmax.f32 %v9033_v22, 0.0 }
 0x38d   :  { %v10655_v8 = vpack.c.bf16 %v9094_v28, %v9094_v28  ;;  %v9095_v5 = vmax.f32 %v9031_v7, 0.0 }
 0x38e   :  { %9417 = vst.msk [vmem:[%s17158_s4 + $0xf8] sm:$0xf] %vm9354_vm7, %v10657_v15  ;;  %v10658_v10 = vpack.c.bf16 %v9097_v2, %v9097_v2 }
 0x38f   :  { %9415 = vst.msk [vmem:[%s17158_s4 + $0xf0] sm:$0xf] %vm9354_vm7, %v10655_v8  ;;  %v10656_v46 = vpack.c.bf16 %v9095_v5, %v9095_v5 }
 0x390   :  { %9418 = vst.msk [vmem:[%s17158_s4 + $0xfc] sm:$0xf] %vm9354_vm7, %v10658_v10 }
 0x391   :  { %9416 = vst.msk [vmem:[%s17158_s4 + $0xf4] sm:$0xf] %vm9354_vm7, %v10656_v46 }

</bundles_post_ra>
